<compile_context>
chip_gen: v7x
topology: tpu7x:2x2x1
jax: 0.10.0
libtpu: 0.0.40
codegen_flags: <defaults>
</compile_context>

<pallas_src>
import functools

import numpy as np
import jax
import jax.numpy as jnp
from jax.experimental import pallas as pl
from jax.experimental.pallas import tpu as pltpu


# ------------------------------ Pallas kernel --------------------------------

def _lenet5_kernel(xs_ref,
                   a1_ref, b1_ref,
                   a2_ref, b2_ref,
                   a3_ref, b3_ref,
                   pc_ref, prs_ref, w12_ref, b12_ref,
                   out_ref):
    """Whole LeNet5 forward for one image; all intermediates live in VMEM."""
    f32, bf16 = jnp.float32, jnp.bfloat16

    def conv_relu(x_bf, a_ref, b_ref):
        # x_bf: (K, W) bf16.  a_ref: (KW, M, K) bf16.  Returns f32 (M, OW).
        kw = a_ref.shape[0]
        ow = x_bf.shape[1] - kw + 1
        acc = jnp.dot(a_ref[0], x_bf[:, 0:ow], preferred_element_type=f32)
        for kj in range(1, kw):
            acc = acc + jnp.dot(a_ref[kj], x_bf[:, kj:kj + ow],
                                preferred_element_type=f32)
        return jnp.maximum(acc + b_ref[...], 0.0)

    def lane_avg_pool(z_f32):
        # 2-wide / stride-2 average pool along the lane (width) axis, done as
        # banded 256-wide blocks against the shared (256, 128) pool matrix.
        # Output pieces are 128-wide (lane aligned) except the final remainder.
        w = z_f32.shape[1]
        pieces = []
        start = 0
        while start < w:
            wb = min(256, w - start)
            blk = jnp.dot(z_f32[:, start:start + wb].astype(bf16),
                          pc_ref[:wb, :wb // 2], preferred_element_type=f32)
            pieces.append(blk.astype(bf16))
            start += wb
        return jnp.concatenate(pieces, axis=-1) if len(pieces) > 1 else pieces[0]

    # conv1: kj taps folded into the contraction axis (single K=180 matmul).
    z = jnp.maximum(jnp.dot(a1_ref[...], xs_ref[...], preferred_element_type=f32)
                    + b1_ref[...], 0.0)                               # (192, 984)
    # pool1 width half (VPU-cheap banded matmul) -> conv2 (pool1 row half is
    # folded into a2), then the same for pool2 / conv3.
    z = conv_relu(lane_avg_pool(z), a2_ref, b2_ref)                   # (192, 488)
    z = conv_relu(lane_avg_pool(z), a3_ref, b3_ref)                   # (240, 240)

    # pool3 row half (ones matrix), then fused [pool3 column half * 0.25 ->
    # linear1 -> linear2] in a single matmul against W12 (classes padded to 128).
    rs = jnp.dot(prs_ref[...], z.astype(bf16), preferred_element_type=f32)   # (120, 240)
    out_ref[...] = (jnp.dot(rs.astype(bf16), w12_ref[...],
                            preferred_element_type=f32) + b12_ref[...])      # (120, 128)


# ------------------------- host-side weight folding --------------------------

def prepare_params(params, x_shape):
    """Fold PyTorch-layout weights into the matrices the kernel consumes.

    Done once with numpy on the host, outside the per-forward path.
    """
    p = {k: np.asarray(v, np.float32) for k, v in params.items()}
    _, c, h, w = x_shape
    prep = {}
    pr_prev = None       # previous layer's (row-pool) fold matrix
    kw1 = None

    for li, name in enumerate(["conv1", "conv2", "conv3"], start=1):
        wgt, bias = p[f"{name}_w"], p[f"{name}_b"]
        o, cin, kh, kw = wgt.shape
        assert cin == c, (cin, c)
        oh, ow = h - kh + 1, w - kw + 1
        assert oh % 2 == 0 and ow % 2 == 0, (oh, ow)

        # A_kj[o*OH + y, c*H + y + ki] = W[o, c, ki, kj]
        a = np.zeros((kw, o * oh, cin * h), np.float32)
        rows = np.arange(o)[:, None] * oh      # (O, 1)
        cols = np.arange(cin)[None, :] * h     # (1, C)
        for kj in range(kw):
            for ki in range(kh):
                for y in range(oh):
                    a[kj, rows + y, cols + y + ki] = wgt[:, :, ki, kj]

        if pr_prev is not None:
            # Fold the previous layer's height-pair average (0.5 weights) into
            # this conv's weights: exact (pool is linear, sits after the ReLU).
            a = a @ pr_prev                              # (kw, o*oh, prev_rows)

        if li == 1:
            kw1 = kw
            # conv1: fold the kj taps into K -> one (O*OH, KW*C*H) matrix.
            prep["A1"] = jnp.asarray(np.concatenate(list(a), axis=1), jnp.bfloat16)
        else:
            prep[f"A{li}"] = jnp.asarray(a, jnp.bfloat16)
        prep[f"b{li}"] = jnp.asarray(np.repeat(bias, oh)[:, None], jnp.float32)

        poh = oh // 2
        r = np.arange(o * poh)
        oi, py = r // poh, r % poh
        if li < 3:
            pr = np.zeros((o * poh, o * oh), np.float32)
            pr[r, oi * oh + 2 * py] = 0.5
            pr[r, oi * oh + 2 * py + 1] = 0.5
            pr_prev = pr
        else:
            # pool3 row half: plain sums (0.25 lives in the fused linear).
            prs = np.zeros((o * poh, o * oh), np.float32)
            prs[r, oi * oh + 2 * py] = 1.0
            prs[r, oi * oh + 2 * py + 1] = 1.0
            prep["PRS"] = jnp.asarray(prs, jnp.bfloat16)
        c, h, w = o, poh, ow // 2

    # Shared width-pool block matrix: PC[i, j] = 0.5 for i in {2j, 2j+1}.
    pc = np.zeros((256, 128), np.float32)
    j = np.arange(128)
    pc[2 * j, j] = 0.5
    pc[2 * j + 1, j] = 0.5
    prep["PC"] = jnp.asarray(pc, jnp.bfloat16)

    # Fused linear1+linear2 with pool3's width-average (and its 0.25) folded in.
    w_l1, b_l1 = p["linear1_w"], p["linear1_b"]      # (84, 120), (84,)
    w_l2, b_l2 = p["linear2_w"], p["linear2_b"]      # (10, 84), (10,)
    assert w_l1.shape[1] == w, (w_l1.shape, w)
    w1wide = 0.25 * np.repeat(w_l1, 2, axis=1).T     # (240, 84)
    w12 = w1wide @ w_l2.T                            # (240, 10)
    b12 = b_l1 @ w_l2.T + b_l2                       # (10,)
    n_cls, n_pad = int(b12.shape[0]), 128
    w12p = np.zeros((w12.shape[0], n_pad), np.float32)
    w12p[:, :n_cls] = w12
    b12p = np.zeros((1, n_pad), np.float32)
    b12p[0, :n_cls] = b12
    prep["W12"] = jnp.asarray(w12p, jnp.bfloat16)
    prep["B12"] = jnp.asarray(b12p, jnp.float32)

    meta = {"out_c": c, "n_cls": n_cls, "n_pad": n_pad, "kw1": kw1}
    return prep, meta


# ------------------------------ forward wrapper -------------------------------

_CONST_NAMES = ("A1", "b1", "A2", "b2", "A3", "b3", "PC", "PRS", "W12", "B12")


def lenet5_forward(x, prep, *, meta):
    n, c, h, w = x.shape
    assert c == 1
    kw = meta["kw1"]
    ow1 = w - kw + 1
    x2 = x.reshape(n, h, w)
    # conv1's kj taps are folded into K: build the (KW*H, OW1) shifted slab
    # with plain XLA ops outside the kernel (cheap, fused by XLA).
    slab = jnp.concatenate([x2[:, :, kj:kj + ow1] for kj in range(kw)],
                           axis=1).astype(jnp.bfloat16)          # (n, kw*h, ow1)

    consts = [prep[k] for k in _CONST_NAMES]
    out_c, n_pad, n_cls = meta["out_c"], meta["n_pad"], meta["n_cls"]

    def _const_spec(a):
        zeros = (0,) * a.ndim
        return pl.BlockSpec(a.shape, lambda i, _z=zeros: _z)

    out = pl.pallas_call(
        _lenet5_kernel,
        out_shape=jax.ShapeDtypeStruct((n, out_c, n_pad), jnp.float32),
        grid=(n,),
        in_specs=[pl.BlockSpec((None, kw * h, ow1), lambda i: (i, 0, 0))]
                + [_const_spec(a) for a in consts],
        out_specs=pl.BlockSpec((None, out_c, n_pad), lambda i: (i, 0, 0)),
        compiler_params=pltpu.CompilerParams(
            dimension_semantics=("parallel",),
            vmem_limit_bytes=32 * 1024 * 1024),
    )(slab, *consts)
    return out[:, :, :n_cls].reshape(n, out_c, 1, n_cls)


# ------------------------ deterministic parameters ---------------------------

def init_params(key):
    ks = jax.random.split(key, 10)

    def t(k, shape, scale):
        return (scale * jax.random.normal(k, shape)).astype(jnp.float32)

    return {
        "conv1_w": t(ks[0], (6, 1, 5, 5), 0.2),
        "conv1_b": t(ks[1], (6,), 0.1),
        "conv2_w": t(ks[2], (16, 6, 5, 5), 0.1),
        "conv2_b": t(ks[3], (16,), 0.1),
        "conv3_w": t(ks[4], (120, 16, 5, 5), 0.05),
        "conv3_b": t(ks[5], (120,), 0.05),
        "linear1_w": t(ks[6], (84, 120), 0.1),
        "linear1_b": t(ks[7], (84,), 0.1),
        "linear2_w": t(ks[8], (10, 84), 0.1),
        "linear2_b": t(ks[9], (10,), 0.1),
    }


# --------------------------- pure-JAX reference -------------------------------

def lenet5_reference(x, p):
    def conv(x, w, b):
        y = jax.lax.conv_general_dilated(x, w, (1, 1), "VALID")
        return jnp.maximum(y + b[None, :, None, None], 0.0)

    def pool(x):
        return 0.25 * (x[:, :, 0::2, 0::2] + x[:, :, 0::2, 1::2]
                       + x[:, :, 1::2, 0::2] + x[:, :, 1::2, 1::2])

    out = pool(conv(x, p["conv1_w"], p["conv1_b"]))
    out = pool(conv(out, p["conv2_w"], p["conv2_b"]))
    out = pool(conv(out, p["conv3_w"], p["conv3_b"]))
    out = out @ p["linear1_w"].T + p["linear1_b"]
    out = out @ p["linear2_w"].T + p["linear2_b"]
    return out


if __name__ == "__main__":
    key = jax.random.PRNGKey(0)
    pkey, xkey = jax.random.split(key)
    params = init_params(pkey)
    # Input width 988 so the width after pool3 is exactly 120, as required by
    # nn.Linear(120, 84) being applied without a flatten (see layout note).
    x = jax.random.normal(xkey, (2, 1, 36, 988), dtype=jnp.float32)

    prep, meta = prepare_params(params, x.shape)      # one-time weight folding
    fwd = jax.jit(functools.partial(lenet5_forward, meta=meta))

    out = jax.block_until_ready(fwd(x, prep))
    assert out.shape == (2, 120, 1, 10), out.shape

    ref = lenet5_reference(x, params)
    np.testing.assert_allclose(np.asarray(out), np.asarray(ref),
                               rtol=2e-2, atol=2e-2)
    print("KERNEL_OK")
</pallas_src>

<mosaic_0001>
module attributes {stable_mosaic.version = 11 : i64} {
  func.func @_lenet5_kernel(%arg0: i32, %arg1: memref<1x180x984xbf16, #tpu.memory_space<vmem>>, %arg2: memref<192x180xbf16, #tpu.memory_space<vmem>>, %arg3: memref<192x1xf32, #tpu.memory_space<vmem>>, %arg4: memref<5x192x192xbf16, #tpu.memory_space<vmem>>, %arg5: memref<192x1xf32, #tpu.memory_space<vmem>>, %arg6: memref<5x240x192xbf16, #tpu.memory_space<vmem>>, %arg7: memref<240x1xf32, #tpu.memory_space<vmem>>, %arg8: memref<256x128xbf16, #tpu.memory_space<vmem>>, %arg9: memref<120x240xbf16, #tpu.memory_space<vmem>>, %arg10: memref<240x128xbf16, #tpu.memory_space<vmem>>, %arg11: memref<1x128xf32, #tpu.memory_space<vmem>>, %arg12: memref<1x120x128xf32, #tpu.memory_space<vmem>>) attributes {dimension_semantics = [#tpu.dimension_semantics<parallel>], iteration_bounds = array<i64: 2>, scalar_prefetch = 0 : i64, scratch_operands = 0 : i64, tpu.core_type = #tpu.core_type<tc>, window_params = [{transform_indices = @transform_0, window_bounds = array<i64: 1, 180, 984>}, {pipeline_mode = #tpu.pipeline_mode<synchronous>, transform_indices = @transform_1, window_bounds = array<i64: 192, 180>}, {pipeline_mode = #tpu.pipeline_mode<synchronous>, transform_indices = @transform_2, window_bounds = array<i64: 192, 1>}, {pipeline_mode = #tpu.pipeline_mode<synchronous>, transform_indices = @transform_3, window_bounds = array<i64: 5, 192, 192>}, {pipeline_mode = #tpu.pipeline_mode<synchronous>, transform_indices = @transform_4, window_bounds = array<i64: 192, 1>}, {pipeline_mode = #tpu.pipeline_mode<synchronous>, transform_indices = @transform_5, window_bounds = array<i64: 5, 240, 192>}, {pipeline_mode = #tpu.pipeline_mode<synchronous>, transform_indices = @transform_6, window_bounds = array<i64: 240, 1>}, {pipeline_mode = #tpu.pipeline_mode<synchronous>, transform_indices = @transform_7, window_bounds = array<i64: 256, 128>}, {pipeline_mode = #tpu.pipeline_mode<synchronous>, transform_indices = @transform_8, window_bounds = array<i64: 120, 240>}, {pipeline_mode = #tpu.pipeline_mode<synchronous>, transform_indices = @transform_9, window_bounds = array<i64: 240, 128>}, {pipeline_mode = #tpu.pipeline_mode<synchronous>, transform_indices = @transform_10, window_bounds = array<i64: 1, 128>}, {transform_indices = @transform_11, window_bounds = array<i64: 1, 120, 128>}]} {
    %c0 = arith.constant 0 : index
    %c0_0 = arith.constant 0 : index
    %0 = vector.load %arg2[%c0, %c0_0] : memref<192x180xbf16, #tpu.memory_space<vmem>>, vector<192x180xbf16>
    %c0_1 = arith.constant 0 : index
    %c0_2 = arith.constant 0 : index
    %c0_3 = arith.constant 0 : index
    %1 = vector.load %arg1[%c0_1, %c0_2, %c0_3] : memref<1x180x984xbf16, #tpu.memory_space<vmem>>, vector<1x180x984xbf16>
    %2 = vector.shape_cast %1 : vector<1x180x984xbf16> to vector<180x984xbf16>
    %cst = arith.constant dense<0.000000e+00> : vector<192x984xf32>
    %3 = tpu.matmul %0, %2, %cst {dimension_numbers = #tpu.dot_dimension_numbers<[1], [0], [0], [1], [0, 0, 1, 1], [], []>} : vector<192x180xbf16>, vector<180x984xbf16>, vector<192x984xf32> -> vector<192x984xf32>
    %c0_4 = arith.constant 0 : index
    %c0_5 = arith.constant 0 : index
    %4 = vector.load %arg3[%c0_4, %c0_5] : memref<192x1xf32, #tpu.memory_space<vmem>>, vector<192x1xf32>
    %5 = vector.broadcast %4 : vector<192x1xf32> to vector<192x984xf32>
    %6 = arith.addf %3, %5 : vector<192x984xf32>
    %cst_6 = arith.constant 0.000000e+00 : f32
    %7 = vector.broadcast %cst_6 : f32 to vector<192x984xf32>
    %8 = arith.maximumf %6, %7 : vector<192x984xf32>
    %9 = vector.extract_strided_slice %8 {offsets = [0, 0], sizes = [192, 256], strides = [1, 1]} : vector<192x984xf32> to vector<192x256xf32>
    %10 = arith.truncf %9 : vector<192x256xf32> to vector<192x256xbf16>
    %c0_7 = arith.constant 0 : index
    %c0_8 = arith.constant 0 : index
    %11 = vector.load %arg8[%c0_7, %c0_8] : memref<256x128xbf16, #tpu.memory_space<vmem>>, vector<256x128xbf16>
    %cst_9 = arith.constant dense<0.000000e+00> : vector<192x128xf32>
    %12 = tpu.matmul %10, %11, %cst_9 {dimension_numbers = #tpu.dot_dimension_numbers<[1], [0], [0], [1], [0, 0, 1, 1], [], []>} : vector<192x256xbf16>, vector<256x128xbf16>, vector<192x128xf32> -> vector<192x128xf32>
    %13 = arith.truncf %12 : vector<192x128xf32> to vector<192x128xbf16>
    %14 = vector.extract_strided_slice %8 {offsets = [0, 256], sizes = [192, 256], strides = [1, 1]} : vector<192x984xf32> to vector<192x256xf32>
    %15 = arith.truncf %14 : vector<192x256xf32> to vector<192x256xbf16>
    %c0_10 = arith.constant 0 : index
    %c0_11 = arith.constant 0 : index
    %16 = vector.load %arg8[%c0_10, %c0_11] : memref<256x128xbf16, #tpu.memory_space<vmem>>, vector<256x128xbf16>
    %cst_12 = arith.constant dense<0.000000e+00> : vector<192x128xf32>
    %17 = tpu.matmul %15, %16, %cst_12 {dimension_numbers = #tpu.dot_dimension_numbers<[1], [0], [0], [1], [0, 0, 1, 1], [], []>} : vector<192x256xbf16>, vector<256x128xbf16>, vector<192x128xf32> -> vector<192x128xf32>
    %18 = arith.truncf %17 : vector<192x128xf32> to vector<192x128xbf16>
    %19 = vector.extract_strided_slice %8 {offsets = [0, 512], sizes = [192, 256], strides = [1, 1]} : vector<192x984xf32> to vector<192x256xf32>
    %20 = arith.truncf %19 : vector<192x256xf32> to vector<192x256xbf16>
    %c0_13 = arith.constant 0 : index
    %c0_14 = arith.constant 0 : index
    %21 = vector.load %arg8[%c0_13, %c0_14] : memref<256x128xbf16, #tpu.memory_space<vmem>>, vector<256x128xbf16>
    %cst_15 = arith.constant dense<0.000000e+00> : vector<192x128xf32>
    %22 = tpu.matmul %20, %21, %cst_15 {dimension_numbers = #tpu.dot_dimension_numbers<[1], [0], [0], [1], [0, 0, 1, 1], [], []>} : vector<192x256xbf16>, vector<256x128xbf16>, vector<192x128xf32> -> vector<192x128xf32>
    %23 = arith.truncf %22 : vector<192x128xf32> to vector<192x128xbf16>
    %24 = vector.extract_strided_slice %8 {offsets = [0, 768], sizes = [192, 216], strides = [1, 1]} : vector<192x984xf32> to vector<192x216xf32>
    %25 = arith.truncf %24 : vector<192x216xf32> to vector<192x216xbf16>
    %c0_16 = arith.constant 0 : index
    %c0_17 = arith.constant 0 : index
    %26 = vector.load %arg8[%c0_16, %c0_17] : memref<256x128xbf16, #tpu.memory_space<vmem>>, vector<216x108xbf16>
    %cst_18 = arith.constant dense<0.000000e+00> : vector<192x108xf32>
    %27 = tpu.matmul %25, %26, %cst_18 {dimension_numbers = #tpu.dot_dimension_numbers<[1], [0], [0], [1], [0, 0, 1, 1], [], []>} : vector<192x216xbf16>, vector<216x108xbf16>, vector<192x108xf32> -> vector<192x108xf32>
    %28 = arith.truncf %27 : vector<192x108xf32> to vector<192x108xbf16>
    %29 = tpu.concatenate %13, %18, %23, %28 in 1 : vector<192x128xbf16>, vector<192x128xbf16>, vector<192x128xbf16>, vector<192x108xbf16> -> vector<192x492xbf16>
    %c0_19 = arith.constant 0 : index
    %c0_20 = arith.constant 0 : index
    %c0_21 = arith.constant 0 : index
    %30 = vector.load %arg4[%c0_19, %c0_20, %c0_21] : memref<5x192x192xbf16, #tpu.memory_space<vmem>>, vector<1x192x192xbf16>
    %31 = vector.shape_cast %30 : vector<1x192x192xbf16> to vector<192x192xbf16>
    %32 = vector.extract_strided_slice %29 {offsets = [0, 0], sizes = [192, 488], strides = [1, 1]} : vector<192x492xbf16> to vector<192x488xbf16>
    %cst_22 = arith.constant dense<0.000000e+00> : vector<192x488xf32>
    %33 = tpu.matmul %31, %32, %cst_22 {dimension_numbers = #tpu.dot_dimension_numbers<[1], [0], [0], [1], [0, 0, 1, 1], [], []>} : vector<192x192xbf16>, vector<192x488xbf16>, vector<192x488xf32> -> vector<192x488xf32>
    %c1 = arith.constant 1 : index
    %c0_23 = arith.constant 0 : index
    %c0_24 = arith.constant 0 : index
    %34 = vector.load %arg4[%c1, %c0_23, %c0_24] : memref<5x192x192xbf16, #tpu.memory_space<vmem>>, vector<1x192x192xbf16>
    %35 = vector.shape_cast %34 : vector<1x192x192xbf16> to vector<192x192xbf16>
    %36 = vector.extract_strided_slice %29 {offsets = [0, 1], sizes = [192, 488], strides = [1, 1]} : vector<192x492xbf16> to vector<192x488xbf16>
    %cst_25 = arith.constant dense<0.000000e+00> : vector<192x488xf32>
    %37 = tpu.matmul %35, %36, %cst_25 {dimension_numbers = #tpu.dot_dimension_numbers<[1], [0], [0], [1], [0, 0, 1, 1], [], []>} : vector<192x192xbf16>, vector<192x488xbf16>, vector<192x488xf32> -> vector<192x488xf32>
    %38 = arith.addf %33, %37 : vector<192x488xf32>
    %c2 = arith.constant 2 : index
    %c0_26 = arith.constant 0 : index
    %c0_27 = arith.constant 0 : index
    %39 = vector.load %arg4[%c2, %c0_26, %c0_27] : memref<5x192x192xbf16, #tpu.memory_space<vmem>>, vector<1x192x192xbf16>
    %40 = vector.shape_cast %39 : vector<1x192x192xbf16> to vector<192x192xbf16>
    %41 = vector.extract_strided_slice %29 {offsets = [0, 2], sizes = [192, 488], strides = [1, 1]} : vector<192x492xbf16> to vector<192x488xbf16>
    %cst_28 = arith.constant dense<0.000000e+00> : vector<192x488xf32>
    %42 = tpu.matmul %40, %41, %cst_28 {dimension_numbers = #tpu.dot_dimension_numbers<[1], [0], [0], [1], [0, 0, 1, 1], [], []>} : vector<192x192xbf16>, vector<192x488xbf16>, vector<192x488xf32> -> vector<192x488xf32>
    %43 = arith.addf %38, %42 : vector<192x488xf32>
    %c3 = arith.constant 3 : index
    %c0_29 = arith.constant 0 : index
    %c0_30 = arith.constant 0 : index
    %44 = vector.load %arg4[%c3, %c0_29, %c0_30] : memref<5x192x192xbf16, #tpu.memory_space<vmem>>, vector<1x192x192xbf16>
    %45 = vector.shape_cast %44 : vector<1x192x192xbf16> to vector<192x192xbf16>
    %46 = vector.extract_strided_slice %29 {offsets = [0, 3], sizes = [192, 488], strides = [1, 1]} : vector<192x492xbf16> to vector<192x488xbf16>
    %cst_31 = arith.constant dense<0.000000e+00> : vector<192x488xf32>
    %47 = tpu.matmul %45, %46, %cst_31 {dimension_numbers = #tpu.dot_dimension_numbers<[1], [0], [0], [1], [0, 0, 1, 1], [], []>} : vector<192x192xbf16>, vector<192x488xbf16>, vector<192x488xf32> -> vector<192x488xf32>
    %48 = arith.addf %43, %47 : vector<192x488xf32>
    %c4 = arith.constant 4 : index
    %c0_32 = arith.constant 0 : index
    %c0_33 = arith.constant 0 : index
    %49 = vector.load %arg4[%c4, %c0_32, %c0_33] : memref<5x192x192xbf16, #tpu.memory_space<vmem>>, vector<1x192x192xbf16>
    %50 = vector.shape_cast %49 : vector<1x192x192xbf16> to vector<192x192xbf16>
    %51 = vector.extract_strided_slice %29 {offsets = [0, 4], sizes = [192, 488], strides = [1, 1]} : vector<192x492xbf16> to vector<192x488xbf16>
    %cst_34 = arith.constant dense<0.000000e+00> : vector<192x488xf32>
    %52 = tpu.matmul %50, %51, %cst_34 {dimension_numbers = #tpu.dot_dimension_numbers<[1], [0], [0], [1], [0, 0, 1, 1], [], []>} : vector<192x192xbf16>, vector<192x488xbf16>, vector<192x488xf32> -> vector<192x488xf32>
    %53 = arith.addf %48, %52 : vector<192x488xf32>
    %c0_35 = arith.constant 0 : index
    %c0_36 = arith.constant 0 : index
    %54 = vector.load %arg5[%c0_35, %c0_36] : memref<192x1xf32, #tpu.memory_space<vmem>>, vector<192x1xf32>
    %55 = vector.broadcast %54 : vector<192x1xf32> to vector<192x488xf32>
    %56 = arith.addf %53, %55 : vector<192x488xf32>
    %cst_37 = arith.constant 0.000000e+00 : f32
    %57 = vector.broadcast %cst_37 : f32 to vector<192x488xf32>
    %58 = arith.maximumf %56, %57 : vector<192x488xf32>
    %59 = vector.extract_strided_slice %58 {offsets = [0, 0], sizes = [192, 256], strides = [1, 1]} : vector<192x488xf32> to vector<192x256xf32>
    %60 = arith.truncf %59 : vector<192x256xf32> to vector<192x256xbf16>
    %c0_38 = arith.constant 0 : index
    %c0_39 = arith.constant 0 : index
    %61 = vector.load %arg8[%c0_38, %c0_39] : memref<256x128xbf16, #tpu.memory_space<vmem>>, vector<256x128xbf16>
    %cst_40 = arith.constant dense<0.000000e+00> : vector<192x128xf32>
    %62 = tpu.matmul %60, %61, %cst_40 {dimension_numbers = #tpu.dot_dimension_numbers<[1], [0], [0], [1], [0, 0, 1, 1], [], []>} : vector<192x256xbf16>, vector<256x128xbf16>, vector<192x128xf32> -> vector<192x128xf32>
    %63 = arith.truncf %62 : vector<192x128xf32> to vector<192x128xbf16>
    %64 = vector.extract_strided_slice %58 {offsets = [0, 256], sizes = [192, 232], strides = [1, 1]} : vector<192x488xf32> to vector<192x232xf32>
    %65 = arith.truncf %64 : vector<192x232xf32> to vector<192x232xbf16>
    %c0_41 = arith.constant 0 : index
    %c0_42 = arith.constant 0 : index
    %66 = vector.load %arg8[%c0_41, %c0_42] : memref<256x128xbf16, #tpu.memory_space<vmem>>, vector<232x116xbf16>
    %cst_43 = arith.constant dense<0.000000e+00> : vector<192x116xf32>
    %67 = tpu.matmul %65, %66, %cst_43 {dimension_numbers = #tpu.dot_dimension_numbers<[1], [0], [0], [1], [0, 0, 1, 1], [], []>} : vector<192x232xbf16>, vector<232x116xbf16>, vector<192x116xf32> -> vector<192x116xf32>
    %68 = arith.truncf %67 : vector<192x116xf32> to vector<192x116xbf16>
    %69 = tpu.concatenate %63, %68 in 1 : vector<192x128xbf16>, vector<192x116xbf16> -> vector<192x244xbf16>
    %c0_44 = arith.constant 0 : index
    %c0_45 = arith.constant 0 : index
    %c0_46 = arith.constant 0 : index
    %70 = vector.load %arg6[%c0_44, %c0_45, %c0_46] : memref<5x240x192xbf16, #tpu.memory_space<vmem>>, vector<1x240x192xbf16>
    %71 = vector.shape_cast %70 : vector<1x240x192xbf16> to vector<240x192xbf16>
    %72 = vector.extract_strided_slice %69 {offsets = [0, 0], sizes = [192, 240], strides = [1, 1]} : vector<192x244xbf16> to vector<192x240xbf16>
    %cst_47 = arith.constant dense<0.000000e+00> : vector<240x240xf32>
    %73 = tpu.matmul %71, %72, %cst_47 {dimension_numbers = #tpu.dot_dimension_numbers<[1], [0], [0], [1], [0, 0, 1, 1], [], []>} : vector<240x192xbf16>, vector<192x240xbf16>, vector<240x240xf32> -> vector<240x240xf32>
    %c1_48 = arith.constant 1 : index
    %c0_49 = arith.constant 0 : index
    %c0_50 = arith.constant 0 : index
    %74 = vector.load %arg6[%c1_48, %c0_49, %c0_50] : memref<5x240x192xbf16, #tpu.memory_space<vmem>>, vector<1x240x192xbf16>
    %75 = vector.shape_cast %74 : vector<1x240x192xbf16> to vector<240x192xbf16>
    %76 = vector.extract_strided_slice %69 {offsets = [0, 1], sizes = [192, 240], strides = [1, 1]} : vector<192x244xbf16> to vector<192x240xbf16>
    %cst_51 = arith.constant dense<0.000000e+00> : vector<240x240xf32>
    %77 = tpu.matmul %75, %76, %cst_51 {dimension_numbers = #tpu.dot_dimension_numbers<[1], [0], [0], [1], [0, 0, 1, 1], [], []>} : vector<240x192xbf16>, vector<192x240xbf16>, vector<240x240xf32> -> vector<240x240xf32>
    %78 = arith.addf %73, %77 : vector<240x240xf32>
    %c2_52 = arith.constant 2 : index
    %c0_53 = arith.constant 0 : index
    %c0_54 = arith.constant 0 : index
    %79 = vector.load %arg6[%c2_52, %c0_53, %c0_54] : memref<5x240x192xbf16, #tpu.memory_space<vmem>>, vector<1x240x192xbf16>
    %80 = vector.shape_cast %79 : vector<1x240x192xbf16> to vector<240x192xbf16>
    %81 = vector.extract_strided_slice %69 {offsets = [0, 2], sizes = [192, 240], strides = [1, 1]} : vector<192x244xbf16> to vector<192x240xbf16>
    %cst_55 = arith.constant dense<0.000000e+00> : vector<240x240xf32>
    %82 = tpu.matmul %80, %81, %cst_55 {dimension_numbers = #tpu.dot_dimension_numbers<[1], [0], [0], [1], [0, 0, 1, 1], [], []>} : vector<240x192xbf16>, vector<192x240xbf16>, vector<240x240xf32> -> vector<240x240xf32>
    %83 = arith.addf %78, %82 : vector<240x240xf32>
    %c3_56 = arith.constant 3 : index
    %c0_57 = arith.constant 0 : index
    %c0_58 = arith.constant 0 : index
    %84 = vector.load %arg6[%c3_56, %c0_57, %c0_58] : memref<5x240x192xbf16, #tpu.memory_space<vmem>>, vector<1x240x192xbf16>
    %85 = vector.shape_cast %84 : vector<1x240x192xbf16> to vector<240x192xbf16>
    %86 = vector.extract_strided_slice %69 {offsets = [0, 3], sizes = [192, 240], strides = [1, 1]} : vector<192x244xbf16> to vector<192x240xbf16>
    %cst_59 = arith.constant dense<0.000000e+00> : vector<240x240xf32>
    %87 = tpu.matmul %85, %86, %cst_59 {dimension_numbers = #tpu.dot_dimension_numbers<[1], [0], [0], [1], [0, 0, 1, 1], [], []>} : vector<240x192xbf16>, vector<192x240xbf16>, vector<240x240xf32> -> vector<240x240xf32>
    %88 = arith.addf %83, %87 : vector<240x240xf32>
    %c4_60 = arith.constant 4 : index
    %c0_61 = arith.constant 0 : index
    %c0_62 = arith.constant 0 : index
    %89 = vector.load %arg6[%c4_60, %c0_61, %c0_62] : memref<5x240x192xbf16, #tpu.memory_space<vmem>>, vector<1x240x192xbf16>
    %90 = vector.shape_cast %89 : vector<1x240x192xbf16> to vector<240x192xbf16>
    %91 = vector.extract_strided_slice %69 {offsets = [0, 4], sizes = [192, 240], strides = [1, 1]} : vector<192x244xbf16> to vector<192x240xbf16>
    %cst_63 = arith.constant dense<0.000000e+00> : vector<240x240xf32>
    %92 = tpu.matmul %90, %91, %cst_63 {dimension_numbers = #tpu.dot_dimension_numbers<[1], [0], [0], [1], [0, 0, 1, 1], [], []>} : vector<240x192xbf16>, vector<192x240xbf16>, vector<240x240xf32> -> vector<240x240xf32>
    %93 = arith.addf %88, %92 : vector<240x240xf32>
    %c0_64 = arith.constant 0 : index
    %c0_65 = arith.constant 0 : index
    %94 = vector.load %arg7[%c0_64, %c0_65] : memref<240x1xf32, #tpu.memory_space<vmem>>, vector<240x1xf32>
    %95 = vector.broadcast %94 : vector<240x1xf32> to vector<240x240xf32>
    %96 = arith.addf %93, %95 : vector<240x240xf32>
    %cst_66 = arith.constant 0.000000e+00 : f32
    %97 = vector.broadcast %cst_66 : f32 to vector<240x240xf32>
    %98 = arith.maximumf %96, %97 : vector<240x240xf32>
    %c0_67 = arith.constant 0 : index
    %c0_68 = arith.constant 0 : index
    %99 = vector.load %arg9[%c0_67, %c0_68] : memref<120x240xbf16, #tpu.memory_space<vmem>>, vector<120x240xbf16>
    %100 = arith.truncf %98 : vector<240x240xf32> to vector<240x240xbf16>
    %cst_69 = arith.constant dense<0.000000e+00> : vector<120x240xf32>
    %101 = tpu.matmul %99, %100, %cst_69 {dimension_numbers = #tpu.dot_dimension_numbers<[1], [0], [0], [1], [0, 0, 1, 1], [], []>} : vector<120x240xbf16>, vector<240x240xbf16>, vector<120x240xf32> -> vector<120x240xf32>
    %102 = arith.truncf %101 : vector<120x240xf32> to vector<120x240xbf16>
    %c0_70 = arith.constant 0 : index
    %c0_71 = arith.constant 0 : index
    %103 = vector.load %arg10[%c0_70, %c0_71] : memref<240x128xbf16, #tpu.memory_space<vmem>>, vector<240x128xbf16>
    %cst_72 = arith.constant dense<0.000000e+00> : vector<120x128xf32>
    %104 = tpu.matmul %102, %103, %cst_72 {dimension_numbers = #tpu.dot_dimension_numbers<[1], [0], [0], [1], [0, 0, 1, 1], [], []>} : vector<120x240xbf16>, vector<240x128xbf16>, vector<120x128xf32> -> vector<120x128xf32>
    %c0_73 = arith.constant 0 : index
    %c0_74 = arith.constant 0 : index
    %105 = vector.load %arg11[%c0_73, %c0_74] : memref<1x128xf32, #tpu.memory_space<vmem>>, vector<1x128xf32>
    %106 = vector.broadcast %105 : vector<1x128xf32> to vector<120x128xf32>
    %107 = arith.addf %104, %106 : vector<120x128xf32>
    %c0_75 = arith.constant 0 : index
    %c0_76 = arith.constant 0 : index
    %c0_77 = arith.constant 0 : index
    %108 = vector.load %arg12[%c0_75, %c0_76, %c0_77] : memref<1x120x128xf32, #tpu.memory_space<vmem>>, vector<1x120x128xf32>
    %109 = vector.shape_cast %108 : vector<1x120x128xf32> to vector<120x128xf32>
    %110 = vector.shape_cast %107 : vector<120x128xf32> to vector<1x120x128xf32>
    tpu.vector_store %arg12[%c0_75, %c0_76, %c0_77], %110 {strides = array<i32>} : memref<1x120x128xf32, #tpu.memory_space<vmem>>, vector<1x120x128xf32>,
    return
  }
  func.func @transform_0(%arg0: i32) -> (i32, i32, i32) {
    %c0_i32 = arith.constant 0 : i32
    %c0_i32_0 = arith.constant 0 : i32
    %c0_i32_1 = arith.constant 0 : i32
    return %arg0, %c0_i32, %c0_i32_0 : i32, i32, i32
  }
  func.func @transform_1(%arg0: i32) -> (i32, i32) {
    %c0_i32 = arith.constant 0 : i32
    %c0_i32_0 = arith.constant 0 : i32
    %c0_i32_1 = arith.constant 0 : i32
    return %c0_i32, %c0_i32_0 : i32, i32
  }
  func.func @transform_2(%arg0: i32) -> (i32, i32) {
    %c0_i32 = arith.constant 0 : i32
    %c0_i32_0 = arith.constant 0 : i32
    %c0_i32_1 = arith.constant 0 : i32
    return %c0_i32, %c0_i32_0 : i32, i32
  }
  func.func @transform_3(%arg0: i32) -> (i32, i32, i32) {
    %c0_i32 = arith.constant 0 : i32
    %c0_i32_0 = arith.constant 0 : i32
    %c0_i32_1 = arith.constant 0 : i32
    %c0_i32_2 = arith.constant 0 : i32
    return %c0_i32, %c0_i32_0, %c0_i32_1 : i32, i32, i32
  }
  func.func @transform_4(%arg0: i32) -> (i32, i32) {
    %c0_i32 = arith.constant 0 : i32
    %c0_i32_0 = arith.constant 0 : i32
    %c0_i32_1 = arith.constant 0 : i32
    return %c0_i32, %c0_i32_0 : i32, i32
  }
  func.func @transform_5(%arg0: i32) -> (i32, i32, i32) {
    %c0_i32 = arith.constant 0 : i32
    %c0_i32_0 = arith.constant 0 : i32
    %c0_i32_1 = arith.constant 0 : i32
    %c0_i32_2 = arith.constant 0 : i32
    return %c0_i32, %c0_i32_0, %c0_i32_1 : i32, i32, i32
  }
  func.func @transform_6(%arg0: i32) -> (i32, i32) {
    %c0_i32 = arith.constant 0 : i32
    %c0_i32_0 = arith.constant 0 : i32
    %c0_i32_1 = arith.constant 0 : i32
    return %c0_i32, %c0_i32_0 : i32, i32
  }
  func.func @transform_7(%arg0: i32) -> (i32, i32) {
    %c0_i32 = arith.constant 0 : i32
    %c0_i32_0 = arith.constant 0 : i32
    %c0_i32_1 = arith.constant 0 : i32
    return %c0_i32, %c0_i32_0 : i32, i32
  }
  func.func @transform_8(%arg0: i32) -> (i32, i32) {
    %c0_i32 = arith.constant 0 : i32
    %c0_i32_0 = arith.constant 0 : i32
    %c0_i32_1 = arith.constant 0 : i32
    return %c0_i32, %c0_i32_0 : i32, i32
  }
  func.func @transform_9(%arg0: i32) -> (i32, i32) {
    %c0_i32 = arith.constant 0 : i32
    %c0_i32_0 = arith.constant 0 : i32
    %c0_i32_1 = arith.constant 0 : i32
    return %c0_i32, %c0_i32_0 : i32, i32
  }
  func.func @transform_10(%arg0: i32) -> (i32, i32) {
    %c0_i32 = arith.constant 0 : i32
    %c0_i32_0 = arith.constant 0 : i32
    %c0_i32_1 = arith.constant 0 : i32
    return %c0_i32, %c0_i32_0 : i32, i32
  }
  func.func @transform_11(%arg0: i32) -> (i32, i32, i32) {
    %c0_i32 = arith.constant 0 : i32
    %c0_i32_0 = arith.constant 0 : i32
    %c0_i32_1 = arith.constant 0 : i32
    return %arg0, %c0_i32, %c0_i32_0 : i32, i32, i32
  }
}

</mosaic_0001>

<bundles_post_ra>
// kernel: lenet5_forward.1
= control target key start
LH: loop header
LB: loop body
LE: loop exit
PB: predicated region body
PF: predicated region fallthrough
CT: control target
= control target key end

     0   :  { %s13266_s17 = smov 0   ;;  %s17302_s0 = inlined_call_operand.vmem [shape: bf16[2,180,984], index: 0, kind: input, shape index: {}]   ;;  %s17303_s1 = inlined_call_operand.vmem [shape: bf16[192,180], index: 1, kind: input, shape index: {}]   ;;  %s17304_s2 = inlined_call_operand.vmem [shape: f32[192,1], index: 2, kind: input, shape index: {}]   ;;  %s17305_s3 = inlined_call_operand.vmem [shape: bf16[5,192,192], index: 3, kind: input, shape index: {}]   ;;  %s17306_s4 = inlined_call_operand.vmem [shape: f32[192,1], index: 4, kind: input, shape index: {}]   ;;  %s17307_s5 = inlined_call_operand.vmem [shape: bf16[5,240,192], index: 5, kind: input, shape index: {}]   ;;  %s17308_s6 = inlined_call_operand.vmem [shape: f32[240,1], index: 6, kind: input, shape index: {}]   ;;  %s17309_s7 = inlined_call_operand.vmem [shape: bf16[256,128], index: 7, kind: input, shape index: {}]   ;;  %s17310_s8 = inlined_call_operand.vmem [shape: bf16[120,240], index: 8, kind: input, shape index: {}]   ;;  %s17311_s9 = inlined_call_operand.vmem [shape: bf16[240,128], index: 9, kind: input, shape index: {}]   ;;  %s17312_s10 = inlined_call_operand.vmem [shape: f32[1,128], index: 10, kind: input, shape index: {}]   ;;  %s17313_s11 = inlined_call_operand.vmem [shape: f32[2,120,128], index: 11, kind: output, shape index: {}]  }
   0x1 LB: > { %s10668_s18 = sadd.s32 4294967295, %s13199_s17   ;;  %p10672_p0 = scmp.ge.s32.totalorder %s13199_s17, 1  ;;  %s13199_s17 = sphi %s13266_s17, %s21_s17  }
   0x2   : > { %p337_p1 = scmp.lt.s32.totalorder %s13199_s17, 3 }
   0x4   : > { %p338_p2 = pnand %p10672_p0, %p337_p1 }
   0x6   : > { %341 = sbr.rel (%p338_p2) target bundleno = 2917 (0xb65), region = 64 }
   0xd   : > { %p377_p3 = scmp.lt.s32.totalorder %s10668_s18, 1  ;;  %v12644_v0 = vld [vmem:[%s17303_s1 + $0x4] ss:$8 sps:$4 sm:$0xff]   ;;  %vm1216_vm0 = vcmask 424960   ;;  %v17314_v1 = vmov 0   ;;  %v506_v63 = vld [vmem:[%s17304_s2 + $0x10] sm:$0xff] }
   0xe   : > { %10796 = vmatprep.mubr.msk.bf16.mxu0 %vm1216_vm0, %v12644_v0  ;;  %10809 = vmatprep.mubr.msk.bf16.mxu1 %vm1216_vm0, %v12644_v0  ;;  %v504_v2 = vld [vmem:[%s17304_s2] sm:$0xff]  ;;  %v505_v61 = vld [vmem:[%s17304_s2 + $0x8] sm:$0xff]  ;;  %vm1253_vm1 = vcmask 1041408   ;;  %vm2874_vm2 = vcmask 1043456   ;;  %vm2837_vm3 = vcmask 719872   ;;  %s13202_s22 = smov 127  }
   0xf   : > { %s17429_s18 = smov (!%p377_p3, %s10668_s18), 1  ;;  %12638 = vset.pattern.permute.xlu0 %v17314_v1  ;;  %12639 = vset.pattern.permute.xlu1 %v17314_v1  ;;  %s13203_s23 = smov 126   ;;  %vm3405_vm4 = vcmask 523264   ;;  %vm3320_vm5 = vcmask 1039360   ;;  %vm4427_vm6 = vcmask 1031168   ;;  %vm5179_vm7 = vcmask 1022976  }
  0x10   : > { %s12623_s21 = smul.u32 736, %s17429_s18  ;;  %530 = vperm.xlu0 %12638, %v504_v2   ;;  %540 = vperm.xlu1 %12639, %v506_v63   ;;  %s13204_s27 = smov 125   ;;  %vm5931_vm8 = vcmask 1014784   ;;  %vm7095_vm9 = vcmask 850944   ;;  %vm10199_vm10 = vcmask 916480  }
  0x11   : > { %s13205_s28 = smov 124   ;;  %s12624_s15 = smul.u32 120, %s17429_s18 }
  0x12   : > { %s13287_s24 = scalar_lea.vmem %s17302_s0, %s12623_s21 }
  0x13   : > { %v412_v3 = vld [vmem:[%s13287_s24] sm:$0xff]  ;;  %v413_v5 = vld [vmem:[%s13287_s24 + $0x8] sm:$0xff]  ;;  %v430_v63 = vld [vmem:[%s13287_s24 + $0x90] sm:$0xff]  ;;  %s17282_s25 = scalar_lea.vmem %s17313_s11, %s12624_s15 }
  0x14   : > { %v416_v4 = vld [vmem:[%s13287_s24 + $0x20] sm:$0xff]  ;;  %v417_v7 = vld [vmem:[%s13287_s24 + $0x28] sm:$0xff]  ;;  %535 = vperm.xlu0 %12638, %v505_v61  }
  0x15   : > { %v10700_v6 = vcombine.high %v412_v3, %v416_v4  ;;  %v10699_v8 = vcombine.low %v412_v3, %v416_v4  ;;  %v420_v9 = vld [vmem:[%s13287_s24 + $0x40] sm:$0xff]  ;;  %v10702_v11 = vcombine.high %v413_v5, %v417_v7  ;;  %v10701_v12 = vcombine.low %v413_v5, %v417_v7  ;;  %v421_v14 = vld [vmem:[%s13287_s24 + $0x48] sm:$0xff] }
  0x16   : > { %v424_v10 = vld [vmem:[%s13287_s24 + $0x60] sm:$0xff]  ;;  %v425_v15 = vld [vmem:[%s13287_s24 + $0x68] sm:$0xff] }
  0x17   : > { %v10708_v13 = vcombine.high %v420_v9, %v424_v10  ;;  %v428_v16 = vld [vmem:[%s13287_s24 + $0x80] sm:$0xff]  ;;  %1278 = vmatprep.subr.bf16.mxu0 %v10700_v6  ;;  %v10710_v17 = vcombine.high %v421_v14, %v425_v15  ;;  %v429_v19 = vld [vmem:[%s13287_s24 + $0x88] sm:$0xff]  ;;  %1431 = vmatprep.subr.bf16.mxu1 %v10702_v11  ;;  %v10707_v21 = vcombine.low %v420_v9, %v424_v10  ;;  %v507_v9 = vld [vmem:[%s17304_s2 + $0x18] sm:$0xff] }
  0x18   : > { %v432_v18 = vld [vmem:[%s13287_s24 + $0xa0] sm:$0xff]  ;;  %v433_v20 = vld [vmem:[%s13287_s24 + $0xa8] sm:$0xff]  ;;  %1279 = vmatpush1.bf16.msra.mxu0 %v10699_v8  ;;  %1432 = vmatpush1.bf16.msra.mxu1 %v10701_v12  ;;  %v10709_v22 = vcombine.low %v421_v14, %v425_v15 }
  0x19   : > { %1280 = vmatprep.subr.bf16.mxu0 %v10708_v13  ;;  %v10716_v23 = vcombine.high %v428_v16, %v432_v18  ;;  %1433 = vmatprep.subr.bf16.mxu1 %v10710_v17  ;;  %v10718_v24 = vcombine.high %v429_v19, %v433_v20  ;;  %v436_v25 = vld [vmem:[%s13287_s24 + $0xc0] sm:$0xff]  ;;  %v437_v27 = vld [vmem:[%s13287_s24 + $0xc8] sm:$0xff]  ;;  %v10715_v29 = vcombine.low %v428_v16, %v432_v18  ;;  %v510_v13 = vld [vmem:[%s17304_s2 + $0x30] sm:$0xff] }
  0x1a   : > { %v440_v26 = vld [vmem:[%s13287_s24 + $0xe0] sm:$0xff]  ;;  %v441_v28 = vld [vmem:[%s13287_s24 + $0xe8] sm:$0xff]  ;;  %v10717_v30 = vcombine.low %v429_v19, %v433_v20  ;;  %545 = vperm.xlu1 %12639, %v507_v9   ;;  %v519_v9 = vld [vmem:[%s17304_s2 + $0x78] sm:$0xff] }
  0x1b   : > { %v10724_v31 = vcombine.high %v436_v25, %v440_v26  ;;  %v10726_v32 = vcombine.high %v437_v27, %v441_v28  ;;  %v444_v33 = vld [vmem:[%s13287_s24 + $0x100] sm:$0xff]  ;;  %v445_v35 = vld [vmem:[%s13287_s24 + $0x108] sm:$0xff]  ;;  %v10723_v37 = vcombine.low %v436_v25, %v440_v26  ;;  %v10725_v38 = vcombine.low %v437_v27, %v441_v28 }
  0x1c   : > { %1281 = vmatpush1.bf16.msra.mxu0 %v10707_v21  ;;  %1434 = vmatpush1.bf16.msra.mxu1 %v10709_v22  ;;  %v448_v34 = vld [vmem:[%s13287_s24 + $0x120] sm:$0xff]  ;;  %v449_v36 = vld [vmem:[%s13287_s24 + $0x128] sm:$0xff] }
  0x1d   : > { %1282 = vmatprep.subr.bf16.mxu0 %v10716_v23  ;;  %1435 = vmatprep.subr.bf16.mxu1 %v10718_v24  ;;  %v10732_v39 = vcombine.high %v444_v33, %v448_v34  ;;  %v10734_v40 = vcombine.high %v445_v35, %v449_v36  ;;  %v452_v41 = vld [vmem:[%s13287_s24 + $0x140] sm:$0xff]  ;;  %v453_v43 = vld [vmem:[%s13287_s24 + $0x148] sm:$0xff]  ;;  %v10731_v45 = vcombine.low %v444_v33, %v448_v34  ;;  %v514_v33 = vld [vmem:[%s17304_s2 + $0x50] sm:$0xff] }
  0x1e   : > { %v456_v42 = vld [vmem:[%s13287_s24 + $0x160] sm:$0xff]  ;;  %v457_v44 = vld [vmem:[%s13287_s24 + $0x168] sm:$0xff]  ;;  %v10733_v46 = vcombine.low %v445_v35, %v449_v36 }
  0x1f   : > { %v10740_v47 = vcombine.high %v452_v41, %v456_v42  ;;  %v10742_v48 = vcombine.high %v453_v43, %v457_v44  ;;  %v460_v49 = vld [vmem:[%s13287_s24 + $0x180] sm:$0xff]  ;;  %v461_v51 = vld [vmem:[%s13287_s24 + $0x188] sm:$0xff]  ;;  %v10739_v53 = vcombine.low %v452_v41, %v456_v42  ;;  %v10741_v54 = vcombine.low %v453_v43, %v457_v44 }
  0x20   : > { %1283 = vmatpush1.bf16.msra.mxu0 %v10715_v29  ;;  %1436 = vmatpush1.bf16.msra.mxu1 %v10717_v30  ;;  %v464_v50 = vld [vmem:[%s13287_s24 + $0x1a0] sm:$0xff]  ;;  %v465_v52 = vld [vmem:[%s13287_s24 + $0x1a8] sm:$0xff]  ;;  %v511_v29 = vld [vmem:[%s17304_s2 + $0x38] sm:$0xff] }
  0x21   : > { %1284 = vmatprep.subr.bf16.mxu0 %v10724_v31  ;;  %1437 = vmatprep.subr.bf16.mxu1 %v10726_v32  ;;  %v10748_v55 = vcombine.high %v460_v49, %v464_v50  ;;  %v10750_v56 = vcombine.high %v461_v51, %v465_v52  ;;  %v468_v57 = vld [vmem:[%s13287_s24 + $0x1c0] sm:$0xff]  ;;  %v469_v59 = vld [vmem:[%s13287_s24 + $0x1c8] sm:$0xff]  ;;  %v10747_v62 = vcombine.low %v460_v49, %v464_v50  ;;  %v515_v49 = vld [vmem:[%s17304_s2 + $0x58] sm:$0xff] }
  0x22   : > { %v472_v58 = vld [vmem:[%s13287_s24 + $0x1e0] sm:$0xff]  ;;  %v473_v60 = vld [vmem:[%s13287_s24 + $0x1e8] sm:$0xff]  ;;  %v10749_v0 = vcombine.low %v461_v51, %v465_v52 }
  0x23   : > { %v10756_v2 = vcombine.high %v468_v57, %v472_v58  ;;  %v508_v3 = vld [vmem:[%s17304_s2 + $0x20] sm:$0xff]  ;;  %v10758_v4 = vcombine.high %v469_v59, %v473_v60  ;;  %v477_v7 = vld [vmem:[%s13287_s24 + $0x208] sm:$0xff]  ;;  %v10755_v10 = vcombine.low %v468_v57, %v472_v58  ;;  %v10757_v11 = vcombine.low %v469_v59, %v473_v60  ;;  %v426_v57 = vld [vmem:[%s13287_s24 + $0x70] sm:$0xff] }
  0x24   : > { %1285 = vmatpush1.bf16.msra.mxu0 %v10723_v37  ;;  %1438 = vmatpush1.bf16.msra.mxu1 %v10725_v38  ;;  %v476_v5 = vld [vmem:[%s13287_s24 + $0x200] sm:$0xff]  ;;  %v481_v8 = vld [vmem:[%s13287_s24 + $0x228] sm:$0xff]  ;;  %v423_v58 = vld [vmem:[%s13287_s24 + $0x58] sm:$0xff] }
  0x25   : > { %1286 = vmatprep.subr.bf16.mxu0 %v10732_v39  ;;  %1439 = vmatprep.subr.bf16.mxu1 %v10734_v40  ;;  %v480_v6 = vld [vmem:[%s13287_s24 + $0x220] sm:$0xff]  ;;  %v10766_v14 = vcombine.high %v477_v7, %v481_v8  ;;  %v485_v17 = vld [vmem:[%s13287_s24 + $0x248] sm:$0xff]  ;;  %v10765_v21 = vcombine.low %v477_v7, %v481_v8  ;;  %v12647_v59 = vld [vmem:[%s17303_s1 + $0x14] ss:$8 sps:$4 sm:$0xff]  }
  0x26   : > { %550 = vperm.xlu0 %12638, %v508_v3   ;;  %v10764_v12 = vcombine.high %v476_v5, %v480_v6  ;;  %v484_v15 = vld [vmem:[%s13287_s24 + $0x240] sm:$0xff]  ;;  %v489_v18 = vld [vmem:[%s13287_s24 + $0x268] sm:$0xff]  ;;  %v10763_v20 = vcombine.low %v476_v5, %v480_v6  ;;  %v427_v60 = vld [vmem:[%s13287_s24 + $0x78] sm:$0xff] }
  0x27   : > { %v488_v16 = vld [vmem:[%s13287_s24 + $0x260] sm:$0xff]  ;;  %v509_v19 = vld [vmem:[%s17304_s2 + $0x28] sm:$0xff]  ;;  %v10774_v24 = vcombine.high %v485_v17, %v489_v18  ;;  %v10773_v31 = vcombine.low %v485_v17, %v489_v18  ;;  %v435_v5 = vld [vmem:[%s13287_s24 + $0xb8] sm:$0xff]  ;;  %v10714_v6 = vcombine.high %v423_v58, %v427_v60 }
  0x28   : > { %1287 = vmatpush1.bf16.msra.mxu0 %v10731_v45  ;;  %1440 = vmatpush1.bf16.msra.mxu1 %v10733_v46  ;;  %v10772_v22 = vcombine.high %v484_v15, %v488_v16  ;;  %v512_v23 = vld [vmem:[%s17304_s2 + $0x40] sm:$0xff]  ;;  %v493_v27 = vld [vmem:[%s13287_s24 + $0x288] sm:$0xff]  ;;  %v10771_v30 = vcombine.low %v484_v15, %v488_v16  ;;  %v414_v45 = vld [vmem:[%s13287_s24 + $0x10] sm:$0xff]  ;;  %v10713_v15 = vcombine.low %v423_v58, %v427_v60 }
  0x29   : > { %1288 = vmatprep.subr.bf16.mxu0 %v10740_v47  ;;  %1441 = vmatprep.subr.bf16.mxu1 %v10742_v48  ;;  %v492_v25 = vld [vmem:[%s13287_s24 + $0x280] sm:$0xff]  ;;  %v497_v28 = vld [vmem:[%s13287_s24 + $0x2a8] sm:$0xff]  ;;  %v418_v46 = vld [vmem:[%s13287_s24 + $0x30] sm:$0xff] }
  0x2a   : > { %560 = vperm.xlu0 %12638, %v510_v13   ;;  %v496_v26 = vld [vmem:[%s13287_s24 + $0x2a0] sm:$0xff]  ;;  %555 = vperm.xlu1 %12639, %v509_v19   ;;  %v10782_v34 = vcombine.high %v493_v27, %v497_v28  ;;  %v501_v36 = vld [vmem:[%s13287_s24 + $0x2c8] sm:$0x33]  ;;  %v10781_v39 = vcombine.low %v493_v27, %v497_v28  ;;  %v415_v47 = vld [vmem:[%s13287_s24 + $0x18] sm:$0xff]  ;;  %v10704_v52 = vcombine.high %v414_v45, %v418_v46 }
  0x2b   : > { %v10780_v32 = vcombine.high %v492_v25, %v496_v26  ;;  %v500_v35 = vld [vmem:[%s13287_s24 + $0x2c0] sm:$0x33]  ;;  %v513_v37 = vld [vmem:[%s17304_s2 + $0x48] sm:$0xff]  ;;  %v10779_v38 = vcombine.low %v492_v25, %v496_v26  ;;  %v10790_v43 = vcombine.high %v501_v36, %v501_v36  ;;  %v10789_v44 = vcombine.low %v501_v36, %v501_v36  ;;  %v419_v48 = vld [vmem:[%s13287_s24 + $0x38] sm:$0xff] }
  0x2c   : > { %1289 = vmatpush1.bf16.msra.mxu0 %v10739_v53  ;;  %1442 = vmatpush1.bf16.msra.mxu1 %v10741_v54  ;;  %v10788_v40 = vcombine.high %v500_v35, %v500_v35  ;;  %v10787_v41 = vcombine.low %v500_v35, %v500_v35  ;;  %v516_v42 = vld [vmem:[%s17304_s2 + $0x60] sm:$0xff]  ;;  %v518_v53 = vld [vmem:[%s17304_s2 + $0x70] sm:$0xff]  ;;  %v517_v61 = vld [vmem:[%s17304_s2 + $0x68] sm:$0xff] }
  0x2d   : > { %1290 = vmatprep.subr.bf16.mxu0 %v10748_v55  ;;  %1443 = vmatprep.subr.bf16.mxu1 %v10750_v56  ;;  %v12646_v51 = vld [vmem:[%s17303_s1] ss:$8 sps:$4 sm:$0xff]   ;;  %v1261_v54 = vsel %vm1253_vm1, %v10789_v44, 0  ;;  %v10706_v55 = vcombine.high %v415_v47, %v419_v48  ;;  %v422_v56 = vld [vmem:[%s13287_s24 + $0x50] sm:$0xff]  ;;  %v439_v16 = vld [vmem:[%s13287_s24 + $0xd8] sm:$0xff] }
  0x2e   : > { %570 = vperm.xlu0 %12638, %v512_v23   ;;  %565 = vperm.xlu1 %12639, %v511_v29   ;;  %v1255_v50 = vsel %vm1253_vm1, %v10787_v41, 0  ;;  %v10712_v3 = vcombine.high %v422_v56, %v426_v57  ;;  %v10711_v7 = vcombine.low %v422_v56, %v426_v57  ;;  %v520_v8 = vld [vmem:[%s17304_s2 + $0x80] sm:$0xff]  ;;  %v442_v13 = vld [vmem:[%s13287_s24 + $0xf0] sm:$0xff]  ;;  %v443_v17 = vld [vmem:[%s13287_s24 + $0xf8] sm:$0xff] }
  0x2f   : > { %v451_v25 = vld [vmem:[%s13287_s24 + $0x138] sm:$0xff]  ;;  %v522_v26 = vld [vmem:[%s17304_s2 + $0x90] sm:$0xff]  ;;  %v10730_v27 = vcombine.high %v439_v16, %v443_v17  ;;  %v13432_v28 = vld [vmem:[%s17303_s1 + $0x20] ss:$8 sps:$4 sm:$0xff]  }
  0x30   : > { %1291 = vmatpush1.bf16.msra.mxu0 %v10747_v62  ;;  %1444 = vmatpush1.bf16.msra.mxu1 %v10749_v0  ;;  %v10703_v62 = vcombine.low %v414_v45, %v418_v46  ;;  %v434_v0 = vld [vmem:[%s13287_s24 + $0xb0] sm:$0xff]  ;;  %v455_v36 = vld [vmem:[%s13287_s24 + $0x158] sm:$0xff]  ;;  %v524_v46 = vld [vmem:[%s17304_s2 + $0xa0] sm:$0xff] }
  0x31   : > { %1292 = vmatprep.subr.bf16.mxu0 %v10756_v2  ;;  %1445 = vmatprep.subr.bf16.mxu1 %v10758_v4  ;;  %v10705_v2 = vcombine.low %v415_v47, %v419_v48  ;;  %v431_v4 = vld [vmem:[%s13287_s24 + $0x98] sm:$0xff]  ;;  %v10719_v19 = vcombine.low %v430_v63, %v434_v0  ;;  %v466_v41 = vld [vmem:[%s13287_s24 + $0x1b0] sm:$0xff] }
  0x32   : > { %580 = vperm.xlu0 %12638, %v514_v33   ;;  %575 = vperm.xlu1 %12639, %v513_v37   ;;  %v10722_v18 = vcombine.high %v431_v4, %v435_v5  ;;  %v13442_v33 = vld [vmem:[%s17303_s1 + $0x34] ss:$8 sps:$4 sm:$0xff]  }
  0x33   : > { %v459_v37 = vld [vmem:[%s13287_s24 + $0x178] sm:$0xff]  ;;  %v478_v60 = vld [vmem:[%s13287_s24 + $0x210] sm:$0xff] }
  0x34   : > { %1293 = vmatpush1.bf16.msra.mxu0 %v10755_v10  ;;  %1446 = vmatpush1.bf16.msra.mxu1 %v10757_v11  ;;  %v12649_v10 = vld [vmem:[%s17303_s1 + $0x10] ss:$8 sps:$4 sm:$0xff]   ;;  %v10720_v11 = vcombine.high %v430_v63, %v434_v0  ;;  %v10746_v47 = vcombine.high %v455_v36, %v459_v37 }
  0x35   : > { %1294 = vmatprep.subr.bf16.mxu0 %v10764_v12  ;;  %1447 = vmatprep.subr.bf16.mxu1 %v10766_v14  ;;  %v438_v12 = vld [vmem:[%s13287_s24 + $0xd0] sm:$0xff]  ;;  %v12650_v14 = vld [vmem:[%s17303_s1 + $0x24] ss:$8 sps:$4 sm:$0xff]   ;;  %v463_v44 = vld [vmem:[%s13287_s24 + $0x198] sm:$0xff] }
  0x36   : > { %590 = vperm.xlu0 %12638, %v516_v42   ;;  %585 = vperm.xlu1 %12639, %v515_v49   ;;  %v10728_v23 = vcombine.high %v438_v12, %v442_v13  ;;  %v10727_v29 = vcombine.low %v438_v12, %v442_v13  ;;  %v467_v45 = vld [vmem:[%s13287_s24 + $0x1b8] sm:$0xff] }
  0x37   : > { %v523_v48 = vld [vmem:[%s17304_s2 + $0x98] sm:$0xff]  ;;  %v10754_v58 = vcombine.high %v463_v44, %v467_v45 }
  0x38   : > { %1295 = vmatpush1.bf16.msra.mxu0 %v10763_v20  ;;  %1448 = vmatpush1.bf16.msra.mxu1 %v10765_v21  ;;  %v446_v20 = vld [vmem:[%s13287_s24 + $0x110] sm:$0xff]  ;;  %v471_v56 = vld [vmem:[%s13287_s24 + $0x1d8] sm:$0xff] }
  0x39   : > { %1296 = vmatprep.subr.bf16.mxu0 %v10772_v22  ;;  %1449 = vmatprep.subr.bf16.mxu1 %v10774_v24  ;;  %v450_v21 = vld [vmem:[%s13287_s24 + $0x130] sm:$0xff]  ;;  %v10721_v22 = vcombine.low %v431_v4, %v435_v5  ;;  %v447_v24 = vld [vmem:[%s13287_s24 + $0x118] sm:$0xff]  ;;  %v525_v5 = vld [vmem:[%s17304_s2 + $0xa8] sm:$0xff] }
  0x3a   : > { %600 = vperm.xlu0 %12638, %v518_v53   ;;  %595 = vperm.xlu1 %12639, %v517_v61   ;;  %v10736_v35 = vcombine.high %v446_v20, %v450_v21  ;;  %v10737_v42 = vcombine.low %v447_v24, %v451_v25  ;;  %v13465_v49 = vld [vmem:[%s17303_s1 + $0x30] ss:$8 sps:$4 sm:$0xff]   ;;  %v13472_v53 = vld [vmem:[%s17303_s1 + $0x44] ss:$8 sps:$4 sm:$0xff]  }
  0x3b   : > { %v475_v57 = vld [vmem:[%s13287_s24 + $0x1f8] sm:$0xff]  ;;  %v482_v61 = vld [vmem:[%s13287_s24 + $0x230] sm:$0xff] }
  0x3c   : > { %1297 = vmatpush1.bf16.msra.mxu0 %v10771_v30  ;;  %1450 = vmatpush1.bf16.msra.mxu1 %v10773_v31  ;;  %v454_v30 = vld [vmem:[%s13287_s24 + $0x150] sm:$0xff]  ;;  %v479_v0 = vld [vmem:[%s13287_s24 + $0x218] sm:$0xff]  ;;  %v10768_v12 = vcombine.high %v478_v60, %v482_v61 }
  0x3d   : > { %1298 = vmatprep.subr.bf16.mxu0 %v10780_v32  ;;  %1451 = vmatprep.subr.bf16.mxu1 %v10782_v34  ;;  %v458_v31 = vld [vmem:[%s13287_s24 + $0x170] sm:$0xff]  ;;  %v521_v32 = vld [vmem:[%s17304_s2 + $0x88] sm:$0xff]  ;;  %v10729_v34 = vcombine.low %v439_v16, %v443_v17  ;;  %v487_v13 = vld [vmem:[%s13287_s24 + $0x258] sm:$0xff]  ;;  %v10767_v16 = vcombine.low %v478_v60, %v482_v61 }
  0x3e   : > { %610 = vperm.xlu0 %12638, %v520_v8   ;;  %605 = vperm.xlu1 %12639, %v519_v9   ;;  %v526_v4 = vld [vmem:[%s17304_s2 + $0xb0] sm:$0xff]  ;;  %v13173_v60 = vld [vmem:[%s17303_s1] ss:$8 sps:$4 sm:$0xff]  }
  0x3f   : > { %v486_v8 = vld [vmem:[%s13287_s24 + $0x250] sm:$0xff]  ;;  %v13656_v61 = vld [vmem:[%s17309_s7 + $0x8] sm:$0xff]  }
  0x40   : > { %1299 = vmatpush1.bf16.msra.mxu0 %v10779_v38  ;;  %1452 = vmatpush1.bf16.msra.mxu1 %v10781_v39  ;;  %v10738_v38 = vcombine.high %v447_v24, %v451_v25  ;;  %v10735_v39 = vcombine.low %v446_v20, %v450_v21  ;;  %v490_v9 = vld [vmem:[%s13287_s24 + $0x270] sm:$0xff]  ;;  %v495_v21 = vld [vmem:[%s13287_s24 + $0x298] sm:$0xff] }
  0x41   : > { %10795 = vmatprep.subr.msk.bf16.mxu0 %vm1253_vm1, %v10788_v40  ;;  %10808 = vmatprep.subr.msk.bf16.mxu1 %vm1253_vm1, %v10790_v43  ;;  %v462_v40 = vld [vmem:[%s13287_s24 + $0x190] sm:$0xff]  ;;  %v10744_v43 = vcombine.high %v454_v30, %v458_v31  ;;  %v10776_v20 = vcombine.high %v486_v8, %v490_v9 }
  0x42   : > { %620 = vperm.xlu0 %12638, %v522_v26   ;;  %615 = vperm.xlu1 %12639, %v521_v32   ;;  %v494_v17 = vld [vmem:[%s13287_s24 + $0x290] sm:$0xff]  ;;  %v10775_v26 = vcombine.low %v486_v8, %v490_v9  ;;  %v503_v32 = vld [vmem:[%s13287_s24 + $0x2d8] sm:$0x33]  ;;  %v13711_v8 = vld [vmem:[%s17309_s7 + $0x20] sm:$0xff]  }
  0x43   : > { %v13522_v25 = vld [vmem:[%s17303_s1 + $0x50] ss:$8 sps:$4 sm:$0xff]   ;;  %v13716_v9 = vld [vmem:[%s17309_s7 + $0x68] sm:$0xff]  }
  0x44   : > { %1301 = vmatpush1.bf16.msra.mxu0 %v1255_v50  ;;  %1454 = vmatpush1.bf16.msra.mxu1 %v1261_v54  ;;  %v10743_v50 = vcombine.low %v454_v30, %v458_v31  ;;  %v10745_v54 = vcombine.low %v455_v36, %v459_v37 }
  0x45   : > { %1584 = vmatprep.subr.bf16.mxu0 %v10704_v52  ;;  %1737 = vmatprep.subr.bf16.mxu1 %v10706_v55  ;;  %v474_v52 = vld [vmem:[%s13287_s24 + $0x1f0] sm:$0xff]  ;;  %v10752_v55 = vcombine.high %v462_v40, %v466_v41 }
  0x46   : > { %630 = vperm.xlu0 %12638, %v524_v46   ;;  %625 = vperm.xlu1 %12639, %v523_v48   ;;  %v13567_v46 = vld [vmem:[%s17303_s1 + $0x70] ss:$8 sps:$4 sm:$0xff]   ;;  %v13583_v48 = vld [vmem:[%s17303_s1 + $0x80] ss:$8 sps:$4 sm:$0xff]  }
  0x47   : > { %1311 = vmatmul.mubr.bf16.vlgmr.msra.gmra.mrb[0].mxu0 %v12646_v51  ;;  %1464 = vmatmul.mubr.bf16.vlgmr.msra.gmra.mrb[0].mxu1 %v12646_v51  ;;  %v470_v51 = vld [vmem:[%s13287_s24 + $0x1d0] sm:$0xff] }
  0x48   : > { %1585 = vmatpush1.bf16.msra.mxu0 %v10703_v62  ;;  %10797 = vmatprep.mubr.msk.bf16.mxu0 %vm1216_vm0, %v12647_v59  ;;  %v10753_v62 = vcombine.low %v463_v44, %v467_v45  ;;  %v10760_v63 = vcombine.high %v470_v51, %v474_v52 }
  0x49   : > { %10810 = vmatprep.mubr.msk.bf16.mxu1 %vm1216_vm0, %v12647_v59  ;;  %1738 = vmatpush1.bf16.msra.mxu1 %v10705_v2  ;;  %v10751_v59 = vcombine.low %v462_v40, %v466_v41  ;;  %v483_v2 = vld [vmem:[%s13287_s24 + $0x238] sm:$0xff]  ;;  %v10793_v40 = vcombine.low %v503_v32, %v503_v32  ;;  %v13538_v41 = vld [vmem:[%s17309_s7 + $0x40] sm:$0xff]  }
  0x4a   : > { %1586 = vmatprep.subr.bf16.mxu0 %v10712_v3  ;;  %1739 = vmatprep.subr.bf16.mxu1 %v10714_v6  ;;  %v10762_v3 = vcombine.high %v471_v56, %v475_v57  ;;  %v13495_v6 = vld [vmem:[%s17303_s1 + $0x40] ss:$8 sps:$4 sm:$0xff]  }
  0x4b   : > { %640 = vperm.xlu0 %12638, %v526_v4   ;;  %635 = vperm.xlu1 %12639, %v525_v5   ;;  %v1273_v45 = vsel %vm1253_vm1, %v10793_v40, 0  ;;  %v13692_v4 = vld [vmem:[%s17309_s7 + $0x18] sm:$0xff]   ;;  %v13176_v5 = vld [vmem:[%s17303_s1 + $0x24] ss:$8 sps:$4 sm:$0xff]  }
  0x4c   : > { %1587 = vmatpush1.bf16.msra.mxu0 %v10711_v7  ;;  %v10759_v7 = vcombine.low %v470_v51, %v474_v52  ;;  %v13599_v51 = vld [vmem:[%s17303_s1 + $0x90] ss:$8 sps:$4 sm:$0xff]   ;;  %v13604_v52 = vld [vmem:[%s17303_s1 + $0xa4] ss:$8 sps:$4 sm:$0xff]  }
  0x4d   : > { %1588 = vmatprep.subr.bf16.mxu0 %v10720_v11  ;;  %1740 = vmatpush1.bf16.msra.mxu1 %v10713_v15  ;;  %v10761_v11 = vcombine.low %v471_v56, %v475_v57  ;;  %v10770_v15 = vcombine.high %v479_v0, %v483_v2  ;;  %v13631_v56 = vld [vmem:[%s17303_s1 + $0xb0] ss:$8 sps:$4 sm:$0xff]   ;;  %v13172_v57 = vld [vmem:[%s17303_s1 + $0x4] ss:$8 sps:$4 sm:$0xff]  }
  0x4e   : > { %1741 = vmatprep.subr.bf16.mxu1 %v10722_v18  ;;  %v498_v18 = vld [vmem:[%s13287_s24 + $0x2b0] sm:$0xff] }
  0x4f   : > { %1321 = vmatmul.mubr.bf16.gmra.mrb[4].mxu0 %v12649_v10  ;;  %1474 = vmatmul.mubr.bf16.gmra.mrb[4].mxu1 %v12649_v10  ;;  %v13502_v10 = vld [vmem:[%s17303_s1 + $0x54] ss:$8 sps:$4 sm:$0xff]   ;;  %v10784_v31 = vcombine.high %v494_v17, %v498_v18 }
  0x50   : > { %10798 = vmatprep.mubr.msk.bf16.mxu0 %vm1216_vm0, %v12650_v14  ;;  %10811 = vmatprep.mubr.msk.bf16.mxu1 %vm1216_vm0, %v12650_v14  ;;  %v491_v14 = vld [vmem:[%s13287_s24 + $0x278] sm:$0xff] }
  0x51   : > { %1589 = vmatpush1.bf16.msra.mxu0 %v10719_v19  ;;  %1742 = vmatpush1.bf16.msra.mxu1 %v10721_v22  ;;  %v10769_v19 = vcombine.low %v479_v0, %v483_v2  ;;  %v499_v22 = vld [vmem:[%s13287_s24 + $0x2b8] sm:$0xff]  ;;  %v10778_v24 = vcombine.high %v487_v13, %v491_v14  ;;  %v10777_v30 = vcombine.low %v487_v13, %v491_v14  ;;  %v13675_v0 = vld [vmem:[%s17309_s7 + $0x10] sm:$0xff]  }
  0x52   : > { %1590 = vmatprep.subr.bf16.mxu0 %v10728_v23  ;;  %1743 = vmatprep.subr.bf16.mxu1 %v10730_v27  ;;  %v527_v23 = vld [vmem:[%s17304_s2 + $0xb8] sm:$0xff]  ;;  %v502_v27 = vld [vmem:[%s13287_s24 + $0x2d0] sm:$0x33]  ;;  %v10785_v36 = vcombine.low %v495_v21, %v499_v22 }
  0x53   : > { %645 = vperm.xlu1 %12639, %v527_v23   ;;  %v10792_v37 = vcombine.high %v502_v27, %v502_v27  ;;  %v13680_v2 = vld [vmem:[%s17309_s7 + $0x58] sm:$0xff]  }
  0x54   : > { %v13763_v13 = vld [vmem:[%s17309_s7 + $0x38] sm:$0xff]  }
  0x55   : > { %1591 = vmatpush1.bf16.msra.mxu0 %v10727_v29  ;;  %1744 = vmatpush1.bf16.msra.mxu1 %v10729_v34  ;;  %v13528_v29 = vld [vmem:[%s17303_s1 + $0x64] ss:$8 sps:$4 sm:$0xff]   ;;  %v10786_v34 = vcombine.high %v495_v21, %v499_v22 }
  0x56   : > { %1592 = vmatprep.subr.bf16.mxu0 %v10736_v35  ;;  %1745 = vmatprep.subr.bf16.mxu1 %v10738_v38  ;;  %v10783_v35 = vcombine.low %v494_v17, %v498_v18  ;;  %v10791_v38 = vcombine.low %v502_v27, %v502_v27 }
  0x57   : > { %1331 = vmatmul.mubr.bf16.gmra.mrb[8].mxu0 %v13432_v28  ;;  %1484 = vmatmul.mubr.bf16.gmra.mrb[8].mxu1 %v13432_v28 }
  0x58   : > { %10799 = vmatprep.mubr.msk.bf16.mxu0 %vm1216_vm0, %v13442_v33  ;;  %10812 = vmatprep.mubr.msk.bf16.mxu1 %vm1216_vm0, %v13442_v33  ;;  %v1267_v44 = vsel %vm1253_vm1, %v10791_v38, 0 }
  0x59   : > { %1593 = vmatpush1.bf16.msra.mxu0 %v10735_v39  ;;  %1746 = vmatpush1.bf16.msra.mxu1 %v10737_v42  ;;  %v10794_v39 = vcombine.high %v503_v32, %v503_v32  ;;  %v13545_v42 = vld [vmem:[%s17303_s1 + $0x60] ss:$8 sps:$4 sm:$0xff]  }
  0x5a   : > { %1594 = vmatprep.subr.bf16.mxu0 %v10744_v43  ;;  %1747 = vmatprep.subr.bf16.mxu1 %v10746_v47  ;;  %v13550_v43 = vld [vmem:[%s17303_s1 + $0x74] ss:$8 sps:$4 sm:$0xff]   ;;  %v13572_v47 = vld [vmem:[%s17303_s1 + $0x84] ss:$8 sps:$4 sm:$0xff]  }
  0x5d   : > { %1595 = vmatpush1.bf16.msra.mxu0 %v10743_v50  ;;  %1748 = vmatpush1.bf16.msra.mxu1 %v10745_v54  ;;  %v13588_v50 = vld [vmem:[%s17303_s1 + $0x94] ss:$8 sps:$4 sm:$0xff]   ;;  %v13615_v54 = vld [vmem:[%s17303_s1 + $0xa0] ss:$8 sps:$4 sm:$0xff]  }
  0x5e   : > { %1596 = vmatprep.subr.bf16.mxu0 %v10752_v55  ;;  %1749 = vmatprep.subr.bf16.mxu1 %v10754_v58  ;;  %v13620_v55 = vld [vmem:[%s17303_s1 + $0xb4] ss:$8 sps:$4 sm:$0xff]   ;;  %v13643_v58 = vld [vmem:[%s17309_s7] sm:$0xff]  }
  0x5f   : > { %1341 = vmatmul.mubr.bf16.gmra.mrb[12].mxu0 %v13465_v49  ;;  %1494 = vmatmul.mubr.bf16.gmra.mrb[12].mxu1 %v13465_v49 }
  0x60   : > { %10800 = vmatprep.mubr.msk.bf16.mxu0 %vm1216_vm0, %v13472_v53  ;;  %10813 = vmatprep.mubr.msk.bf16.mxu1 %vm1216_vm0, %v13472_v53 }
  0x61   : > { %1597 = vmatpush1.bf16.msra.mxu0 %v10751_v59  ;;  %1750 = vmatpush1.bf16.msra.mxu1 %v10753_v62  ;;  %v13648_v59 = vld [vmem:[%s17309_s7 + $0x48] sm:$0xff]   ;;  %v13174_v62 = vld [vmem:[%s17303_s1 + $0x14] ss:$8 sps:$4 sm:$0xff]  }
  0x62   : > { %1598 = vmatprep.subr.bf16.mxu0 %v10760_v63  ;;  %1751 = vmatprep.subr.bf16.mxu1 %v10762_v3  ;;  %v13665_v63 = vld [vmem:[%s17309_s7 + $0x50] sm:$0xff]  }
  0x63   : > { %v13175_v3 = vld [vmem:[%s17303_s1 + $0x10] ss:$8 sps:$4 sm:$0xff]  }
  0x65   : > { %1599 = vmatpush1.bf16.msra.mxu0 %v10759_v7  ;;  %1752 = vmatpush1.bf16.msra.mxu1 %v10761_v11  ;;  %v13703_v7 = vld [vmem:[%s17309_s7 + $0x60] sm:$0xff]   ;;  %v13726_v11 = vld [vmem:[%s17309_s7 + $0x28] sm:$0xff]  }
  0x66   : > { %1600 = vmatprep.subr.bf16.mxu0 %v10768_v12  ;;  %1753 = vmatprep.subr.bf16.mxu1 %v10770_v15  ;;  %v13737_v12 = vld [vmem:[%s17309_s7 + $0x70] sm:$0xff]  }
  0x67   : > { %1351 = vmatmul.mubr.bf16.gmra.mrb[16].mxu0 %v13495_v6  ;;  %1504 = vmatmul.mubr.bf16.gmra.mrb[16].mxu1 %v13495_v6 }
  0x68   : > { %10801 = vmatprep.mubr.msk.bf16.mxu0 %vm1216_vm0, %v13502_v10  ;;  %10814 = vmatprep.mubr.msk.bf16.mxu1 %vm1216_vm0, %v13502_v10 }
  0x69   : > { %1601 = vmatpush1.bf16.msra.mxu0 %v10767_v16  ;;  %1754 = vmatpush1.bf16.msra.mxu1 %v10769_v19 }
  0x6a   : > { %1602 = vmatprep.subr.bf16.mxu0 %v10776_v20  ;;  %1755 = vmatprep.subr.bf16.mxu1 %v10778_v24 }
  0x6d   : > { %1603 = vmatpush1.bf16.msra.mxu0 %v10775_v26  ;;  %1756 = vmatpush1.bf16.msra.mxu1 %v10777_v30 }
  0x6e   : > { %1604 = vmatprep.subr.bf16.mxu0 %v10784_v31  ;;  %1757 = vmatprep.subr.bf16.mxu1 %v10786_v34 }
  0x6f   : > { %1361 = vmatmul.mubr.bf16.gmra.mrb[20].mxu0 %v13522_v25  ;;  %1514 = vmatmul.mubr.bf16.gmra.mrb[20].mxu1 %v13522_v25 }
  0x70   : > { %10802 = vmatprep.mubr.msk.bf16.mxu0 %vm1216_vm0, %v13528_v29  ;;  %10815 = vmatprep.mubr.msk.bf16.mxu1 %vm1216_vm0, %v13528_v29 }
  0x71   : > { %1605 = vmatpush1.bf16.msra.mxu0 %v10783_v35  ;;  %1758 = vmatpush1.bf16.msra.mxu1 %v10785_v36 }
  0x72   : > { %10821 = vmatprep.subr.msk.bf16.mxu0 %vm1253_vm1, %v10792_v37  ;;  %10834 = vmatprep.subr.msk.bf16.mxu1 %vm1253_vm1, %v10794_v39 }
  0x75   : > { %1607 = vmatpush1.bf16.msra.mxu0 %v1267_v44  ;;  %1760 = vmatpush1.bf16.msra.mxu1 %v1273_v45 }
  0x76   : > { %11647 = vmatprep.subr.bf16.mxu0 %v13538_v41  ;;  %11735 = vmatprep.subr.bf16.mxu1 %v13538_v41 }
  0x77   : > { %1371 = vmatmul.mubr.bf16.gmra.mrb[24].mxu0 %v13545_v42  ;;  %1524 = vmatmul.mubr.bf16.gmra.mrb[24].mxu1 %v13545_v42 }
  0x78   : > { %10803 = vmatprep.mubr.msk.bf16.mxu0 %vm1216_vm0, %v13550_v43  ;;  %10816 = vmatprep.mubr.msk.bf16.mxu1 %vm1216_vm0, %v13550_v43 }
  0x7f   : > { %1381 = vmatmul.mubr.bf16.gmra.mrb[28].mxu0 %v13567_v46  ;;  %1534 = vmatmul.mubr.bf16.gmra.mrb[28].mxu1 %v13567_v46 }
  0x80   : > { %10804 = vmatprep.mubr.msk.bf16.mxu0 %vm1216_vm0, %v13572_v47  ;;  %10817 = vmatprep.mubr.msk.bf16.mxu1 %vm1216_vm0, %v13572_v47 }
  0x87   : > { %1391 = vmatmul.mubr.bf16.gmra.mrb[32].mxu0 %v13583_v48  ;;  %1544 = vmatmul.mubr.bf16.gmra.mrb[32].mxu1 %v13583_v48 }
  0x88   : > { %10805 = vmatprep.mubr.msk.bf16.mxu0 %vm1216_vm0, %v13588_v50  ;;  %10818 = vmatprep.mubr.msk.bf16.mxu1 %vm1216_vm0, %v13588_v50 }
  0x8f   : > { %1401 = vmatmul.mubr.bf16.gmra.mrb[36].mxu0 %v13599_v51  ;;  %1554 = vmatmul.mubr.bf16.gmra.mrb[36].mxu1 %v13599_v51 }
  0x90   : > { %10806 = vmatprep.mubr.msk.bf16.mxu0 %vm1216_vm0, %v13604_v52  ;;  %10819 = vmatprep.mubr.msk.bf16.mxu1 %vm1216_vm0, %v13604_v52 }
  0x97   : > { %1411 = vmatmul.mubr.bf16.gmra.mrb[40].mxu0 %v13615_v54  ;;  %1564 = vmatmul.mubr.bf16.gmra.mrb[40].mxu1 %v13615_v54 }
  0x98   : > { %10807 = vmatprep.mubr.msk.bf16.mxu0 %vm1216_vm0, %v13620_v55  ;;  %10820 = vmatprep.mubr.msk.bf16.mxu1 %vm1216_vm0, %v13620_v55 }
  0x9f   : > { %1421 = vmatmul.mubr.bf16.gmra.mrb[44].mxu0 %v13631_v56  ;;  %1574 = vmatmul.mubr.bf16.gmra.mrb[44].mxu1 %v13631_v56 }
  0xa0   : > { %10822 = vmatprep.mubr.msk.bf16.mxu0 %vm1216_vm0, %v13172_v57  ;;  %10835 = vmatprep.mubr.msk.bf16.mxu1 %vm1216_vm0, %v13172_v57 }
  0xa7   : > { %1617 = vmatmul.mubr.bf16.vlgmr.msra.gmra.mrb[48].mxu0 %v13173_v60  ;;  %1770 = vmatmul.mubr.bf16.vlgmr.msra.gmra.mrb[48].mxu1 %v13173_v60 }
  0xa8   : > { %10823 = vmatprep.mubr.msk.bf16.mxu0 %vm1216_vm0, %v13174_v62  ;;  %10836 = vmatprep.mubr.msk.bf16.mxu1 %vm1216_vm0, %v13174_v62 }
  0xa9   : > { %11648 = vmatpush3.bf16.msra.mxu0 %v13643_v58  ;;  %11736 = vmatpush3.bf16.msra.mxu1 %v13643_v58 }
  0xaa   : > { %11649 = vmatprep.subr.bf16.mxu0 %v13648_v59  ;;  %11737 = vmatprep.subr.bf16.mxu1 %v13648_v59 }
  0xad   : > { %11650 = vmatpush3.bf16.msra.mxu0 %v13656_v61  ;;  %11738 = vmatpush3.bf16.msra.mxu1 %v13656_v61 }
  0xae   : > { %11651 = vmatprep.subr.bf16.mxu0 %v13665_v63  ;;  %11739 = vmatprep.subr.bf16.mxu1 %v13665_v63 }
  0xaf   : > { %1627 = vmatmul.mubr.bf16.gmra.mrb[52].mxu0 %v13175_v3  ;;  %1780 = vmatmul.mubr.bf16.gmra.mrb[52].mxu1 %v13175_v3 }
  0xb0   : > { %10824 = vmatprep.mubr.msk.bf16.mxu0 %vm1216_vm0, %v13176_v5  ;;  %10837 = vmatprep.mubr.msk.bf16.mxu1 %vm1216_vm0, %v13176_v5 }
  0xb1   : > { %11652 = vmatpush3.bf16.msra.mxu0 %v13675_v0  ;;  %11740 = vmatpush3.bf16.msra.mxu1 %v13675_v0 }
  0xb2   : > { %11653 = vmatprep.subr.bf16.mxu0 %v13680_v2  ;;  %11741 = vmatprep.subr.bf16.mxu1 %v13680_v2 }
  0xb5   : > { %11654 = vmatpush3.bf16.msra.mxu0 %v13692_v4  ;;  %11742 = vmatpush3.bf16.msra.mxu1 %v13692_v4 }
  0xb6   : > { %11655 = vmatprep.subr.bf16.mxu0 %v13703_v7  ;;  %11743 = vmatprep.subr.bf16.mxu1 %v13703_v7 }
  0xb7   : > { %1637 = vmatmul.mubr.bf16.gmra.mrb[56].mxu0 %v13432_v28  ;;  %1790 = vmatmul.mubr.bf16.gmra.mrb[56].mxu1 %v13432_v28  ;;  %v13745_v28 = vld [vmem:[%s17309_s7 + $0x30] sm:$0xff]  }
  0xb8   : > { %10825 = vmatprep.mubr.msk.bf16.mxu0 %vm1216_vm0, %v13442_v33  ;;  %10838 = vmatprep.mubr.msk.bf16.mxu1 %vm1216_vm0, %v13442_v33  ;;  %v13750_v33 = vld [vmem:[%s17309_s7 + $0x78] sm:$0xff]  }
  0xb9   : > { %11656 = vmatpush3.bf16.msra.mxu0 %v13711_v8  ;;  %11744 = vmatpush3.bf16.msra.mxu1 %v13711_v8 }
  0xba   : > { %11657 = vmatprep.subr.bf16.mxu0 %v13716_v9  ;;  %11745 = vmatprep.subr.bf16.mxu1 %v13716_v9 }
  0xbd   : > { %11658 = vmatpush3.bf16.msra.mxu0 %v13726_v11  ;;  %11746 = vmatpush3.bf16.msra.mxu1 %v13726_v11 }
  0xbe   : > { %11659 = vmatprep.subr.bf16.mxu0 %v13737_v12  ;;  %11747 = vmatprep.subr.bf16.mxu1 %v13737_v12 }
  0xbf   : > { %1647 = vmatmul.mubr.bf16.gmra.mrb[60].mxu0 %v13465_v49  ;;  %1800 = vmatmul.mubr.bf16.gmra.mrb[60].mxu1 %v13465_v49  ;;  %v13819_v49 = vpop.permute.xlu0 %530 }
  0xc0   : > { %10826 = vmatprep.mubr.msk.bf16.mxu0 %vm1216_vm0, %v13472_v53  ;;  %10839 = vmatprep.mubr.msk.bf16.mxu1 %vm1216_vm0, %v13472_v53 }
  0xc1   : > { %11660 = vmatpush3.bf16.msra.mxu0 %v13745_v28  ;;  %11748 = vmatpush3.bf16.msra.mxu1 %v13745_v28 }
  0xc2   : > { %11661 = vmatprep.subr.bf16.mxu0 %v13750_v33  ;;  %11749 = vmatprep.subr.bf16.mxu1 %v13750_v33 }
  0xc3   : > { %v13821_v53 = vpop.permute.xlu0 %535 }
  0xc5   : > { %11662 = vmatpush3.bf16.msra.mxu0 %v13763_v13  ;;  %11750 = vmatpush3.bf16.msra.mxu1 %v13763_v13 }
  0xc6   : > { %11823 = vmatprep.subr.bf16.mxu0 %v13538_v41  ;;  %2878 = vmatprep.subr.bf16.mxu1 %v17314_v1 }
  0xc7   : > { %1657 = vmatmul.mubr.bf16.gmra.mrb[64].mxu0 %v13495_v6  ;;  %1810 = vmatmul.mubr.bf16.gmra.mrb[64].mxu1 %v13495_v6  ;;  %v13823_v6 = vpop.permute.xlu1 %540 }
  0xc8   : > { %10827 = vmatprep.mubr.msk.bf16.mxu0 %vm1216_vm0, %v13502_v10  ;;  %10840 = vmatprep.mubr.msk.bf16.mxu1 %vm1216_vm0, %v13502_v10 }
  0xcb   : > { %v13833_v40 = vpop.permute.xlu1 %545 }
  0xcf   : > { %1667 = vmatmul.mubr.bf16.gmra.mrb[68].mxu0 %v13522_v25  ;;  %1820 = vmatmul.mubr.bf16.gmra.mrb[68].mxu1 %v13522_v25 }
  0xd0   : > { %10828 = vmatprep.mubr.msk.bf16.mxu0 %vm1216_vm0, %v13528_v29  ;;  %10841 = vmatprep.mubr.msk.bf16.mxu1 %vm1216_vm0, %v13528_v29 }
  0xd7   : > { %1677 = vmatmul.mubr.bf16.gmra.mrb[72].mxu0 %v13545_v42  ;;  %1830 = vmatmul.mubr.bf16.gmra.mrb[72].mxu1 %v13545_v42 }
  0xd8   : > { %10829 = vmatprep.mubr.msk.bf16.mxu0 %vm1216_vm0, %v13550_v43  ;;  %10842 = vmatprep.mubr.msk.bf16.mxu1 %vm1216_vm0, %v13550_v43 }
  0xdf   : > { %1687 = vmatmul.mubr.bf16.gmra.mrb[76].mxu0 %v13567_v46  ;;  %1840 = vmatmul.mubr.bf16.gmra.mrb[76].mxu1 %v13567_v46 }
  0xe0   : > { %10830 = vmatprep.mubr.msk.bf16.mxu0 %vm1216_vm0, %v13572_v47  ;;  %10843 = vmatprep.mubr.msk.bf16.mxu1 %vm1216_vm0, %v13572_v47 }
  0xe7   : > { %1697 = vmatmul.mubr.bf16.gmra.mrb[80].mxu0 %v13583_v48  ;;  %1850 = vmatmul.mubr.bf16.gmra.mrb[80].mxu1 %v13583_v48  ;;  %v12700_v48 = vld [vmem:[%s17309_s7] sm:$0xff]  }
  0xe8   : > { %10831 = vmatprep.mubr.msk.bf16.mxu0 %vm1216_vm0, %v13588_v50  ;;  %10844 = vmatprep.mubr.msk.bf16.mxu1 %vm1216_vm0, %v13588_v50 }
  0xef   : > { %1707 = vmatmul.mubr.bf16.gmra.mrb[84].mxu0 %v13599_v51  ;;  %1860 = vmatmul.mubr.bf16.gmra.mrb[84].mxu1 %v13599_v51 }
  0xf0   : > { %10832 = vmatprep.mubr.msk.bf16.mxu0 %vm1216_vm0, %v13604_v52  ;;  %10845 = vmatprep.mubr.msk.bf16.mxu1 %vm1216_vm0, %v13604_v52 }
  0xf7   : > { %1717 = vmatmul.mubr.bf16.gmra.mrb[88].mxu0 %v13615_v54  ;;  %1870 = vmatmul.mubr.bf16.gmra.mrb[88].mxu1 %v13615_v54 }
  0xf8   : > { %10833 = vmatprep.mubr.msk.bf16.mxu0 %vm1216_vm0, %v13620_v55  ;;  %10846 = vmatprep.mubr.msk.bf16.mxu1 %vm1216_vm0, %v13620_v55 }
  0xff   : > { %1727 = vmatmul.mubr.bf16.gmra.mrb[92].mxu0 %v13631_v56  ;;  %1880 = vmatmul.mubr.bf16.gmra.mrb[92].mxu1 %v13631_v56 }
 0x11a   : > { %v1312_v10 = vpop.f32.mrb[0].mxu0  ;;  %v1465_v15 = vpop.f32.mrb[0].mxu1 }
 0x11b   : > { %v1313_v14 = vadd.f32 %v1312_v10, %v13819_v49  ;;  %v1314_v16 = vpop.f32.mrb[1].mxu0  ;;  %v1466_v17 = vadd.f32 %v1465_v15, %v13819_v49  ;;  %v1467_v19 = vpop.f32.mrb[1].mxu1 }
 0x11c   : > { %v1315_v18 = vadd.f32 %v1314_v16, %v13819_v49  ;;  %v1316_v20 = vpop.f32.mrb[2].mxu0  ;;  %v1468_v21 = vadd.f32 %v1467_v19, %v13819_v49  ;;  %v1469_v23 = vpop.f32.mrb[2].mxu1  ;;  %v12701_v16 = vld [vmem:[%s17309_s7 + $0x8] sm:$0xff]  }
 0x11d   : > { %v1317_v22 = vadd.f32 %v1316_v20, %v13821_v53  ;;  %v1318_v24 = vpop.f32.mrb[3].mxu0  ;;  %v1470_v25 = vadd.f32 %v1469_v23, %v13821_v53  ;;  %v1471_v27 = vpop.f32.mrb[3].mxu1  ;;  %v1890_v29 = vmax.f32 %v1313_v14, 0.0  ;;  %v1892_v32 = vmax.f32 %v1466_v17, 0.0 }
 0x11e   : > { %v1319_v26 = vadd.f32 %v1318_v24, %v13821_v53  ;;  %v1472_v31 = vadd.f32 %v1471_v27, %v13821_v53  ;;  %v1891_v34 = vmax.f32 %v1315_v18, 0.0  ;;  %v1893_v37 = vmax.f32 %v1468_v21, 0.0  ;;  %v13852_v21 = vpop.permute.xlu0 %550  ;;  %v13854_v24 = vpop.permute.xlu1 %555 }
 0x11f   : > { %v1898_v30 = vmax.f32 %v1317_v22, 0.0  ;;  %v1900_v35 = vmax.f32 %v1470_v25, 0.0 }
 0x120   : > { %v1899_v36 = vmax.f32 %v1319_v26, 0.0  ;;  %v1901_v39 = vmax.f32 %v1472_v31, 0.0 }
 0x121   : > { %v2082_v38 = vpack.c.bf16 %v1898_v30, %v1890_v29  ;;  %v2375_v41 = vpack.c.bf16 %v1900_v35, %v1892_v32  ;;  %v12702_v32 = vld [vmem:[%s17309_s7 + $0x10] sm:$0xff]  }
 0x122   : > { %v1322_v42 = vpop.f32.mrb[4].mxu0  ;;  %v2083_v43 = vpack.c.bf16 %v1899_v36, %v1891_v34  ;;  %v1475_v45 = vpop.f32.mrb[4].mxu1  ;;  %v2376_v47 = vpack.c.bf16 %v1901_v39, %v1893_v37 }
 0x123   : > { %v1323_v44 = vadd.f32 %v1322_v42, %v13823_v6  ;;  %v1324_v46 = vpop.f32.mrb[5].mxu0  ;;  %v1476_v50 = vadd.f32 %v1475_v45, %v13823_v6  ;;  %v1477_v52 = vpop.f32.mrb[5].mxu1 }
 0x124   : > { %v1325_v51 = vadd.f32 %v1324_v46, %v13823_v6  ;;  %v1326_v54 = vpop.f32.mrb[6].mxu0  ;;  %2266 = vmatprep.mubr.bf16.mxu0 %v2083_v43  ;;  %v1478_v55 = vadd.f32 %v1477_v52, %v13823_v6  ;;  %v1479_v57 = vpop.f32.mrb[6].mxu1  ;;  %2431 = vmatprep.mubr.bf16.mxu1 %v2376_v47  ;;  %v12703_v47 = vld [vmem:[%s17309_s7 + $0x18] sm:$0xff]  }
 0x125   : > { %v1327_v56 = vadd.f32 %v1326_v54, %v13833_v40  ;;  %v1328_v60 = vpop.f32.mrb[7].mxu0  ;;  %2267 = vmatmul.mubr.bf16.vlgmr.msra.gmra.mrb[96].mxu0 %v2082_v38  ;;  %v1480_v62 = vadd.f32 %v1479_v57, %v13833_v40  ;;  %v1481_v5 = vpop.f32.mrb[7].mxu1  ;;  %2432 = vmatmul.mubr.bf16.vlgmr.msra.gmra.mrb[96].mxu1 %v2375_v41  ;;  %v1906_v10 = vmax.f32 %v1323_v44, 0.0  ;;  %v1908_v17 = vmax.f32 %v1476_v50, 0.0 }
 0x126   : > { %v1329_v3 = vadd.f32 %v1328_v60, %v13833_v40  ;;  %11824 = vmatpush3.bf16.msra.mxu0 %v13643_v58  ;;  %v1482_v15 = vadd.f32 %v1481_v5, %v13833_v40  ;;  %2879 = vmatpush1.bf16.msra.mxu1 %v12700_v48  ;;  %v1907_v18 = vmax.f32 %v1325_v51, 0.0  ;;  %v1909_v58 = vmax.f32 %v1478_v55, 0.0  ;;  %v13876_v54 = vpop.permute.xlu0 %560  ;;  %v13878_v57 = vpop.permute.xlu1 %565 }
 0x127   : > { %v1914_v14 = vmax.f32 %v1327_v56, 0.0  ;;  %11825 = vmatprep.subr.bf16.mxu0 %v13648_v59  ;;  %v1916_v19 = vmax.f32 %v1480_v62, 0.0  ;;  %2880 = vmatprep.subr.bf16.mxu1 %v17314_v1 }
 0x128   : > { %v1915_v20 = vmax.f32 %v1329_v3, 0.0  ;;  %v1917_v22 = vmax.f32 %v1482_v15, 0.0  ;;  %v12704_v15 = vld [vmem:[%s17309_s7 + $0x20] sm:$0xff]  }
 0x129   : > { %v2084_v23 = vpack.c.bf16 %v1914_v14, %v1906_v10  ;;  %v2377_v27 = vpack.c.bf16 %v1916_v19, %v1908_v17 }
 0x12a   : > { %v1332_v25 = vpop.f32.mrb[8].mxu0  ;;  %v2085_v26 = vpack.c.bf16 %v1915_v20, %v1907_v18  ;;  %11826 = vmatpush3.bf16.msra.mxu0 %v13656_v61  ;;  %v1485_v29 = vpop.f32.mrb[8].mxu1  ;;  %v2378_v31 = vpack.c.bf16 %v1917_v22, %v1909_v58  ;;  %2881 = vmatpush1.bf16.msra.mxu1 %v12701_v16 }
 0x12b   : > { %v1333_v59 = vadd.f32 %v1332_v25, %v13852_v21  ;;  %v1334_v30 = vpop.f32.mrb[9].mxu0  ;;  %11827 = vmatprep.subr.bf16.mxu0 %v13665_v63  ;;  %v1486_v34 = vadd.f32 %v1485_v29, %v13852_v21  ;;  %v1487_v36 = vpop.f32.mrb[9].mxu1  ;;  %2882 = vmatprep.subr.bf16.mxu1 %v17314_v1  ;;  %v12705_v29 = vld [vmem:[%s17309_s7 + $0x28] sm:$0xff]  }
 0x12c   : > { %v1335_v35 = vadd.f32 %v1334_v30, %v13852_v21  ;;  %v1336_v37 = vpop.f32.mrb[10].mxu0  ;;  %2274 = vmatprep.mubr.bf16.mxu0 %v2085_v26  ;;  %v1488_v61 = vadd.f32 %v1487_v36, %v13852_v21  ;;  %v1489_v39 = vpop.f32.mrb[10].mxu1  ;;  %2439 = vmatprep.mubr.bf16.mxu1 %v2378_v31 }
 0x12d   : > { %v1337_v38 = vadd.f32 %v1336_v37, %v13854_v24  ;;  %v1338_v41 = vpop.f32.mrb[11].mxu0  ;;  %2275 = vmatmul.mubr.bf16.gmra.mrb[100].mxu0 %v2084_v23  ;;  %v1490_v42 = vadd.f32 %v1489_v39, %v13854_v24  ;;  %v1491_v43 = vpop.f32.mrb[11].mxu1  ;;  %2440 = vmatmul.mubr.bf16.gmra.mrb[100].mxu1 %v2377_v27  ;;  %v1922_v44 = vmax.f32 %v1333_v59, 0.0  ;;  %v1924_v48 = vmax.f32 %v1486_v34, 0.0 }
 0x12e   : > { %v1339_v63 = vadd.f32 %v1338_v41, %v13854_v24  ;;  %11828 = vmatpush3.bf16.msra.mxu0 %v13675_v0  ;;  %v1492_v46 = vadd.f32 %v1491_v43, %v13854_v24  ;;  %2883 = vmatpush1.bf16.msra.mxu1 %v12702_v32  ;;  %v1923_v50 = vmax.f32 %v1335_v35, 0.0  ;;  %v1925_v0 = vmax.f32 %v1488_v61, 0.0  ;;  %v13900_v35 = vpop.permute.xlu0 %570  ;;  %v13902_v61 = vpop.permute.xlu1 %575 }
 0x12f   : > { %v1930_v45 = vmax.f32 %v1337_v38, 0.0  ;;  %11829 = vmatprep.subr.bf16.mxu0 %v13680_v2  ;;  %v1932_v51 = vmax.f32 %v1490_v42, 0.0  ;;  %2884 = vmatprep.subr.bf16.mxu1 %v17314_v1 }
 0x130   : > { %v1931_v52 = vmax.f32 %v1339_v63, 0.0  ;;  %v1933_v55 = vmax.f32 %v1492_v46, 0.0 }
 0x131   : > { %v2086_v56 = vpack.c.bf16 %v1930_v45, %v1922_v44  ;;  %v2379_v3 = vpack.c.bf16 %v1932_v51, %v1924_v48  ;;  %v12706_v44 = vld [vmem:[%s17309_s7 + $0x30] sm:$0xff]  }
 0x132   : > { %v1342_v60 = vpop.f32.mrb[12].mxu0  ;;  %v2087_v62 = vpack.c.bf16 %v1931_v52, %v1923_v50  ;;  %11830 = vmatpush3.bf16.msra.mxu0 %v13692_v4  ;;  %v1495_v5 = vpop.f32.mrb[12].mxu1  ;;  %v2380_v14 = vpack.c.bf16 %v1933_v55, %v1925_v0  ;;  %2885 = vmatpush1.bf16.msra.mxu1 %v12703_v47 }
 0x133   : > { %v1343_v2 = vadd.f32 %v1342_v60, %v13876_v54  ;;  %v1344_v10 = vpop.f32.mrb[13].mxu0  ;;  %11831 = vmatprep.subr.bf16.mxu0 %v13703_v7  ;;  %v1496_v16 = vadd.f32 %v1495_v5, %v13876_v54  ;;  %v1497_v18 = vpop.f32.mrb[13].mxu1  ;;  %2886 = vmatprep.subr.bf16.mxu1 %v17314_v1 }
 0x134   : > { %v1345_v17 = vadd.f32 %v1344_v10, %v13876_v54  ;;  %v1346_v19 = vpop.f32.mrb[14].mxu0  ;;  %2282 = vmatprep.mubr.bf16.mxu0 %v2087_v62  ;;  %v1498_v4 = vadd.f32 %v1497_v18, %v13876_v54  ;;  %v1499_v58 = vpop.f32.mrb[14].mxu1  ;;  %2447 = vmatprep.mubr.bf16.mxu1 %v2380_v14 }
 0x135   : > { %v1347_v20 = vadd.f32 %v1346_v19, %v13878_v57  ;;  %v1348_v22 = vpop.f32.mrb[15].mxu0  ;;  %2283 = vmatmul.mubr.bf16.gmra.mrb[104].mxu0 %v2086_v56  ;;  %v1500_v23 = vadd.f32 %v1499_v58, %v13878_v57  ;;  %v1501_v25 = vpop.f32.mrb[15].mxu1  ;;  %2448 = vmatmul.mubr.bf16.gmra.mrb[104].mxu1 %v2379_v3  ;;  %v1938_v26 = vmax.f32 %v1343_v2, 0.0  ;;  %v1940_v30 = vmax.f32 %v1496_v16, 0.0  ;;  %v12707_v3 = vld [vmem:[%s17309_s7 + $0x38] sm:$0xff]  }
 0x136   : > { %v1349_v7 = vadd.f32 %v1348_v22, %v13878_v57  ;;  %11832 = vmatpush3.bf16.msra.mxu0 %v13711_v8  ;;  %v1502_v59 = vadd.f32 %v1501_v25, %v13878_v57  ;;  %2887 = vmatpush1.bf16.msra.mxu1 %v12704_v15  ;;  %v1939_v31 = vmax.f32 %v1345_v17, 0.0  ;;  %v1941_v8 = vmax.f32 %v1498_v4, 0.0  ;;  %v13924_v15 = vpop.permute.xlu0 %580  ;;  %v13926_v18 = vpop.permute.xlu1 %585 }
 0x137   : > { %v1946_v27 = vmax.f32 %v1347_v20, 0.0  ;;  %11833 = vmatprep.subr.bf16.mxu0 %v13716_v9  ;;  %v1948_v32 = vmax.f32 %v1500_v23, 0.0  ;;  %2888 = vmatprep.subr.bf16.mxu1 %v17314_v1 }
 0x138   : > { %v1947_v34 = vmax.f32 %v1349_v7, 0.0  ;;  %v1949_v36 = vmax.f32 %v1502_v59, 0.0  ;;  %v12708_v7 = vld [vmem:[%s17309_s7 + $0x40] sm:$0xff]  }
 0x139   : > { %v2088_v37 = vpack.c.bf16 %v1946_v27, %v1938_v26  ;;  %v2381_v41 = vpack.c.bf16 %v1948_v32, %v1940_v30 }
 0x13a   : > { %v1352_v38 = vpop.f32.mrb[16].mxu0  ;;  %v2089_v39 = vpack.c.bf16 %v1947_v34, %v1939_v31  ;;  %11834 = vmatpush3.bf16.msra.mxu0 %v13726_v11  ;;  %v1505_v42 = vpop.f32.mrb[16].mxu1  ;;  %v2382_v43 = vpack.c.bf16 %v1949_v36, %v1941_v8  ;;  %2889 = vmatpush1.bf16.msra.mxu1 %v12705_v29 }
 0x13b   : > { %v1353_v9 = vadd.f32 %v1352_v38, %v13900_v35  ;;  %v1354_v63 = vpop.f32.mrb[17].mxu0  ;;  %11835 = vmatprep.subr.bf16.mxu0 %v13737_v12  ;;  %v1506_v45 = vadd.f32 %v1505_v42, %v13900_v35  ;;  %v1507_v47 = vpop.f32.mrb[17].mxu1  ;;  %2890 = vmatprep.subr.bf16.mxu1 %v17314_v1 }
 0x13c   : > { %v1355_v46 = vadd.f32 %v1354_v63, %v13900_v35  ;;  %v1356_v48 = vpop.f32.mrb[18].mxu0  ;;  %2290 = vmatprep.mubr.bf16.mxu0 %v2089_v39  ;;  %v1508_v11 = vadd.f32 %v1507_v47, %v13900_v35  ;;  %v1509_v51 = vpop.f32.mrb[18].mxu1  ;;  %2455 = vmatprep.mubr.bf16.mxu1 %v2382_v43  ;;  %v12709_v39 = vld [vmem:[%s17309_s7 + $0x48] sm:$0xff]  }
 0x13d   : > { %v1357_v50 = vadd.f32 %v1356_v48, %v13902_v61  ;;  %v1358_v52 = vpop.f32.mrb[19].mxu0  ;;  %2291 = vmatmul.mubr.bf16.gmra.mrb[108].mxu0 %v2088_v37  ;;  %v1510_v0 = vadd.f32 %v1509_v51, %v13902_v61  ;;  %v1511_v55 = vpop.f32.mrb[19].mxu1  ;;  %2456 = vmatmul.mubr.bf16.gmra.mrb[108].mxu1 %v2381_v41  ;;  %v1954_v56 = vmax.f32 %v1353_v9, 0.0  ;;  %v1956_v2 = vmax.f32 %v1506_v45, 0.0 }
 0x13e   : > { %v1359_v12 = vadd.f32 %v1358_v52, %v13902_v61  ;;  %11836 = vmatpush3.bf16.msra.mxu0 %v13745_v28  ;;  %v1512_v62 = vadd.f32 %v1511_v55, %v13902_v61  ;;  %2891 = vmatpush1.bf16.msra.mxu1 %v12706_v44  ;;  %v1955_v5 = vmax.f32 %v1355_v46, 0.0  ;;  %v1957_v28 = vmax.f32 %v1508_v11, 0.0  ;;  %v13945_v43 = vpop.permute.xlu0 %590  ;;  %v13947_v47 = vpop.permute.xlu1 %595  ;;  %v12710_v55 = vld [vmem:[%s17309_s7 + $0x50] sm:$0xff]  }
 0x13f   : > { %v1962_v60 = vmax.f32 %v1357_v50, 0.0  ;;  %11837 = vmatprep.subr.bf16.mxu0 %v13750_v33  ;;  %v1964_v10 = vmax.f32 %v1510_v0, 0.0  ;;  %2892 = vmatprep.subr.bf16.mxu1 %v17314_v1 }
 0x140   : > { %v1963_v14 = vmax.f32 %v1359_v12, 0.0  ;;  %v1965_v16 = vmax.f32 %v1512_v62, 0.0 }
 0x141   : > { %v2090_v17 = vpack.c.bf16 %v1962_v60, %v1954_v56  ;;  %v2383_v20 = vpack.c.bf16 %v1964_v10, %v1956_v2 }
 0x142   : > { %v1362_v19 = vpop.f32.mrb[20].mxu0  ;;  %v2091_v4 = vpack.c.bf16 %v1963_v14, %v1955_v5  ;;  %11838 = vmatpush3.bf16.msra.mxu0 %v13763_v13  ;;  %v1515_v58 = vpop.f32.mrb[20].mxu1  ;;  %v2384_v23 = vpack.c.bf16 %v1965_v16, %v1957_v28  ;;  %2893 = vmatpush1.bf16.msra.mxu1 %v12707_v3 }
 0x143   : > { %v1363_v33 = vadd.f32 %v1362_v19, %v13924_v15  ;;  %v1364_v22 = vpop.f32.mrb[21].mxu0  ;;  %v1516_v25 = vadd.f32 %v1515_v58, %v13924_v15  ;;  %v1517_v27 = vpop.f32.mrb[21].mxu1  ;;  %2894 = vmatprep.subr.bf16.mxu1 %v17314_v1 }
 0x144   : > { %v1365_v26 = vadd.f32 %v1364_v22, %v13924_v15  ;;  %v1366_v59 = vpop.f32.mrb[22].mxu0  ;;  %2298 = vmatprep.mubr.bf16.mxu0 %v2091_v4  ;;  %v1518_v13 = vadd.f32 %v1517_v27, %v13924_v15  ;;  %v1519_v30 = vpop.f32.mrb[22].mxu1  ;;  %2463 = vmatprep.mubr.bf16.mxu1 %v2384_v23 }
 0x145   : > { %v1367_v29 = vadd.f32 %v1366_v59, %v13926_v18  ;;  %v1368_v31 = vpop.f32.mrb[23].mxu0  ;;  %2299 = vmatmul.mubr.bf16.gmra.mrb[112].mxu0 %v2090_v17  ;;  %v1520_v32 = vadd.f32 %v1519_v30, %v13926_v18  ;;  %v1521_v8 = vpop.f32.mrb[23].mxu1  ;;  %2464 = vmatmul.mubr.bf16.gmra.mrb[112].mxu1 %v2383_v20  ;;  %v1970_v36 = vmax.f32 %v1363_v33, 0.0  ;;  %v1972_v41 = vmax.f32 %v1516_v25, 0.0  ;;  %v12711_v33 = vld [vmem:[%s17309_s7 + $0x58] sm:$0xff]  }
 0x146   : > { %v1369_v34 = vadd.f32 %v1368_v31, %v13926_v18  ;;  %v1522_v38 = vadd.f32 %v1521_v8, %v13926_v18  ;;  %2895 = vmatpush1.bf16.msra.mxu1 %v12708_v7  ;;  %v1971_v9 = vmax.f32 %v1365_v26, 0.0  ;;  %v1973_v44 = vmax.f32 %v1518_v13, 0.0  ;;  %v13965_v25 = vpop.permute.xlu0 %600  ;;  %v13967_v13 = vpop.permute.xlu1 %605 }
 0x147   : > { %v1978_v37 = vmax.f32 %v1367_v29, 0.0  ;;  %v1980_v42 = vmax.f32 %v1520_v32, 0.0  ;;  %2896 = vmatprep.subr.bf16.mxu1 %v17314_v1 }
 0x148   : > { %v1979_v63 = vmax.f32 %v1369_v34, 0.0  ;;  %v1981_v45 = vmax.f32 %v1522_v38, 0.0  ;;  %v12713_v38 = vld [vmem:[%s17309_s7 + $0x68] ss:$0 sps:$4 sm:$0xff]  }
 0x149   : > { %v2092_v46 = vpack.c.bf16 %v1978_v37, %v1970_v36  ;;  %v2385_v50 = vpack.c.bf16 %v1980_v42, %v1972_v41  ;;  %v12712_v37 = vld [vmem:[%s17309_s7 + $0x60] sm:$0xff]  }
 0x14a   : > { %v1372_v48 = vpop.f32.mrb[24].mxu0  ;;  %v2093_v11 = vpack.c.bf16 %v1979_v63, %v1971_v9  ;;  %v1525_v52 = vpop.f32.mrb[24].mxu1  ;;  %v2386_v12 = vpack.c.bf16 %v1981_v45, %v1973_v44  ;;  %2897 = vmatpush1.bf16.msra.mxu1 %v12709_v39 }
 0x14b   : > { %v1373_v51 = vadd.f32 %v1372_v48, %v13945_v43  ;;  %v1374_v0 = vpop.f32.mrb[25].mxu0  ;;  %v1526_v56 = vadd.f32 %v1525_v52, %v13945_v43  ;;  %v1527_v62 = vpop.f32.mrb[25].mxu1  ;;  %2898 = vmatprep.subr.bf16.mxu1 %v17314_v1 }
 0x14c   : > { %v1375_v60 = vadd.f32 %v1374_v0, %v13945_v43  ;;  %v1376_v3 = vpop.f32.mrb[26].mxu0  ;;  %2306 = vmatprep.mubr.bf16.mxu0 %v2093_v11  ;;  %v1528_v2 = vadd.f32 %v1527_v62, %v13945_v43  ;;  %v1529_v10 = vpop.f32.mrb[26].mxu1  ;;  %2471 = vmatprep.mubr.bf16.mxu1 %v2386_v12  ;;  %v2876_v12 = vsel %vm2874_vm2, %v12713_v38, 0 }
 0x14d   : > { %v1377_v5 = vadd.f32 %v1376_v3, %v13947_v47  ;;  %v1378_v14 = vpop.f32.mrb[27].mxu0  ;;  %2307 = vmatmul.mubr.bf16.gmra.mrb[116].mxu0 %v2092_v46  ;;  %v1530_v28 = vadd.f32 %v1529_v10, %v13947_v47  ;;  %v1531_v17 = vpop.f32.mrb[27].mxu1  ;;  %2472 = vmatmul.mubr.bf16.gmra.mrb[116].mxu1 %v2385_v50  ;;  %v1986_v19 = vmax.f32 %v1373_v51, 0.0  ;;  %v1988_v58 = vmax.f32 %v1526_v56, 0.0 }
 0x14e   : > { %v1379_v16 = vadd.f32 %v1378_v14, %v13947_v47  ;;  %v1532_v20 = vadd.f32 %v1531_v17, %v13947_v47  ;;  %2899 = vmatpush1.bf16.msra.mxu1 %v12710_v55  ;;  %v1987_v22 = vmax.f32 %v1375_v60, 0.0  ;;  %v1989_v26 = vmax.f32 %v1528_v2, 0.0  ;;  %v13986_v3 = vpop.permute.xlu0 %610  ;;  %v13988_v14 = vpop.permute.xlu1 %615 }
 0x14f   : > { %v1994_v4 = vmax.f32 %v1377_v5, 0.0  ;;  %v1996_v23 = vmax.f32 %v1530_v28, 0.0  ;;  %2900 = vmatprep.subr.bf16.mxu1 %v17314_v1 }
 0x150   : > { %v1995_v7 = vmax.f32 %v1379_v16, 0.0  ;;  %v1997_v27 = vmax.f32 %v1532_v20, 0.0 }
 0x151   : > { %v2094_v59 = vpack.c.bf16 %v1994_v4, %v1986_v19  ;;  %v2387_v31 = vpack.c.bf16 %v1996_v23, %v1988_v58 }
 0x152   : > { %v1382_v29 = vpop.f32.mrb[28].mxu0  ;;  %v2095_v30 = vpack.c.bf16 %v1995_v7, %v1987_v22  ;;  %v1535_v34 = vpop.f32.mrb[28].mxu1  ;;  %v2388_v36 = vpack.c.bf16 %v1997_v27, %v1989_v26  ;;  %2901 = vmatpush1.bf16.msra.mxu1 %v12711_v33 }
 0x153   : > { %v1383_v32 = vadd.f32 %v1382_v29, %v13965_v25  ;;  %v1384_v8 = vpop.f32.mrb[29].mxu0  ;;  %v1536_v39 = vadd.f32 %v1535_v34, %v13965_v25  ;;  %v1537_v9 = vpop.f32.mrb[29].mxu1  ;;  %2902 = vmatprep.subr.bf16.mxu1 %v17314_v1 }
 0x154   : > { %v1385_v41 = vadd.f32 %v1384_v8, %v13965_v25  ;;  %v1386_v42 = vpop.f32.mrb[30].mxu0  ;;  %2314 = vmatprep.mubr.bf16.mxu0 %v2095_v30  ;;  %v1538_v63 = vadd.f32 %v1537_v9, %v13965_v25  ;;  %v1539_v45 = vpop.f32.mrb[30].mxu1  ;;  %2479 = vmatprep.mubr.bf16.mxu1 %v2388_v36 }
 0x155   : > { %v1387_v44 = vadd.f32 %v1386_v42, %v13967_v13  ;;  %v1388_v46 = vpop.f32.mrb[31].mxu0  ;;  %2315 = vmatmul.mubr.bf16.gmra.mrb[120].mxu0 %v2094_v59  ;;  %v1540_v48 = vadd.f32 %v1539_v45, %v13967_v13  ;;  %v1541_v50 = vpop.f32.mrb[31].mxu1  ;;  %2480 = vmatmul.mubr.bf16.gmra.mrb[120].mxu1 %v2387_v31  ;;  %v2002_v51 = vmax.f32 %v1383_v32, 0.0  ;;  %v2004_v55 = vmax.f32 %v1536_v39, 0.0 }
 0x156   : > { %v1389_v11 = vadd.f32 %v1388_v46, %v13967_v13  ;;  %v1542_v0 = vadd.f32 %v1541_v50, %v13967_v13  ;;  %2903 = vmatpush1.bf16.msra.mxu1 %v12712_v37  ;;  %v2003_v56 = vmax.f32 %v1385_v41, 0.0  ;;  %v2005_v2 = vmax.f32 %v1538_v63, 0.0  ;;  %v13998_v9 = vpop.permute.xlu0 %620  ;;  %v14000_v45 = vpop.permute.xlu1 %625 }
 0x157   : > { %v2010_v52 = vmax.f32 %v1387_v44, 0.0  ;;  %v2012_v60 = vmax.f32 %v1540_v48, 0.0  ;;  %2904 = vmatprep.subr.bf16.mxu1 %v17314_v1 }
 0x158   : > { %v2011_v62 = vmax.f32 %v1389_v11, 0.0  ;;  %v2013_v5 = vmax.f32 %v1542_v0, 0.0 }
 0x159   : > { %v2096_v10 = vpack.c.bf16 %v2010_v52, %v2002_v51  ;;  %v2389_v17 = vpack.c.bf16 %v2012_v60, %v2004_v55 }
 0x15a   : > { %v1392_v28 = vpop.f32.mrb[32].mxu0  ;;  %v2097_v16 = vpack.c.bf16 %v2011_v62, %v2003_v56  ;;  %v1545_v19 = vpop.f32.mrb[32].mxu1  ;;  %v2390_v20 = vpack.c.bf16 %v2013_v5, %v2005_v2  ;;  %2905 = vmatpush1.bf16.msra.mxu1 %v2876_v12 }
 0x15b   : > { %v1394_v4 = vpop.f32.mrb[33].mxu0  ;;  %v1393_v33 = vadd.f32 %v1392_v28, %v13986_v3  ;;  %v1546_v58 = vadd.f32 %v1545_v19, %v13986_v3  ;;  %v1547_v22 = vpop.f32.mrb[33].mxu1 }
 0x15c   : > { %v1396_v23 = vpop.f32.mrb[34].mxu0  ;;  %2322 = vmatprep.mubr.bf16.mxu0 %v2097_v16  ;;  %v1395_v7 = vadd.f32 %v1394_v4, %v13986_v3  ;;  %v1548_v26 = vadd.f32 %v1547_v22, %v13986_v3  ;;  %v1549_v27 = vpop.f32.mrb[34].mxu1  ;;  %2487 = vmatprep.mubr.bf16.mxu1 %v2390_v20 }
 0x15d   : > { %v1398_v59 = vpop.f32.mrb[35].mxu0  ;;  %2323 = vmatmul.mubr.bf16.gmra.mrb[124].mxu0 %v2096_v10  ;;  %v1397_v29 = vadd.f32 %v1396_v23, %v13988_v14  ;;  %v1550_v30 = vadd.f32 %v1549_v27, %v13988_v14  ;;  %v1551_v31 = vpop.f32.mrb[35].mxu1  ;;  %2488 = vmatmul.mubr.bf16.gmra.mrb[124].mxu1 %v2389_v17  ;;  %v2018_v8 = vmax.f32 %v1393_v33, 0.0  ;;  %v2020_v39 = vmax.f32 %v1546_v58, 0.0 }
 0x15e   : > { %v1399_v32 = vadd.f32 %v1398_v59, %v13988_v14  ;;  %v1552_v34 = vadd.f32 %v1551_v31, %v13988_v14  ;;  %v2019_v37 = vmax.f32 %v1395_v7, 0.0  ;;  %v2021_v42 = vmax.f32 %v1548_v26, 0.0  ;;  %v14010_v7 = vpop.permute.xlu0 %630 }
 0x15f   : > { %v2026_v36 = vmax.f32 %v1397_v29, 0.0  ;;  %v2028_v41 = vmax.f32 %v1550_v30, 0.0  ;;  %v14012_v29 = vpop.permute.xlu1 %635 }
 0x160   : > { %v2027_v38 = vmax.f32 %v1399_v32, 0.0  ;;  %v2029_v63 = vmax.f32 %v1552_v34, 0.0 }
 0x161   : > { %v2098_v44 = vpack.c.bf16 %v2026_v36, %v2018_v8  ;;  %v2391_v11 = vpack.c.bf16 %v2028_v41, %v2020_v39 }
 0x162   : > { %v1402_v46 = vpop.f32.mrb[36].mxu0  ;;  %v2099_v48 = vpack.c.bf16 %v2027_v38, %v2019_v37  ;;  %v1555_v50 = vpop.f32.mrb[36].mxu1  ;;  %v2392_v52 = vpack.c.bf16 %v2029_v63, %v2021_v42 }
 0x163   : > { %v1404_v51 = vpop.f32.mrb[37].mxu0  ;;  %v1403_v0 = vadd.f32 %v1402_v46, %v13998_v9  ;;  %v1556_v12 = vadd.f32 %v1555_v50, %v13998_v9  ;;  %v1557_v55 = vpop.f32.mrb[37].mxu1 }
 0x164   : > { %v1406_v56 = vpop.f32.mrb[38].mxu0  ;;  %2330 = vmatprep.mubr.bf16.mxu0 %v2099_v48  ;;  %v1405_v60 = vadd.f32 %v1404_v51, %v13998_v9  ;;  %v1558_v62 = vadd.f32 %v1557_v55, %v13998_v9  ;;  %v1559_v2 = vpop.f32.mrb[38].mxu1  ;;  %2495 = vmatprep.mubr.bf16.mxu1 %v2392_v52 }
 0x165   : > { %v1408_v5 = vpop.f32.mrb[39].mxu0  ;;  %2331 = vmatmul.mubr.bf16.gmra.mrb[128].mxu0 %v2098_v44  ;;  %v1407_v10 = vadd.f32 %v1406_v56, %v14000_v45  ;;  %v1560_v28 = vadd.f32 %v1559_v2, %v14000_v45  ;;  %v1561_v16 = vpop.f32.mrb[39].mxu1  ;;  %2496 = vmatmul.mubr.bf16.gmra.mrb[128].mxu1 %v2391_v11  ;;  %v2034_v4 = vmax.f32 %v1403_v0, 0.0  ;;  %v2036_v22 = vmax.f32 %v1556_v12, 0.0 }
 0x166   : > { %v1409_v17 = vadd.f32 %v1408_v5, %v14000_v45  ;;  %v1562_v19 = vadd.f32 %v1561_v16, %v14000_v45  ;;  %v2035_v33 = vmax.f32 %v1405_v60, 0.0  ;;  %v2037_v26 = vmax.f32 %v1558_v62, 0.0  ;;  %v14022_v2 = vpop.permute.xlu0 %640  ;;  %v14024_v16 = vpop.permute.xlu1 %645 }
 0x167   : > { %v2042_v20 = vmax.f32 %v1407_v10, 0.0  ;;  %v2044_v23 = vmax.f32 %v1560_v28, 0.0 }
 0x168   : > { %v2043_v58 = vmax.f32 %v1409_v17, 0.0  ;;  %v2045_v27 = vmax.f32 %v1562_v19, 0.0 }
 0x169   : > { %v2100_v59 = vpack.c.bf16 %v2042_v20, %v2034_v4  ;;  %v2393_v32 = vpack.c.bf16 %v2044_v23, %v2036_v22 }
 0x16a   : > { %v1412_v30 = vpop.f32.mrb[40].mxu0  ;;  %v2101_v31 = vpack.c.bf16 %v2043_v58, %v2035_v33  ;;  %v1565_v34 = vpop.f32.mrb[40].mxu1  ;;  %v2394_v36 = vpack.c.bf16 %v2045_v27, %v2037_v26 }
 0x16b   : > { %v1414_v8 = vpop.f32.mrb[41].mxu0  ;;  %v1413_v37 = vadd.f32 %v1412_v30, %v14010_v7  ;;  %v1566_v38 = vadd.f32 %v1565_v34, %v14010_v7  ;;  %v1567_v39 = vpop.f32.mrb[41].mxu1 }
 0x16c   : > { %v1416_v41 = vpop.f32.mrb[42].mxu0  ;;  %2338 = vmatprep.mubr.bf16.mxu0 %v2101_v31  ;;  %v1415_v42 = vadd.f32 %v1414_v8, %v14010_v7  ;;  %v1568_v63 = vadd.f32 %v1567_v39, %v14010_v7  ;;  %v1569_v44 = vpop.f32.mrb[42].mxu1  ;;  %2503 = vmatprep.mubr.bf16.mxu1 %v2394_v36 }
 0x16d   : > { %v1418_v46 = vpop.f32.mrb[43].mxu0  ;;  %2339 = vmatmul.mubr.bf16.gmra.mrb[132].mxu0 %v2100_v59  ;;  %v1417_v48 = vadd.f32 %v1416_v41, %v14012_v29  ;;  %v1570_v11 = vadd.f32 %v1569_v44, %v14012_v29  ;;  %v1571_v50 = vpop.f32.mrb[43].mxu1  ;;  %2504 = vmatmul.mubr.bf16.gmra.mrb[132].mxu1 %v2393_v32  ;;  %v2050_v0 = vmax.f32 %v1413_v37, 0.0  ;;  %v2052_v60 = vmax.f32 %v1566_v38, 0.0 }
 0x16e   : > { %v1419_v51 = vadd.f32 %v1418_v46, %v14012_v29  ;;  %v1572_v52 = vadd.f32 %v1571_v50, %v14012_v29  ;;  %v2051_v55 = vmax.f32 %v1415_v42, 0.0  ;;  %v2053_v5 = vmax.f32 %v1568_v63, 0.0 }
 0x16f   : > { %v2058_v12 = vmax.f32 %v1417_v48, 0.0  ;;  %v2060_v62 = vmax.f32 %v1570_v11, 0.0 }
 0x170   : > { %v2059_v56 = vmax.f32 %v1419_v51, 0.0  ;;  %v2061_v10 = vmax.f32 %v1572_v52, 0.0 }
 0x171   : > { %v2102_v28 = vpack.c.bf16 %v2058_v12, %v2050_v0  ;;  %v2395_v4 = vpack.c.bf16 %v2060_v62, %v2052_v60 }
 0x172   : > { %v1422_v17 = vpop.f32.mrb[44].mxu0  ;;  %v2103_v19 = vpack.c.bf16 %v2059_v56, %v2051_v55  ;;  %v1575_v20 = vpop.f32.mrb[44].mxu1  ;;  %v2396_v58 = vpack.c.bf16 %v2061_v10, %v2053_v5 }
 0x173   : > { %v1424_v33 = vpop.f32.mrb[45].mxu0  ;;  %v1423_v22 = vadd.f32 %v1422_v17, %v14022_v2  ;;  %v1576_v23 = vadd.f32 %v1575_v20, %v14022_v2  ;;  %v1577_v26 = vpop.f32.mrb[45].mxu1 }
 0x174   : > { %v1426_v27 = vpop.f32.mrb[46].mxu0  ;;  %2346 = vmatprep.mubr.bf16.mxu0 %v2103_v19  ;;  %v1425_v59 = vadd.f32 %v1424_v33, %v14022_v2  ;;  %v1578_v30 = vadd.f32 %v1577_v26, %v14022_v2  ;;  %v1579_v31 = vpop.f32.mrb[46].mxu1  ;;  %2511 = vmatprep.mubr.bf16.mxu1 %v2396_v58 }
 0x175   : > { %v1428_v32 = vpop.f32.mrb[47].mxu0  ;;  %2347 = vmatmul.mubr.bf16.gmra.mrb[136].mxu0 %v2102_v28  ;;  %v1427_v34 = vadd.f32 %v1426_v27, %v14024_v16  ;;  %v1580_v8 = vadd.f32 %v1579_v31, %v14024_v16  ;;  %v1581_v36 = vpop.f32.mrb[47].mxu1  ;;  %2512 = vmatmul.mubr.bf16.gmra.mrb[136].mxu1 %v2395_v4  ;;  %v2066_v39 = vmax.f32 %v1423_v22, 0.0  ;;  %v2068_v44 = vmax.f32 %v1576_v23, 0.0 }
 0x176   : > { %v1429_v37 = vadd.f32 %v1428_v32, %v14024_v16  ;;  %v1582_v38 = vadd.f32 %v1581_v36, %v14024_v16  ;;  %v2067_v42 = vmax.f32 %v1425_v59, 0.0  ;;  %v2069_v48 = vmax.f32 %v1578_v30, 0.0 }
 0x177   : > { %v2074_v41 = vmax.f32 %v1427_v34, 0.0  ;;  %v2076_v46 = vmax.f32 %v1580_v8, 0.0 }
 0x178   : > { %v2075_v63 = vmax.f32 %v1429_v37, 0.0  ;;  %v2077_v11 = vmax.f32 %v1582_v38, 0.0 }
 0x179   : > { %v2104_v50 = vpack.c.bf16 %v2074_v41, %v2066_v39  ;;  %v2397_v0 = vpack.c.bf16 %v2076_v46, %v2068_v44 }
 0x17a   : > { %v1618_v51 = vpop.f32.mrb[48].mxu0  ;;  %v2105_v52 = vpack.c.bf16 %v2075_v63, %v2067_v42  ;;  %v1771_v55 = vpop.f32.mrb[48].mxu1  ;;  %v2398_v60 = vpack.c.bf16 %v2077_v11, %v2069_v48 }
 0x17b   : > { %v1619_v12 = vadd.f32 %v1618_v51, %v13819_v49  ;;  %v1620_v56 = vpop.f32.mrb[49].mxu0  ;;  %v1772_v62 = vadd.f32 %v1771_v55, %v13819_v49  ;;  %v1773_v5 = vpop.f32.mrb[49].mxu1 }
 0x17c   : > { %v1622_v10 = vpop.f32.mrb[50].mxu0  ;;  %2354 = vmatprep.mubr.bf16.mxu0 %v2105_v52  ;;  %v1621_v28 = vadd.f32 %v1620_v56, %v13819_v49  ;;  %v1774_v17 = vadd.f32 %v1773_v5, %v13819_v49  ;;  %v1775_v4 = vpop.f32.mrb[50].mxu1  ;;  %2519 = vmatprep.mubr.bf16.mxu1 %v2398_v60 }
 0x17d   : > { %v1623_v19 = vadd.f32 %v1622_v10, %v13821_v53  ;;  %v1624_v20 = vpop.f32.mrb[51].mxu0  ;;  %2355 = vmatmul.mubr.bf16.gmra.mrb[140].mxu0 %v2104_v50  ;;  %v1776_v33 = vadd.f32 %v1775_v4, %v13821_v53  ;;  %v1777_v58 = vpop.f32.mrb[51].mxu1  ;;  %2520 = vmatmul.mubr.bf16.gmra.mrb[140].mxu1 %v2397_v0  ;;  %v1894_v23 = vmax.f32 %v1619_v12, 0.0  ;;  %v1896_v59 = vmax.f32 %v1772_v62, 0.0 }
 0x17e   : > { %v1625_v22 = vadd.f32 %v1624_v20, %v13821_v53  ;;  %v1778_v27 = vadd.f32 %v1777_v58, %v13821_v53  ;;  %v1895_v31 = vmax.f32 %v1621_v28, 0.0  ;;  %v1897_v32 = vmax.f32 %v1774_v17, 0.0 }
 0x17f   : > { %v1902_v26 = vmax.f32 %v1623_v19, 0.0  ;;  %v1904_v30 = vmax.f32 %v1776_v33, 0.0 }
 0x180   : > { %v1903_v49 = vmax.f32 %v1625_v22, 0.0  ;;  %v1905_v8 = vmax.f32 %v1778_v27, 0.0 }
 0x181   : > { %v2540_v34 = vpack.c.bf16 %v1902_v26, %v1894_v23  ;;  %v2705_v36 = vpack.c.bf16 %v1904_v30, %v1896_v59 }
 0x182   : > { %v1628_v37 = vpop.f32.mrb[52].mxu0  ;;  %v2541_v38 = vpack.c.bf16 %v1903_v49, %v1895_v31  ;;  %v1781_v39 = vpop.f32.mrb[52].mxu1  ;;  %v2706_v42 = vpack.c.bf16 %v1905_v8, %v1897_v32 }
 0x183   : > { %v1630_v41 = vpop.f32.mrb[53].mxu0  ;;  %v1629_v63 = vadd.f32 %v1628_v37, %v13823_v6  ;;  %v1782_v44 = vadd.f32 %v1781_v39, %v13823_v6  ;;  %v1783_v46 = vpop.f32.mrb[53].mxu1 }
 0x184   : > { %v1632_v53 = vpop.f32.mrb[54].mxu0  ;;  %2596 = vmatprep.mubr.bf16.mxu0 %v2541_v38  ;;  %v1631_v48 = vadd.f32 %v1630_v41, %v13823_v6  ;;  %v1784_v11 = vadd.f32 %v1783_v46, %v13823_v6  ;;  %v1785_v50 = vpop.f32.mrb[54].mxu1  ;;  %10877 = vmatprep.mubr.msk.bf16.mxu1 %vm2837_vm3, %v2706_v42 }
 0x185   : > { %v1634_v51 = vpop.f32.mrb[55].mxu0  ;;  %2597 = vmatmul.mubr.bf16.vlgmr.msra.gmra.mrb[144].mxu0 %v2540_v34  ;;  %v1633_v52 = vadd.f32 %v1632_v53, %v13833_v40  ;;  %v1786_v0 = vadd.f32 %v1785_v50, %v13833_v40  ;;  %v1787_v12 = vpop.f32.mrb[55].mxu1  ;;  %2911 = vmatmul.mubr.bf16.vlgmr.msra.gmra.mrb[144].mxu1 %v2705_v36  ;;  %v1910_v60 = vmax.f32 %v1629_v63, 0.0  ;;  %v1912_v6 = vmax.f32 %v1782_v44, 0.0 }
 0x186   : > { %v1635_v55 = vadd.f32 %v1634_v51, %v13833_v40  ;;  %v1788_v56 = vadd.f32 %v1787_v12, %v13833_v40  ;;  %v1911_v5 = vmax.f32 %v1631_v48, 0.0  ;;  %v1913_v17 = vmax.f32 %v1784_v11, 0.0 }
 0x187   : > { %v1918_v62 = vmax.f32 %v1633_v52, 0.0  ;;  %v1920_v28 = vmax.f32 %v1786_v0, 0.0 }
 0x188   : > { %v1919_v10 = vmax.f32 %v1635_v55, 0.0  ;;  %v1921_v19 = vmax.f32 %v1788_v56, 0.0 }
 0x189   : > { %v2542_v4 = vpack.c.bf16 %v1918_v62, %v1910_v60  ;;  %v2707_v58 = vpack.c.bf16 %v1920_v28, %v1912_v6 }
 0x18a   : > { %v1638_v20 = vpop.f32.mrb[56].mxu0  ;;  %v2543_v33 = vpack.c.bf16 %v1919_v10, %v1911_v5  ;;  %v1791_v22 = vpop.f32.mrb[56].mxu1  ;;  %v2708_v26 = vpack.c.bf16 %v1921_v19, %v1913_v17 }
 0x18b   : > { %v1640_v23 = vpop.f32.mrb[57].mxu0  ;;  %v1639_v27 = vadd.f32 %v1638_v20, %v13852_v21  ;;  %v1792_v59 = vadd.f32 %v1791_v22, %v13852_v21  ;;  %v1793_v40 = vpop.f32.mrb[57].mxu1 }
 0x18c   : > { %v1642_v30 = vpop.f32.mrb[58].mxu0  ;;  %2604 = vmatprep.mubr.bf16.mxu0 %v2543_v33  ;;  %v1641_v31 = vadd.f32 %v1640_v23, %v13852_v21  ;;  %v1794_v49 = vadd.f32 %v1793_v40, %v13852_v21  ;;  %v1795_v32 = vpop.f32.mrb[58].mxu1  ;;  %10878 = vmatprep.mubr.msk.bf16.mxu1 %vm2837_vm3, %v2708_v26 }
 0x18d   : > { %v1644_v34 = vpop.f32.mrb[59].mxu0  ;;  %2605 = vmatmul.mubr.bf16.gmra.mrb[148].mxu0 %v2542_v4  ;;  %v1643_v8 = vadd.f32 %v1642_v30, %v13854_v24  ;;  %v1796_v36 = vadd.f32 %v1795_v32, %v13854_v24  ;;  %v1797_v37 = vpop.f32.mrb[59].mxu1  ;;  %2919 = vmatmul.mubr.bf16.gmra.mrb[148].mxu1 %v2707_v58  ;;  %v1926_v41 = vmax.f32 %v1639_v27, 0.0  ;;  %v1928_v21 = vmax.f32 %v1792_v59, 0.0 }
 0x18e   : > { %v1645_v38 = vadd.f32 %v1644_v34, %v13854_v24  ;;  %v1798_v39 = vadd.f32 %v1797_v37, %v13854_v24  ;;  %v1927_v63 = vmax.f32 %v1641_v31, 0.0  ;;  %v1929_v53 = vmax.f32 %v1794_v49, 0.0 }
 0x18f   : > { %v1934_v42 = vmax.f32 %v1643_v8, 0.0  ;;  %v1936_v46 = vmax.f32 %v1796_v36, 0.0 }
 0x190   : > { %v1935_v44 = vmax.f32 %v1645_v38, 0.0  ;;  %v1937_v48 = vmax.f32 %v1798_v39, 0.0 }
 0x191   : > { %v2544_v11 = vpack.c.bf16 %v1934_v42, %v1926_v41  ;;  %v2709_v52 = vpack.c.bf16 %v1936_v46, %v1928_v21 }
 0x192   : > { %v1648_v50 = vpop.f32.mrb[60].mxu0  ;;  %v2545_v51 = vpack.c.bf16 %v1935_v44, %v1927_v63  ;;  %v1801_v0 = vpop.f32.mrb[60].mxu1  ;;  %v2710_v55 = vpack.c.bf16 %v1937_v48, %v1929_v53 }
 0x193   : > { %v1650_v12 = vpop.f32.mrb[61].mxu0  ;;  %v1649_v56 = vadd.f32 %v1648_v50, %v13876_v54  ;;  %v1802_v60 = vadd.f32 %v1801_v0, %v13876_v54  ;;  %v1803_v24 = vpop.f32.mrb[61].mxu1 }
 0x194   : > { %v1652_v62 = vpop.f32.mrb[62].mxu0  ;;  %2612 = vmatprep.mubr.bf16.mxu0 %v2545_v51  ;;  %v1651_v5 = vadd.f32 %v1650_v12, %v13876_v54  ;;  %v1804_v10 = vadd.f32 %v1803_v24, %v13876_v54  ;;  %v1805_v6 = vpop.f32.mrb[62].mxu1  ;;  %10879 = vmatprep.mubr.msk.bf16.mxu1 %vm2837_vm3, %v2710_v55 }
 0x195   : > { %v1654_v28 = vpop.f32.mrb[63].mxu0  ;;  %2613 = vmatmul.mubr.bf16.gmra.mrb[152].mxu0 %v2544_v11  ;;  %v1653_v17 = vadd.f32 %v1652_v62, %v13878_v57  ;;  %v1806_v19 = vadd.f32 %v1805_v6, %v13878_v57  ;;  %v1807_v4 = vpop.f32.mrb[63].mxu1  ;;  %2927 = vmatmul.mubr.bf16.gmra.mrb[152].mxu1 %v2709_v52  ;;  %v1942_v58 = vmax.f32 %v1649_v56, 0.0  ;;  %v1944_v54 = vmax.f32 %v1802_v60, 0.0 }
 0x196   : > { %v1655_v20 = vadd.f32 %v1654_v28, %v13878_v57  ;;  %v1808_v33 = vadd.f32 %v1807_v4, %v13878_v57  ;;  %v1943_v23 = vmax.f32 %v1651_v5, 0.0  ;;  %v1945_v59 = vmax.f32 %v1804_v10, 0.0 }
 0x197   : > { %v1950_v22 = vmax.f32 %v1653_v17, 0.0  ;;  %v1952_v27 = vmax.f32 %v1806_v19, 0.0 }
 0x198   : > { %v1951_v26 = vmax.f32 %v1655_v20, 0.0  ;;  %v1953_v40 = vmax.f32 %v1808_v33, 0.0 }
 0x199   : > { %v2546_v30 = vpack.c.bf16 %v1950_v22, %v1942_v58  ;;  %v2711_v32 = vpack.c.bf16 %v1952_v27, %v1944_v54 }
 0x19a   : > { %v1658_v31 = vpop.f32.mrb[64].mxu0  ;;  %v2547_v49 = vpack.c.bf16 %v1951_v26, %v1943_v23  ;;  %v1811_v34 = vpop.f32.mrb[64].mxu1  ;;  %v2712_v36 = vpack.c.bf16 %v1953_v40, %v1945_v59 }
 0x19b   : > { %v1660_v8 = vpop.f32.mrb[65].mxu0  ;;  %v1659_v37 = vadd.f32 %v1658_v31, %v13900_v35  ;;  %v1812_v38 = vadd.f32 %v1811_v34, %v13900_v35  ;;  %v1813_v57 = vpop.f32.mrb[65].mxu1 }
 0x19c   : > { %v1662_v39 = vpop.f32.mrb[66].mxu0  ;;  %2620 = vmatprep.mubr.bf16.mxu0 %v2547_v49  ;;  %v1661_v41 = vadd.f32 %v1660_v8, %v13900_v35  ;;  %v1814_v42 = vadd.f32 %v1813_v57, %v13900_v35  ;;  %v1815_v63 = vpop.f32.mrb[66].mxu1  ;;  %10880 = vmatprep.mubr.msk.bf16.mxu1 %vm2837_vm3, %v2712_v36 }
 0x19d   : > { %v1664_v44 = vpop.f32.mrb[67].mxu0  ;;  %2621 = vmatmul.mubr.bf16.gmra.mrb[156].mxu0 %v2546_v30  ;;  %v1663_v21 = vadd.f32 %v1662_v39, %v13902_v61  ;;  %v1816_v46 = vadd.f32 %v1815_v63, %v13902_v61  ;;  %v1817_v53 = vpop.f32.mrb[67].mxu1  ;;  %2935 = vmatmul.mubr.bf16.gmra.mrb[156].mxu1 %v2711_v32  ;;  %v1958_v50 = vmax.f32 %v1659_v37, 0.0  ;;  %v1960_v35 = vmax.f32 %v1812_v38, 0.0 }
 0x19e   : > { %v1665_v48 = vadd.f32 %v1664_v44, %v13902_v61  ;;  %v1818_v11 = vadd.f32 %v1817_v53, %v13902_v61  ;;  %v1959_v52 = vmax.f32 %v1661_v41, 0.0  ;;  %v1961_v55 = vmax.f32 %v1814_v42, 0.0 }
 0x19f   : > { %v1966_v51 = vmax.f32 %v1663_v21, 0.0  ;;  %v1968_v12 = vmax.f32 %v1816_v46, 0.0 }
 0x1a0   : > { %v1967_v0 = vmax.f32 %v1665_v48, 0.0  ;;  %v1969_v56 = vmax.f32 %v1818_v11, 0.0 }
 0x1a1   : > { %v2548_v60 = vpack.c.bf16 %v1966_v51, %v1958_v50  ;;  %v2713_v5 = vpack.c.bf16 %v1968_v12, %v1960_v35 }
 0x1a2   : > { %v1668_v24 = vpop.f32.mrb[68].mxu0  ;;  %v2549_v62 = vpack.c.bf16 %v1967_v0, %v1959_v52  ;;  %v1821_v10 = vpop.f32.mrb[68].mxu1  ;;  %v2714_v28 = vpack.c.bf16 %v1969_v56, %v1961_v55 }
 0x1a3   : > { %v1670_v6 = vpop.f32.mrb[69].mxu0  ;;  %v1669_v17 = vadd.f32 %v1668_v24, %v13924_v15  ;;  %v1822_v19 = vadd.f32 %v1821_v10, %v13924_v15  ;;  %v1823_v61 = vpop.f32.mrb[69].mxu1 }
 0x1a4   : > { %v1672_v4 = vpop.f32.mrb[70].mxu0  ;;  %2628 = vmatprep.mubr.bf16.mxu0 %v2549_v62  ;;  %v1671_v20 = vadd.f32 %v1670_v6, %v13924_v15  ;;  %v1824_v33 = vadd.f32 %v1823_v61, %v13924_v15  ;;  %v1825_v58 = vpop.f32.mrb[70].mxu1  ;;  %10881 = vmatprep.mubr.msk.bf16.mxu1 %vm2837_vm3, %v2714_v28 }
 0x1a5   : > { %v1674_v22 = vpop.f32.mrb[71].mxu0  ;;  %2629 = vmatmul.mubr.bf16.gmra.mrb[160].mxu0 %v2548_v60  ;;  %v1673_v23 = vadd.f32 %v1672_v4, %v13926_v18  ;;  %v1826_v26 = vadd.f32 %v1825_v58, %v13926_v18  ;;  %v1827_v54 = vpop.f32.mrb[71].mxu1  ;;  %2943 = vmatmul.mubr.bf16.gmra.mrb[160].mxu1 %v2713_v5  ;;  %v1974_v40 = vmax.f32 %v1669_v17, 0.0  ;;  %v1976_v15 = vmax.f32 %v1822_v19, 0.0 }
 0x1a6   : > { %v1675_v27 = vadd.f32 %v1674_v22, %v13926_v18  ;;  %v1828_v59 = vadd.f32 %v1827_v54, %v13926_v18  ;;  %v1975_v31 = vmax.f32 %v1671_v20, 0.0  ;;  %v1977_v34 = vmax.f32 %v1824_v33, 0.0 }
 0x1a7   : > { %v1982_v30 = vmax.f32 %v1673_v23, 0.0  ;;  %v1984_v32 = vmax.f32 %v1826_v26, 0.0 }
 0x1a8   : > { %v1983_v49 = vmax.f32 %v1675_v27, 0.0  ;;  %v1985_v8 = vmax.f32 %v1828_v59, 0.0 }
 0x1a9   : > { %v2550_v36 = vpack.c.bf16 %v1982_v30, %v1974_v40  ;;  %v2715_v57 = vpack.c.bf16 %v1984_v32, %v1976_v15 }
 0x1aa   : > { %v1678_v37 = vpop.f32.mrb[72].mxu0  ;;  %v2551_v38 = vpack.c.bf16 %v1983_v49, %v1975_v31  ;;  %v1831_v39 = vpop.f32.mrb[72].mxu1  ;;  %v2716_v42 = vpack.c.bf16 %v1985_v8, %v1977_v34 }
 0x1ab   : > { %v1680_v41 = vpop.f32.mrb[73].mxu0  ;;  %v1679_v63 = vadd.f32 %v1678_v37, %v13945_v43  ;;  %v1832_v44 = vadd.f32 %v1831_v39, %v13945_v43  ;;  %v1833_v18 = vpop.f32.mrb[73].mxu1 }
 0x1ac   : > { %v1682_v21 = vpop.f32.mrb[74].mxu0  ;;  %2636 = vmatprep.mubr.bf16.mxu0 %v2551_v38  ;;  %v1681_v46 = vadd.f32 %v1680_v41, %v13945_v43  ;;  %v1834_v53 = vadd.f32 %v1833_v18, %v13945_v43  ;;  %v1835_v48 = vpop.f32.mrb[74].mxu1  ;;  %10882 = vmatprep.mubr.msk.bf16.mxu1 %vm2837_vm3, %v2716_v42 }
 0x1ad   : > { %v1684_v11 = vpop.f32.mrb[75].mxu0  ;;  %2637 = vmatmul.mubr.bf16.gmra.mrb[164].mxu0 %v2550_v36  ;;  %v1683_v50 = vadd.f32 %v1682_v21, %v13947_v47  ;;  %v1836_v51 = vadd.f32 %v1835_v48, %v13947_v47  ;;  %v1837_v52 = vpop.f32.mrb[75].mxu1  ;;  %2951 = vmatmul.mubr.bf16.gmra.mrb[164].mxu1 %v2715_v57  ;;  %v1990_v12 = vmax.f32 %v1679_v63, 0.0  ;;  %v1992_v43 = vmax.f32 %v1832_v44, 0.0 }
 0x1ae   : > { %v1685_v0 = vadd.f32 %v1684_v11, %v13947_v47  ;;  %v1838_v35 = vadd.f32 %v1837_v52, %v13947_v47  ;;  %v1991_v56 = vmax.f32 %v1681_v46, 0.0  ;;  %v1993_v62 = vmax.f32 %v1834_v53, 0.0 }
 0x1af   : > { %v1998_v55 = vmax.f32 %v1683_v50, 0.0  ;;  %v2000_v24 = vmax.f32 %v1836_v51, 0.0 }
 0x1b0   : > { %v1999_v60 = vmax.f32 %v1685_v0, 0.0  ;;  %v2001_v5 = vmax.f32 %v1838_v35, 0.0 }
 0x1b1   : > { %v2552_v10 = vpack.c.bf16 %v1998_v55, %v1990_v12  ;;  %v2717_v17 = vpack.c.bf16 %v2000_v24, %v1992_v43 }
 0x1b2   : > { %v1688_v6 = vpop.f32.mrb[76].mxu0  ;;  %v2553_v28 = vpack.c.bf16 %v1999_v60, %v1991_v56  ;;  %v1841_v19 = vpop.f32.mrb[76].mxu1  ;;  %v2718_v4 = vpack.c.bf16 %v2001_v5, %v1993_v62 }
 0x1b3   : > { %v1690_v61 = vpop.f32.mrb[77].mxu0  ;;  %v1689_v20 = vadd.f32 %v1688_v6, %v13965_v25  ;;  %v1842_v33 = vadd.f32 %v1841_v19, %v13965_v25  ;;  %v1843_v47 = vpop.f32.mrb[77].mxu1 }
 0x1b4   : > { %v1692_v58 = vpop.f32.mrb[78].mxu0  ;;  %2644 = vmatprep.mubr.bf16.mxu0 %v2553_v28  ;;  %v1691_v22 = vadd.f32 %v1690_v61, %v13965_v25  ;;  %v1844_v23 = vadd.f32 %v1843_v47, %v13965_v25  ;;  %v1845_v26 = vpop.f32.mrb[78].mxu1  ;;  %10883 = vmatprep.mubr.msk.bf16.mxu1 %vm2837_vm3, %v2718_v4 }
 0x1b5   : > { %v1694_v54 = vpop.f32.mrb[79].mxu0  ;;  %2645 = vmatmul.mubr.bf16.gmra.mrb[168].mxu0 %v2552_v10  ;;  %v1693_v27 = vadd.f32 %v1692_v58, %v13967_v13  ;;  %v1846_v59 = vadd.f32 %v1845_v26, %v13967_v13  ;;  %v1847_v40 = vpop.f32.mrb[79].mxu1  ;;  %2959 = vmatmul.mubr.bf16.gmra.mrb[168].mxu1 %v2717_v17  ;;  %v2006_v49 = vmax.f32 %v1689_v20, 0.0  ;;  %v2008_v25 = vmax.f32 %v1842_v33, 0.0 }
 0x1b6   : > { %v1695_v30 = vadd.f32 %v1694_v54, %v13967_v13  ;;  %v1848_v31 = vadd.f32 %v1847_v40, %v13967_v13  ;;  %v2007_v32 = vmax.f32 %v1691_v22, 0.0  ;;  %v2009_v36 = vmax.f32 %v1844_v23, 0.0 }
 0x1b7   : > { %v2014_v15 = vmax.f32 %v1693_v27, 0.0  ;;  %v2016_v8 = vmax.f32 %v1846_v59, 0.0 }
 0x1b8   : > { %v2015_v34 = vmax.f32 %v1695_v30, 0.0  ;;  %v2017_v37 = vmax.f32 %v1848_v31, 0.0 }
 0x1b9   : > { %v2554_v38 = vpack.c.bf16 %v2014_v15, %v2006_v49  ;;  %v2719_v41 = vpack.c.bf16 %v2016_v8, %v2008_v25 }
 0x1ba   : > { %v1698_v57 = vpop.f32.mrb[80].mxu0  ;;  %v2555_v39 = vpack.c.bf16 %v2015_v34, %v2007_v32  ;;  %v1851_v42 = vpop.f32.mrb[80].mxu1  ;;  %v2720_v44 = vpack.c.bf16 %v2017_v37, %v2009_v36 }
 0x1bb   : > { %v1700_v63 = vpop.f32.mrb[81].mxu0  ;;  %v1699_v18 = vadd.f32 %v1698_v57, %v13986_v3  ;;  %v1852_v21 = vadd.f32 %v1851_v42, %v13986_v3  ;;  %v1853_v13 = vpop.f32.mrb[81].mxu1 }
 0x1bc   : > { %v1702_v46 = vpop.f32.mrb[82].mxu0  ;;  %2652 = vmatprep.mubr.bf16.mxu0 %v2555_v39  ;;  %v1701_v53 = vadd.f32 %v1700_v63, %v13986_v3  ;;  %v1854_v48 = vadd.f32 %v1853_v13, %v13986_v3  ;;  %v1855_v11 = vpop.f32.mrb[82].mxu1  ;;  %10884 = vmatprep.mubr.msk.bf16.mxu1 %vm2837_vm3, %v2720_v44 }
 0x1bd   : > { %v1704_v50 = vpop.f32.mrb[83].mxu0  ;;  %2653 = vmatmul.mubr.bf16.gmra.mrb[172].mxu0 %v2554_v38  ;;  %v1703_v51 = vadd.f32 %v1702_v46, %v13988_v14  ;;  %v1856_v52 = vadd.f32 %v1855_v11, %v13988_v14  ;;  %v1857_v0 = vpop.f32.mrb[83].mxu1  ;;  %2967 = vmatmul.mubr.bf16.gmra.mrb[172].mxu1 %v2719_v41  ;;  %v2022_v55 = vmax.f32 %v1699_v18, 0.0  ;;  %v2024_v3 = vmax.f32 %v1852_v21, 0.0 }
 0x1be   : > { %v1705_v35 = vadd.f32 %v1704_v50, %v13988_v14  ;;  %v1858_v12 = vadd.f32 %v1857_v0, %v13988_v14  ;;  %v2023_v60 = vmax.f32 %v1701_v53, 0.0  ;;  %v2025_v62 = vmax.f32 %v1854_v48, 0.0 }
 0x1bf   : > { %v2030_v56 = vmax.f32 %v1703_v51, 0.0  ;;  %v2032_v24 = vmax.f32 %v1856_v52, 0.0 }
 0x1c0   : > { %v2031_v43 = vmax.f32 %v1705_v35, 0.0  ;;  %v2033_v5 = vmax.f32 %v1858_v12, 0.0 }
 0x1c1   : > { %v2556_v10 = vpack.c.bf16 %v2030_v56, %v2022_v55  ;;  %v2721_v17 = vpack.c.bf16 %v2032_v24, %v2024_v3 }
 0x1c2   : > { %v1708_v6 = vpop.f32.mrb[84].mxu0  ;;  %v2557_v28 = vpack.c.bf16 %v2031_v43, %v2023_v60  ;;  %v1861_v19 = vpop.f32.mrb[84].mxu1  ;;  %v2722_v4 = vpack.c.bf16 %v2033_v5, %v2025_v62 }
 0x1c3   : > { %v1710_v61 = vpop.f32.mrb[85].mxu0  ;;  %v1709_v20 = vadd.f32 %v1708_v6, %v13998_v9  ;;  %v1862_v33 = vadd.f32 %v1861_v19, %v13998_v9  ;;  %v1863_v14 = vpop.f32.mrb[85].mxu1 }
 0x1c4   : > { %v1712_v47 = vpop.f32.mrb[86].mxu0  ;;  %2660 = vmatprep.mubr.bf16.mxu0 %v2557_v28  ;;  %v1711_v58 = vadd.f32 %v1710_v61, %v13998_v9  ;;  %v1864_v22 = vadd.f32 %v1863_v14, %v13998_v9  ;;  %v1865_v23 = vpop.f32.mrb[86].mxu1  ;;  %10885 = vmatprep.mubr.msk.bf16.mxu1 %vm2837_vm3, %v2722_v4 }
 0x1c5   : > { %v1714_v26 = vpop.f32.mrb[87].mxu0  ;;  %2661 = vmatmul.mubr.bf16.gmra.mrb[176].mxu0 %v2556_v10  ;;  %v1713_v54 = vadd.f32 %v1712_v47, %v14000_v45  ;;  %v1866_v27 = vadd.f32 %v1865_v23, %v14000_v45  ;;  %v1867_v59 = vpop.f32.mrb[87].mxu1  ;;  %2975 = vmatmul.mubr.bf16.gmra.mrb[176].mxu1 %v2721_v17  ;;  %v2038_v31 = vmax.f32 %v1709_v20, 0.0  ;;  %v2040_v9 = vmax.f32 %v1862_v33, 0.0 }
 0x1c6   : > { %v1715_v40 = vadd.f32 %v1714_v26, %v14000_v45  ;;  %v1868_v30 = vadd.f32 %v1867_v59, %v14000_v45  ;;  %v2039_v15 = vmax.f32 %v1711_v58, 0.0  ;;  %v2041_v25 = vmax.f32 %v1864_v22, 0.0 }
 0x1c7   : > { %v2046_v49 = vmax.f32 %v1713_v54, 0.0  ;;  %v2048_v34 = vmax.f32 %v1866_v27, 0.0 }
 0x1c8   : > { %v2047_v32 = vmax.f32 %v1715_v40, 0.0  ;;  %v2049_v8 = vmax.f32 %v1868_v30, 0.0 }
 0x1c9   : > { %v2558_v36 = vpack.c.bf16 %v2046_v49, %v2038_v31  ;;  %v2723_v57 = vpack.c.bf16 %v2048_v34, %v2040_v9 }
 0x1ca   : > { %v1718_v37 = vpop.f32.mrb[88].mxu0  ;;  %v2559_v38 = vpack.c.bf16 %v2047_v32, %v2039_v15  ;;  %v1871_v39 = vpop.f32.mrb[88].mxu1  ;;  %v2724_v42 = vpack.c.bf16 %v2049_v8, %v2041_v25 }
 0x1cb   : > { %v1720_v41 = vpop.f32.mrb[89].mxu0  ;;  %v1719_v63 = vadd.f32 %v1718_v37, %v14010_v7  ;;  %v1872_v44 = vadd.f32 %v1871_v39, %v14010_v7  ;;  %v1873_v45 = vpop.f32.mrb[89].mxu1 }
 0x1cc   : > { %v1722_v18 = vpop.f32.mrb[90].mxu0  ;;  %2668 = vmatprep.mubr.bf16.mxu0 %v2559_v38  ;;  %v1721_v21 = vadd.f32 %v1720_v41, %v14010_v7  ;;  %v1874_v13 = vadd.f32 %v1873_v45, %v14010_v7  ;;  %v1875_v46 = vpop.f32.mrb[90].mxu1  ;;  %10886 = vmatprep.mubr.msk.bf16.mxu1 %vm2837_vm3, %v2724_v42 }
 0x1cd   : > { %v1724_v53 = vpop.f32.mrb[91].mxu0  ;;  %2669 = vmatmul.mubr.bf16.gmra.mrb[180].mxu0 %v2558_v36  ;;  %v1723_v48 = vadd.f32 %v1722_v18, %v14012_v29  ;;  %v1876_v11 = vadd.f32 %v1875_v46, %v14012_v29  ;;  %v1877_v50 = vpop.f32.mrb[91].mxu1  ;;  %2983 = vmatmul.mubr.bf16.gmra.mrb[180].mxu1 %v2723_v57  ;;  %v2054_v0 = vmax.f32 %v1719_v63, 0.0  ;;  %v2056_v7 = vmax.f32 %v1872_v44, 0.0 }
 0x1ce   : > { %v1725_v51 = vadd.f32 %v1724_v53, %v14012_v29  ;;  %v1878_v52 = vadd.f32 %v1877_v50, %v14012_v29  ;;  %v2055_v12 = vmax.f32 %v1721_v21, 0.0  ;;  %v2057_v60 = vmax.f32 %v1874_v13, 0.0 }
 0x1cf   : > { %v2062_v35 = vmax.f32 %v1723_v48, 0.0  ;;  %v2064_v56 = vmax.f32 %v1876_v11, 0.0 }
 0x1d0   : > { %v2063_v55 = vmax.f32 %v1725_v51, 0.0  ;;  %v2065_v43 = vmax.f32 %v1878_v52, 0.0 }
 0x1d1   : > { %v2560_v3 = vpack.c.bf16 %v2062_v35, %v2054_v0  ;;  %v2725_v5 = vpack.c.bf16 %v2064_v56, %v2056_v7 }
 0x1d2   : > { %v1728_v24 = vpop.f32.mrb[92].mxu0  ;;  %v2561_v62 = vpack.c.bf16 %v2063_v55, %v2055_v12  ;;  %v1881_v6 = vpop.f32.mrb[92].mxu1  ;;  %v2726_v17 = vpack.c.bf16 %v2065_v43, %v2057_v60 }
 0x1d3   : > { %v1729_v10 = vadd.f32 %v1728_v24, %v14022_v2  ;;  %v1730_v28 = vpop.f32.mrb[93].mxu0  ;;  %v1882_v19 = vadd.f32 %v1881_v6, %v14022_v2  ;;  %v1883_v61 = vpop.f32.mrb[93].mxu1 }
 0x1d4   : > { %v1731_v29 = vadd.f32 %v1730_v28, %v14022_v2  ;;  %v1732_v4 = vpop.f32.mrb[94].mxu0  ;;  %2676 = vmatprep.mubr.bf16.mxu0 %v2561_v62  ;;  %v1884_v20 = vadd.f32 %v1883_v61, %v14022_v2  ;;  %v1885_v14 = vpop.f32.mrb[94].mxu1  ;;  %10887 = vmatprep.mubr.msk.bf16.mxu1 %vm2837_vm3, %v2726_v17 }
 0x1d5   : > { %v1733_v33 = vadd.f32 %v1732_v4, %v14024_v16  ;;  %v1734_v47 = vpop.f32.mrb[95].mxu0  ;;  %2677 = vmatmul.mubr.bf16.gmra.mrb[184].mxu0 %v2560_v3  ;;  %v1886_v58 = vadd.f32 %v1885_v14, %v14024_v16  ;;  %v1887_v23 = vpop.f32.mrb[95].mxu1  ;;  %2991 = vmatmul.mubr.bf16.gmra.mrb[184].mxu1 %v2725_v5  ;;  %v2070_v26 = vmax.f32 %v1729_v10, 0.0  ;;  %v2072_v59 = vmax.f32 %v1882_v19, 0.0 }
 0x1d6   : > { %v1735_v22 = vadd.f32 %v1734_v47, %v14024_v16  ;;  %v1888_v27 = vadd.f32 %v1887_v23, %v14024_v16  ;;  %v2071_v40 = vmax.f32 %v1731_v29, 0.0  ;;  %v2073_v31 = vmax.f32 %v1884_v20, 0.0 }
 0x1d7   : > { %v2078_v54 = vmax.f32 %v1733_v33, 0.0  ;;  %v2080_v2 = vmax.f32 %v1886_v58, 0.0 }
 0x1d8   : > { %v2079_v30 = vmax.f32 %v1735_v22, 0.0  ;;  %v2081_v15 = vmax.f32 %v1888_v27, 0.0 }
 0x1d9   : > { %v2562_v49 = vpack.c.bf16 %v2078_v54, %v2070_v26  ;;  %v2727_v9 = vpack.c.bf16 %v2080_v2, %v2072_v59 }
 0x1da   : > { %v2563_v32 = vpack.c.bf16 %v2079_v30, %v2071_v40  ;;  %v2728_v34 = vpack.c.bf16 %v2081_v15, %v2073_v31 }
 0x1dc   : > { %2684 = vmatprep.mubr.bf16.mxu0 %v2563_v32  ;;  %10888 = vmatprep.mubr.msk.bf16.mxu1 %vm2837_vm3, %v2728_v34 }
 0x1dd   : > { %2685 = vmatmul.mubr.bf16.gmra.mrb[188].mxu0 %v2562_v49  ;;  %2999 = vmatmul.mubr.bf16.gmra.mrb[188].mxu1 %v2727_v9 }
 0x1f8   : > { %v11663_v25 = vpop.f32.mrb[96].mxu0  ;;  %v11751_v8 = vpop.f32.mrb[96].mxu1 }
 0x1f9   : > { %v11664_v36 = vpop.f32.mrb[97].mxu0  ;;  %v11752_v16 = vpop.f32.mrb[97].mxu1 }
 0x1fa   : > { %v11665_v37 = vadd.f32 %v11664_v36, %v11663_v25  ;;  %v11666_v38 = vpop.f32.mrb[98].mxu0  ;;  %v11753_v57 = vadd.f32 %v11752_v16, %v11751_v8  ;;  %v11754_v39 = vpop.f32.mrb[98].mxu1 }
 0x1fb   : > { %v11667_v41 = vpop.f32.mrb[99].mxu0  ;;  %v11755_v63 = vpop.f32.mrb[99].mxu1 }
 0x1fc   : > { %v11668_v42 = vadd.f32 %v11667_v41, %v11666_v38  ;;  %v11756_v44 = vadd.f32 %v11755_v63, %v11754_v39 }
 0x1fe   : > { %v14142_v45 = vpack.c.bf16 %v11668_v42, %v11665_v37  ;;  %v14144_v18 = vpack.c.bf16 %v11756_v44, %v11753_v57 }
 0x200   : > { %v11669_v21 = vpop.f32.mrb[100].mxu0  ;;  %v11757_v13 = vpop.f32.mrb[100].mxu1  ;;  %3226 = vrot.lane.b32.xlu0 %v14144_v18, %s13202_s22 }
 0x201   : > { %v11670_v46 = vpop.f32.mrb[101].mxu0  ;;  %v11758_v48 = vpop.f32.mrb[101].mxu1 }
 0x202   : > { %v11671_v53 = vadd.f32 %v11670_v46, %v11669_v21  ;;  %v11672_v11 = vpop.f32.mrb[102].mxu0  ;;  %v11759_v50 = vadd.f32 %v11758_v48, %v11757_v13  ;;  %v11760_v51 = vpop.f32.mrb[102].mxu1 }
 0x203   : > { %v11673_v52 = vpop.f32.mrb[103].mxu0  ;;  %v11761_v35 = vpop.f32.mrb[103].mxu1 }
 0x204   : > { %v11674_v0 = vadd.f32 %v11673_v52, %v11672_v11  ;;  %v11762_v12 = vadd.f32 %v11761_v35, %v11760_v51  ;;  %3224 = vrot.lane.b32.xlu0 %v14142_v45, %s13202_s22 }
 0x206   : > { %v14150_v55 = vpack.c.bf16 %v11674_v0, %v11671_v53  ;;  %v14152_v7 = vpack.c.bf16 %v11762_v12, %v11759_v50 }
 0x208   : > { %17355 = vst [vmem:[#allocation2_spill] sm:$0xff] %v14150_v55  ;;  %v11675_v56 = vpop.f32.mrb[104].mxu0  ;;  %v11763_v60 = vpop.f32.mrb[104].mxu1  ;;  %3234 = vrot.lane.b32.xlu0 %v14152_v7, %s13202_s22 }
 0x209   : > { %v11676_v43 = vpop.f32.mrb[105].mxu0  ;;  %v11764_v24 = vpop.f32.mrb[105].mxu1 }
 0x20a   : > { %v11677_v3 = vadd.f32 %v11676_v43, %v11675_v56  ;;  %v11678_v62 = vpop.f32.mrb[106].mxu0  ;;  %v11765_v5 = vadd.f32 %v11764_v24, %v11763_v60  ;;  %v11766_v10 = vpop.f32.mrb[106].mxu1 }
 0x20b   : > { %v11679_v6 = vpop.f32.mrb[107].mxu0  ;;  %v11767_v17 = vpop.f32.mrb[107].mxu1 }
 0x20c   : > { %v11680_v28 = vadd.f32 %v11679_v6, %v11678_v62  ;;  %v11768_v19 = vadd.f32 %v11767_v17, %v11766_v10  ;;  %3232 = vrot.lane.b32.xlu0 %v14150_v55, %s13202_s22 }
 0x20e   : > { %v14158_v29 = vpack.c.bf16 %v11680_v28, %v11677_v3  ;;  %v14160_v61 = vpack.c.bf16 %v11768_v19, %v11765_v5 }
 0x210   : > { %17356 = vst [vmem:[#allocation3_spill] sm:$0xff] %v14160_v61  ;;  %v11681_v4 = vpop.f32.mrb[108].mxu0  ;;  %v11769_v20 = vpop.f32.mrb[108].mxu1  ;;  %3242 = vrot.lane.b32.xlu0 %v14160_v61, %s13202_s22 }
 0x211   : > { %v11682_v33 = vpop.f32.mrb[109].mxu0  ;;  %v11770_v47 = vpop.f32.mrb[109].mxu1 }
 0x212   : > { %v11683_v14 = vadd.f32 %v11682_v33, %v11681_v4  ;;  %v11684_v58 = vpop.f32.mrb[110].mxu0  ;;  %v11771_v22 = vadd.f32 %v11770_v47, %v11769_v20  ;;  %v11772_v23 = vpop.f32.mrb[110].mxu1 }
 0x213   : > { %v11685_v26 = vpop.f32.mrb[111].mxu0  ;;  %v11773_v27 = vpop.f32.mrb[111].mxu1 }
 0x214   : > { %v11686_v54 = vadd.f32 %v11685_v26, %v11684_v58  ;;  %v11774_v59 = vadd.f32 %v11773_v27, %v11772_v23  ;;  %3240 = vrot.lane.b32.xlu0 %v14158_v29, %s13202_s22 }
 0x216   : > { %v14166_v40 = vpack.c.bf16 %v11686_v54, %v11683_v14  ;;  %v14168_v2 = vpack.c.bf16 %v11774_v59, %v11771_v22 }
 0x218   : > { %v11687_v30 = vpop.f32.mrb[112].mxu0  ;;  %v11775_v31 = vpop.f32.mrb[112].mxu1  ;;  %3250 = vrot.lane.b32.xlu0 %v14168_v2, %s13202_s22 }
 0x219   : > { %v11688_v49 = vpop.f32.mrb[113].mxu0  ;;  %v11776_v32 = vpop.f32.mrb[113].mxu1 }
 0x21a   : > { %v11689_v15 = vadd.f32 %v11688_v49, %v11687_v30  ;;  %v11690_v9 = vpop.f32.mrb[114].mxu0  ;;  %v11777_v34 = vadd.f32 %v11776_v32, %v11775_v31  ;;  %v11778_v25 = vpop.f32.mrb[114].mxu1 }
 0x21b   : > { %v11691_v8 = vpop.f32.mrb[115].mxu0  ;;  %v11779_v37 = vpop.f32.mrb[115].mxu1 }
 0x21c   : > { %v11692_v36 = vadd.f32 %v11691_v8, %v11690_v9  ;;  %v11780_v16 = vadd.f32 %v11779_v37, %v11778_v25  ;;  %3248 = vrot.lane.b32.xlu0 %v14166_v40, %s13202_s22 }
 0x21e   : > { %v14174_v38 = vpack.c.bf16 %v11692_v36, %v11689_v15  ;;  %v14176_v57 = vpack.c.bf16 %v11780_v16, %v11777_v34 }
 0x220   : > { %v11693_v39 = vpop.f32.mrb[116].mxu0  ;;  %v11781_v41 = vpop.f32.mrb[116].mxu1  ;;  %3258 = vrot.lane.b32.xlu0 %v14176_v57, %s13202_s22 }
 0x221   : > { %v11694_v42 = vpop.f32.mrb[117].mxu0  ;;  %v11782_v44 = vpop.f32.mrb[117].mxu1 }
 0x222   : > { %v11695_v63 = vadd.f32 %v11694_v42, %v11693_v39  ;;  %v11696_v21 = vpop.f32.mrb[118].mxu0  ;;  %v11783_v13 = vadd.f32 %v11782_v44, %v11781_v41  ;;  %v11784_v46 = vpop.f32.mrb[118].mxu1 }
 0x223   : > { %v11697_v53 = vpop.f32.mrb[119].mxu0  ;;  %v11785_v11 = vpop.f32.mrb[119].mxu1 }
 0x224   : > { %v11698_v48 = vadd.f32 %v11697_v53, %v11696_v21  ;;  %v11786_v50 = vadd.f32 %v11785_v11, %v11784_v46  ;;  %3256 = vrot.lane.b32.xlu0 %v14174_v38, %s13202_s22 }
 0x226   : > { %v14182_v51 = vpack.c.bf16 %v11698_v48, %v11695_v63  ;;  %v14184_v52 = vpack.c.bf16 %v11786_v50, %v11783_v13 }
 0x228   : > { %v11699_v0 = vpop.f32.mrb[120].mxu0  ;;  %v11787_v35 = vpop.f32.mrb[120].mxu1  ;;  %3266 = vrot.lane.b32.xlu0 %v14184_v52, %s13202_s22 }
 0x229   : > { %v11700_v12 = vpop.f32.mrb[121].mxu0  ;;  %v11788_v60 = vpop.f32.mrb[121].mxu1 }
 0x22a   : > { %v11701_v56 = vadd.f32 %v11700_v12, %v11699_v0  ;;  %v11702_v43 = vpop.f32.mrb[122].mxu0  ;;  %v11789_v3 = vadd.f32 %v11788_v60, %v11787_v35  ;;  %v11790_v24 = vpop.f32.mrb[122].mxu1 }
 0x22b   : > { %v11703_v62 = vpop.f32.mrb[123].mxu0  ;;  %v11791_v10 = vpop.f32.mrb[123].mxu1 }
 0x22c   : > { %v11704_v5 = vadd.f32 %v11703_v62, %v11702_v43  ;;  %v11792_v6 = vadd.f32 %v11791_v10, %v11790_v24  ;;  %3264 = vrot.lane.b32.xlu0 %v14182_v51, %s13202_s22 }
 0x22e   : > { %v14190_v28 = vpack.c.bf16 %v11704_v5, %v11701_v56  ;;  %v14192_v17 = vpack.c.bf16 %v11792_v6, %v11789_v3 }
 0x230   : > { %v11705_v19 = vpop.f32.mrb[124].mxu0  ;;  %v11793_v4 = vpop.f32.mrb[124].mxu1  ;;  %3274 = vrot.lane.b32.xlu0 %v14192_v17, %s13202_s22 }
 0x231   : > { %v11706_v20 = vpop.f32.mrb[125].mxu0  ;;  %v11794_v14 = vpop.f32.mrb[125].mxu1 }
 0x232   : > { %v11707_v33 = vadd.f32 %v11706_v20, %v11705_v19  ;;  %v11708_v47 = vpop.f32.mrb[126].mxu0  ;;  %v11795_v58 = vadd.f32 %v11794_v14, %v11793_v4  ;;  %v11796_v22 = vpop.f32.mrb[126].mxu1 }
 0x233   : > { %v11709_v23 = vpop.f32.mrb[127].mxu0  ;;  %v11797_v54 = vpop.f32.mrb[127].mxu1 }
 0x234   : > { %v11710_v26 = vadd.f32 %v11709_v23, %v11708_v47  ;;  %v11798_v27 = vadd.f32 %v11797_v54, %v11796_v22  ;;  %3272 = vrot.lane.b32.xlu0 %v14190_v28, %s13202_s22 }
 0x236   : > { %v14198_v59 = vpack.c.bf16 %v11710_v26, %v11707_v33  ;;  %v14200_v30 = vpack.c.bf16 %v11798_v27, %v11795_v58 }
 0x238   : > { %17357 = vst [vmem:[#allocation4_spill] sm:$0xff] %v14198_v59  ;;  %v11711_v31 = vpop.f32.mrb[128].mxu0  ;;  %v11799_v49 = vpop.f32.mrb[128].mxu1  ;;  %3282 = vrot.lane.b32.xlu0 %v14200_v30, %s13202_s22 }
 0x239   : > { %v11712_v15 = vpop.f32.mrb[129].mxu0  ;;  %v11800_v9 = vpop.f32.mrb[129].mxu1 }
 0x23a   : > { %v11713_v32 = vadd.f32 %v11712_v15, %v11711_v31  ;;  %v11714_v34 = vpop.f32.mrb[130].mxu0  ;;  %v11801_v25 = vadd.f32 %v11800_v9, %v11799_v49  ;;  %v11802_v8 = vpop.f32.mrb[130].mxu1 }
 0x23b   : > { %v11715_v36 = vpop.f32.mrb[131].mxu0  ;;  %v11803_v16 = vpop.f32.mrb[131].mxu1 }
 0x23c   : > { %v11716_v37 = vadd.f32 %v11715_v36, %v11714_v34  ;;  %v11804_v39 = vadd.f32 %v11803_v16, %v11802_v8  ;;  %3280 = vrot.lane.b32.xlu0 %v14198_v59, %s13202_s22 }
 0x23e   : > { %v14206_v41 = vpack.c.bf16 %v11716_v37, %v11713_v32  ;;  %v14208_v42 = vpack.c.bf16 %v11804_v39, %v11801_v25 }
 0x240   : > { %17358 = vst [vmem:[#allocation5_spill] sm:$0xff] %v14206_v41  ;;  %17359 = vst [vmem:[#allocation6_spill] sm:$0xff] %v14208_v42  ;;  %v11717_v63 = vpop.f32.mrb[132].mxu0  ;;  %v11805_v44 = vpop.f32.mrb[132].mxu1  ;;  %3290 = vrot.lane.b32.xlu0 %v14208_v42, %s13202_s22 }
 0x241   : > { %v11718_v21 = vpop.f32.mrb[133].mxu0  ;;  %v11806_v46 = vpop.f32.mrb[133].mxu1 }
 0x242   : > { %v11719_v13 = vadd.f32 %v11718_v21, %v11717_v63  ;;  %v11720_v53 = vpop.f32.mrb[134].mxu0  ;;  %v11807_v48 = vadd.f32 %v11806_v46, %v11805_v44  ;;  %v11808_v11 = vpop.f32.mrb[134].mxu1 }
 0x243   : > { %v11721_v50 = vpop.f32.mrb[135].mxu0  ;;  %v11809_v35 = vpop.f32.mrb[135].mxu1 }
 0x244   : > { %v11722_v0 = vadd.f32 %v11721_v50, %v11720_v53  ;;  %v11810_v12 = vadd.f32 %v11809_v35, %v11808_v11  ;;  %3288 = vrot.lane.b32.xlu0 %v14206_v41, %s13202_s22 }
 0x246   : > { %v14214_v56 = vpack.c.bf16 %v11722_v0, %v11719_v13  ;;  %v14216_v60 = vpack.c.bf16 %v11810_v12, %v11807_v48 }
 0x248   : > { %17360 = vst [vmem:[#allocation7_spill] sm:$0xff] %v14214_v56  ;;  %17361 = vst [vmem:[#allocation8_spill] sm:$0xff] %v14216_v60  ;;  %v11723_v43 = vpop.f32.mrb[136].mxu0  ;;  %v11811_v3 = vpop.f32.mrb[136].mxu1  ;;  %3298 = vrot.lane.b32.xlu0 %v14216_v60, %s13202_s22 }
 0x249   : > { %v11724_v24 = vpop.f32.mrb[137].mxu0  ;;  %v11812_v5 = vpop.f32.mrb[137].mxu1 }
 0x24a   : > { %v11725_v62 = vadd.f32 %v11724_v24, %v11723_v43  ;;  %v11726_v10 = vpop.f32.mrb[138].mxu0  ;;  %v11813_v6 = vadd.f32 %v11812_v5, %v11811_v3  ;;  %v11814_v19 = vpop.f32.mrb[138].mxu1 }
 0x24b   : > { %v11727_v4 = vpop.f32.mrb[139].mxu0  ;;  %v11815_v33 = vpop.f32.mrb[139].mxu1 }
 0x24c   : > { %v11728_v20 = vadd.f32 %v11727_v4, %v11726_v10  ;;  %v11816_v14 = vadd.f32 %v11815_v33, %v11814_v19  ;;  %3296 = vrot.lane.b32.xlu0 %v14214_v56, %s13202_s22 }
 0x24e   : > { %v14222_v47 = vpack.c.bf16 %v11728_v20, %v11725_v62  ;;  %v14224_v58 = vpack.c.bf16 %v11816_v14, %v11813_v6 }
 0x250   : > { %17362 = vst [vmem:[#allocation9_spill] sm:$0xff] %v14224_v58  ;;  %v11729_v22 = vpop.f32.mrb[140].mxu0  ;;  %v11817_v23 = vpop.f32.mrb[140].mxu1  ;;  %3306 = vrot.lane.b32.xlu0 %v14224_v58, %s13202_s22 }
 0x251   : > { %v11730_v26 = vpop.f32.mrb[141].mxu0  ;;  %v11818_v27 = vpop.f32.mrb[141].mxu1 }
 0x252   : > { %v11731_v54 = vadd.f32 %v11730_v26, %v11729_v22  ;;  %v11732_v31 = vpop.f32.mrb[142].mxu0  ;;  %v11819_v49 = vadd.f32 %v11818_v27, %v11817_v23  ;;  %v11820_v15 = vpop.f32.mrb[142].mxu1 }
 0x253   : > { %v11733_v32 = vpop.f32.mrb[143].mxu0  ;;  %v11821_v34 = vpop.f32.mrb[143].mxu1 }
 0x254   : > { %v11734_v9 = vadd.f32 %v11733_v32, %v11732_v31  ;;  %v11822_v25 = vadd.f32 %v11821_v34, %v11820_v15  ;;  %3304 = vrot.lane.b32.xlu0 %v14222_v47, %s13202_s22 }
 0x256   : > { %v14230_v8 = vpack.c.bf16 %v11734_v9, %v11731_v54  ;;  %v14232_v36 = vpack.c.bf16 %v11822_v25, %v11819_v49 }
 0x258   : > { %v11839_v37 = vpop.f32.mrb[144].mxu0  ;;  %v2912_v16 = vpop.f32.mrb[144].mxu1  ;;  %3314 = vrot.lane.b32.xlu0 %v14232_v36, %s13202_s22 }
 0x259   : > { %v11840_v39 = vpop.f32.mrb[145].mxu0  ;;  %v2914_v44 = vpop.f32.mrb[145].mxu1 }
 0x25a   : > { %v11841_v63 = vadd.f32 %v11840_v39, %v11839_v37  ;;  %v11842_v21 = vpop.f32.mrb[146].mxu0  ;;  %v2915_v13 = vpop.f32.mrb[146].mxu1 }
 0x25b   : > { %v11843_v46 = vpop.f32.mrb[147].mxu0  ;;  %v14236_v53 = vpack.c.bf16 %v2915_v13, %v2912_v16  ;;  %v2917_v11 = vpop.f32.mrb[147].mxu1 }
 0x25c   : > { %v11844_v48 = vadd.f32 %v11843_v46, %v11842_v21  ;;  %3312 = vrot.lane.b32.xlu0 %v14230_v8, %s13202_s22 }
 0x25d   : > { %3230 = vrot.lane.b32.xlu1 %v14236_v53, %s13202_s22 }
 0x25e   : > { %v14240_v50 = vpack.c.bf16 %v11844_v48, %v11841_v63 }
 0x260   : > { %v11845_v0 = vpop.f32.mrb[148].mxu0  ;;  %v2920_v35 = vpop.f32.mrb[148].mxu1  ;;  %4333 = vrot.lane.b32.xlu0 %v14144_v18, %s13203_s23 }
 0x261   : > { %v11846_v12 = vpop.f32.mrb[149].mxu0  ;;  %v2922_v3 = vpop.f32.mrb[149].mxu1  ;;  %3228 = vrot.lane.b32.xlu1 %v14240_v50, %s13202_s22 }
 0x262   : > { %v11847_v43 = vadd.f32 %v11846_v12, %v11845_v0  ;;  %v11848_v24 = vpop.f32.mrb[150].mxu0  ;;  %v2923_v62 = vpop.f32.mrb[150].mxu1 }
 0x263   : > { %v11849_v5 = vpop.f32.mrb[151].mxu0  ;;  %v14248_v10 = vpack.c.bf16 %v2923_v62, %v2920_v35  ;;  %v2925_v19 = vpop.f32.mrb[151].mxu1 }
 0x264   : > { %v11850_v6 = vadd.f32 %v11849_v5, %v11848_v24  ;;  %4331 = vrot.lane.b32.xlu0 %v14142_v45, %s13203_s23 }
 0x265   : > { %17363 = vst [vmem:[#allocation10_spill] sm:$0xff] %v14248_v10  ;;  %3238 = vrot.lane.b32.xlu1 %v14248_v10, %s13202_s22 }
 0x266   : > { %v14252_v4 = vpack.c.bf16 %v11850_v6, %v11847_v43 }
 0x268   : > { %v11851_v20 = vpop.f32.mrb[152].mxu0  ;;  %v2928_v33 = vpop.f32.mrb[152].mxu1  ;;  %4341 = vrot.lane.b32.xlu0 %v14152_v7, %s13203_s23 }
 0x269   : > { %v11852_v14 = vpop.f32.mrb[153].mxu0  ;;  %v2930_v23 = vpop.f32.mrb[153].mxu1  ;;  %3236 = vrot.lane.b32.xlu1 %v14252_v4, %s13202_s22 }
 0x26a   : > { %v11853_v22 = vadd.f32 %v11852_v14, %v11851_v20  ;;  %v11854_v26 = vpop.f32.mrb[154].mxu0  ;;  %v2931_v54 = vpop.f32.mrb[154].mxu1 }
 0x26b   : > { %v11855_v27 = vpop.f32.mrb[155].mxu0  ;;  %v14260_v31 = vpack.c.bf16 %v2931_v54, %v2928_v33  ;;  %v2933_v15 = vpop.f32.mrb[155].mxu1 }
 0x26c   : > { %v11856_v49 = vadd.f32 %v11855_v27, %v11854_v26  ;;  %4339 = vrot.lane.b32.xlu0 %v14150_v55, %s13203_s23 }
 0x26d   : > { %3246 = vrot.lane.b32.xlu1 %v14260_v31, %s13202_s22 }
 0x26e   : > { %v14264_v32 = vpack.c.bf16 %v11856_v49, %v11853_v22 }
 0x270   : > { %v11857_v9 = vpop.f32.mrb[156].mxu0  ;;  %v2936_v34 = vpop.f32.mrb[156].mxu1  ;;  %4349 = vrot.lane.b32.xlu0 %v14160_v61, %s13203_s23 }
 0x271   : > { %v11858_v25 = vpop.f32.mrb[157].mxu0  ;;  %v2938_v16 = vpop.f32.mrb[157].mxu1  ;;  %3244 = vrot.lane.b32.xlu1 %v14264_v32, %s13202_s22 }
 0x272   : > { %v11859_v37 = vadd.f32 %v11858_v25, %v11857_v9  ;;  %v11860_v39 = vpop.f32.mrb[158].mxu0  ;;  %v2939_v63 = vpop.f32.mrb[158].mxu1 }
 0x273   : > { %v14272_v44 = vpop.permute.xlu0 %3226  ;;  %v14274_v21 = vpack.c.bf16 %v2939_v63, %v2936_v34  ;;  %v11861_v13 = vpop.f32.mrb[159].mxu0 }
 0x274   : > { %v2941_v46 = vpop.f32.mrb[159].mxu1  ;;  %v11862_v48 = vadd.f32 %v11861_v13, %v11860_v39  ;;  %4347 = vrot.lane.b32.xlu0 %v14158_v29, %s13203_s23 }
 0x275   : > { %3254 = vrot.lane.b32.xlu1 %v14274_v21, %s13202_s22 }
 0x276   : > { %v14280_v11 = vpack.c.bf16 %v11862_v48, %v11859_v37 }
 0x277   : > { %v14282_v0 = vpop.permute.xlu0 %3224 }
 0x278   : > { %v11863_v35 = vpop.f32.mrb[160].mxu0  ;;  %v2944_v12 = vpop.f32.mrb[160].mxu1  ;;  %4357 = vrot.lane.b32.xlu0 %v14168_v2, %s13203_s23 }
 0x279   : > { %v11864_v43 = vpop.f32.mrb[161].mxu0  ;;  %v2946_v24 = vpop.f32.mrb[161].mxu1  ;;  %3252 = vrot.lane.b32.xlu1 %v14280_v11, %s13202_s22 }
 0x27a   : > { %v11865_v3 = vadd.f32 %v11864_v43, %v11863_v35  ;;  %v11866_v62 = vpop.f32.mrb[162].mxu0  ;;  %v2947_v5 = vpop.f32.mrb[162].mxu1 }
 0x27b   : > { %v14288_v6 = vpop.permute.xlu0 %3234  ;;  %v14290_v19 = vpack.c.bf16 %v2947_v5, %v2944_v12  ;;  %v11867_v20 = vpop.f32.mrb[163].mxu0 }
 0x27c   : > { %v2949_v33 = vpop.f32.mrb[163].mxu1  ;;  %v11868_v14 = vadd.f32 %v11867_v20, %v11866_v62  ;;  %4355 = vrot.lane.b32.xlu0 %v14166_v40, %s13203_s23 }
 0x27d   : > { %3262 = vrot.lane.b32.xlu1 %v14290_v19, %s13202_s22 }
 0x27e   : > { %v14296_v22 = vpack.c.bf16 %v11868_v14, %v11865_v3 }
 0x27f   : > { %v14298_v23 = vpop.permute.xlu0 %3232 }
 0x280   : > { %v11869_v26 = vpop.f32.mrb[164].mxu0  ;;  %v2952_v54 = vpop.f32.mrb[164].mxu1  ;;  %4365 = vrot.lane.b32.xlu0 %v14176_v57, %s13203_s23 }
 0x281   : > { %v11870_v27 = vpop.f32.mrb[165].mxu0  ;;  %v2954_v15 = vpop.f32.mrb[165].mxu1  ;;  %3260 = vrot.lane.b32.xlu1 %v14296_v22, %s13202_s22 }
 0x282   : > { %v11871_v49 = vadd.f32 %v11870_v27, %v11869_v26  ;;  %v11872_v9 = vpop.f32.mrb[166].mxu0  ;;  %v2955_v34 = vpop.f32.mrb[166].mxu1 }
 0x283   : > { %v14304_v25 = vpop.permute.xlu0 %3242  ;;  %v14306_v37 = vpack.c.bf16 %v2955_v34, %v2952_v54  ;;  %v11873_v16 = vpop.f32.mrb[167].mxu0 }
 0x284   : > { %v2957_v39 = vpop.f32.mrb[167].mxu1  ;;  %v11874_v63 = vadd.f32 %v11873_v16, %v11872_v9  ;;  %4363 = vrot.lane.b32.xlu0 %v14174_v38, %s13203_s23 }
 0x285   : > { %3270 = vrot.lane.b32.xlu1 %v14306_v37, %s13202_s22 }
 0x286   : > { %v14312_v13 = vpack.c.bf16 %v11874_v63, %v11871_v49 }
 0x287   : > { %v14314_v46 = vpop.permute.xlu0 %3240 }
 0x288   : > { %v11875_v48 = vpop.f32.mrb[168].mxu0  ;;  %v2960_v35 = vpop.f32.mrb[168].mxu1  ;;  %4373 = vrot.lane.b32.xlu0 %v14184_v52, %s13203_s23 }
 0x289   : > { %v11876_v12 = vpop.f32.mrb[169].mxu0  ;;  %v2962_v3 = vpop.f32.mrb[169].mxu1  ;;  %3268 = vrot.lane.b32.xlu1 %v14312_v13, %s13202_s22 }
 0x28a   : > { %v11877_v43 = vadd.f32 %v11876_v12, %v11875_v48  ;;  %v11878_v24 = vpop.f32.mrb[170].mxu0  ;;  %v2963_v62 = vpop.f32.mrb[170].mxu1 }
 0x28b   : > { %v14320_v5 = vpop.permute.xlu0 %3250  ;;  %v14322_v20 = vpack.c.bf16 %v2963_v62, %v2960_v35  ;;  %v11879_v33 = vpop.f32.mrb[171].mxu0 }
 0x28c   : > { %v2965_v14 = vpop.f32.mrb[171].mxu1  ;;  %v11880_v26 = vadd.f32 %v11879_v33, %v11878_v24  ;;  %4371 = vrot.lane.b32.xlu0 %v14182_v51, %s13203_s23 }
 0x28d   : > { %3278 = vrot.lane.b32.xlu1 %v14322_v20, %s13202_s22 }
 0x28e   : > { %v14328_v54 = vpack.c.bf16 %v11880_v26, %v11877_v43 }
 0x28f   : > { %v14330_v27 = vpop.permute.xlu0 %3248 }
 0x290   : > { %v11881_v49 = vpop.f32.mrb[172].mxu0  ;;  %v2968_v15 = vpop.f32.mrb[172].mxu1  ;;  %4381 = vrot.lane.b32.xlu0 %v14192_v17, %s13203_s23 }
 0x291   : > { %v11882_v9 = vpop.f32.mrb[173].mxu0  ;;  %v2970_v16 = vpop.f32.mrb[173].mxu1  ;;  %3276 = vrot.lane.b32.xlu1 %v14328_v54, %s13202_s22 }
 0x292   : > { %v11883_v34 = vadd.f32 %v11882_v9, %v11881_v49  ;;  %v11884_v39 = vpop.f32.mrb[174].mxu0  ;;  %v2971_v63 = vpop.f32.mrb[174].mxu1 }
 0x293   : > { %v14336_v48 = vpop.permute.xlu0 %3258  ;;  %v14338_v35 = vpack.c.bf16 %v2971_v63, %v2968_v15  ;;  %v11885_v12 = vpop.f32.mrb[175].mxu0 }
 0x294   : > { %v2973_v43 = vpop.f32.mrb[175].mxu1  ;;  %v11886_v3 = vadd.f32 %v11885_v12, %v11884_v39  ;;  %4379 = vrot.lane.b32.xlu0 %v14190_v28, %s13203_s23 }
 0x295   : > { %17364 = vst [vmem:[#allocation11_spill] sm:$0xff] %v14338_v35  ;;  %3286 = vrot.lane.b32.xlu1 %v14338_v35, %s13202_s22 }
 0x296   : > { %v14344_v24 = vpack.c.bf16 %v11886_v3, %v11883_v34 }
 0x297   : > { %v14346_v62 = vpop.permute.xlu0 %3256 }
 0x298   : > { %v11887_v33 = vpop.f32.mrb[176].mxu0  ;;  %v2976_v14 = vpop.f32.mrb[176].mxu1  ;;  %4389 = vrot.lane.b32.xlu0 %v14200_v30, %s13203_s23 }
 0x299   : > { %v11888_v26 = vpop.f32.mrb[177].mxu0  ;;  %v2978_v15 = vpop.f32.mrb[177].mxu1  ;;  %3284 = vrot.lane.b32.xlu1 %v14344_v24, %s13202_s22 }
 0x29a   : > { %v11889_v49 = vadd.f32 %v11888_v26, %v11887_v33  ;;  %v11890_v9 = vpop.f32.mrb[178].mxu0  ;;  %v2979_v16 = vpop.f32.mrb[178].mxu1 }
 0x29b   : > { %v14352_v39 = vpop.permute.xlu0 %3266  ;;  %v14354_v63 = vpack.c.bf16 %v2979_v16, %v2976_v14  ;;  %v11891_v34 = vpop.f32.mrb[179].mxu0 }
 0x29c   : > { %v2981_v12 = vpop.f32.mrb[179].mxu1  ;;  %v11892_v43 = vadd.f32 %v11891_v34, %v11890_v9  ;;  %4387 = vrot.lane.b32.xlu0 %v14198_v59, %s13203_s23 }
 0x29d   : > { %17365 = vst [vmem:[#allocation12_spill] sm:$0xff] %v14354_v63  ;;  %3294 = vrot.lane.b32.xlu1 %v14354_v63, %s13202_s22 }
 0x29e   : > { %v14360_v3 = vpack.c.bf16 %v11892_v43, %v11889_v49 }
 0x29f   : > { %v14362_v33 = vpop.permute.xlu0 %3264 }
 0x2a0   : > { %17366 = vst [vmem:[#allocation13_spill] sm:$0xff] %v14360_v3  ;;  %v11893_v26 = vpop.f32.mrb[180].mxu0  ;;  %v2984_v15 = vpop.f32.mrb[180].mxu1  ;;  %4397 = vrot.lane.b32.xlu0 %v14208_v42, %s13203_s23 }
 0x2a1   : > { %v11894_v14 = vpop.f32.mrb[181].mxu0  ;;  %v2986_v1 = vpop.f32.mrb[181].mxu1  ;;  %3292 = vrot.lane.b32.xlu1 %v14360_v3, %s13202_s22 }
 0x2a2   : > { %v11895_v16 = vadd.f32 %v11894_v14, %v11893_v26  ;;  %v11896_v9 = vpop.f32.mrb[182].mxu0  ;;  %v2987_v34 = vpop.f32.mrb[182].mxu1 }
 0x2a3   : > { %v14368_v12 = vpop.permute.xlu0 %3274  ;;  %v14370_v63 = vpack.c.bf16 %v2987_v34, %v2984_v15  ;;  %v11897_v49 = vpop.f32.mrb[183].mxu0 }
 0x2a4   : > { %17367 = vst [vmem:[#allocation14_spill] sm:$0xff] %v14368_v12  ;;  %v2989_v43 = vpop.f32.mrb[183].mxu1  ;;  %v11898_v59 = vadd.f32 %v11897_v49, %v11896_v9  ;;  %4395 = vrot.lane.b32.xlu0 %v14206_v41, %s13203_s23 }
 0x2a5   : > { %17368 = vst [vmem:[#allocation15_spill] sm:$0xff] %v14370_v63  ;;  %3302 = vrot.lane.b32.xlu1 %v14370_v63, %s13202_s22 }
 0x2a6   : > { %v14376_v26 = vpack.c.bf16 %v11898_v59, %v11895_v16 }
 0x2a7   : > { %v14378_v1 = vpop.permute.xlu0 %3272 }
 0x2a8   : > { %v11899_v14 = vpop.f32.mrb[184].mxu0  ;;  %v2992_v42 = vpop.f32.mrb[184].mxu1  ;;  %4405 = vrot.lane.b32.xlu0 %v14216_v60, %s13203_s23 }
 0x2a9   : > { %v11900_v15 = vpop.f32.mrb[185].mxu0  ;;  %v2994_v12 = vpop.f32.mrb[185].mxu1  ;;  %3300 = vrot.lane.b32.xlu1 %v14376_v26, %s13202_s22 }
 0x2aa   : > { %v11901_v34 = vadd.f32 %v11900_v15, %v11899_v14  ;;  %v11902_v9 = vpop.f32.mrb[186].mxu0  ;;  %v2995_v49 = vpop.f32.mrb[186].mxu1  ;;  %v12716_v15 = vld [vmem:[%s17305_s3 + $0xc4] ss:$8 sps:$4 sm:$0xff]  }
 0x2ab   : > { %v14384_v43 = vpop.permute.xlu0 %3282  ;;  %v14386_v63 = vpack.c.bf16 %v2995_v49, %v2992_v42  ;;  %v11903_v59 = vpop.f32.mrb[187].mxu0  ;;  %10937 = vmatprep.mubr.msk.bf16.mxu0 %vm3405_vm4, %v12716_v15  ;;  %10949 = vmatprep.mubr.msk.bf16.mxu1 %vm3405_vm4, %v12716_v15 }
 0x2ac   : > { %17369 = vst [vmem:[#allocation16_spill] sm:$0xff] %v14384_v43  ;;  %v2997_v16 = vpop.f32.mrb[187].mxu1  ;;  %v11904_v41 = vadd.f32 %v11903_v59, %v11902_v9  ;;  %4403 = vrot.lane.b32.xlu0 %v14214_v56, %s13203_s23 }
 0x2ad   : > { %17370 = vst [vmem:[#allocation17_spill] sm:$0xff] %v14386_v63  ;;  %3310 = vrot.lane.b32.xlu1 %v14386_v63, %s13202_s22 }
 0x2ae   : > { %v14392_v14 = vpack.c.bf16 %v11904_v41, %v11901_v34 }
 0x2af   : > { %v14394_v12 = vpop.permute.xlu0 %3280 }
 0x2b0   : > { %17371 = vst [vmem:[#allocation18_spill] sm:$0xff] %v14394_v12  ;;  %v11905_v43 = vpop.f32.mrb[188].mxu0  ;;  %v3000_v42 = vpop.f32.mrb[188].mxu1  ;;  %4413 = vrot.lane.b32.xlu0 %v14224_v58, %s13203_s23 }
 0x2b1   : > { %v11906_v9 = vpop.f32.mrb[189].mxu0  ;;  %v3002_v59 = vpop.f32.mrb[189].mxu1  ;;  %3308 = vrot.lane.b32.xlu1 %v14392_v14, %s13202_s22 }
 0x2b2   : > { %v11907_v49 = vadd.f32 %v11906_v9, %v11905_v43  ;;  %v11908_v41 = vpop.f32.mrb[190].mxu0  ;;  %v3003_v34 = vpop.f32.mrb[190].mxu1 }
 0x2b3   : > { %v14405_v16 = vpop.permute.xlu0 %3290  ;;  %v14407_v63 = vpack.c.bf16 %v3003_v34, %v3000_v42  ;;  %v11909_v56 = vpop.f32.mrb[191].mxu0 }
 0x2b4   : > { %v3005_v12 = vpop.f32.mrb[191].mxu1  ;;  %v11910_v60 = vadd.f32 %v11909_v56, %v11908_v41  ;;  %4411 = vrot.lane.b32.xlu0 %v14222_v47, %s13203_s23 }
 0x2b5   : > { %17372 = vst [vmem:[#allocation19_spill] sm:$0xff] %v14407_v63 }
 0x2b6   : > { %v14411_v58 = vpack.c.bf16 %v11910_v60, %v11907_v49 }
 0x2b7   : > { %v14413_v43 = vpop.permute.xlu0 %3288 }
 0x2b8   : > { %3316 = vrot.lane.b32.xlu1 %v14411_v58, %s13202_s22  ;;  %4421 = vrot.lane.b32.xlu0 %v14232_v36, %s13203_s23 }
 0x2bb   : > { %v14419_v15 = vpop.permute.xlu0 %3298 }
 0x2bc   : > { %3318 = vrot.lane.b32.xlu1 %v14407_v63, %s13202_s22  ;;  %4419 = vrot.lane.b32.xlu0 %v14230_v8, %s13203_s23 }
 0x2bf   : > { %v14425_v56 = vpop.permute.xlu0 %3296 }
 0x2c0   : > { %4335 = vrot.lane.b32.xlu1 %v14240_v50, %s13203_s23  ;;  %5085 = vrot.lane.b32.xlu0 %v14144_v18, %s13204_s27 }
 0x2c3   : > { %v14431_v60 = vpop.permute.xlu0 %3306 }
 0x2c4   : > { %4337 = vrot.lane.b32.xlu1 %v14236_v53, %s13203_s23  ;;  %5083 = vrot.lane.b32.xlu0 %v14142_v45, %s13204_s27 }
 0x2c7   : > { %v14437_v12 = vpop.permute.xlu0 %3304 }
 0x2c8   : > { %4343 = vrot.lane.b32.xlu1 %v14252_v4, %s13203_s23  ;;  %5093 = vrot.lane.b32.xlu0 %v14152_v7, %s13204_s27 }
 0x2cb   : > { %v14443_v42 = vpop.permute.xlu0 %3314 }
 0x2cc   : > { %4345 = vrot.lane.b32.xlu1 %v14248_v10, %s13203_s23  ;;  %5091 = vrot.lane.b32.xlu0 %v14150_v55, %s13204_s27  ;;  %v3321_v10 = vsel %vm3320_vm5, %v14282_v0, %v14272_v44 }
 0x2cf   : > { %v14449_v9 = vpop.permute.xlu0 %3312  ;;  %v3231_v49 = vpop.permute.xlu1 %3230 }
 0x2d0   : > { %3595 = vmatprep.subr.bf16.mxu1 %v3231_v49  ;;  %4351 = vrot.lane.b32.xlu1 %v14264_v32, %s13203_s23 }
 0x2d1   : > { %5101 = vrot.lane.b32.xlu0 %v14160_v61, %s13204_s27 }
 0x2d3   : > { %v14455_v59 = vpop.permute.xlu0 %4333  ;;  %v3229_v41 = vpop.permute.xlu1 %3228 }
 0x2d4   : > { %17373 = vst [vmem:[#allocation20_spill] sm:$0xff] %v14455_v59  ;;  %4353 = vrot.lane.b32.xlu1 %v14260_v31, %s13203_s23  ;;  %v3322_v34 = vsel %vm3320_vm5, %v14272_v44, %v3229_v41  ;;  %v3323_v55 = vsel %vm3320_vm5, %v3229_v41, %v3231_v49  ;;  %v3324_v44 = vsel %vm3320_vm5, %v14298_v23, %v14288_v6 }
 0x2d5   : > { %5099 = vrot.lane.b32.xlu0 %v14158_v29, %s13204_s27  ;;  %3442 = vmatprep.subr.bf16.mxu0 %v3322_v34 }
 0x2d6   : > { %3596 = vmatpush1.bf16.msra.mxu1 %v3323_v55  ;;  %3443 = vmatpush1.bf16.msra.mxu0 %v3321_v10 }
 0x2d7   : > { %v14467_v59 = vpop.permute.xlu0 %4331  ;;  %v3239_v61 = vpop.permute.xlu1 %3238 }
 0x2d8   : > { %4359 = vrot.lane.b32.xlu1 %v14280_v11, %s13203_s23  ;;  %3597 = vmatprep.subr.bf16.mxu1 %v3239_v61 }
 0x2d9   : > { %5109 = vrot.lane.b32.xlu0 %v14168_v2, %s13204_s27 }
 0x2db   : > { %v14473_v49 = vpop.permute.xlu0 %4341  ;;  %v3237_v41 = vpop.permute.xlu1 %3236 }
 0x2dc   : > { %4361 = vrot.lane.b32.xlu1 %v14274_v21, %s13203_s23  ;;  %v3325_v55 = vsel %vm3320_vm5, %v14288_v6, %v3237_v41  ;;  %v3326_v10 = vsel %vm3320_vm5, %v3237_v41, %v3239_v61  ;;  %v3327_v41 = vsel %vm3320_vm5, %v14314_v46, %v14304_v25 }
 0x2dd   : > { %5107 = vrot.lane.b32.xlu0 %v14166_v40, %s13204_s27  ;;  %3444 = vmatprep.subr.bf16.mxu0 %v3325_v55 }
 0x2de   : > { %3598 = vmatpush1.bf16.msra.mxu1 %v3326_v10  ;;  %3445 = vmatpush1.bf16.msra.mxu0 %v3324_v44 }
 0x2df   : > { %v3247_v0 = vpop.permute.xlu1 %3246  ;;  %v14487_v34 = vpop.permute.xlu0 %4339 }
 0x2e0   : > { %4367 = vrot.lane.b32.xlu1 %v14296_v22, %s13203_s23  ;;  %3599 = vmatprep.subr.bf16.mxu1 %v3247_v0 }
 0x2e1   : > { %5117 = vrot.lane.b32.xlu0 %v14176_v57, %s13204_s27 }
 0x2e3   : > { %v3245_v61 = vpop.permute.xlu1 %3244  ;;  %v14501_v55 = vpop.permute.xlu0 %4349 }
 0x2e4   : > { %4369 = vrot.lane.b32.xlu1 %v14290_v19, %s13203_s23  ;;  %v3328_v6 = vsel %vm3320_vm5, %v14304_v25, %v3245_v61  ;;  %v3329_v23 = vsel %vm3320_vm5, %v3245_v61, %v3247_v0  ;;  %17374 = vst [vmem:[#allocation21_spill] sm:$0xff] %v14501_v55  ;;  %v3330_v0 = vsel %vm3320_vm5, %v14330_v27, %v14320_v5  ;;  %v17391_v55 = vld [vmem:[#allocation9_spill] sm:$0xff] }
 0x2e5   : > { %5115 = vrot.lane.b32.xlu0 %v14174_v38, %s13204_s27  ;;  %3446 = vmatprep.subr.bf16.mxu0 %v3328_v6 }
 0x2e6   : > { %3600 = vmatpush1.bf16.msra.mxu1 %v3329_v23  ;;  %3447 = vmatpush1.bf16.msra.mxu0 %v3327_v41 }
 0x2e7   : > { %v3255_v10 = vpop.permute.xlu1 %3254  ;;  %v14515_v61 = vpop.permute.xlu0 %4347 }
 0x2e8   : > { %4375 = vrot.lane.b32.xlu1 %v14312_v13, %s13203_s23  ;;  %3601 = vmatprep.subr.bf16.mxu1 %v3255_v10  ;;  %17375 = vst [vmem:[#allocation22_spill] sm:$0xff] %v14515_v61 }
 0x2e9   : > { %5125 = vrot.lane.b32.xlu0 %v14184_v52, %s13204_s27 }
 0x2eb   : > { %v3253_v44 = vpop.permute.xlu1 %3252  ;;  %v14523_v23 = vpop.permute.xlu0 %4357 }
 0x2ec   : > { %4377 = vrot.lane.b32.xlu1 %v14306_v37, %s13203_s23  ;;  %v3331_v25 = vsel %vm3320_vm5, %v14320_v5, %v3253_v44  ;;  %v3332_v46 = vsel %vm3320_vm5, %v3253_v44, %v3255_v10  ;;  %17376 = vst [vmem:[#allocation23_spill] sm:$0xff] %v14523_v23  ;;  %v3333_v10 = vsel %vm3320_vm5, %v14346_v62, %v14336_v48  ;;  %v17390_v23 = vld [vmem:[#allocation7_spill] sm:$0xff] }
 0x2ed   : > { %5123 = vrot.lane.b32.xlu0 %v14182_v51, %s13204_s27  ;;  %3448 = vmatprep.subr.bf16.mxu0 %v3331_v25 }
 0x2ee   : > { %3602 = vmatpush1.bf16.msra.mxu1 %v3332_v46  ;;  %3449 = vmatpush1.bf16.msra.mxu0 %v3330_v0  ;;  %v3336_v0 = vsel %vm3320_vm5, %v14362_v33, %v14352_v39 }
 0x2ef   : > { %v3263_v6 = vpop.permute.xlu1 %3262  ;;  %v14537_v25 = vpop.permute.xlu0 %4355 }
 0x2f0   : > { %4383 = vrot.lane.b32.xlu1 %v14328_v54, %s13203_s23  ;;  %3603 = vmatprep.subr.bf16.mxu1 %v3263_v6  ;;  %17377 = vst [vmem:[#allocation24_spill] sm:$0xff] %v14537_v25  ;;  %v17385_v25 = vld [vmem:[#allocation8_spill] sm:$0xff] }
 0x2f1   : > { %5133 = vrot.lane.b32.xlu0 %v14192_v17, %s13204_s27 }
 0x2f3   : > { %v3261_v41 = vpop.permute.xlu1 %3260 }
 0x2f4   : > { %4385 = vrot.lane.b32.xlu1 %v14322_v20, %s13203_s23  ;;  %v3334_v5 = vsel %vm3320_vm5, %v14336_v48, %v3261_v41  ;;  %v3335_v27 = vsel %vm3320_vm5, %v3261_v41, %v3263_v6  ;;  %v17378_v6 = vld [vmem:[#allocation4_spill] sm:$0xff]  ;;  %v14551_v41 = vpop.permute.xlu0 %4365 }
 0x2f5   : > { %5131 = vrot.lane.b32.xlu0 %v14190_v28, %s13204_s27  ;;  %3450 = vmatprep.subr.bf16.mxu0 %v3334_v5  ;;  %17379 = vst [vmem:[#allocation4_spill] sm:$0xff] %v14551_v41 }
 0x2f6   : > { %3604 = vmatpush1.bf16.msra.mxu1 %v3335_v27  ;;  %3451 = vmatpush1.bf16.msra.mxu0 %v3333_v10  ;;  %v17380_v27 = vld [vmem:[#allocation6_spill] sm:$0xff] }
 0x2f7   : > { %v3271_v44 = vpop.permute.xlu1 %3270 }
 0x2f8   : > { %4391 = vrot.lane.b32.xlu1 %v14344_v24, %s13203_s23  ;;  %3605 = vmatprep.subr.bf16.mxu1 %v3271_v44 }
 0x2f9   : > { %5141 = vrot.lane.b32.xlu0 %v14200_v30, %s13204_s27 }
 0x2fb   : > { %v3269_v46 = vpop.permute.xlu1 %3268 }
 0x2fc   : > { %4393 = vrot.lane.b32.xlu1 %v14338_v35, %s13203_s23  ;;  %v3337_v48 = vsel %vm3320_vm5, %v14352_v39, %v3269_v46  ;;  %v3338_v62 = vsel %vm3320_vm5, %v3269_v46, %v3271_v44  ;;  %v17381_v44 = vld [vmem:[#allocation12_spill] sm:$0xff]  ;;  %v17382_v39 = vld [vmem:[#allocation14_spill] sm:$0xff] }
 0x2fd   : > { %5139 = vrot.lane.b32.xlu0 %v17378_v6, %s13204_s27  ;;  %3452 = vmatprep.subr.bf16.mxu0 %v3337_v48  ;;  %v3339_v48 = vsel %vm3320_vm5, %v14378_v1, %v17382_v39  ;;  %v17387_v1 = vld [vmem:[#allocation15_spill] sm:$0xff] }
 0x2fe   : > { %3606 = vmatpush1.bf16.msra.mxu1 %v3338_v62  ;;  %3453 = vmatpush1.bf16.msra.mxu0 %v3336_v0  ;;  %v14565_v62 = vpop.permute.xlu0 %4363  ;;  %v17384_v0 = vld [vmem:[#allocation5_spill] sm:$0xff] }
 0x2ff   : > { %v3279_v5 = vpop.permute.xlu1 %3278  ;;  %17383 = vst [vmem:[#allocation6_spill] sm:$0xff] %v14565_v62 }
 0x300   : > { %4399 = vrot.lane.b32.xlu1 %v14360_v3, %s13203_s23  ;;  %3607 = vmatprep.subr.bf16.mxu1 %v3279_v5 }
 0x301   : > { %5149 = vrot.lane.b32.xlu0 %v17380_v27, %s13204_s27 }
 0x303   : > { %v3277_v10 = vpop.permute.xlu1 %3276 }
 0x304   : > { %4401 = vrot.lane.b32.xlu1 %v17381_v44, %s13203_s23  ;;  %v3340_v33 = vsel %vm3320_vm5, %v17382_v39, %v3277_v10  ;;  %v3341_v46 = vsel %vm3320_vm5, %v3277_v10, %v3279_v5  ;;  %v14573_v5 = vpop.permute.xlu0 %4373  ;;  %v17388_v39 = vld [vmem:[#allocation16_spill] sm:$0xff] }
 0x305   : > { %5147 = vrot.lane.b32.xlu0 %v17384_v0, %s13204_s27  ;;  %3454 = vmatprep.subr.bf16.mxu0 %v3340_v33  ;;  %17386 = vst [vmem:[#allocation12_spill] sm:$0xff] %v14573_v5 }
 0x306   : > { %3608 = vmatpush1.bf16.msra.mxu1 %v3341_v46  ;;  %3455 = vmatpush1.bf16.msra.mxu0 %v3339_v48  ;;  %v17389_v46 = vld [vmem:[#allocation18_spill] sm:$0xff] }
 0x307   : > { %v3287_v41 = vpop.permute.xlu1 %3286  ;;  %v3342_v48 = vsel %vm3320_vm5, %v17389_v46, %v17388_v39 }
 0x308   : > { %4407 = vrot.lane.b32.xlu1 %v14376_v26, %s13203_s23  ;;  %3609 = vmatprep.subr.bf16.mxu1 %v3287_v41  ;;  %v14587_v61 = vpop.permute.xlu0 %4371 }
 0x309   : > { %5157 = vrot.lane.b32.xlu0 %v17385_v25, %s13204_s27 }
 0x30b   : > { %v3285_v10 = vpop.permute.xlu1 %3284 }
 0x30c   : > { %4409 = vrot.lane.b32.xlu1 %v17387_v1, %s13203_s23  ;;  %v3343_v62 = vsel %vm3320_vm5, %v17388_v39, %v3285_v10  ;;  %v3344_v33 = vsel %vm3320_vm5, %v3285_v10, %v3287_v41  ;;  %v17392_v10 = vld [vmem:[#allocation17_spill] sm:$0xff]  ;;  %v14601_v46 = vpop.permute.xlu0 %4381 }
 0x30d   : > { %5155 = vrot.lane.b32.xlu0 %v17390_v23, %s13204_s27  ;;  %3456 = vmatprep.subr.bf16.mxu0 %v3343_v62 }
 0x30e   : > { %3610 = vmatpush1.bf16.msra.mxu1 %v3344_v33  ;;  %3457 = vmatpush1.bf16.msra.mxu0 %v3342_v48  ;;  %v3345_v33 = vsel %vm3320_vm5, %v14413_v43, %v14405_v16 }
 0x30f   : > { %v3295_v5 = vpop.permute.xlu1 %3294 }
 0x310   : > { %4415 = vrot.lane.b32.xlu1 %v14392_v14, %s13203_s23  ;;  %3611 = vmatprep.subr.bf16.mxu1 %v3295_v5 }
 0x311   : > { %5165 = vrot.lane.b32.xlu0 %v17391_v55, %s13204_s27 }
 0x313   : > { %v3293_v41 = vpop.permute.xlu1 %3292 }
 0x314   : > { %4417 = vrot.lane.b32.xlu1 %v17392_v10, %s13203_s23  ;;  %v3346_v39 = vsel %vm3320_vm5, %v14405_v16, %v3293_v41  ;;  %v3347_v62 = vsel %vm3320_vm5, %v3293_v41, %v3295_v5  ;;  %v3348_v41 = vsel %vm3320_vm5, %v14425_v56, %v14419_v15 }
 0x315   : > { %5163 = vrot.lane.b32.xlu0 %v14222_v47, %s13204_s27  ;;  %3458 = vmatprep.subr.bf16.mxu0 %v3346_v39  ;;  %v14615_v39 = vpop.permute.xlu0 %4379 }
 0x316   : > { %3612 = vmatpush1.bf16.msra.mxu1 %v3347_v62  ;;  %3459 = vmatpush1.bf16.msra.mxu0 %v3345_v33 }
 0x317   : > { %v3303_v48 = vpop.permute.xlu1 %3302 }
 0x318   : > { %4423 = vrot.lane.b32.xlu1 %v14411_v58, %s13203_s23  ;;  %3613 = vmatprep.subr.bf16.mxu1 %v3303_v48 }
 0x319   : > { %5173 = vrot.lane.b32.xlu0 %v14232_v36, %s13204_s27  ;;  %v14623_v33 = vpop.permute.xlu0 %4389 }
 0x31b   : > { %v3301_v5 = vpop.permute.xlu1 %3300 }
 0x31c   : > { %4425 = vrot.lane.b32.xlu1 %v14407_v63, %s13203_s23  ;;  %v3349_v16 = vsel %vm3320_vm5, %v14419_v15, %v3301_v5  ;;  %v3350_v43 = vsel %vm3320_vm5, %v3301_v5, %v3303_v48  ;;  %v3351_v5 = vsel %vm3320_vm5, %v14437_v12, %v14431_v60  ;;  %v17393_v12 = vld [vmem:[#allocation10_spill] sm:$0xff] }
 0x31d   : > { %5171 = vrot.lane.b32.xlu0 %v14230_v8, %s13204_s27  ;;  %3460 = vmatprep.subr.bf16.mxu0 %v3349_v16  ;;  %v14637_v16 = vpop.permute.xlu0 %4387 }
 0x31e   : > { %3614 = vmatpush1.bf16.msra.mxu1 %v3350_v43  ;;  %3461 = vmatpush1.bf16.msra.mxu0 %v3348_v41 }
 0x31f   : > { %v3311_v62 = vpop.permute.xlu1 %3310 }
 0x320   : > { %5087 = vrot.lane.b32.xlu1 %v14240_v50, %s13204_s27  ;;  %3615 = vmatprep.subr.bf16.mxu1 %v3311_v62 }
 0x321   : > { %5837 = vrot.lane.b32.xlu0 %v14144_v18, %s13205_s28 }
 0x323   : > { %v3309_v15 = vpop.permute.xlu1 %3308 }
 0x324   : > { %5089 = vrot.lane.b32.xlu1 %v14236_v53, %s13204_s27  ;;  %v3352_v56 = vsel %vm3320_vm5, %v14431_v60, %v3309_v15  ;;  %v3353_v48 = vsel %vm3320_vm5, %v3309_v15, %v3311_v62  ;;  %v3354_v60 = vsel %vm3320_vm5, %v14449_v9, %v14443_v42  ;;  %v12714_v62 = vld [vmem:[%s17305_s3 + $0xc0] ss:$8 sps:$4 sm:$0xff]   ;;  %v12717_v9 = vld [vmem:[%s17305_s3 + $0xd4] ss:$8 sps:$4 sm:$0xff]  }
 0x325   : > { %5835 = vrot.lane.b32.xlu0 %v14142_v45, %s13205_s28  ;;  %3462 = vmatprep.subr.bf16.mxu0 %v3352_v56  ;;  %v17394_v15 = vld [vmem:[#allocation2_spill] sm:$0xff] }
 0x326   : > { %3616 = vmatpush1.bf16.msra.mxu1 %v3353_v48  ;;  %3463 = vmatpush1.bf16.msra.mxu0 %v3351_v5  ;;  %v14654_v48 = vpop.permute.xlu0 %4397  ;;  %v17395_v5 = vld [vmem:[#allocation3_spill] sm:$0xff] }
 0x328   : > { %5095 = vrot.lane.b32.xlu1 %v14252_v4, %s13204_s27 }
 0x329   : > { %5845 = vrot.lane.b32.xlu0 %v14152_v7, %s13205_s28 }
 0x32a   : > { %v3317_v43 = vpop.permute.xlu1 %3316 }
 0x32b   : > { %v3355_v41 = vsel %vm3320_vm5, %v14443_v42, %v3317_v43 }
 0x32c   : > { %5097 = vrot.lane.b32.xlu1 %v17393_v12, %s13204_s27  ;;  %3464 = vmatprep.subr.bf16.mxu0 %v3355_v41  ;;  %v14675_v41 = vpop.permute.xlu0 %4395 }
 0x32d   : > { %5843 = vrot.lane.b32.xlu0 %v17394_v15, %s13205_s28  ;;  %3465 = vmatpush1.bf16.msra.mxu0 %v3354_v60 }
 0x32e   : > { %v3319_v56 = vpop.permute.xlu1 %3318  ;;  %3892 = vmatprep.subr.bf16.mxu0 %v14144_v18 }
 0x32f   : > { %3617 = vmatprep.subr.bf16.mxu1 %v3319_v56  ;;  %v3356_v42 = vsel %vm3320_vm5, %v3317_v43, %v3319_v56  ;;  %v12719_v43 = vld [vmem:[%s17305_s3 + $0xd0] ss:$8 sps:$4 sm:$0xff]  }
 0x330   : > { %5103 = vrot.lane.b32.xlu1 %v14264_v32, %s13204_s27  ;;  %3475 = vmatmul.mubr.bf16.vlgmr.msra.gmra.mrb[192].mxu0 %v12714_v62 }
 0x331   : > { %3618 = vmatpush1.bf16.msra.mxu1 %v3356_v42  ;;  %5853 = vrot.lane.b32.xlu0 %v17395_v5, %s13205_s28  ;;  %v12725_v42 = vld [vmem:[%s17305_s3 + $0xf0] ss:$8 sps:$4 sm:$0xff]  }
 0x332   : > { %3893 = vmatpush1.bf16.msra.mxu0 %v14142_v45  ;;  %4045 = vmatprep.subr.bf16.mxu1 %v14236_v53  ;;  %v14666_v18 = vpop.permute.xlu1 %4335 }
 0x333   : > { %3894 = vmatprep.subr.bf16.mxu0 %v14152_v7  ;;  %10938 = vmatprep.mubr.msk.bf16.mxu0 %vm3405_vm4, %v12717_v9  ;;  %v12720_v7 = vld [vmem:[%s17305_s3 + $0xe4] ss:$8 sps:$4 sm:$0xff]  }
 0x334   : > { %3628 = vmatmul.mubr.bf16.vlgmr.msra.gmra.mrb[192].mxu1 %v12714_v62  ;;  %5105 = vrot.lane.b32.xlu1 %v14260_v31, %s13204_s27  ;;  %v14698_v62 = vpop.permute.xlu0 %4405 }
 0x335   : > { %4046 = vmatpush1.bf16.msra.mxu1 %v14240_v50  ;;  %5851 = vrot.lane.b32.xlu0 %v14158_v29, %s13205_s28 }
 0x336   : > { %3895 = vmatpush1.bf16.msra.mxu0 %v17394_v15  ;;  %4047 = vmatprep.subr.bf16.mxu1 %v17393_v12  ;;  %v14682_v45 = vpop.permute.xlu1 %4337  ;;  %v12722_v15 = vld [vmem:[%s17305_s3 + $0xe0] ss:$8 sps:$4 sm:$0xff]  }
 0x337   : > { %3896 = vmatprep.subr.bf16.mxu0 %v17395_v5  ;;  %10950 = vmatprep.mubr.msk.bf16.mxu1 %vm3405_vm4, %v12717_v9  ;;  %v12726_v5 = vld [vmem:[%s17305_s3 + $0x104] ss:$8 sps:$4 sm:$0xff]  }
 0x338   : > { %5111 = vrot.lane.b32.xlu1 %v14280_v11, %s13204_s27  ;;  %3485 = vmatmul.mubr.bf16.gmra.mrb[196].mxu0 %v12719_v43  ;;  %v14721_v56 = vpop.permute.xlu0 %4403 }
 0x339   : > { %4048 = vmatpush1.bf16.msra.mxu1 %v14252_v4  ;;  %5861 = vrot.lane.b32.xlu0 %v14168_v2, %s13205_s28 }
 0x33a   : > { %3897 = vmatpush1.bf16.msra.mxu0 %v14158_v29  ;;  %4049 = vmatprep.subr.bf16.mxu1 %v14260_v31  ;;  %v14696_v60 = vpop.permute.xlu1 %4343 }
 0x33b   : > { %3898 = vmatprep.subr.bf16.mxu0 %v14168_v2  ;;  %10939 = vmatprep.mubr.msk.bf16.mxu0 %vm3405_vm4, %v12720_v7  ;;  %v12723_v2 = vld [vmem:[%s17305_s3 + $0xf4] ss:$8 sps:$4 sm:$0xff]  }
 0x33c   : > { %3638 = vmatmul.mubr.bf16.gmra.mrb[196].mxu1 %v12719_v43  ;;  %5113 = vrot.lane.b32.xlu1 %v14274_v21, %s13204_s27  ;;  %v14744_v9 = vpop.permute.xlu0 %4413  ;;  %v12728_v43 = vld [vmem:[%s17305_s3 + $0x100] ss:$8 sps:$4 sm:$0xff]  }
 0x33d   : > { %4050 = vmatpush1.bf16.msra.mxu1 %v14264_v32  ;;  %5859 = vrot.lane.b32.xlu0 %v14166_v40, %s13205_s28 }
 0x33e   : > { %3899 = vmatpush1.bf16.msra.mxu0 %v14166_v40  ;;  %4051 = vmatprep.subr.bf16.mxu1 %v14274_v21  ;;  %v14712_v29 = vpop.permute.xlu1 %4345 }
 0x33f   : > { %3900 = vmatprep.subr.bf16.mxu0 %v14176_v57  ;;  %10951 = vmatprep.mubr.msk.bf16.mxu1 %vm3405_vm4, %v12720_v7 }
 0x340   : > { %5119 = vrot.lane.b32.xlu1 %v14296_v22, %s13204_s27  ;;  %3495 = vmatmul.mubr.bf16.gmra.mrb[200].mxu0 %v12722_v15  ;;  %v14767_v7 = vpop.permute.xlu0 %4411 }
 0x341   : > { %4052 = vmatpush1.bf16.msra.mxu1 %v14280_v11  ;;  %5869 = vrot.lane.b32.xlu0 %v14176_v57, %s13205_s28 }
 0x342   : > { %3901 = vmatpush1.bf16.msra.mxu0 %v14174_v38  ;;  %4053 = vmatprep.subr.bf16.mxu1 %v14290_v19  ;;  %v14728_v40 = vpop.permute.xlu1 %4351 }
 0x343   : > { %3902 = vmatprep.subr.bf16.mxu0 %v14184_v52  ;;  %10940 = vmatprep.mubr.msk.bf16.mxu0 %vm3405_vm4, %v12723_v2 }
 0x344   : > { %3648 = vmatmul.mubr.bf16.gmra.mrb[200].mxu1 %v12722_v15  ;;  %5121 = vrot.lane.b32.xlu1 %v14290_v19, %s13204_s27  ;;  %v12729_v15 = vld [vmem:[%s17305_s3 + $0x114] ss:$8 sps:$4 sm:$0xff]  }
 0x345   : > { %4054 = vmatpush1.bf16.msra.mxu1 %v14296_v22  ;;  %5867 = vrot.lane.b32.xlu0 %v14174_v38, %s13205_s28 }
 0x346   : > { %3903 = vmatpush1.bf16.msra.mxu0 %v14182_v51  ;;  %4055 = vmatprep.subr.bf16.mxu1 %v14306_v37  ;;  %v14742_v57 = vpop.permute.xlu1 %4353 }
 0x347   : > { %3904 = vmatprep.subr.bf16.mxu0 %v14192_v17  ;;  %10952 = vmatprep.mubr.msk.bf16.mxu1 %vm3405_vm4, %v12723_v2  ;;  %v14790_v2 = vpop.permute.xlu0 %4421 }
 0x348   : > { %5127 = vrot.lane.b32.xlu1 %v14312_v13, %s13204_s27  ;;  %3505 = vmatmul.mubr.bf16.gmra.mrb[204].mxu0 %v12725_v42  ;;  %17396 = vst [vmem:[#allocation14_spill] sm:$0xff] %v14790_v2 }
 0x349   : > { %4056 = vmatpush1.bf16.msra.mxu1 %v14312_v13  ;;  %5877 = vrot.lane.b32.xlu0 %v14184_v52, %s13205_s28 }
 0x34a   : > { %3905 = vmatpush1.bf16.msra.mxu0 %v14190_v28  ;;  %4057 = vmatprep.subr.bf16.mxu1 %v14322_v20  ;;  %v14758_v38 = vpop.permute.xlu1 %4359 }
 0x34b   : > { %3906 = vmatprep.subr.bf16.mxu0 %v14200_v30  ;;  %10941 = vmatprep.mubr.msk.bf16.mxu0 %vm3405_vm4, %v12726_v5 }
 0x34c   : > { %3658 = vmatmul.mubr.bf16.gmra.mrb[204].mxu1 %v12725_v42  ;;  %5129 = vrot.lane.b32.xlu1 %v14306_v37, %s13204_s27 }
 0x34d   : > { %4058 = vmatpush1.bf16.msra.mxu1 %v14328_v54  ;;  %5875 = vrot.lane.b32.xlu0 %v14182_v51, %s13205_s28 }
 0x34e   : > { %3907 = vmatpush1.bf16.msra.mxu0 %v17378_v6  ;;  %4059 = vmatprep.subr.bf16.mxu1 %v14338_v35  ;;  %v14774_v52 = vpop.permute.xlu1 %4361 }
 0x34f   : > { %3908 = vmatprep.subr.bf16.mxu0 %v17380_v27  ;;  %10953 = vmatprep.mubr.msk.bf16.mxu1 %vm3405_vm4, %v12726_v5  ;;  %v12732_v5 = vld [vmem:[%s17305_s3 + $0x124] ss:$8 sps:$4 sm:$0xff]  }
 0x350   : > { %5135 = vrot.lane.b32.xlu1 %v14328_v54, %s13204_s27  ;;  %3515 = vmatmul.mubr.bf16.gmra.mrb[208].mxu0 %v12728_v43 }
 0x351   : > { %4060 = vmatpush1.bf16.msra.mxu1 %v14344_v24  ;;  %5885 = vrot.lane.b32.xlu0 %v14192_v17, %s13205_s28  ;;  %v12731_v17 = vld [vmem:[%s17305_s3 + $0x110] ss:$8 sps:$4 sm:$0xff]  }
 0x352   : > { %3909 = vmatpush1.bf16.msra.mxu0 %v17384_v0  ;;  %4061 = vmatprep.subr.bf16.mxu1 %v17381_v44  ;;  %v14788_v51 = vpop.permute.xlu1 %4367 }
 0x353   : > { %3910 = vmatprep.subr.bf16.mxu0 %v17385_v25  ;;  %10942 = vmatprep.mubr.msk.bf16.mxu0 %vm3405_vm4, %v12729_v15 }
 0x354   : > { %3668 = vmatmul.mubr.bf16.gmra.mrb[208].mxu1 %v12728_v43  ;;  %5137 = vrot.lane.b32.xlu1 %v14322_v20, %s13204_s27  ;;  %v14813_v43 = vpop.permute.xlu0 %4419 }
 0x355   : > { %4062 = vmatpush1.bf16.msra.mxu1 %v14360_v3  ;;  %5883 = vrot.lane.b32.xlu0 %v14190_v28, %s13205_s28  ;;  %17397 = vst [vmem:[#allocation5_spill] sm:$0xff] %v14813_v43  ;;  %v12735_v43 = vld [vmem:[%s17305_s3 + $0x134] ss:$8 sps:$4 sm:$0xff]  }
 0x356   : > { %3911 = vmatpush1.bf16.msra.mxu0 %v17390_v23  ;;  %4063 = vmatprep.subr.bf16.mxu1 %v17387_v1  ;;  %v14804_v42 = vpop.permute.xlu1 %4369 }
 0x357   : > { %3912 = vmatprep.subr.bf16.mxu0 %v17391_v55  ;;  %10954 = vmatprep.mubr.msk.bf16.mxu1 %vm3405_vm4, %v12729_v15  ;;  %v12734_v15 = vld [vmem:[%s17305_s3 + $0x120] ss:$8 sps:$4 sm:$0xff]  }
 0x358   : > { %5143 = vrot.lane.b32.xlu1 %v14344_v24, %s13204_s27  ;;  %3525 = vmatmul.mubr.bf16.gmra.mrb[212].mxu0 %v12731_v17  ;;  %v14842_v2 = vpop.permute.xlu0 %5085 }
 0x359   : > { %4064 = vmatpush1.bf16.msra.mxu1 %v14376_v26  ;;  %5893 = vrot.lane.b32.xlu0 %v14200_v30, %s13205_s28 }
 0x35a   : > { %3913 = vmatpush1.bf16.msra.mxu0 %v14222_v47  ;;  %4065 = vmatprep.subr.bf16.mxu1 %v17392_v10  ;;  %v14820_v28 = vpop.permute.xlu1 %4375 }
 0x35b   : > { %3914 = vmatprep.subr.bf16.mxu0 %v14232_v36  ;;  %10943 = vmatprep.mubr.msk.bf16.mxu0 %vm3405_vm4, %v12732_v5 }
 0x35c   : > { %3678 = vmatmul.mubr.bf16.gmra.mrb[212].mxu1 %v12731_v17  ;;  %5145 = vrot.lane.b32.xlu1 %v14338_v35, %s13204_s27  ;;  %v17398_v17 = vld [vmem:[#allocation20_spill] sm:$0xff] }
 0x35d   : > { %4066 = vmatpush1.bf16.msra.mxu1 %v14392_v14  ;;  %5891 = vrot.lane.b32.xlu0 %v17378_v6, %s13205_s28  ;;  %v4429_v35 = vsel %vm4427_vm6, %v17398_v17, %v14666_v18 }
 0x35e   : > { %3915 = vmatpush1.bf16.msra.mxu0 %v14230_v8  ;;  %4067 = vmatprep.subr.bf16.mxu1 %v14407_v63  ;;  %v14834_v30 = vpop.permute.xlu1 %4377 }
 0x35f   : > { %4548 = vmatprep.subr.bf16.mxu0 %v4429_v35  ;;  %10955 = vmatprep.mubr.msk.bf16.mxu1 %vm3405_vm4, %v12732_v5  ;;  %v12737_v35 = vld [vmem:[%s17305_s3 + $0x130] ss:$8 sps:$4 sm:$0xff]   ;;  %v14859_v5 = vpop.permute.xlu0 %5083 }
 0x360   : > { %5151 = vrot.lane.b32.xlu1 %v14360_v3, %s13204_s27  ;;  %3535 = vmatmul.mubr.bf16.gmra.mrb[216].mxu0 %v12734_v15  ;;  %17399 = vst [vmem:[#allocation8_spill] sm:$0xff] %v14859_v5 }
 0x361   : > { %4068 = vmatpush1.bf16.msra.mxu1 %v14411_v58  ;;  %5901 = vrot.lane.b32.xlu0 %v17380_v27, %s13205_s28  ;;  %v12738_v27 = vld [vmem:[%s17305_s3 + $0x144] ss:$8 sps:$4 sm:$0xff]  }
 0x362   : > { %4701 = vmatprep.subr.bf16.mxu1 %v14682_v45  ;;  %v14851_v6 = vpop.permute.xlu1 %4383  ;;  %10944 = vmatprep.mubr.msk.bf16.mxu0 %vm3405_vm4, %v12735_v43 }
 0x364   : > { %3688 = vmatmul.mubr.bf16.gmra.mrb[216].mxu1 %v12734_v15  ;;  %5153 = vrot.lane.b32.xlu1 %v17381_v44, %s13204_s27 }
 0x365   : > { %5899 = vrot.lane.b32.xlu0 %v17384_v0, %s13205_s28  ;;  %10956 = vmatprep.mubr.msk.bf16.mxu1 %vm3405_vm4, %v12735_v43  ;;  %v14876_v0 = vpop.permute.xlu0 %5093  ;;  %v12740_v43 = vld [vmem:[%s17305_s3 + $0x140] ss:$8 sps:$4 sm:$0xff]  }
 0x366   : > { %v14867_v3 = vpop.permute.xlu1 %4385  ;;  %17400 = vst [vmem:[#allocation15_spill] sm:$0xff] %v14876_v0 }
 0x368   : > { %5159 = vrot.lane.b32.xlu1 %v14376_v26, %s13204_s27  ;;  %3545 = vmatmul.mubr.bf16.gmra.mrb[220].mxu0 %v12737_v35 }
 0x369   : > { %5909 = vrot.lane.b32.xlu0 %v17385_v25, %s13205_s28  ;;  %10945 = vmatprep.mubr.msk.bf16.mxu0 %vm3405_vm4, %v12738_v27  ;;  %v12741_v25 = vld [vmem:[%s17305_s3 + $0x154] ss:$8 sps:$4 sm:$0xff]  }
 0x36a   : > { %v14874_v15 = vpop.permute.xlu1 %4391 }
 0x36c   : > { %3698 = vmatmul.mubr.bf16.gmra.mrb[220].mxu1 %v12737_v35  ;;  %5161 = vrot.lane.b32.xlu1 %v17387_v1, %s13204_s27  ;;  %v14893_v35 = vpop.permute.xlu0 %5091 }
 0x36d   : > { %5907 = vrot.lane.b32.xlu0 %v17390_v23, %s13205_s28  ;;  %10957 = vmatprep.mubr.msk.bf16.mxu1 %vm3405_vm4, %v12738_v27  ;;  %17401 = vst [vmem:[#allocation16_spill] sm:$0xff] %v14893_v35  ;;  %v12743_v27 = vld [vmem:[%s17305_s3 + $0x150] ss:$8 sps:$4 sm:$0xff]  }
 0x36e   : > { %v14889_v5 = vpop.permute.xlu1 %4393 }
 0x370   : > { %5167 = vrot.lane.b32.xlu1 %v14392_v14, %s13204_s27  ;;  %3555 = vmatmul.mubr.bf16.gmra.mrb[224].mxu0 %v12740_v43  ;;  %v14913_v0 = vpop.permute.xlu0 %5101 }
 0x371   : > { %5917 = vrot.lane.b32.xlu0 %v17391_v55, %s13205_s28  ;;  %10946 = vmatprep.mubr.msk.bf16.mxu0 %vm3405_vm4, %v12741_v25  ;;  %v12744_v55 = vld [vmem:[%s17305_s3 + $0x164] ss:$8 sps:$4 sm:$0xff]   ;;  %17402 = vst [vmem:[#allocation18_spill] sm:$0xff] %v14913_v0 }
 0x372   : > { %v14898_v23 = vpop.permute.xlu1 %4399 }
 0x374   : > { %3708 = vmatmul.mubr.bf16.gmra.mrb[224].mxu1 %v12740_v43  ;;  %5169 = vrot.lane.b32.xlu1 %v17392_v10, %s13204_s27  ;;  %v12746_v43 = vld [vmem:[%s17305_s3 + $0x160] ss:$8 sps:$4 sm:$0xff]  }
 0x375   : > { %5915 = vrot.lane.b32.xlu0 %v14222_v47, %s13205_s28  ;;  %10958 = vmatprep.mubr.msk.bf16.mxu1 %vm3405_vm4, %v12741_v25  ;;  %v14927_v25 = vpop.permute.xlu0 %5099 }
 0x376   : > { %v14911_v35 = vpop.permute.xlu1 %4401  ;;  %17403 = vst [vmem:[#allocation7_spill] sm:$0xff] %v14927_v25 }
 0x378   : > { %5175 = vrot.lane.b32.xlu1 %v14411_v58, %s13204_s27  ;;  %3565 = vmatmul.mubr.bf16.gmra.mrb[228].mxu0 %v12743_v27 }
 0x379   : > { %5925 = vrot.lane.b32.xlu0 %v14232_v36, %s13205_s28  ;;  %10947 = vmatprep.mubr.msk.bf16.mxu0 %vm3405_vm4, %v12744_v55  ;;  %v12747_v36 = vld [vmem:[%s17305_s3 + $0x174] ss:$8 sps:$4 sm:$0xff]   ;;  %v14948_v25 = vpop.permute.xlu0 %5109 }
 0x37a   : > { %v14920_v47 = vpop.permute.xlu1 %4407  ;;  %17404 = vst [vmem:[#allocation9_spill] sm:$0xff] %v14948_v25 }
 0x37c   : > { %3718 = vmatmul.mubr.bf16.gmra.mrb[228].mxu1 %v12743_v27  ;;  %5177 = vrot.lane.b32.xlu1 %v14407_v63, %s13204_s27  ;;  %v6454_v27 = vld [vmem:[%s17306_s4] sm:$0xff] }
 0x37d   : > { %5923 = vrot.lane.b32.xlu0 %v14230_v8, %s13205_s28  ;;  %10959 = vmatprep.mubr.msk.bf16.mxu1 %vm3405_vm4, %v12744_v55  ;;  %v6456_v55 = vld [vmem:[%s17306_s4 + $0x10] sm:$0xff] }
 0x37e   : > { %v14935_v0 = vpop.permute.xlu1 %4409 }
 0x380   : > { %5839 = vrot.lane.b32.xlu1 %v14240_v50, %s13205_s28  ;;  %3575 = vmatmul.mubr.bf16.gmra.mrb[232].mxu0 %v12746_v43  ;;  %v12749_v50 = vld [vmem:[%s17305_s3 + $0x170] ss:$8 sps:$4 sm:$0xff]  }
 0x381   : > { %6480 = vperm.xlu0 %12638, %v6454_v27   ;;  %10948 = vmatprep.mubr.msk.bf16.mxu0 %vm3405_vm4, %v12747_v36  ;;  %v12752_v27 = vld [vmem:[%s17305_s3 + $0x4] ss:$8 sps:$4 sm:$0xff]  }
 0x382   : > { %v14943_v8 = vpop.permute.xlu1 %4415 }
 0x384   : > { %3728 = vmatmul.mubr.bf16.gmra.mrb[232].mxu1 %v12746_v43  ;;  %5841 = vrot.lane.b32.xlu1 %v14236_v53, %s13205_s28  ;;  %v6458_v43 = vld [vmem:[%s17306_s4 + $0x20] sm:$0xff]  ;;  %v14966_v53 = vpop.permute.xlu0 %5107 }
 0x385   : > { %6490 = vperm.xlu0 %12638, %v6456_v55   ;;  %10960 = vmatprep.mubr.msk.bf16.mxu1 %vm3405_vm4, %v12747_v36  ;;  %17405 = vst [vmem:[#allocation17_spill] sm:$0xff] %v14966_v53  ;;  %v6460_v55 = vld [vmem:[%s17306_s4 + $0x30] sm:$0xff]  ;;  %v6462_v53 = vld [vmem:[%s17306_s4 + $0x40] sm:$0xff] }
 0x386   : > { %v14959_v63 = vpop.permute.xlu1 %4417 }
 0x388   : > { %5847 = vrot.lane.b32.xlu1 %v14252_v4, %s13205_s28  ;;  %3585 = vmatmul.mubr.bf16.gmra.mrb[236].mxu0 %v12749_v50  ;;  %v12750_v4 = vld [vmem:[%s17305_s3] ss:$8 sps:$4 sm:$0xff]   ;;  %v14988_v25 = vpop.permute.xlu0 %5117 }
 0x389   : > { %6500 = vperm.xlu0 %12638, %v6458_v43   ;;  %10985 = vmatprep.mubr.msk.bf16.mxu0 %vm3405_vm4, %v12752_v27  ;;  %17406 = vst [vmem:[#allocation10_spill] sm:$0xff] %v14988_v25  ;;  %v6464_v25 = vld [vmem:[%s17306_s4 + $0x50] sm:$0xff] }
 0x38a   : > { %v14969_v36 = vpop.permute.xlu1 %4423 }
 0x38c   : > { %3738 = vmatmul.mubr.bf16.gmra.mrb[236].mxu1 %v12749_v50  ;;  %5849 = vrot.lane.b32.xlu1 %v17393_v12, %s13205_s28  ;;  %v12753_v50 = vld [vmem:[%s17305_s3 + $0x14] ss:$8 sps:$4 sm:$0xff]   ;;  %v4428_v12 = vsel %vm4427_vm6, %v14467_v59, %v17398_v17  ;;  %v4430_v59 = vsel %vm4427_vm6, %v14666_v18, %v14682_v45  ;;  %v12755_v17 = vld [vmem:[%s17305_s3 + $0x10] ss:$8 sps:$4 sm:$0xff]   ;;  %v12756_v18 = vld [vmem:[%s17305_s3 + $0x24] ss:$8 sps:$4 sm:$0xff]  }
 0x38d   : > { %6510 = vperm.xlu0 %12638, %v6460_v55   ;;  %10997 = vmatprep.mubr.msk.bf16.mxu1 %vm3405_vm4, %v12752_v27  ;;  %v4432_v27 = vsel %vm4427_vm6, %v14473_v49, %v14696_v60  ;;  %v17408_v45 = vld [vmem:[#allocation22_spill] sm:$0xff] }
 0x38e   : > { %v14980_v43 = vpop.permute.xlu1 %4425 }
 0x390   : > { %5855 = vrot.lane.b32.xlu1 %v14264_v32, %s13205_s28  ;;  %3925 = vmatmul.mubr.bf16.vlgmr.msra.gmra.mrb[192].mxu0 %v12750_v4  ;;  %v4431_v32 = vsel %vm4427_vm6, %v14487_v34, %v14473_v49  ;;  %v17407_v49 = vld [vmem:[#allocation21_spill] sm:$0xff] }
 0x391   : > { %4549 = vmatpush1.bf16.msra.mxu0 %v4428_v12  ;;  %6520 = vperm.xlu0 %12638, %v6462_v53   ;;  %v15015_v53 = vpop.permute.xlu0 %5115  ;;  %v4435_v34 = vsel %vm4427_vm6, %v17407_v49, %v14728_v40  ;;  %v4433_v12 = vsel %vm4427_vm6, %v14696_v60, %v14712_v29  ;;  %v6468_v60 = vld [vmem:[%s17306_s4 + $0x70] sm:$0xff] }
 0x392   : > { %4550 = vmatprep.subr.bf16.mxu0 %v4432_v27  ;;  %v14998_v55 = vpop.permute.xlu1 %5087  ;;  %10986 = vmatprep.mubr.msk.bf16.mxu0 %vm3405_vm4, %v12753_v50 }
 0x394   : > { %4078 = vmatmul.mubr.bf16.vlgmr.msra.gmra.mrb[192].mxu1 %v12750_v4  ;;  %5857 = vrot.lane.b32.xlu1 %v14260_v31, %s13205_s28  ;;  %v6466_v31 = vld [vmem:[%s17306_s4 + $0x60] sm:$0xff] }
 0x395   : > { %4702 = vmatpush1.bf16.msra.mxu1 %v4430_v59  ;;  %4551 = vmatpush1.bf16.msra.mxu0 %v4431_v32  ;;  %v15044_v59 = vpop.permute.xlu0 %5125 }
 0x396   : > { %4703 = vmatprep.subr.bf16.mxu1 %v14712_v29  ;;  %6530 = vperm.xlu0 %12638, %v6464_v25   ;;  %v15021_v4 = vpop.permute.xlu1 %5089  ;;  %v4434_v25 = vsel %vm4427_vm6, %v17408_v45, %v17407_v49  ;;  %v4436_v49 = vsel %vm4427_vm6, %v14728_v40, %v14742_v57  ;;  %v12759_v40 = vld [vmem:[%s17305_s3 + $0x34] ss:$8 sps:$4 sm:$0xff]  }
 0x397   : > { %4552 = vmatprep.subr.bf16.mxu0 %v4435_v34  ;;  %10998 = vmatprep.mubr.msk.bf16.mxu1 %vm3405_vm4, %v12753_v50  ;;  %v17409_v50 = vld [vmem:[#allocation23_spill] sm:$0xff] }
 0x398   : > { %5863 = vrot.lane.b32.xlu1 %v14280_v11, %s13205_s28  ;;  %3935 = vmatmul.mubr.bf16.gmra.mrb[196].mxu0 %v12755_v17  ;;  %v4438_v27 = vsel %vm4427_vm6, %v17409_v50, %v14758_v38  ;;  %v17410_v11 = vld [vmem:[#allocation24_spill] sm:$0xff]  ;;  %v12758_v34 = vld [vmem:[%s17305_s3 + $0x20] ss:$8 sps:$4 sm:$0xff]  }
 0x399   : > { %4704 = vmatpush1.bf16.msra.mxu1 %v4433_v12  ;;  %4553 = vmatpush1.bf16.msra.mxu0 %v4434_v25  ;;  %v4437_v29 = vsel %vm4427_vm6, %v17410_v11, %v17409_v50  ;;  %v4439_v12 = vsel %vm4427_vm6, %v14758_v38, %v14774_v52  ;;  %v15082_v50 = vpop.permute.xlu0 %5123  ;;  %v6472_v38 = vld [vmem:[%s17306_s4 + $0x90] sm:$0xff] }
 0x39a   : > { %4705 = vmatprep.subr.bf16.mxu1 %v14742_v57  ;;  %6540 = vperm.xlu0 %12638, %v6466_v31   ;;  %v15042_v32 = vpop.permute.xlu1 %5095  ;;  %v17411_v31 = vld [vmem:[#allocation4_spill] sm:$0xff]  ;;  %v17412_v57 = vld [vmem:[#allocation6_spill] sm:$0xff] }
 0x39b   : > { %4554 = vmatprep.subr.bf16.mxu0 %v4438_v27  ;;  %10987 = vmatprep.mubr.msk.bf16.mxu0 %vm3405_vm4, %v12756_v18  ;;  %v4440_v25 = vsel %vm4427_vm6, %v17412_v57, %v17411_v31  ;;  %v12761_v11 = vld [vmem:[%s17305_s3 + $0x30] ss:$8 sps:$4 sm:$0xff]   ;;  %v17414_v57 = vld [vmem:[#allocation14_spill] sm:$0xff] }
 0x39c   : > { %4088 = vmatmul.mubr.bf16.gmra.mrb[196].mxu1 %v12755_v17  ;;  %5865 = vrot.lane.b32.xlu1 %v14274_v21, %s13205_s28  ;;  %v4441_v17 = vsel %vm4427_vm6, %v17411_v31, %v14788_v51  ;;  %v6470_v21 = vld [vmem:[%s17306_s4 + $0x80] sm:$0xff]  ;;  %v4450_v31 = vsel %vm4427_vm6, %v14623_v33, %v14874_v15 }
 0x39d   : > { %4706 = vmatpush1.bf16.msra.mxu1 %v4436_v49  ;;  %4555 = vmatpush1.bf16.msra.mxu0 %v4437_v29  ;;  %v15111_v49 = vpop.permute.xlu0 %5133 }
 0x39e   : > { %4707 = vmatprep.subr.bf16.mxu1 %v14774_v52  ;;  %6550 = vperm.xlu0 %12638, %v6468_v60   ;;  %v15065_v45 = vpop.permute.xlu1 %5097  ;;  %v4442_v52 = vsel %vm4427_vm6, %v14788_v51, %v14804_v42  ;;  %v12762_v51 = vld [vmem:[%s17305_s3 + $0x44] ss:$8 sps:$4 sm:$0xff]  }
 0x39f   : > { %4556 = vmatprep.subr.bf16.mxu0 %v4441_v17  ;;  %10999 = vmatprep.mubr.msk.bf16.mxu1 %vm3405_vm4, %v12756_v18  ;;  %v17413_v18 = vld [vmem:[#allocation12_spill] sm:$0xff] }
 0x3a0   : > { %5871 = vrot.lane.b32.xlu1 %v14296_v22, %s13205_s28  ;;  %3945 = vmatmul.mubr.bf16.gmra.mrb[200].mxu0 %v12758_v34  ;;  %v4444_v27 = vsel %vm4427_vm6, %v17413_v18, %v14820_v28  ;;  %v4443_v22 = vsel %vm4427_vm6, %v14587_v61, %v17413_v18  ;;  %v4447_v61 = vsel %vm4427_vm6, %v14601_v46, %v14851_v6 }
 0x3a1   : > { %4708 = vmatpush1.bf16.msra.mxu1 %v4439_v12  ;;  %4557 = vmatpush1.bf16.msra.mxu0 %v4440_v25  ;;  %v4462_v25 = vsel %vm4427_vm6, %v17414_v57, %v14969_v36  ;;  %v12770_v12 = vld [vmem:[%s17305_s3 + $0x60] ss:$8 sps:$4 sm:$0xff]   ;;  %v5181_v18 = vsel %vm5179_vm7, %v14842_v2, %v14998_v55 }
 0x3a2   : > { %4709 = vmatprep.subr.bf16.mxu1 %v14804_v42  ;;  %6560 = vperm.xlu0 %12638, %v6470_v21   ;;  %v15088_v60 = vpop.permute.xlu1 %5103  ;;  %v4446_v42 = vsel %vm4427_vm6, %v14615_v39, %v14601_v46  ;;  %v6476_v46 = vld [vmem:[%s17306_s4 + $0xb0] sm:$0xff]  ;;  %v4448_v39 = vsel %vm4427_vm6, %v14851_v6, %v14867_v3  ;;  %v4451_v6 = vsel %vm4427_vm6, %v14874_v15, %v14889_v5 }
 0x3a3   : > { %4558 = vmatprep.subr.bf16.mxu0 %v4444_v27  ;;  %10988 = vmatprep.mubr.msk.bf16.mxu0 %vm3405_vm4, %v12759_v40  ;;  %v4456_v21 = vsel %vm4427_vm6, %v14698_v62, %v14920_v47  ;;  %v4459_v15 = vsel %vm4427_vm6, %v14744_v9, %v14943_v8  ;;  %v12771_v27 = vld [vmem:[%s17305_s3 + $0x74] ss:$8 sps:$4 sm:$0xff]  }
 0x3a4   : > { %4098 = vmatmul.mubr.bf16.gmra.mrb[200].mxu1 %v12758_v34  ;;  %5873 = vrot.lane.b32.xlu1 %v14290_v19, %s13205_s28  ;;  %v6474_v19 = vld [vmem:[%s17306_s4 + $0xa0] sm:$0xff]  ;;  %v4445_v34 = vsel %vm4427_vm6, %v14820_v28, %v14834_v30 }
 0x3a5   : > { %4710 = vmatpush1.bf16.msra.mxu1 %v4442_v52  ;;  %4559 = vmatpush1.bf16.msra.mxu0 %v4443_v22  ;;  %v12764_v28 = vld [vmem:[%s17305_s3 + $0x40] ss:$8 sps:$4 sm:$0xff]   ;;  %v17417_v22 = vld [vmem:[#allocation13_spill] sm:$0xff] }
 0x3a6   : > { %4711 = vmatprep.subr.bf16.mxu1 %v14834_v30  ;;  %6570 = vperm.xlu0 %12638, %v6472_v38   ;;  %v15109_v29 = vpop.permute.xlu1 %5105  ;;  %v15149_v30 = vpop.permute.xlu0 %5131  ;;  %v4463_v38 = vsel %vm4427_vm6, %v14969_v36, %v14980_v43 }
 0x3a7   : > { %4560 = vmatprep.subr.bf16.mxu0 %v4447_v61  ;;  %11000 = vmatprep.mubr.msk.bf16.mxu1 %vm3405_vm4, %v12759_v40 }
 0x3a8   : > { %5879 = vrot.lane.b32.xlu1 %v14312_v13, %s13205_s28  ;;  %3955 = vmatmul.mubr.bf16.gmra.mrb[204].mxu0 %v12761_v11  ;;  %v4449_v13 = vsel %vm4427_vm6, %v14637_v16, %v14623_v33  ;;  %v4453_v33 = vsel %vm4427_vm6, %v14654_v48, %v14898_v23 }
 0x3a9   : > { %4712 = vmatpush1.bf16.msra.mxu1 %v4445_v34  ;;  %4561 = vmatpush1.bf16.msra.mxu0 %v4446_v42 }
 0x3aa   : > { %4713 = vmatprep.subr.bf16.mxu1 %v14867_v3  ;;  %6580 = vperm.xlu0 %12638, %v6474_v19   ;;  %v15132_v17 = vpop.permute.xlu1 %5111  ;;  %v4452_v3 = vsel %vm4427_vm6, %v14675_v41, %v14654_v48  ;;  %v15175_v48 = vpop.permute.xlu0 %5141  ;;  %v4454_v41 = vsel %vm4427_vm6, %v14898_v23, %v14911_v35 }
 0x3ab   : > { %4562 = vmatprep.subr.bf16.mxu0 %v4450_v31  ;;  %10989 = vmatprep.mubr.msk.bf16.mxu0 %vm3405_vm4, %v12762_v51  ;;  %v12779_v31 = vld [vmem:[%s17305_s3 + $0x90] ss:$8 sps:$4 sm:$0xff]  }
 0x3ac   : > { %4108 = vmatmul.mubr.bf16.gmra.mrb[204].mxu1 %v12761_v11  ;;  %5881 = vrot.lane.b32.xlu1 %v14306_v37, %s13205_s28  ;;  %v12765_v37 = vld [vmem:[%s17305_s3 + $0x54] ss:$8 sps:$4 sm:$0xff]   ;;  %v12773_v11 = vld [vmem:[%s17305_s3 + $0x70] ss:$8 sps:$4 sm:$0xff]  }
 0x3ad   : > { %4714 = vmatpush1.bf16.msra.mxu1 %v4448_v39  ;;  %4563 = vmatpush1.bf16.msra.mxu0 %v4449_v13  ;;  %v17418_v39 = vld [vmem:[#allocation19_spill] sm:$0xff] }
 0x3ae   : > { %4715 = vmatprep.subr.bf16.mxu1 %v14889_v5  ;;  %6590 = vperm.xlu0 %12638, %v6476_v46   ;;  %v15155_v16 = vpop.permute.xlu1 %5113  ;;  %v12767_v5 = vld [vmem:[%s17305_s3 + $0x50] ss:$8 sps:$4 sm:$0xff]   ;;  %v15207_v23 = vpop.permute.xlu0 %5139 }
 0x3af   : > { %4564 = vmatprep.subr.bf16.mxu0 %v4453_v33  ;;  %11001 = vmatprep.mubr.msk.bf16.mxu1 %vm3405_vm4, %v12762_v51  ;;  %v12776_v51 = vld [vmem:[%s17305_s3 + $0x80] ss:$8 sps:$4 sm:$0xff]  }
 0x3b0   : > { %5887 = vrot.lane.b32.xlu1 %v14328_v54, %s13205_s28  ;;  %3965 = vmatmul.mubr.bf16.gmra.mrb[208].mxu0 %v12764_v28  ;;  %v4455_v54 = vsel %vm4427_vm6, %v14721_v56, %v14698_v62  ;;  %v4458_v56 = vsel %vm4427_vm6, %v14767_v7, %v14744_v9  ;;  %v17415_v7 = vld [vmem:[#allocation5_spill] sm:$0xff] }
 0x3b1   : > { %4716 = vmatpush1.bf16.msra.mxu1 %v4451_v6  ;;  %4565 = vmatpush1.bf16.msra.mxu0 %v4452_v3  ;;  %v6457_v6 = vld [vmem:[%s17306_s4 + $0x18] sm:$0xff] }
 0x3b2   : > { %4717 = vmatprep.subr.bf16.mxu1 %v14911_v35  ;;  %4566 = vmatprep.subr.bf16.mxu0 %v4456_v21  ;;  %v15173_v40 = vpop.permute.xlu1 %5119  ;;  %v4457_v35 = vsel %vm4427_vm6, %v14920_v47, %v14935_v0  ;;  %v17416_v47 = vld [vmem:[#allocation11_spill] sm:$0xff] }
 0x3b3   : > { %10990 = vmatprep.mubr.msk.bf16.mxu0 %vm3405_vm4, %v12765_v37 }
 0x3b4   : > { %4118 = vmatmul.mubr.bf16.gmra.mrb[208].mxu1 %v12764_v28  ;;  %5889 = vrot.lane.b32.xlu1 %v14322_v20, %s13205_s28  ;;  %v12768_v20 = vld [vmem:[%s17305_s3 + $0x64] ss:$8 sps:$4 sm:$0xff]   ;;  %v12782_v28 = vld [vmem:[%s17305_s3 + $0xa0] ss:$8 sps:$4 sm:$0xff]  }
 0x3b5   : > { %4718 = vmatpush1.bf16.msra.mxu1 %v4454_v41  ;;  %4567 = vmatpush1.bf16.msra.mxu0 %v4455_v54  ;;  %v12785_v41 = vld [vmem:[%s17305_s3 + $0xb0] ss:$8 sps:$4 sm:$0xff]  }
 0x3b6   : > { %4719 = vmatprep.subr.bf16.mxu1 %v14935_v0  ;;  %4568 = vmatprep.subr.bf16.mxu0 %v4459_v15  ;;  %v15193_v62 = vpop.permute.xlu1 %5121  ;;  %v4460_v0 = vsel %vm4427_vm6, %v14943_v8, %v14959_v63  ;;  %v15236_v8 = vpop.permute.xlu0 %5149  ;;  %v12788_v15 = vld [vmem:[%s17305_s3 + $0x184] ss:$8 sps:$4 sm:$0xff]  }
 0x3b7   : > { %11002 = vmatprep.mubr.msk.bf16.mxu1 %vm3405_vm4, %v12765_v37  ;;  %v6455_v37 = vld [vmem:[%s17306_s4 + $0x8] sm:$0xff] }
 0x3b8   : > { %5895 = vrot.lane.b32.xlu1 %v14344_v24, %s13205_s28  ;;  %3975 = vmatmul.mubr.bf16.gmra.mrb[212].mxu0 %v12767_v5  ;;  %v4461_v24 = vsel %vm4427_vm6, %v17415_v7, %v17414_v57  ;;  %v6463_v7 = vld [vmem:[%s17306_s4 + $0x48] sm:$0xff] }
 0x3b9   : > { %4720 = vmatpush1.bf16.msra.mxu1 %v4457_v35  ;;  %4569 = vmatpush1.bf16.msra.mxu0 %v4458_v56  ;;  %v6461_v35 = vld [vmem:[%s17306_s4 + $0x38] sm:$0xff] }
 0x3ba   : > { %4721 = vmatprep.subr.bf16.mxu1 %v14959_v63  ;;  %4570 = vmatprep.subr.bf16.mxu0 %v4462_v25  ;;  %v15213_v9 = vpop.permute.xlu1 %5127  ;;  %v15253_v36 = vpop.permute.xlu0 %5147  ;;  %v12786_v25 = vld [vmem:[%s17305_s3 + $0x180] ss:$8 sps:$4 sm:$0xff]  }
 0x3bb   : > { %10991 = vmatprep.mubr.msk.bf16.mxu0 %vm3405_vm4, %v12768_v20 }
 0x3bc   : > { %4128 = vmatmul.mubr.bf16.gmra.mrb[212].mxu1 %v12767_v5  ;;  %5897 = vrot.lane.b32.xlu1 %v17416_v47, %s13205_s28  ;;  %v6459_v5 = vld [vmem:[%s17306_s4 + $0x28] sm:$0xff] }
 0x3bd   : > { %4722 = vmatpush1.bf16.msra.mxu1 %v4460_v0  ;;  %4571 = vmatpush1.bf16.msra.mxu0 %v4461_v24  ;;  %v12789_v24 = vld [vmem:[%s17305_s3 + $0x194] ss:$8 sps:$4 sm:$0xff]  }
 0x3be   : > { %4723 = vmatprep.subr.bf16.mxu1 %v14980_v43  ;;  %5300 = vmatprep.subr.bf16.mxu0 %v5181_v18  ;;  %v15234_v63 = vpop.permute.xlu1 %5129  ;;  %v12774_v43 = vld [vmem:[%s17305_s3 + $0x84] ss:$8 sps:$4 sm:$0xff]   ;;  %v15266_v19 = vpop.permute.xlu0 %5157 }
 0x3bf   : > { %11003 = vmatprep.mubr.msk.bf16.mxu1 %vm3405_vm4, %v12768_v20 }
 0x3c0   : > { %5903 = vrot.lane.b32.xlu1 %v17417_v22, %s13205_s28  ;;  %3985 = vmatmul.mubr.bf16.gmra.mrb[216].mxu0 %v12770_v12  ;;  %v6465_v22 = vld [vmem:[%s17306_s4 + $0x58] sm:$0xff] }
 0x3c1   : > { %4724 = vmatpush1.bf16.msra.mxu1 %v4463_v38  ;;  %10992 = vmatprep.mubr.msk.bf16.mxu0 %vm3405_vm4, %v12771_v27 }
 0x3c2   : > { %5453 = vmatprep.subr.bf16.mxu1 %v15021_v4  ;;  %v15246_v52 = vpop.permute.xlu1 %5135  ;;  %v15281_v34 = vpop.permute.xlu0 %5155 }
 0x3c4   : > { %4138 = vmatmul.mubr.bf16.gmra.mrb[216].mxu1 %v12770_v12  ;;  %5905 = vrot.lane.b32.xlu1 %v17381_v44, %s13205_s28  ;;  %v17419_v12 = vld [vmem:[#allocation8_spill] sm:$0xff] }
 0x3c5   : > { %11004 = vmatprep.mubr.msk.bf16.mxu1 %vm3405_vm4, %v12771_v27  ;;  %v5180_v18 = vsel %vm5179_vm7, %v17419_v12, %v14842_v2  ;;  %v17420_v27 = vld [vmem:[#allocation15_spill] sm:$0xff] }
 0x3c6   : > { %v15259_v61 = vpop.permute.xlu1 %5137  ;;  %v15297_v13 = vpop.permute.xlu0 %5165  ;;  %v5184_v38 = vsel %vm5179_vm7, %v17420_v27, %v15042_v32 }
 0x3c8   : > { %5911 = vrot.lane.b32.xlu1 %v14376_v26, %s13205_s28  ;;  %3995 = vmatmul.mubr.bf16.gmra.mrb[220].mxu0 %v12773_v11  ;;  %v12777_v26 = vld [vmem:[%s17305_s3 + $0x94] ss:$8 sps:$4 sm:$0xff]  }
 0x3c9   : > { %10993 = vmatprep.mubr.msk.bf16.mxu0 %vm3405_vm4, %v12774_v43 }
 0x3ca   : > { %v15264_v44 = vpop.permute.xlu1 %5143  ;;  %v15309_v33 = vpop.permute.xlu0 %5163 }
 0x3cc   : > { %4148 = vmatmul.mubr.bf16.gmra.mrb[220].mxu1 %v12773_v11  ;;  %5913 = vrot.lane.b32.xlu1 %v17387_v1, %s13205_s28 }
 0x3cd   : > { %11005 = vmatprep.mubr.msk.bf16.mxu1 %vm3405_vm4, %v12774_v43  ;;  %v17421_v43 = vld [vmem:[#allocation16_spill] sm:$0xff] }
 0x3ce   : > { %v15277_v42 = vpop.permute.xlu1 %5145  ;;  %v15326_v54 = vpop.permute.xlu0 %5173  ;;  %v5183_v2 = vsel %vm5179_vm7, %v17421_v43, %v17420_v27  ;;  %v5196_v43 = vsel %vm5179_vm7, %v15044_v59, %v15213_v9 }
 0x3d0   : > { %5919 = vrot.lane.b32.xlu1 %v14392_v14, %s13205_s28  ;;  %4005 = vmatmul.mubr.bf16.gmra.mrb[224].mxu0 %v12776_v51  ;;  %v12780_v14 = vld [vmem:[%s17305_s3 + $0xa4] ss:$8 sps:$4 sm:$0xff]  }
 0x3d1   : > { %10994 = vmatprep.mubr.msk.bf16.mxu0 %vm3405_vm4, %v12777_v26 }
 0x3d2   : > { %v15284_v1 = vpop.permute.xlu1 %5151  ;;  %v15340_v56 = vpop.permute.xlu0 %5171 }
 0x3d4   : > { %4158 = vmatmul.mubr.bf16.gmra.mrb[224].mxu1 %v12776_v51  ;;  %5921 = vrot.lane.b32.xlu1 %v17392_v10, %s13205_s28  ;;  %v5182_v51 = vsel %vm5179_vm7, %v14998_v55, %v15021_v4  ;;  %v12792_v55 = vld [vmem:[%s17305_s3 + $0x1a4] ss:$8 sps:$4 sm:$0xff]  }
 0x3d5   : > { %11006 = vmatprep.mubr.msk.bf16.mxu1 %vm3405_vm4, %v12777_v26  ;;  %v12791_v26 = vld [vmem:[%s17305_s3 + $0x190] ss:$8 sps:$4 sm:$0xff]   ;;  %v17423_v4 = vld [vmem:[#allocation7_spill] sm:$0xff] }
 0x3d6   : > { %v15295_v46 = vpop.permute.xlu1 %5153  ;;  %v15360_v47 = vpop.permute.xlu0 %5837 }
 0x3d8   : > { %5927 = vrot.lane.b32.xlu1 %v14411_v58, %s13205_s28  ;;  %4015 = vmatmul.mubr.bf16.gmra.mrb[228].mxu0 %v12779_v31  ;;  %v12783_v58 = vld [vmem:[%s17305_s3 + $0xb4] ss:$8 sps:$4 sm:$0xff]  }
 0x3d9   : > { %10995 = vmatprep.mubr.msk.bf16.mxu0 %vm3405_vm4, %v12780_v14 }
 0x3da   : > { %v15302_v10 = vpop.permute.xlu1 %5159 }
 0x3dc   : > { %4168 = vmatmul.mubr.bf16.gmra.mrb[228].mxu1 %v12779_v31  ;;  %5929 = vrot.lane.b32.xlu1 %v17418_v39, %s13205_s28  ;;  %v15383_v31 = vpop.permute.xlu0 %5835 }
 0x3dd   : > { %11007 = vmatprep.mubr.msk.bf16.mxu1 %vm3405_vm4, %v12780_v14  ;;  %v17422_v14 = vld [vmem:[#allocation18_spill] sm:$0xff] }
 0x3de   : > { %v15318_v3 = vpop.permute.xlu1 %5161  ;;  %v5187_v39 = vsel %vm5179_vm7, %v17422_v14, %v15088_v60 }
 0x3e0   : > { %6485 = vperm.xlu1 %12639, %v6455_v37   ;;  %4025 = vmatmul.mubr.bf16.gmra.mrb[232].mxu0 %v12782_v28  ;;  %v5186_v37 = vsel %vm5179_vm7, %v17423_v4, %v17422_v14  ;;  %v5197_v14 = vsel %vm5179_vm7, %v15213_v9, %v15234_v63  ;;  %v12800_v9 = vld [vmem:[%s17305_s3 + $0x1c0] ss:$8 sps:$4 sm:$0xff]   ;;  %v5205_v4 = vsel %vm5179_vm7, %v15236_v8, %v15284_v1 }
 0x3e1   : > { %10996 = vmatprep.mubr.msk.bf16.mxu0 %vm3405_vm4, %v12783_v58 }
 0x3e2   : > { %v15324_v21 = vpop.permute.xlu1 %5167 }
 0x3e4   : > { %4178 = vmatmul.mubr.bf16.gmra.mrb[232].mxu1 %v12782_v28  ;;  %6495 = vperm.xlu1 %12639, %v6457_v6   ;;  %v6467_v28 = vld [vmem:[%s17306_s4 + $0x68] sm:$0xff]  ;;  %v5185_v6 = vsel %vm5179_vm7, %v15042_v32, %v15065_v45  ;;  %v17425_v32 = vld [vmem:[#allocation17_spill] sm:$0xff] }
 0x3e5   : > { %11008 = vmatprep.mubr.msk.bf16.mxu1 %vm3405_vm4, %v12783_v58 }
 0x3e6   : > { %v15338_v20 = vpop.permute.xlu1 %5169 }
 0x3e8   : > { %6505 = vperm.xlu1 %12639, %v6459_v5   ;;  %4035 = vmatmul.mubr.bf16.gmra.mrb[236].mxu0 %v12785_v41 }
 0x3e9   : > { %11057 = vmatprep.mubr.msk.bf16.mxu0 %vm3405_vm4, %v12788_v15 }
 0x3ea   : > { %v15346_v57 = vpop.permute.xlu1 %5175 }
 0x3ec   : > { %4188 = vmatmul.mubr.bf16.gmra.mrb[236].mxu1 %v12785_v41  ;;  %6515 = vperm.xlu1 %12639, %v6461_v35   ;;  %v17424_v41 = vld [vmem:[#allocation9_spill] sm:$0xff]  ;;  %v15411_v35 = vpop.permute.xlu0 %5845 }
 0x3ed   : > { %11069 = vmatprep.mubr.msk.bf16.mxu1 %vm3405_vm4, %v12788_v15  ;;  %v5190_v5 = vsel %vm5179_vm7, %v17424_v41, %v15132_v17  ;;  %v6469_v15 = vld [vmem:[%s17306_s4 + $0x78] sm:$0xff] }
 0x3ee   : > { %v15358_v0 = vpop.permute.xlu1 %5177 }
 0x3f0   : > { %6525 = vperm.xlu1 %12639, %v6463_v7   ;;  %4581 = vmatmul.mubr.bf16.vlgmr.msra.gmra.mrb[192].mxu0 %v12786_v25  ;;  %v12794_v7 = vld [vmem:[%s17305_s3 + $0x1a0] ss:$8 sps:$4 sm:$0xff]  }
 0x3f1   : > { %5301 = vmatpush1.bf16.msra.mxu0 %v5180_v18  ;;  %11058 = vmatprep.mubr.msk.bf16.mxu0 %vm3405_vm4, %v12789_v24  ;;  %v6471_v18 = vld [vmem:[%s17306_s4 + $0x88] sm:$0xff] }
 0x3f2   : > { %5302 = vmatprep.subr.bf16.mxu0 %v5184_v38  ;;  %v15372_v11 = vpop.permute.xlu1 %5839  ;;  %v5191_v38 = vsel %vm5179_vm7, %v15132_v17, %v15155_v16 }
 0x3f4   : > { %4734 = vmatmul.mubr.bf16.vlgmr.msra.gmra.mrb[192].mxu1 %v12786_v25  ;;  %6535 = vperm.xlu1 %12639, %v6465_v22   ;;  %v5188_v25 = vsel %vm5179_vm7, %v15088_v60, %v15109_v29  ;;  %v12795_v60 = vld [vmem:[%s17305_s3 + $0x1b4] ss:$8 sps:$4 sm:$0xff]   ;;  %v15442_v22 = vpop.permute.xlu0 %5843 }
 0x3f5   : > { %5454 = vmatpush1.bf16.msra.mxu1 %v5182_v51  ;;  %5303 = vmatpush1.bf16.msra.mxu0 %v5183_v2  ;;  %v6473_v2 = vld [vmem:[%s17306_s4 + $0x98] sm:$0xff] }
 0x3f6   : > { %5455 = vmatprep.subr.bf16.mxu1 %v15065_v45  ;;  %5304 = vmatprep.subr.bf16.mxu0 %v5187_v39  ;;  %v15399_v58 = vpop.permute.xlu1 %5841  ;;  %v5189_v45 = vsel %vm5179_vm7, %v17425_v32, %v17424_v41  ;;  %v12797_v51 = vld [vmem:[%s17305_s3 + $0x1b0] ss:$8 sps:$4 sm:$0xff]   ;;  %v5202_v39 = vsel %vm5179_vm7, %v15175_v48, %v15264_v44 }
 0x3f7   : > { %11070 = vmatprep.mubr.msk.bf16.mxu1 %vm3405_vm4, %v12789_v24  ;;  %v17426_v24 = vld [vmem:[#allocation10_spill] sm:$0xff]  ;;  %v12809_v32 = vld [vmem:[%s17305_s3 + $0x1f0] ss:$8 sps:$4 sm:$0xff]  }
 0x3f8   : > { %6545 = vperm.xlu1 %12639, %v6467_v28   ;;  %4591 = vmatmul.mubr.bf16.gmra.mrb[196].mxu0 %v12791_v26  ;;  %v5193_v12 = vsel %vm5179_vm7, %v17426_v24, %v15173_v40  ;;  %v6477_v28 = vld [vmem:[%s17306_s4 + $0xb8] sm:$0xff] }
 0x3f9   : > { %5456 = vmatpush1.bf16.msra.mxu1 %v5185_v6  ;;  %5305 = vmatpush1.bf16.msra.mxu0 %v5186_v37  ;;  %v5208_v37 = vsel %vm5179_vm7, %v15266_v19, %v15302_v10 }
 0x3fa   : > { %5457 = vmatprep.subr.bf16.mxu1 %v15109_v29  ;;  %5306 = vmatprep.subr.bf16.mxu0 %v5190_v5  ;;  %v15429_v27 = vpop.permute.xlu1 %5847  ;;  %v5192_v29 = vsel %vm5179_vm7, %v15015_v53, %v17426_v24  ;;  %v5195_v53 = vsel %vm5179_vm7, %v15082_v50, %v15044_v59  ;;  %v6475_v59 = vld [vmem:[%s17306_s4 + $0xa8] sm:$0xff]  ;;  %v15470_v50 = vpop.permute.xlu0 %5853  ;;  %v5214_v5 = vsel %vm5179_vm7, %v15326_v54, %v15346_v57  ;;  %v12813_v24 = vld [vmem:[%s17305_s3 + $0x214] ss:$8 sps:$4 sm:$0xff]  }
 0x3fb   : > { %11059 = vmatprep.mubr.msk.bf16.mxu0 %vm3405_vm4, %v12792_v55 }
 0x3fc   : > { %4744 = vmatmul.mubr.bf16.gmra.mrb[196].mxu1 %v12791_v26  ;;  %6555 = vperm.xlu1 %12639, %v6469_v15   ;;  %v5199_v26 = vsel %vm5179_vm7, %v15111_v49, %v15246_v52  ;;  %v5933_v15 = vsel %vm5931_vm8, %v15360_v47, %v15372_v11 }
 0x3fd   : > { %5458 = vmatpush1.bf16.msra.mxu1 %v5188_v25  ;;  %5307 = vmatpush1.bf16.msra.mxu0 %v5189_v45 }
 0x3fe   : > { %5459 = vmatprep.subr.bf16.mxu1 %v15155_v16  ;;  %5308 = vmatprep.subr.bf16.mxu0 %v5193_v12  ;;  %v15455_v17 = vpop.permute.xlu1 %5849  ;;  %v5194_v16 = vsel %vm5179_vm7, %v15173_v40, %v15193_v62  ;;  %v12798_v40 = vld [vmem:[%s17305_s3 + $0x1c4] ss:$8 sps:$4 sm:$0xff]  }
 0x3ff   : > { %11071 = vmatprep.mubr.msk.bf16.mxu1 %vm3405_vm4, %v12792_v55 }
 0x400   : > { %6565 = vperm.xlu1 %12639, %v6471_v18   ;;  %4601 = vmatmul.mubr.bf16.gmra.mrb[200].mxu0 %v12794_v7 }
 0x401   : > { %5460 = vmatpush1.bf16.msra.mxu1 %v5191_v38  ;;  %5309 = vmatpush1.bf16.msra.mxu0 %v5192_v29  ;;  %v12815_v29 = vld [vmem:[%s17305_s3 + $0x210] ss:$8 sps:$4 sm:$0xff]   ;;  %v12816_v38 = vld [vmem:[%s17305_s3 + $0x224] ss:$8 sps:$4 sm:$0xff]  }
 0x402   : > { %5461 = vmatprep.subr.bf16.mxu1 %v15193_v62  ;;  %5310 = vmatprep.subr.bf16.mxu0 %v5196_v43  ;;  %v5198_v62 = vsel %vm5179_vm7, %v15149_v30, %v15111_v49  ;;  %v15488_v55 = vpop.permute.xlu1 %5855  ;;  %v5201_v49 = vsel %vm5179_vm7, %v15207_v23, %v15175_v48  ;;  %v5200_v30 = vsel %vm5179_vm7, %v15246_v52, %v15259_v61  ;;  %v12801_v48 = vld [vmem:[%s17305_s3 + $0x1d4] ss:$8 sps:$4 sm:$0xff]  }
 0x403   : > { %11060 = vmatprep.mubr.msk.bf16.mxu0 %vm3405_vm4, %v12795_v60  ;;  %v5204_v23 = vsel %vm5179_vm7, %v15253_v36, %v15236_v8  ;;  %v5207_v8 = vsel %vm5179_vm7, %v15281_v34, %v15266_v19  ;;  %v5206_v36 = vsel %vm5179_vm7, %v15284_v1, %v15295_v46  ;;  %v12804_v19 = vld [vmem:[%s17305_s3 + $0x1e4] ss:$8 sps:$4 sm:$0xff]   ;;  %v5210_v34 = vsel %vm5179_vm7, %v15309_v33, %v15297_v13 }
 0x404   : > { %4754 = vmatmul.mubr.bf16.gmra.mrb[200].mxu1 %v12794_v7  ;;  %6575 = vperm.xlu1 %12639, %v6473_v2   ;;  %v5209_v1 = vsel %vm5179_vm7, %v15302_v10, %v15318_v3  ;;  %v5212_v33 = vsel %vm5179_vm7, %v15324_v21, %v15338_v20  ;;  %v12812_v7 = vld [vmem:[%s17305_s3 + $0x200] ss:$8 sps:$4 sm:$0xff]  }
 0x405   : > { %5462 = vmatpush1.bf16.msra.mxu1 %v5194_v16  ;;  %5311 = vmatpush1.bf16.msra.mxu0 %v5195_v53  ;;  %v12818_v53 = vld [vmem:[%s17305_s3 + $0x220] ss:$8 sps:$4 sm:$0xff]  }
 0x406   : > { %5463 = vmatprep.subr.bf16.mxu1 %v15234_v63  ;;  %5312 = vmatprep.subr.bf16.mxu0 %v5199_v26  ;;  %v15501_v63 = vpop.permute.xlu0 %5851  ;;  %v15514_v52 = vpop.permute.xlu1 %5857 }
 0x407   : > { %11072 = vmatprep.mubr.msk.bf16.mxu1 %vm3405_vm4, %v12795_v60 }
 0x408   : > { %6585 = vperm.xlu1 %12639, %v6475_v59   ;;  %4611 = vmatmul.mubr.bf16.gmra.mrb[204].mxu0 %v12797_v51 }
 0x409   : > { %5464 = vmatpush1.bf16.msra.mxu1 %v5197_v14  ;;  %5313 = vmatpush1.bf16.msra.mxu0 %v5198_v62  ;;  %v12824_v62 = vld [vmem:[%s17305_s3 + $0x244] ss:$8 sps:$4 sm:$0xff]  }
 0x40a   : > { %5465 = vmatprep.subr.bf16.mxu1 %v15259_v61  ;;  %5314 = vmatprep.subr.bf16.mxu0 %v5202_v39  ;;  %v5203_v61 = vsel %vm5179_vm7, %v15264_v44, %v15277_v42  ;;  %v15523_v6 = vpop.permute.xlu0 %5861  ;;  %v12803_v44 = vld [vmem:[%s17305_s3 + $0x1d0] ss:$8 sps:$4 sm:$0xff]   ;;  %v15538_v41 = vpop.permute.xlu1 %5863 }
 0x40b   : > { %11061 = vmatprep.mubr.msk.bf16.mxu0 %vm3405_vm4, %v12798_v40 }
 0x40c   : > { %4764 = vmatmul.mubr.bf16.gmra.mrb[204].mxu1 %v12797_v51  ;;  %6595 = vperm.xlu1 %12639, %v6477_v28   ;;  %v12819_v51 = vld [vmem:[%s17305_s3 + $0x234] ss:$8 sps:$4 sm:$0xff]  }
 0x40d   : > { %5466 = vmatpush1.bf16.msra.mxu1 %v5200_v30  ;;  %5315 = vmatpush1.bf16.msra.mxu0 %v5201_v49  ;;  %v12822_v49 = vld [vmem:[%s17305_s3 + $0x240] ss:$8 sps:$4 sm:$0xff]   ;;  %v12825_v30 = vld [vmem:[%s17305_s3 + $0x254] ss:$8 sps:$4 sm:$0xff]  }
 0x40e   : > { %5467 = vmatprep.subr.bf16.mxu1 %v15277_v42  ;;  %5316 = vmatprep.subr.bf16.mxu0 %v5205_v4  ;;  %v5211_v42 = vsel %vm5179_vm7, %v15297_v13, %v15324_v21  ;;  %v5213_v13 = vsel %vm5179_vm7, %v15340_v56, %v15326_v54  ;;  %v15561_v10 = vpop.permute.xlu1 %5865  ;;  %v12807_v54 = vld [vmem:[%s17305_s3 + $0x1f4] ss:$8 sps:$4 sm:$0xff]   ;;  %v5215_v21 = vsel %vm5179_vm7, %v15346_v57, %v15358_v0  ;;  %v12810_v57 = vld [vmem:[%s17305_s3 + $0x204] ss:$8 sps:$4 sm:$0xff]  }
 0x40f   : > { %11073 = vmatprep.mubr.msk.bf16.mxu1 %vm3405_vm4, %v12798_v40  ;;  %v12821_v40 = vld [vmem:[%s17305_s3 + $0x230] ss:$8 sps:$4 sm:$0xff]   ;;  %v5932_v4 = vsel %vm5931_vm8, %v15383_v31, %v15360_v47  ;;  %v5934_v47 = vsel %vm5931_vm8, %v15372_v11, %v15399_v58  ;;  %v12828_v11 = vld [vmem:[%s17305_s3 + $0x264] ss:$8 sps:$4 sm:$0xff]  }
 0x410   : > { %4621 = vmatmul.mubr.bf16.gmra.mrb[208].mxu0 %v12800_v9  ;;  %v12827_v31 = vld [vmem:[%s17305_s3 + $0x250] ss:$8 sps:$4 sm:$0xff]  }
 0x411   : > { %5468 = vmatpush1.bf16.msra.mxu1 %v5203_v61  ;;  %5317 = vmatpush1.bf16.msra.mxu0 %v5204_v23  ;;  %v5935_v61 = vsel %vm5931_vm8, %v15442_v22, %v15411_v35  ;;  %v5937_v22 = vsel %vm5931_vm8, %v15429_v27, %v15455_v17 }
 0x412   : > { %5469 = vmatprep.subr.bf16.mxu1 %v15295_v46  ;;  %5318 = vmatprep.subr.bf16.mxu0 %v5208_v37  ;;  %v15551_v46 = vpop.permute.xlu0 %5859 }
 0x413   : > { %11062 = vmatprep.mubr.msk.bf16.mxu0 %vm3405_vm4, %v12801_v48 }
 0x414   : > { %4774 = vmatmul.mubr.bf16.gmra.mrb[208].mxu1 %v12800_v9 }
 0x415   : > { %5470 = vmatpush1.bf16.msra.mxu1 %v5206_v36  ;;  %5319 = vmatpush1.bf16.msra.mxu0 %v5207_v8  ;;  %v5939_v8 = vsel %vm5931_vm8, %v15470_v50, %v15488_v55  ;;  %v5942_v36 = vsel %vm5931_vm8, %v15523_v6, %v15538_v41 }
 0x416   : > { %5471 = vmatprep.subr.bf16.mxu1 %v15318_v3  ;;  %5320 = vmatprep.subr.bf16.mxu0 %v5211_v42  ;;  %v12806_v3 = vld [vmem:[%s17305_s3 + $0x1e0] ss:$8 sps:$4 sm:$0xff]   ;;  %v15576_v56 = vpop.permute.xlu0 %5869 }
 0x417   : > { %11074 = vmatprep.mubr.msk.bf16.mxu1 %vm3405_vm4, %v12801_v48  ;;  %v5936_v48 = vsel %vm5931_vm8, %v15411_v35, %v15429_v27  ;;  %v5940_v27 = vsel %vm5931_vm8, %v15488_v55, %v15514_v52  ;;  %v12831_v55 = vld [vmem:[%s17305_s3 + $0x274] ss:$8 sps:$4 sm:$0xff]  }
 0x418   : > { %4631 = vmatmul.mubr.bf16.gmra.mrb[212].mxu0 %v12803_v44 }
 0x419   : > { %5472 = vmatpush1.bf16.msra.mxu1 %v5209_v1  ;;  %5321 = vmatpush1.bf16.msra.mxu0 %v5210_v34 }
 0x41a   : > { %5473 = vmatprep.subr.bf16.mxu1 %v15338_v20  ;;  %5322 = vmatprep.subr.bf16.mxu0 %v5214_v5  ;;  %v15583_v20 = vpop.permute.xlu1 %5871  ;;  %v15589_v45 = vpop.permute.xlu0 %5867  ;;  %v12833_v5 = vld [vmem:[%s17305_s3 + $0x270] ss:$8 sps:$4 sm:$0xff]  }
 0x41b   : > { %11063 = vmatprep.mubr.msk.bf16.mxu0 %vm3405_vm4, %v12804_v19 }
 0x41c   : > { %4784 = vmatmul.mubr.bf16.gmra.mrb[212].mxu1 %v12803_v44 }
 0x41d   : > { %5474 = vmatpush1.bf16.msra.mxu1 %v5212_v33  ;;  %5323 = vmatpush1.bf16.msra.mxu0 %v5213_v13  ;;  %v12834_v33 = vld [vmem:[%s17305_s3 + $0x284] ss:$8 sps:$4 sm:$0xff]  }
 0x41e   : > { %5475 = vmatprep.subr.bf16.mxu1 %v15358_v0  ;;  %6052 = vmatprep.subr.bf16.mxu0 %v5933_v15  ;;  %v15595_v0 = vpop.permute.xlu1 %5873  ;;  %v15598_v25 = vpop.permute.xlu0 %5877 }
 0x41f   : > { %11075 = vmatprep.mubr.msk.bf16.mxu1 %vm3405_vm4, %v12804_v19 }
 0x420   : > { %4641 = vmatmul.mubr.bf16.gmra.mrb[216].mxu0 %v12806_v3 }
 0x421   : > { %5476 = vmatpush1.bf16.msra.mxu1 %v5215_v21  ;;  %11064 = vmatprep.mubr.msk.bf16.mxu0 %vm3405_vm4, %v12807_v54 }
 0x422   : > { %6205 = vmatprep.subr.bf16.mxu1 %v15399_v58  ;;  %v15607_v12 = vpop.permute.xlu1 %5879  ;;  %v15609_v18 = vpop.permute.xlu0 %5875  ;;  %v5938_v58 = vsel %vm5931_vm8, %v15501_v63, %v15470_v50  ;;  %v5941_v50 = vsel %vm5931_vm8, %v15551_v46, %v15523_v6  ;;  %v5945_v63 = vsel %vm5931_vm8, %v15576_v56, %v15583_v20  ;;  %v5943_v6 = vsel %vm5931_vm8, %v15538_v41, %v15561_v10 }
 0x423   : > { %v5948_v34 = vsel %vm5931_vm8, %v15598_v25, %v15607_v12  ;;  %v5947_v1 = vsel %vm5931_vm8, %v15609_v18, %v15598_v25  ;;  %v5946_v41 = vsel %vm5931_vm8, %v15583_v20, %v15595_v0 }
 0x424   : > { %4794 = vmatmul.mubr.bf16.gmra.mrb[216].mxu1 %v12806_v3 }
 0x425   : > { %11076 = vmatprep.mubr.msk.bf16.mxu1 %vm3405_vm4, %v12807_v54 }
 0x426   : > { %v15612_v60 = vpop.permute.xlu1 %5881  ;;  %v15621_v43 = vpop.permute.xlu0 %5885 }
 0x427   : > { %v5949_v15 = vsel %vm5931_vm8, %v15607_v12, %v15612_v60 }
 0x428   : > { %4651 = vmatmul.mubr.bf16.gmra.mrb[220].mxu0 %v12809_v32 }
 0x429   : > { %11065 = vmatprep.mubr.msk.bf16.mxu0 %vm3405_vm4, %v12810_v57 }
 0x42a   : > { %v15624_v2 = vpop.permute.xlu1 %5887  ;;  %v15629_v16 = vpop.permute.xlu0 %5883 }
 0x42b   : > { %v5951_v13 = vsel %vm5931_vm8, %v15621_v43, %v15624_v2  ;;  %v5950_v3 = vsel %vm5931_vm8, %v15629_v16, %v15621_v43 }
 0x42c   : > { %4804 = vmatmul.mubr.bf16.gmra.mrb[220].mxu1 %v12809_v32  ;;  %v12836_v32 = vld [vmem:[%s17305_s3 + $0x280] ss:$8 sps:$4 sm:$0xff]  }
 0x42d   : > { %11077 = vmatprep.mubr.msk.bf16.mxu1 %vm3405_vm4, %v12810_v57 }
 0x42e   : > { %v15635_v26 = vpop.permute.xlu1 %5889  ;;  %v15638_v59 = vpop.permute.xlu0 %5893 }
 0x42f   : > { %v5952_v20 = vsel %vm5931_vm8, %v15624_v2, %v15635_v26 }
 0x430   : > { %4661 = vmatmul.mubr.bf16.gmra.mrb[224].mxu0 %v12812_v7 }
 0x431   : > { %11066 = vmatprep.mubr.msk.bf16.mxu0 %vm3405_vm4, %v12813_v24 }
 0x432   : > { %v15647_v14 = vpop.permute.xlu1 %5895  ;;  %v15649_v39 = vpop.permute.xlu0 %5891 }
 0x433   : > { %v5954_v54 = vsel %vm5931_vm8, %v15638_v59, %v15647_v14  ;;  %v5953_v21 = vsel %vm5931_vm8, %v15649_v39, %v15638_v59 }
 0x434   : > { %4814 = vmatmul.mubr.bf16.gmra.mrb[224].mxu1 %v12812_v7 }
 0x435   : > { %11078 = vmatprep.mubr.msk.bf16.mxu1 %vm3405_vm4, %v12813_v24 }
 0x436   : > { %v15652_v28 = vpop.permute.xlu1 %5897  ;;  %v15661_v9 = vpop.permute.xlu0 %5901 }
 0x437   : > { %v5955_v24 = vsel %vm5931_vm8, %v15647_v14, %v15652_v28  ;;  %v12842_v14 = vld [vmem:[%s17305_s3 + $0x2a0] ss:$8 sps:$4 sm:$0xff]  }
 0x438   : > { %4671 = vmatmul.mubr.bf16.gmra.mrb[228].mxu0 %v12815_v29 }
 0x439   : > { %11067 = vmatprep.mubr.msk.bf16.mxu0 %vm3405_vm4, %v12816_v38 }
 0x43a   : > { %v15670_v23 = vpop.permute.xlu1 %5903  ;;  %v15681_v37 = vpop.permute.xlu0 %5899 }
 0x43b   : > { %v5957_v57 = vsel %vm5931_vm8, %v15661_v9, %v15670_v23  ;;  %v5956_v25 = vsel %vm5931_vm8, %v15681_v37, %v15661_v9  ;;  %v17427_v9 = vmov 0   ;;  %v12854_v37 = vld [vmem:[%s17305_s3 + $0x2e0] ss:$8 sps:$4 sm:$0xff]  }
 0x43c   : > { %4824 = vmatmul.mubr.bf16.gmra.mrb[228].mxu1 %v12815_v29 }
 0x43d   : > { %11079 = vmatprep.mubr.msk.bf16.mxu1 %vm3405_vm4, %v12816_v38  ;;  %v12839_v38 = vld [vmem:[%s17305_s3 + $0x290] ss:$8 sps:$4 sm:$0xff]  }
 0x43e   : > { %v15694_v35 = vpop.permute.xlu1 %5905  ;;  %v15703_v44 = vpop.permute.xlu0 %5909 }
 0x43f   : > { %v5958_v29 = vsel %vm5931_vm8, %v15670_v23, %v15694_v35  ;;  %v12848_v23 = vld [vmem:[%s17305_s3 + $0x2c0] ss:$8 sps:$4 sm:$0xff]  }
 0x440   : > { %4681 = vmatmul.mubr.bf16.gmra.mrb[232].mxu0 %v12818_v53 }
 0x441   : > { %11068 = vmatprep.mubr.msk.bf16.mxu0 %vm3405_vm4, %v12819_v51 }
 0x442   : > { %v15718_v42 = vpop.permute.xlu1 %5911  ;;  %v5908_v19 = vpop.permute.xlu0 %5907 }
 0x443   : > { %v5960_v12 = vsel %vm5931_vm8, %v15703_v44, %v15718_v42 }
 0x444   : > { %4834 = vmatmul.mubr.bf16.gmra.mrb[232].mxu1 %v12818_v53  ;;  %v12840_v53 = vld [vmem:[%s17305_s3 + $0x2a4] ss:$8 sps:$4 sm:$0xff]  }
 0x445   : > { %11080 = vmatprep.mubr.msk.bf16.mxu1 %vm3405_vm4, %v12819_v51 }
 0x446   : > { %v5914_v46 = vpop.permute.xlu1 %5913 }
 0x447   : > { %v5961_v51 = vsel %vm5931_vm8, %v15718_v42, %v5914_v46  ;;  %v13180_v42 = vld [vmem:[%s17309_s7 + $0x8] sm:$0xff]  }
 0x448   : > { %4691 = vmatmul.mubr.bf16.gmra.mrb[236].mxu0 %v12821_v40 }
 0x449   : > { %11129 = vmatprep.mubr.msk.bf16.mxu0 %vm3405_vm4, %v12824_v62 }
 0x44c   : > { %4844 = vmatmul.mubr.bf16.gmra.mrb[236].mxu1 %v12821_v40 }
 0x44d   : > { %11141 = vmatprep.mubr.msk.bf16.mxu1 %vm3405_vm4, %v12824_v62 }
 0x450   : > { %5333 = vmatmul.mubr.bf16.vlgmr.msra.gmra.mrb[192].mxu0 %v12822_v49 }
 0x451   : > { %6053 = vmatpush1.bf16.msra.mxu0 %v5932_v4  ;;  %11130 = vmatprep.mubr.msk.bf16.mxu0 %vm3405_vm4, %v12825_v30  ;;  %v12845_v4 = vld [vmem:[%s17305_s3 + $0x2b0] ss:$8 sps:$4 sm:$0xff]  }
 0x452   : > { %6054 = vmatprep.subr.bf16.mxu0 %v5936_v48  ;;  %v12846_v48 = vld [vmem:[%s17305_s3 + $0x2c4] ss:$8 sps:$4 sm:$0xff]  }
 0x454   : > { %5486 = vmatmul.mubr.bf16.vlgmr.msra.gmra.mrb[192].mxu1 %v12822_v49  ;;  %v13177_v49 = vld [vmem:[%s17309_s7 + $0x40] sm:$0xff]  }
 0x455   : > { %6206 = vmatpush1.bf16.msra.mxu1 %v5934_v47  ;;  %6055 = vmatpush1.bf16.msra.mxu0 %v5935_v61  ;;  %v12849_v61 = vld [vmem:[%s17305_s3 + $0x2d4] ss:$8 sps:$4 sm:$0xff]   ;;  %v12851_v47 = vld [vmem:[%s17305_s3 + $0x2d0] ss:$8 sps:$4 sm:$0xff]  }
 0x456   : > { %6207 = vmatprep.subr.bf16.mxu1 %v15455_v17  ;;  %6056 = vmatprep.subr.bf16.mxu0 %v5939_v8  ;;  %v12830_v17 = vld [vmem:[%s17305_s3 + $0x260] ss:$8 sps:$4 sm:$0xff]   ;;  %v12855_v8 = vld [vmem:[%s17305_s3 + $0x2f4] ss:$8 sps:$4 sm:$0xff]  }
 0x457   : > { %11142 = vmatprep.mubr.msk.bf16.mxu1 %vm3405_vm4, %v12825_v30 }
 0x458   : > { %5343 = vmatmul.mubr.bf16.gmra.mrb[196].mxu0 %v12827_v31 }
 0x459   : > { %6208 = vmatpush1.bf16.msra.mxu1 %v5937_v22  ;;  %6057 = vmatpush1.bf16.msra.mxu0 %v5938_v58  ;;  %v12860_v58 = vld [vmem:[%s17305_s3 + $0x304] ss:$8 sps:$4 sm:$0xff]   ;;  %v12861_v22 = vld [vmem:[%s17305_s3 + $0x314] ss:$8 sps:$4 sm:$0xff]  }
 0x45a   : > { %6209 = vmatprep.subr.bf16.mxu1 %v15514_v52  ;;  %6058 = vmatprep.subr.bf16.mxu0 %v5942_v36  ;;  %v5944_v52 = vsel %vm5931_vm8, %v15589_v45, %v15576_v56  ;;  %v5920_v56 = vpop.permute.xlu1 %5919  ;;  %v13178_v36 = vld [vmem:[%s17309_s7] sm:$0xff]  }
 0x45b   : > { %11131 = vmatprep.mubr.msk.bf16.mxu0 %vm3405_vm4, %v12828_v11 }
 0x45c   : > { %5496 = vmatmul.mubr.bf16.gmra.mrb[196].mxu1 %v12827_v31  ;;  %v12852_v31 = vld [vmem:[%s17305_s3 + $0x2e4] ss:$8 sps:$4 sm:$0xff]  }
 0x45d   : > { %6210 = vmatpush1.bf16.msra.mxu1 %v5940_v27  ;;  %6059 = vmatpush1.bf16.msra.mxu0 %v5941_v50  ;;  %v13179_v50 = vld [vmem:[%s17309_s7 + $0x48] sm:$0xff]   ;;  %v12863_v27 = vld [vmem:[%s17305_s3 + $0x310] ss:$8 sps:$4 sm:$0xff]  }
 0x45e   : > { %6211 = vmatprep.subr.bf16.mxu1 %v15561_v10  ;;  %6060 = vmatprep.subr.bf16.mxu0 %v5945_v63  ;;  %v5918_v10 = vpop.permute.xlu0 %5917  ;;  %v5922_v7 = vpop.permute.xlu1 %5921  ;;  %v12895_v63 = vld [vmem:[%s17309_s7 + $0x8] sm:$0xff]  }
 0x45f   : > { %11143 = vmatprep.mubr.msk.bf16.mxu1 %vm3405_vm4, %v12828_v11  ;;  %v5963_v43 = vsel %vm5931_vm8, %v5918_v10, %v5920_v56  ;;  %v5964_v62 = vsel %vm5931_vm8, %v5920_v56, %v5922_v7  ;;  %v12857_v11 = vld [vmem:[%s17305_s3 + $0x2f0] ss:$8 sps:$4 sm:$0xff]   ;;  %v13188_v56 = vld [vmem:[%s17309_s7 + $0x28] sm:$0xff]  }
 0x460   : > { %5353 = vmatmul.mubr.bf16.gmra.mrb[200].mxu0 %v12830_v17 }
 0x461   : > { %6212 = vmatpush1.bf16.msra.mxu1 %v5943_v6  ;;  %6061 = vmatpush1.bf16.msra.mxu0 %v5944_v52  ;;  %v12896_v52 = vld [vmem:[%s17309_s7 + $0x10] sm:$0xff]  }
 0x462   : > { %6213 = vmatprep.subr.bf16.mxu1 %v15595_v0  ;;  %6062 = vmatprep.subr.bf16.mxu0 %v5948_v34  ;;  %v5916_v45 = vpop.permute.xlu0 %5915  ;;  %v12837_v0 = vld [vmem:[%s17305_s3 + $0x294] ss:$8 sps:$4 sm:$0xff]   ;;  %v5928_v2 = vpop.permute.xlu1 %5927  ;;  %v12866_v34 = vld [vmem:[%s17305_s3 + $0x320] ss:$8 sps:$4 sm:$0xff]  }
 0x463   : > { %11132 = vmatprep.mubr.msk.bf16.mxu0 %vm3405_vm4, %v12831_v55  ;;  %v5962_v16 = vsel %vm5931_vm8, %v5916_v45, %v5918_v10  ;;  %v13182_v6 = vld [vmem:[%s17309_s7 + $0x10] sm:$0xff]   ;;  %v13186_v10 = vld [vmem:[%s17309_s7 + $0x20] sm:$0xff]   ;;  %v13191_v45 = vld [vmem:[%s17309_s7 + $0x78] sm:$0xff]  }
 0x464   : > { %5506 = vmatmul.mubr.bf16.gmra.mrb[200].mxu1 %v12830_v17  ;;  %v12864_v17 = vld [vmem:[%s17305_s3 + $0x324] ss:$8 sps:$4 sm:$0xff]  }
 0x465   : > { %6214 = vmatpush1.bf16.msra.mxu1 %v5946_v41  ;;  %6063 = vmatpush1.bf16.msra.mxu0 %v5947_v1  ;;  %v12867_v1 = vld [vmem:[%s17305_s3 + $0x334] ss:$8 sps:$4 sm:$0xff]  }
 0x466   : > { %6215 = vmatprep.subr.bf16.mxu1 %v15612_v60  ;;  %6064 = vmatprep.subr.bf16.mxu0 %v5951_v13  ;;  %v5926_v18 = vpop.permute.xlu0 %5925  ;;  %v5959_v60 = vsel %vm5931_vm8, %v5908_v19, %v15703_v44  ;;  %v5930_v39 = vpop.permute.xlu1 %5929  ;;  %v12894_v44 = vld [vmem:[%s17309_s7] sm:$0xff]   ;;  %v13183_v19 = vld [vmem:[%s17309_s7 + $0x58] sm:$0xff]  }
 0x467   : > { %11144 = vmatprep.mubr.msk.bf16.mxu1 %vm3405_vm4, %v12831_v55  ;;  %v5966_v59 = vsel %vm5931_vm8, %v5926_v18, %v5928_v2  ;;  %v5967_v30 = vsel %vm5931_vm8, %v5928_v2, %v5930_v39  ;;  %v13181_v55 = vld [vmem:[%s17309_s7 + $0x50] sm:$0xff]   ;;  %v13184_v41 = vld [vmem:[%s17309_s7 + $0x18] sm:$0xff]   ;;  %v12898_v13 = vld [vmem:[%s17309_s7 + $0x20] sm:$0xff]  }
 0x468   : > { %5363 = vmatmul.mubr.bf16.gmra.mrb[204].mxu0 %v12833_v5  ;;  %v12905_v2 = vld [vmem:[%s17309_s7 + $0x58] sm:$0xff]  }
 0x469   : > { %6216 = vmatpush1.bf16.msra.mxu1 %v5949_v15  ;;  %6065 = vmatpush1.bf16.msra.mxu0 %v5950_v3  ;;  %v12869_v3 = vld [vmem:[%s17305_s3 + $0x330] ss:$8 sps:$4 sm:$0xff]   ;;  %v12870_v15 = vld [vmem:[%s17305_s3 + $0x344] ss:$8 sps:$4 sm:$0xff]  }
 0x46a   : > { %6217 = vmatprep.subr.bf16.mxu1 %v15635_v26  ;;  %6066 = vmatprep.subr.bf16.mxu0 %v5954_v54  ;;  %v5924_v26 = vpop.permute.xlu0 %5923  ;;  %v12899_v54 = vld [vmem:[%s17309_s7 + $0x28] sm:$0xff]  }
 0x46b   : > { %11133 = vmatprep.mubr.msk.bf16.mxu0 %vm3405_vm4, %v12834_v33  ;;  %v5965_v40 = vsel %vm5931_vm8, %v5924_v26, %v5926_v18  ;;  %v12876_v18 = vld [vmem:[%s17305_s3 + $0x364] ss:$8 sps:$4 sm:$0xff]   ;;  %v12885_v26 = vld [vmem:[%s17305_s3 + $0x394] ss:$8 sps:$4 sm:$0xff]  }
 0x46c   : > { %5516 = vmatmul.mubr.bf16.gmra.mrb[204].mxu1 %v12833_v5  ;;  %v13185_v5 = vld [vmem:[%s17309_s7 + $0x60] sm:$0xff]  }
 0x46d   : > { %6218 = vmatpush1.bf16.msra.mxu1 %v5952_v20  ;;  %6067 = vmatpush1.bf16.msra.mxu0 %v5953_v21  ;;  %v13189_v21 = vld [vmem:[%s17309_s7 + $0x70] sm:$0xff]  }
 0x46e   : > { %6219 = vmatprep.subr.bf16.mxu1 %v15652_v28  ;;  %6068 = vmatprep.subr.bf16.mxu0 %v5957_v57  ;;  %v12843_v28 = vld [vmem:[%s17305_s3 + $0x2b4] ss:$8 sps:$4 sm:$0xff]   ;;  %v12872_v57 = vld [vmem:[%s17305_s3 + $0x340] ss:$8 sps:$4 sm:$0xff]  }
 0x46f   : > { %11145 = vmatprep.mubr.msk.bf16.mxu1 %vm3405_vm4, %v12834_v33  ;;  %v13187_v33 = vld [vmem:[%s17309_s7 + $0x68] sm:$0xff]   ;;  %v12900_v20 = vld [vmem:[%s17309_s7 + $0x30] sm:$0xff]  }
 0x470   : > { %5373 = vmatmul.mubr.bf16.gmra.mrb[208].mxu0 %v12836_v32 }
 0x471   : > { %6220 = vmatpush1.bf16.msra.mxu1 %v5955_v24  ;;  %6069 = vmatpush1.bf16.msra.mxu0 %v5956_v25  ;;  %v12901_v25 = vld [vmem:[%s17309_s7 + $0x38] sm:$0xff]   ;;  %v12902_v24 = vld [vmem:[%s17309_s7 + $0x40] sm:$0xff]  }
 0x472   : > { %6221 = vmatprep.subr.bf16.mxu1 %v15694_v35  ;;  %6070 = vmatprep.subr.bf16.mxu0 %v5960_v12  ;;  %v12858_v35 = vld [vmem:[%s17305_s3 + $0x300] ss:$8 sps:$4 sm:$0xff]   ;;  %v12875_v12 = vld [vmem:[%s17305_s3 + $0x350] ss:$8 sps:$4 sm:$0xff]  }
 0x473   : > { %11134 = vmatprep.mubr.msk.bf16.mxu0 %vm3405_vm4, %v12837_v0 }
 0x474   : > { %5526 = vmatmul.mubr.bf16.gmra.mrb[208].mxu1 %v12836_v32  ;;  %v13190_v32 = vld [vmem:[%s17309_s7 + $0x30] sm:$0xff]  }
 0x475   : > { %6222 = vmatpush1.bf16.msra.mxu1 %v5958_v29  ;;  %6071 = vmatpush1.bf16.msra.mxu0 %v5959_v60  ;;  %v12903_v60 = vld [vmem:[%s17309_s7 + $0x48] sm:$0xff]   ;;  %v12904_v29 = vld [vmem:[%s17309_s7 + $0x50] sm:$0xff]  }
 0x476   : > { %6223 = vmatprep.subr.bf16.mxu1 %v5914_v46  ;;  %6072 = vmatprep.subr.bf16.mxu0 %v5963_v43  ;;  %v12897_v46 = vld [vmem:[%s17309_s7 + $0x18] sm:$0xff]  }
 0x477   : > { %11146 = vmatprep.mubr.msk.bf16.mxu1 %vm3405_vm4, %v12837_v0  ;;  %v12873_v0 = vld [vmem:[%s17305_s3 + $0x354] ss:$8 sps:$4 sm:$0xff]  }
 0x478   : > { %5383 = vmatmul.mubr.bf16.gmra.mrb[212].mxu0 %v12839_v38  ;;  %v12879_v43 = vld [vmem:[%s17305_s3 + $0x374] ss:$8 sps:$4 sm:$0xff]  }
 0x479   : > { %6224 = vmatpush1.bf16.msra.mxu1 %v5961_v51  ;;  %6073 = vmatpush1.bf16.msra.mxu0 %v5962_v16  ;;  %v12882_v16 = vld [vmem:[%s17305_s3 + $0x384] ss:$8 sps:$4 sm:$0xff]   ;;  %v12884_v51 = vld [vmem:[%s17305_s3 + $0x380] ss:$8 sps:$4 sm:$0xff]  }
 0x47a   : > { %6225 = vmatprep.subr.bf16.mxu1 %v5922_v7  ;;  %6074 = vmatprep.subr.bf16.mxu0 %v5966_v59  ;;  %v13192_v7 = vld [vmem:[%s17309_s7 + $0x38] sm:$0xff]  }
 0x47b   : > { %11135 = vmatprep.mubr.msk.bf16.mxu0 %vm3405_vm4, %v12840_v53  ;;  %v12887_v59 = vld [vmem:[%s17305_s3 + $0x390] ss:$8 sps:$4 sm:$0xff]  }
 0x47c   : > { %5536 = vmatmul.mubr.bf16.gmra.mrb[212].mxu1 %v12839_v38  ;;  %v12878_v38 = vld [vmem:[%s17305_s3 + $0x360] ss:$8 sps:$4 sm:$0xff]  }
 0x47d   : > { %6226 = vmatpush1.bf16.msra.mxu1 %v5964_v62  ;;  %6075 = vmatpush1.bf16.msra.mxu0 %v5965_v40  ;;  %v12888_v40 = vld [vmem:[%s17305_s3 + $0x3a4] ss:$8 sps:$4 sm:$0xff]   ;;  %v12890_v62 = vld [vmem:[%s17305_s3 + $0x3a0] ss:$8 sps:$4 sm:$0xff]  }
 0x47e   : > { %6227 = vmatprep.subr.bf16.mxu1 %v5930_v39  ;;  %11147 = vmatprep.mubr.msk.bf16.mxu1 %vm3405_vm4, %v12840_v53  ;;  %v12881_v53 = vld [vmem:[%s17305_s3 + $0x370] ss:$8 sps:$4 sm:$0xff]  }
 0x47f   : > { %11911 = vmatprep.subr.bf16.mxu0 %v13177_v49  ;;  %v12893_v39 = vld [vmem:[%s17305_s3 + $0x3b0] ss:$8 sps:$4 sm:$0xff]   ;;  %v12907_v49 = vld [vmem:[%s17309_s7 + $0x68] sm:$0xff]  }
 0x480   : > { %5393 = vmatmul.mubr.bf16.gmra.mrb[216].mxu0 %v12842_v14 }
 0x481   : > { %6228 = vmatpush1.bf16.msra.mxu1 %v5967_v30  ;;  %11136 = vmatprep.mubr.msk.bf16.mxu0 %vm3405_vm4, %v12843_v28  ;;  %v12908_v30 = vld [vmem:[%s17309_s7 + $0x70] ss:$0 sps:$4 sm:$0xff]  }
 0x482   : > { %7135 = vmatprep.subr.bf16.mxu1 %v17427_v9 }
 0x484   : > { %5546 = vmatmul.mubr.bf16.gmra.mrb[216].mxu1 %v12842_v14  ;;  %v12891_v14 = vld [vmem:[%s17305_s3 + $0x3b4] ss:$8 sps:$4 sm:$0xff]  }
 0x485   : > { %11148 = vmatprep.mubr.msk.bf16.mxu1 %vm3405_vm4, %v12843_v28  ;;  %v12906_v28 = vld [vmem:[%s17309_s7 + $0x60] sm:$0xff]  }
 0x488   : > { %5403 = vmatmul.mubr.bf16.gmra.mrb[220].mxu0 %v12845_v4 }
 0x489   : > { %11137 = vmatprep.mubr.msk.bf16.mxu0 %vm3405_vm4, %v12846_v48 }
 0x48c   : > { %5556 = vmatmul.mubr.bf16.gmra.mrb[220].mxu1 %v12845_v4  ;;  %v7133_v4 = vsel %vm2874_vm2, %v12908_v30, 0 }
 0x48d   : > { %11149 = vmatprep.mubr.msk.bf16.mxu1 %vm3405_vm4, %v12846_v48  ;;  %v6481_v48 = vpop.permute.xlu0 %6480 }
 0x490   : > { %5413 = vmatmul.mubr.bf16.gmra.mrb[224].mxu0 %v12848_v23 }
 0x491   : > { %11138 = vmatprep.mubr.msk.bf16.mxu0 %vm3405_vm4, %v12849_v61 }
 0x494   : > { %5566 = vmatmul.mubr.bf16.gmra.mrb[224].mxu1 %v12848_v23 }
 0x495   : > { %11150 = vmatprep.mubr.msk.bf16.mxu1 %vm3405_vm4, %v12849_v61 }
 0x498   : > { %5423 = vmatmul.mubr.bf16.gmra.mrb[228].mxu0 %v12851_v47 }
 0x499   : > { %11139 = vmatprep.mubr.msk.bf16.mxu0 %vm3405_vm4, %v12852_v31 }
 0x49c   : > { %5576 = vmatmul.mubr.bf16.gmra.mrb[228].mxu1 %v12851_v47 }
 0x49d   : > { %11151 = vmatprep.mubr.msk.bf16.mxu1 %vm3405_vm4, %v12852_v31  ;;  %v6486_v31 = vpop.permute.xlu1 %6485 }
 0x4a0   : > { %5433 = vmatmul.mubr.bf16.gmra.mrb[232].mxu0 %v12854_v37 }
 0x4a1   : > { %11140 = vmatprep.mubr.msk.bf16.mxu0 %vm3405_vm4, %v12855_v8 }
 0x4a4   : > { %5586 = vmatmul.mubr.bf16.gmra.mrb[232].mxu1 %v12854_v37 }
 0x4a5   : > { %11152 = vmatprep.mubr.msk.bf16.mxu1 %vm3405_vm4, %v12855_v8 }
 0x4a8   : > { %5443 = vmatmul.mubr.bf16.gmra.mrb[236].mxu0 %v12857_v11 }
 0x4a9   : > { %11201 = vmatprep.mubr.msk.bf16.mxu0 %vm3405_vm4, %v12860_v58 }
 0x4ac   : > { %5596 = vmatmul.mubr.bf16.gmra.mrb[236].mxu1 %v12857_v11 }
 0x4ad   : > { %11213 = vmatprep.mubr.msk.bf16.mxu1 %vm3405_vm4, %v12860_v58 }
 0x4b0   : > { %6085 = vmatmul.mubr.bf16.vlgmr.msra.gmra.mrb[192].mxu0 %v12858_v35 }
 0x4b1   : > { %11202 = vmatprep.mubr.msk.bf16.mxu0 %vm3405_vm4, %v12861_v22  ;;  %11912 = vmatpush3.bf16.msra.mxu0 %v13178_v36 }
 0x4b2   : > { %11913 = vmatprep.subr.bf16.mxu0 %v13179_v50 }
 0x4b4   : > { %6238 = vmatmul.mubr.bf16.vlgmr.msra.gmra.mrb[192].mxu1 %v12858_v35 }
 0x4b5   : > { %11214 = vmatprep.mubr.msk.bf16.mxu1 %vm3405_vm4, %v12861_v22  ;;  %7136 = vmatpush1.bf16.msra.mxu1 %v12894_v44 }
 0x4b6   : > { %7137 = vmatprep.subr.bf16.mxu1 %v17427_v9  ;;  %11914 = vmatpush3.bf16.msra.mxu0 %v13180_v42 }
 0x4b7   : > { %11915 = vmatprep.subr.bf16.mxu0 %v13181_v55 }
 0x4b8   : > { %6095 = vmatmul.mubr.bf16.gmra.mrb[196].mxu0 %v12863_v27 }
 0x4b9   : > { %11203 = vmatprep.mubr.msk.bf16.mxu0 %vm3405_vm4, %v12864_v17  ;;  %7138 = vmatpush1.bf16.msra.mxu1 %v12895_v63 }
 0x4ba   : > { %7139 = vmatprep.subr.bf16.mxu1 %v17427_v9  ;;  %11916 = vmatpush3.bf16.msra.mxu0 %v13182_v6 }
 0x4bb   : > { %11917 = vmatprep.subr.bf16.mxu0 %v13183_v19 }
 0x4bc   : > { %6248 = vmatmul.mubr.bf16.gmra.mrb[196].mxu1 %v12863_v27 }
 0x4bd   : > { %11215 = vmatprep.mubr.msk.bf16.mxu1 %vm3405_vm4, %v12864_v17  ;;  %7140 = vmatpush1.bf16.msra.mxu1 %v12896_v52 }
 0x4be   : > { %7141 = vmatprep.subr.bf16.mxu1 %v17427_v9  ;;  %11918 = vmatpush3.bf16.msra.mxu0 %v13184_v41 }
 0x4bf   : > { %11919 = vmatprep.subr.bf16.mxu0 %v13185_v5 }
 0x4c0   : > { %6105 = vmatmul.mubr.bf16.gmra.mrb[200].mxu0 %v12866_v34 }
 0x4c1   : > { %11204 = vmatprep.mubr.msk.bf16.mxu0 %vm3405_vm4, %v12867_v1  ;;  %7142 = vmatpush1.bf16.msra.mxu1 %v12897_v46 }
 0x4c2   : > { %7143 = vmatprep.subr.bf16.mxu1 %v17427_v9  ;;  %11920 = vmatpush3.bf16.msra.mxu0 %v13186_v10 }
 0x4c3   : > { %11921 = vmatprep.subr.bf16.mxu0 %v13187_v33 }
 0x4c4   : > { %6258 = vmatmul.mubr.bf16.gmra.mrb[200].mxu1 %v12866_v34  ;;  %v6491_v34 = vpop.permute.xlu0 %6490 }
 0x4c5   : > { %11216 = vmatprep.mubr.msk.bf16.mxu1 %vm3405_vm4, %v12867_v1  ;;  %7144 = vmatpush1.bf16.msra.mxu1 %v12898_v13 }
 0x4c6   : > { %7145 = vmatprep.subr.bf16.mxu1 %v17427_v9  ;;  %11922 = vmatpush3.bf16.msra.mxu0 %v13188_v56 }
 0x4c7   : > { %11923 = vmatprep.subr.bf16.mxu0 %v13189_v21 }
 0x4c8   : > { %6115 = vmatmul.mubr.bf16.gmra.mrb[204].mxu0 %v12869_v3 }
 0x4c9   : > { %11205 = vmatprep.mubr.msk.bf16.mxu0 %vm3405_vm4, %v12870_v15  ;;  %7146 = vmatpush1.bf16.msra.mxu1 %v12899_v54 }
 0x4ca   : > { %7147 = vmatprep.subr.bf16.mxu1 %v17427_v9  ;;  %11924 = vmatpush3.bf16.msra.mxu0 %v13190_v32 }
 0x4cb   : > { %11925 = vmatprep.subr.bf16.mxu0 %v13191_v45 }
 0x4cc   : > { %6268 = vmatmul.mubr.bf16.gmra.mrb[204].mxu1 %v12869_v3  ;;  %v6496_v3 = vpop.permute.xlu1 %6495 }
 0x4cd   : > { %11217 = vmatprep.mubr.msk.bf16.mxu1 %vm3405_vm4, %v12870_v15  ;;  %7148 = vmatpush1.bf16.msra.mxu1 %v12900_v20 }
 0x4ce   : > { %7149 = vmatprep.subr.bf16.mxu1 %v17427_v9  ;;  %11926 = vmatpush3.bf16.msra.mxu0 %v13192_v7 }
 0x4d0   : > { %6125 = vmatmul.mubr.bf16.gmra.mrb[208].mxu0 %v12872_v57 }
 0x4d1   : > { %11206 = vmatprep.mubr.msk.bf16.mxu0 %vm3405_vm4, %v12873_v0  ;;  %7150 = vmatpush1.bf16.msra.mxu1 %v12901_v25 }
 0x4d2   : > { %7151 = vmatprep.subr.bf16.mxu1 %v17427_v9 }
 0x4d4   : > { %6278 = vmatmul.mubr.bf16.gmra.mrb[208].mxu1 %v12872_v57 }
 0x4d5   : > { %11218 = vmatprep.mubr.msk.bf16.mxu1 %vm3405_vm4, %v12873_v0  ;;  %7152 = vmatpush1.bf16.msra.mxu1 %v12902_v24 }
 0x4d6   : > { %7153 = vmatprep.subr.bf16.mxu1 %v17427_v9 }
 0x4d8   : > { %6135 = vmatmul.mubr.bf16.gmra.mrb[212].mxu0 %v12875_v12 }
 0x4d9   : > { %11207 = vmatprep.mubr.msk.bf16.mxu0 %vm3405_vm4, %v12876_v18  ;;  %7154 = vmatpush1.bf16.msra.mxu1 %v12903_v60 }
 0x4da   : > { %7155 = vmatprep.subr.bf16.mxu1 %v17427_v9 }
 0x4dc   : > { %6288 = vmatmul.mubr.bf16.gmra.mrb[212].mxu1 %v12875_v12 }
 0x4dd   : > { %11219 = vmatprep.mubr.msk.bf16.mxu1 %vm3405_vm4, %v12876_v18  ;;  %7156 = vmatpush1.bf16.msra.mxu1 %v12904_v29 }
 0x4de   : > { %7157 = vmatprep.subr.bf16.mxu1 %v17427_v9 }
 0x4e0   : > { %6145 = vmatmul.mubr.bf16.gmra.mrb[216].mxu0 %v12878_v38 }
 0x4e1   : > { %11208 = vmatprep.mubr.msk.bf16.mxu0 %vm3405_vm4, %v12879_v43  ;;  %7158 = vmatpush1.bf16.msra.mxu1 %v12905_v2 }
 0x4e2   : > { %7159 = vmatprep.subr.bf16.mxu1 %v17427_v9 }
 0x4e4   : > { %6298 = vmatmul.mubr.bf16.gmra.mrb[216].mxu1 %v12878_v38 }
 0x4e5   : > { %11220 = vmatprep.mubr.msk.bf16.mxu1 %vm3405_vm4, %v12879_v43  ;;  %7160 = vmatpush1.bf16.msra.mxu1 %v12906_v28 }
 0x4e6   : > { %7161 = vmatprep.subr.bf16.mxu1 %v17427_v9 }
 0x4e8   : > { %6155 = vmatmul.mubr.bf16.gmra.mrb[220].mxu0 %v12881_v53 }
 0x4e9   : > { %11209 = vmatprep.mubr.msk.bf16.mxu0 %vm3405_vm4, %v12882_v16  ;;  %7162 = vmatpush1.bf16.msra.mxu1 %v12907_v49  ;;  %v6506_v49 = vpop.permute.xlu1 %6505 }
 0x4ea   : > { %7163 = vmatprep.subr.bf16.mxu1 %v17427_v9 }
 0x4ec   : > { %6308 = vmatmul.mubr.bf16.gmra.mrb[220].mxu1 %v12881_v53 }
 0x4ed   : > { %11221 = vmatprep.mubr.msk.bf16.mxu1 %vm3405_vm4, %v12882_v16  ;;  %7164 = vmatpush1.bf16.msra.mxu1 %v7133_v4 }
 0x4f0   : > { %6165 = vmatmul.mubr.bf16.gmra.mrb[224].mxu0 %v12884_v51 }
 0x4f1   : > { %11210 = vmatprep.mubr.msk.bf16.mxu0 %vm3405_vm4, %v12885_v26 }
 0x4f4   : > { %6318 = vmatmul.mubr.bf16.gmra.mrb[224].mxu1 %v12884_v51  ;;  %v6501_v51 = vpop.permute.xlu0 %6500 }
 0x4f5   : > { %11222 = vmatprep.mubr.msk.bf16.mxu1 %vm3405_vm4, %v12885_v26 }
 0x4f8   : > { %6175 = vmatmul.mubr.bf16.gmra.mrb[228].mxu0 %v12887_v59 }
 0x4f9   : > { %11211 = vmatprep.mubr.msk.bf16.mxu0 %vm3405_vm4, %v12888_v40 }
 0x4fc   : > { %6328 = vmatmul.mubr.bf16.gmra.mrb[228].mxu1 %v12887_v59 }
 0x4fd   : > { %11223 = vmatprep.mubr.msk.bf16.mxu1 %vm3405_vm4, %v12888_v40 }
 0x500   : > { %6185 = vmatmul.mubr.bf16.gmra.mrb[232].mxu0 %v12890_v62 }
 0x501   : > { %11212 = vmatprep.mubr.msk.bf16.mxu0 %vm3405_vm4, %v12891_v14 }
 0x504   : > { %6338 = vmatmul.mubr.bf16.gmra.mrb[232].mxu1 %v12890_v62 }
 0x505   : > { %11224 = vmatprep.mubr.msk.bf16.mxu1 %vm3405_vm4, %v12891_v14 }
 0x508   : > { %6195 = vmatmul.mubr.bf16.gmra.mrb[236].mxu0 %v12893_v39 }
 0x50c   : > { %6348 = vmatmul.mubr.bf16.gmra.mrb[236].mxu1 %v12893_v39 }
 0x583   : > { %v6086_v23 = vpop.f32.mrb[192].mxu0 }
 0x584   : > { %v6598_v61 = vadd.f32 %v6481_v48, %v6086_v23  ;;  %v6088_v47 = vpop.f32.mrb[193].mxu0 }
 0x585   : > { %v6599_v37 = vadd.f32 %v6481_v48, %v6088_v47  ;;  %v6090_v8 = vpop.f32.mrb[194].mxu0 }
 0x586   : > { %v6602_v11 = vadd.f32 %v6486_v31, %v6090_v8  ;;  %v6092_v58 = vpop.f32.mrb[195].mxu0  ;;  %v6694_v36 = vmax.f32 %v6598_v61, 0.0 }
 0x587   : > { %v6603_v35 = vadd.f32 %v6486_v31, %v6092_v58  ;;  %v6239_v22 = vpop.f32.mrb[192].mxu1  ;;  %v6695_v17 = vmax.f32 %v6599_v37, 0.0 }
 0x588   : > { %v6698_v44 = vmax.f32 %v6602_v11, 0.0  ;;  %v6600_v50 = vadd.f32 %v6481_v48, %v6239_v22  ;;  %v6241_v27 = vpop.f32.mrb[193].mxu1 }
 0x589   : > { %v6699_v63 = vmax.f32 %v6603_v35, 0.0  ;;  %v6601_v42 = vadd.f32 %v6481_v48, %v6241_v27  ;;  %v6243_v55 = vpop.f32.mrb[194].mxu1 }
 0x58a   : > { %v6790_v52 = vpack.c.bf16 %v6698_v44, %v6694_v36  ;;  %v6604_v6 = vadd.f32 %v6486_v31, %v6243_v55  ;;  %v6245_v19 = vpop.f32.mrb[195].mxu1  ;;  %v6696_v5 = vmax.f32 %v6600_v50, 0.0 }
 0x58b   : > { %v6791_v1 = vpack.c.bf16 %v6699_v63, %v6695_v17  ;;  %v6605_v46 = vadd.f32 %v6486_v31, %v6245_v19  ;;  %v6096_v41 = vpop.f32.mrb[196].mxu0  ;;  %v6697_v15 = vmax.f32 %v6601_v42, 0.0 }
 0x58c   : > { %v6700_v13 = vmax.f32 %v6604_v6, 0.0  ;;  %v6606_v10 = vadd.f32 %v6491_v34, %v6096_v41  ;;  %v6098_v33 = vpop.f32.mrb[197].mxu0 }
 0x58d   : > { %v6701_v54 = vmax.f32 %v6605_v46, 0.0  ;;  %v6607_v56 = vadd.f32 %v6491_v34, %v6098_v33  ;;  %v6100_v21 = vpop.f32.mrb[198].mxu0  ;;  %6846 = vmatprep.mubr.bf16.mxu0 %v6791_v1 }
 0x58e   : > { %v6955_v20 = vpack.c.bf16 %v6700_v13, %v6696_v5  ;;  %v6610_v32 = vadd.f32 %v6496_v3, %v6100_v21  ;;  %v6102_v45 = vpop.f32.mrb[199].mxu0  ;;  %6847 = vmatmul.mubr.bf16.vlgmr.msra.gmra.mrb[240].mxu0 %v6790_v52  ;;  %v6702_v7 = vmax.f32 %v6606_v10, 0.0  ;;  %v6511_v52 = vpop.permute.xlu0 %6510 }
 0x58f   : > { %v6956_v57 = vpack.c.bf16 %v6701_v54, %v6697_v15  ;;  %v6611_v0 = vadd.f32 %v6496_v3, %v6102_v45  ;;  %v6249_v25 = vpop.f32.mrb[196].mxu1  ;;  %v6703_v60 = vmax.f32 %v6607_v56, 0.0  ;;  %v6516_v13 = vpop.permute.xlu1 %6515 }
 0x590   : > { %v6706_v24 = vmax.f32 %v6610_v32, 0.0  ;;  %v6608_v12 = vadd.f32 %v6491_v34, %v6249_v25  ;;  %v6251_v18 = vpop.f32.mrb[197].mxu1 }
 0x591   : > { %v6707_v29 = vmax.f32 %v6611_v0, 0.0  ;;  %v6609_v38 = vadd.f32 %v6491_v34, %v6251_v18  ;;  %v6253_v43 = vpop.f32.mrb[198].mxu1  ;;  %11240 = vmatprep.mubr.msk.bf16.mxu1 %vm7095_vm9, %v6956_v57 }
 0x592   : > { %v6792_v2 = vpack.c.bf16 %v6706_v24, %v6702_v7  ;;  %v6612_v53 = vadd.f32 %v6496_v3, %v6253_v43  ;;  %v6255_v16 = vpop.f32.mrb[199].mxu1  ;;  %7168 = vmatmul.mubr.bf16.vlgmr.msra.gmra.mrb[240].mxu1 %v6955_v20  ;;  %v6704_v62 = vmax.f32 %v6608_v12, 0.0 }
 0x593   : > { %v6793_v26 = vpack.c.bf16 %v6707_v29, %v6703_v60  ;;  %v6613_v59 = vadd.f32 %v6496_v3, %v6255_v16  ;;  %v6106_v40 = vpop.f32.mrb[200].mxu0  ;;  %v6705_v30 = vmax.f32 %v6609_v38, 0.0 }
 0x594   : > { %v6708_v14 = vmax.f32 %v6612_v53, 0.0  ;;  %v6614_v39 = vadd.f32 %v6501_v51, %v6106_v40  ;;  %v6108_v28 = vpop.f32.mrb[201].mxu0 }
 0x595   : > { %v6709_v4 = vmax.f32 %v6613_v59, 0.0  ;;  %v6615_v48 = vadd.f32 %v6501_v51, %v6108_v28  ;;  %v6110_v23 = vpop.f32.mrb[202].mxu0  ;;  %6854 = vmatprep.mubr.bf16.mxu0 %v6793_v26 }
 0x596   : > { %v6957_v61 = vpack.c.bf16 %v6708_v14, %v6704_v62  ;;  %v6618_v47 = vadd.f32 %v6506_v49, %v6110_v23  ;;  %v6112_v31 = vpop.f32.mrb[203].mxu0  ;;  %6855 = vmatmul.mubr.bf16.gmra.mrb[244].mxu0 %v6792_v2  ;;  %v6710_v58 = vmax.f32 %v6614_v39, 0.0  ;;  %v6521_v2 = vpop.permute.xlu0 %6520 }
 0x597   : > { %v6958_v37 = vpack.c.bf16 %v6709_v4, %v6705_v30  ;;  %v6619_v8 = vadd.f32 %v6506_v49, %v6112_v31  ;;  %v6259_v11 = vpop.f32.mrb[200].mxu1  ;;  %v6711_v44 = vmax.f32 %v6615_v48, 0.0  ;;  %v6526_v14 = vpop.permute.xlu1 %6525 }
 0x598   : > { %v6714_v35 = vmax.f32 %v6618_v47, 0.0  ;;  %v6616_v22 = vadd.f32 %v6501_v51, %v6259_v11  ;;  %v6261_v36 = vpop.f32.mrb[201].mxu1 }
 0x599   : > { %v6715_v50 = vmax.f32 %v6619_v8, 0.0  ;;  %v6617_v27 = vadd.f32 %v6501_v51, %v6261_v36  ;;  %v6263_v17 = vpop.f32.mrb[202].mxu1  ;;  %11241 = vmatprep.mubr.msk.bf16.mxu1 %vm7095_vm9, %v6958_v37 }
 0x59a   : > { %v6794_v63 = vpack.c.bf16 %v6714_v35, %v6710_v58  ;;  %v6620_v42 = vadd.f32 %v6506_v49, %v6263_v17  ;;  %v6265_v55 = vpop.f32.mrb[203].mxu1  ;;  %7176 = vmatmul.mubr.bf16.gmra.mrb[244].mxu1 %v6957_v61  ;;  %v6712_v1 = vmax.f32 %v6616_v22, 0.0 }
 0x59b   : > { %v6795_v6 = vpack.c.bf16 %v6715_v50, %v6711_v44  ;;  %v6621_v19 = vadd.f32 %v6506_v49, %v6265_v55  ;;  %v6116_v34 = vpop.f32.mrb[204].mxu0  ;;  %v6713_v10 = vmax.f32 %v6617_v27, 0.0 }
 0x59c   : > { %v6716_v46 = vmax.f32 %v6620_v42, 0.0  ;;  %v6622_v41 = vadd.f32 %v6511_v52, %v6116_v34  ;;  %v6118_v5 = vpop.f32.mrb[205].mxu0 }
 0x59d   : > { %v6717_v33 = vmax.f32 %v6621_v19, 0.0  ;;  %v6623_v3 = vadd.f32 %v6511_v52, %v6118_v5  ;;  %v6120_v15 = vpop.f32.mrb[206].mxu0  ;;  %6862 = vmatprep.mubr.bf16.mxu0 %v6795_v6 }
 0x59e   : > { %v6959_v54 = vpack.c.bf16 %v6716_v46, %v6712_v1  ;;  %v6626_v56 = vadd.f32 %v6516_v13, %v6120_v15  ;;  %v6122_v21 = vpop.f32.mrb[207].mxu0  ;;  %6863 = vmatmul.mubr.bf16.gmra.mrb[248].mxu0 %v6794_v63  ;;  %v6718_v57 = vmax.f32 %v6622_v41, 0.0  ;;  %v6531_v63 = vpop.permute.xlu0 %6530 }
 0x59f   : > { %v6960_v20 = vpack.c.bf16 %v6717_v33, %v6713_v10  ;;  %v6627_v32 = vadd.f32 %v6516_v13, %v6122_v21  ;;  %v6269_v45 = vpop.f32.mrb[204].mxu1  ;;  %v6719_v24 = vmax.f32 %v6623_v3, 0.0  ;;  %v6536_v46 = vpop.permute.xlu1 %6535 }
 0x5a0   : > { %v6722_v0 = vmax.f32 %v6626_v56, 0.0  ;;  %v6624_v25 = vadd.f32 %v6511_v52, %v6269_v45  ;;  %v6271_v7 = vpop.f32.mrb[205].mxu1 }
 0x5a1   : > { %v6723_v12 = vmax.f32 %v6627_v32, 0.0  ;;  %v6625_v18 = vadd.f32 %v6511_v52, %v6271_v7  ;;  %v6273_v60 = vpop.f32.mrb[206].mxu1  ;;  %11242 = vmatprep.mubr.msk.bf16.mxu1 %vm7095_vm9, %v6960_v20 }
 0x5a2   : > { %v6796_v29 = vpack.c.bf16 %v6722_v0, %v6718_v57  ;;  %v6628_v38 = vadd.f32 %v6516_v13, %v6273_v60  ;;  %v6275_v43 = vpop.f32.mrb[207].mxu1  ;;  %7184 = vmatmul.mubr.bf16.gmra.mrb[248].mxu1 %v6959_v54  ;;  %v6720_v26 = vmax.f32 %v6624_v25, 0.0 }
 0x5a3   : > { %v6797_v53 = vpack.c.bf16 %v6723_v12, %v6719_v24  ;;  %v6629_v16 = vadd.f32 %v6516_v13, %v6275_v43  ;;  %v6126_v51 = vpop.f32.mrb[208].mxu0  ;;  %v6721_v39 = vmax.f32 %v6625_v18, 0.0 }
 0x5a4   : > { %v6724_v59 = vmax.f32 %v6628_v38, 0.0  ;;  %v6630_v40 = vadd.f32 %v6521_v2, %v6126_v51  ;;  %v6128_v62 = vpop.f32.mrb[209].mxu0 }
 0x5a5   : > { %v6725_v28 = vmax.f32 %v6629_v16, 0.0  ;;  %v6631_v49 = vadd.f32 %v6521_v2, %v6128_v62  ;;  %v6130_v30 = vpop.f32.mrb[210].mxu0  ;;  %6870 = vmatprep.mubr.bf16.mxu0 %v6797_v53 }
 0x5a6   : > { %v6961_v4 = vpack.c.bf16 %v6724_v59, %v6720_v26  ;;  %v6634_v48 = vadd.f32 %v6526_v14, %v6130_v30  ;;  %v6132_v23 = vpop.f32.mrb[211].mxu0  ;;  %6871 = vmatmul.mubr.bf16.gmra.mrb[252].mxu0 %v6796_v29  ;;  %v6726_v37 = vmax.f32 %v6630_v40, 0.0  ;;  %v6541_v29 = vpop.permute.xlu0 %6540 }
 0x5a7   : > { %v6962_v61 = vpack.c.bf16 %v6725_v28, %v6721_v39  ;;  %v6635_v47 = vadd.f32 %v6526_v14, %v6132_v23  ;;  %v6279_v31 = vpop.f32.mrb[208].mxu1  ;;  %v6727_v35 = vmax.f32 %v6631_v49, 0.0  ;;  %v6546_v59 = vpop.permute.xlu1 %6545 }
 0x5a8   : > { %v6730_v8 = vmax.f32 %v6634_v48, 0.0  ;;  %v6632_v11 = vadd.f32 %v6521_v2, %v6279_v31  ;;  %v6281_v58 = vpop.f32.mrb[209].mxu1 }
 0x5a9   : > { %v6731_v22 = vmax.f32 %v6635_v47, 0.0  ;;  %v6633_v36 = vadd.f32 %v6521_v2, %v6281_v58  ;;  %v6283_v44 = vpop.f32.mrb[210].mxu1  ;;  %11243 = vmatprep.mubr.msk.bf16.mxu1 %vm7095_vm9, %v6962_v61 }
 0x5aa   : > { %v6798_v50 = vpack.c.bf16 %v6730_v8, %v6726_v37  ;;  %v6636_v27 = vadd.f32 %v6526_v14, %v6283_v44  ;;  %v6285_v17 = vpop.f32.mrb[211].mxu1  ;;  %7192 = vmatmul.mubr.bf16.gmra.mrb[252].mxu1 %v6961_v4  ;;  %v6728_v6 = vmax.f32 %v6632_v11, 0.0 }
 0x5ab   : > { %v6799_v42 = vpack.c.bf16 %v6731_v22, %v6727_v35  ;;  %v6637_v55 = vadd.f32 %v6526_v14, %v6285_v17  ;;  %v6136_v52 = vpop.f32.mrb[212].mxu0  ;;  %v6729_v41 = vmax.f32 %v6633_v36, 0.0 }
 0x5ac   : > { %v6732_v19 = vmax.f32 %v6636_v27, 0.0  ;;  %v6638_v34 = vadd.f32 %v6531_v63, %v6136_v52  ;;  %v6138_v1 = vpop.f32.mrb[213].mxu0 }
 0x5ad   : > { %v6733_v5 = vmax.f32 %v6637_v55, 0.0  ;;  %v6639_v13 = vadd.f32 %v6531_v63, %v6138_v1  ;;  %v6140_v10 = vpop.f32.mrb[214].mxu0  ;;  %6878 = vmatprep.mubr.bf16.mxu0 %v6799_v42 }
 0x5ae   : > { %v6963_v33 = vpack.c.bf16 %v6732_v19, %v6728_v6  ;;  %v6642_v3 = vadd.f32 %v6536_v46, %v6140_v10  ;;  %v6142_v15 = vpop.f32.mrb[215].mxu0  ;;  %6879 = vmatmul.mubr.bf16.gmra.mrb[0].mxu0 %v6798_v50  ;;  %v6734_v20 = vmax.f32 %v6638_v34, 0.0  ;;  %v6551_v50 = vpop.permute.xlu0 %6550 }
 0x5af   : > { %v6964_v54 = vpack.c.bf16 %v6733_v5, %v6729_v41  ;;  %v6643_v56 = vadd.f32 %v6536_v46, %v6142_v15  ;;  %v6289_v21 = vpop.f32.mrb[212].mxu1  ;;  %v6735_v0 = vmax.f32 %v6639_v13, 0.0  ;;  %v6556_v19 = vpop.permute.xlu1 %6555 }
 0x5b0   : > { %v6738_v32 = vmax.f32 %v6642_v3, 0.0  ;;  %v6640_v45 = vadd.f32 %v6531_v63, %v6289_v21  ;;  %v6291_v57 = vpop.f32.mrb[213].mxu1 }
 0x5b1   : > { %v6739_v25 = vmax.f32 %v6643_v56, 0.0  ;;  %v6641_v7 = vadd.f32 %v6531_v63, %v6291_v57  ;;  %v6293_v24 = vpop.f32.mrb[214].mxu1  ;;  %11244 = vmatprep.mubr.msk.bf16.mxu1 %vm7095_vm9, %v6964_v54 }
 0x5b2   : > { %v6800_v12 = vpack.c.bf16 %v6738_v32, %v6734_v20  ;;  %v6644_v18 = vadd.f32 %v6536_v46, %v6293_v24  ;;  %v6295_v60 = vpop.f32.mrb[215].mxu1  ;;  %7200 = vmatmul.mubr.bf16.gmra.mrb[0].mxu1 %v6963_v33  ;;  %v6736_v53 = vmax.f32 %v6640_v45, 0.0 }
 0x5b3   : > { %v6801_v38 = vpack.c.bf16 %v6739_v25, %v6735_v0  ;;  %v6645_v43 = vadd.f32 %v6536_v46, %v6295_v60  ;;  %v6146_v2 = vpop.f32.mrb[216].mxu0  ;;  %v6737_v40 = vmax.f32 %v6641_v7, 0.0 }
 0x5b4   : > { %v6740_v16 = vmax.f32 %v6644_v18, 0.0  ;;  %v6646_v51 = vadd.f32 %v6541_v29, %v6146_v2  ;;  %v6148_v26 = vpop.f32.mrb[217].mxu0 }
 0x5b5   : > { %v6741_v62 = vmax.f32 %v6645_v43, 0.0  ;;  %v6647_v14 = vadd.f32 %v6541_v29, %v6148_v26  ;;  %v6150_v39 = vpop.f32.mrb[218].mxu0  ;;  %6886 = vmatprep.mubr.bf16.mxu0 %v6801_v38 }
 0x5b6   : > { %v6965_v28 = vpack.c.bf16 %v6740_v16, %v6736_v53  ;;  %v6650_v49 = vadd.f32 %v6546_v59, %v6150_v39  ;;  %v6152_v30 = vpop.f32.mrb[219].mxu0  ;;  %6887 = vmatmul.mubr.bf16.gmra.mrb[4].mxu0 %v6800_v12  ;;  %v6742_v61 = vmax.f32 %v6646_v51, 0.0  ;;  %v6561_v12 = vpop.permute.xlu0 %6560 }
 0x5b7   : > { %v6966_v4 = vpack.c.bf16 %v6741_v62, %v6737_v40  ;;  %v6651_v48 = vadd.f32 %v6546_v59, %v6152_v30  ;;  %v6299_v23 = vpop.f32.mrb[216].mxu1  ;;  %v6743_v8 = vmax.f32 %v6647_v14, 0.0  ;;  %v6566_v16 = vpop.permute.xlu1 %6565 }
 0x5b8   : > { %v6746_v47 = vmax.f32 %v6650_v49, 0.0  ;;  %v6648_v31 = vadd.f32 %v6541_v29, %v6299_v23  ;;  %v6301_v37 = vpop.f32.mrb[217].mxu1 }
 0x5b9   : > { %v6747_v11 = vmax.f32 %v6651_v48, 0.0  ;;  %v6649_v58 = vadd.f32 %v6541_v29, %v6301_v37  ;;  %v6303_v35 = vpop.f32.mrb[218].mxu1  ;;  %11245 = vmatprep.mubr.msk.bf16.mxu1 %vm7095_vm9, %v6966_v4 }
 0x5ba   : > { %v6802_v22 = vpack.c.bf16 %v6746_v47, %v6742_v61  ;;  %v6652_v36 = vadd.f32 %v6546_v59, %v6303_v35  ;;  %v6305_v44 = vpop.f32.mrb[219].mxu1  ;;  %7208 = vmatmul.mubr.bf16.gmra.mrb[4].mxu1 %v6965_v28  ;;  %v6744_v42 = vmax.f32 %v6648_v31, 0.0 }
 0x5bb   : > { %v6803_v27 = vpack.c.bf16 %v6747_v11, %v6743_v8  ;;  %v6653_v17 = vadd.f32 %v6546_v59, %v6305_v44  ;;  %v6156_v63 = vpop.f32.mrb[220].mxu0  ;;  %v6745_v34 = vmax.f32 %v6649_v58, 0.0 }
 0x5bc   : > { %v6748_v55 = vmax.f32 %v6652_v36, 0.0  ;;  %v6654_v52 = vadd.f32 %v6551_v50, %v6156_v63  ;;  %v6158_v6 = vpop.f32.mrb[221].mxu0 }
 0x5bd   : > { %v6749_v1 = vmax.f32 %v6653_v17, 0.0  ;;  %v6655_v46 = vadd.f32 %v6551_v50, %v6158_v6  ;;  %v6160_v41 = vpop.f32.mrb[222].mxu0  ;;  %6894 = vmatprep.mubr.bf16.mxu0 %v6803_v27 }
 0x5be   : > { %v6967_v5 = vpack.c.bf16 %v6748_v55, %v6744_v42  ;;  %v6658_v13 = vadd.f32 %v6556_v19, %v6160_v41  ;;  %v6162_v10 = vpop.f32.mrb[223].mxu0  ;;  %6895 = vmatmul.mubr.bf16.gmra.mrb[8].mxu0 %v6802_v22  ;;  %v6750_v54 = vmax.f32 %v6654_v52, 0.0  ;;  %v6571_v22 = vpop.permute.xlu0 %6570 }
 0x5bf   : > { %v6968_v33 = vpack.c.bf16 %v6749_v1, %v6745_v34  ;;  %v6659_v3 = vadd.f32 %v6556_v19, %v6162_v10  ;;  %v6309_v15 = vpop.f32.mrb[220].mxu1  ;;  %v6751_v32 = vmax.f32 %v6655_v46, 0.0  ;;  %v6576_v55 = vpop.permute.xlu1 %6575 }
 0x5c0   : > { %v6754_v56 = vmax.f32 %v6658_v13, 0.0  ;;  %v6656_v21 = vadd.f32 %v6551_v50, %v6309_v15  ;;  %v6311_v20 = vpop.f32.mrb[221].mxu1 }
 0x5c1   : > { %v6755_v45 = vmax.f32 %v6659_v3, 0.0  ;;  %v6657_v57 = vadd.f32 %v6551_v50, %v6311_v20  ;;  %v6313_v0 = vpop.f32.mrb[222].mxu1  ;;  %11246 = vmatprep.mubr.msk.bf16.mxu1 %vm7095_vm9, %v6968_v33 }
 0x5c2   : > { %v6804_v25 = vpack.c.bf16 %v6754_v56, %v6750_v54  ;;  %v6660_v7 = vadd.f32 %v6556_v19, %v6313_v0  ;;  %v6315_v24 = vpop.f32.mrb[223].mxu1  ;;  %7216 = vmatmul.mubr.bf16.gmra.mrb[8].mxu1 %v6967_v5  ;;  %v6752_v38 = vmax.f32 %v6656_v21, 0.0 }
 0x5c3   : > { %v6805_v18 = vpack.c.bf16 %v6755_v45, %v6751_v32  ;;  %v6661_v60 = vadd.f32 %v6556_v19, %v6315_v24  ;;  %v6166_v29 = vpop.f32.mrb[224].mxu0  ;;  %v6753_v51 = vmax.f32 %v6657_v57, 0.0 }
 0x5c4   : > { %v6756_v43 = vmax.f32 %v6660_v7, 0.0  ;;  %v6662_v2 = vadd.f32 %v6561_v12, %v6166_v29  ;;  %v6168_v53 = vpop.f32.mrb[225].mxu0 }
 0x5c5   : > { %v6757_v26 = vmax.f32 %v6661_v60, 0.0  ;;  %v6663_v59 = vadd.f32 %v6561_v12, %v6168_v53  ;;  %v6170_v40 = vpop.f32.mrb[226].mxu0  ;;  %6902 = vmatprep.mubr.bf16.mxu0 %v6805_v18 }
 0x5c6   : > { %v6969_v62 = vpack.c.bf16 %v6756_v43, %v6752_v38  ;;  %v6666_v14 = vadd.f32 %v6566_v16, %v6170_v40  ;;  %v6172_v39 = vpop.f32.mrb[227].mxu0  ;;  %6903 = vmatmul.mubr.bf16.gmra.mrb[12].mxu0 %v6804_v25  ;;  %v6758_v4 = vmax.f32 %v6662_v2, 0.0  ;;  %v6581_v25 = vpop.permute.xlu0 %6580 }
 0x5c7   : > { %v6970_v28 = vpack.c.bf16 %v6757_v26, %v6753_v51  ;;  %v6667_v49 = vadd.f32 %v6566_v16, %v6172_v39  ;;  %v6319_v30 = vpop.f32.mrb[224].mxu1  ;;  %v6759_v47 = vmax.f32 %v6663_v59, 0.0  ;;  %v6586_v43 = vpop.permute.xlu1 %6585 }
 0x5c8   : > { %v6762_v48 = vmax.f32 %v6666_v14, 0.0  ;;  %v6664_v23 = vadd.f32 %v6561_v12, %v6319_v30  ;;  %v6321_v61 = vpop.f32.mrb[225].mxu1 }
 0x5c9   : > { %v6763_v31 = vmax.f32 %v6667_v49, 0.0  ;;  %v6665_v37 = vadd.f32 %v6561_v12, %v6321_v61  ;;  %v6323_v8 = vpop.f32.mrb[226].mxu1  ;;  %11247 = vmatprep.mubr.msk.bf16.mxu1 %vm7095_vm9, %v6970_v28 }
 0x5ca   : > { %v6806_v11 = vpack.c.bf16 %v6762_v48, %v6758_v4  ;;  %v6668_v58 = vadd.f32 %v6566_v16, %v6323_v8  ;;  %v6325_v35 = vpop.f32.mrb[227].mxu1  ;;  %7224 = vmatmul.mubr.bf16.gmra.mrb[12].mxu1 %v6969_v62  ;;  %v6760_v27 = vmax.f32 %v6664_v23, 0.0 }
 0x5cb   : > { %v6807_v36 = vpack.c.bf16 %v6763_v31, %v6759_v47  ;;  %v6669_v44 = vadd.f32 %v6566_v16, %v6325_v35  ;;  %v6176_v50 = vpop.f32.mrb[228].mxu0  ;;  %v6761_v52 = vmax.f32 %v6665_v37, 0.0 }
 0x5cc   : > { %v6764_v17 = vmax.f32 %v6668_v58, 0.0  ;;  %v6670_v63 = vadd.f32 %v6571_v22, %v6176_v50  ;;  %v6178_v42 = vpop.f32.mrb[229].mxu0 }
 0x5cd   : > { %v6765_v6 = vmax.f32 %v6669_v44, 0.0  ;;  %v6671_v19 = vadd.f32 %v6571_v22, %v6178_v42  ;;  %v6180_v34 = vpop.f32.mrb[230].mxu0  ;;  %6910 = vmatprep.mubr.bf16.mxu0 %v6807_v36 }
 0x5ce   : > { %v6971_v1 = vpack.c.bf16 %v6764_v17, %v6760_v27  ;;  %v6674_v46 = vadd.f32 %v6576_v55, %v6180_v34  ;;  %v6182_v41 = vpop.f32.mrb[231].mxu0  ;;  %6911 = vmatmul.mubr.bf16.gmra.mrb[16].mxu0 %v6806_v11  ;;  %v6766_v33 = vmax.f32 %v6670_v63, 0.0  ;;  %v6591_v11 = vpop.permute.xlu0 %6590 }
 0x5cf   : > { %v6972_v5 = vpack.c.bf16 %v6765_v6, %v6761_v52  ;;  %v6675_v13 = vadd.f32 %v6576_v55, %v6182_v41  ;;  %v6329_v10 = vpop.f32.mrb[228].mxu1  ;;  %v6767_v56 = vmax.f32 %v6671_v19, 0.0  ;;  %v6596_v17 = vpop.permute.xlu1 %6595 }
 0x5d0   : > { %v6770_v3 = vmax.f32 %v6674_v46, 0.0  ;;  %v6672_v15 = vadd.f32 %v6571_v22, %v6329_v10  ;;  %v6331_v54 = vpop.f32.mrb[229].mxu1 }
 0x5d1   : > { %v6771_v21 = vmax.f32 %v6675_v13, 0.0  ;;  %v6673_v20 = vadd.f32 %v6571_v22, %v6331_v54  ;;  %v6333_v32 = vpop.f32.mrb[230].mxu1  ;;  %11248 = vmatprep.mubr.msk.bf16.mxu1 %vm7095_vm9, %v6972_v5 }
 0x5d2   : > { %v6808_v45 = vpack.c.bf16 %v6770_v3, %v6766_v33  ;;  %v6676_v57 = vadd.f32 %v6576_v55, %v6333_v32  ;;  %v6335_v0 = vpop.f32.mrb[231].mxu1  ;;  %7232 = vmatmul.mubr.bf16.gmra.mrb[16].mxu1 %v6971_v1  ;;  %v6768_v18 = vmax.f32 %v6672_v15, 0.0 }
 0x5d3   : > { %v6809_v7 = vpack.c.bf16 %v6771_v21, %v6767_v56  ;;  %v6677_v24 = vadd.f32 %v6576_v55, %v6335_v0  ;;  %v6186_v12 = vpop.f32.mrb[232].mxu0  ;;  %v6769_v2 = vmax.f32 %v6673_v20, 0.0 }
 0x5d4   : > { %v6772_v60 = vmax.f32 %v6676_v57, 0.0  ;;  %v6678_v29 = vadd.f32 %v6581_v25, %v6186_v12  ;;  %v6188_v38 = vpop.f32.mrb[233].mxu0 }
 0x5d5   : > { %v6773_v53 = vmax.f32 %v6677_v24, 0.0  ;;  %v6679_v16 = vadd.f32 %v6581_v25, %v6188_v38  ;;  %v6190_v51 = vpop.f32.mrb[234].mxu0  ;;  %6918 = vmatprep.mubr.bf16.mxu0 %v6809_v7 }
 0x5d6   : > { %v6973_v26 = vpack.c.bf16 %v6772_v60, %v6768_v18  ;;  %v6682_v59 = vadd.f32 %v6586_v43, %v6190_v51  ;;  %v6192_v40 = vpop.f32.mrb[235].mxu0  ;;  %6919 = vmatmul.mubr.bf16.gmra.mrb[20].mxu0 %v6808_v45  ;;  %v6774_v28 = vmax.f32 %v6678_v29, 0.0 }
 0x5d7   : > { %v6974_v62 = vpack.c.bf16 %v6773_v53, %v6769_v2  ;;  %v6683_v14 = vadd.f32 %v6586_v43, %v6192_v40  ;;  %v6339_v39 = vpop.f32.mrb[232].mxu1  ;;  %v6775_v48 = vmax.f32 %v6679_v16, 0.0 }
 0x5d8   : > { %v6778_v49 = vmax.f32 %v6682_v59, 0.0  ;;  %v6680_v30 = vadd.f32 %v6581_v25, %v6339_v39  ;;  %v6341_v4 = vpop.f32.mrb[233].mxu1 }
 0x5d9   : > { %v6779_v23 = vmax.f32 %v6683_v14, 0.0  ;;  %v6681_v61 = vadd.f32 %v6581_v25, %v6341_v4  ;;  %v6343_v47 = vpop.f32.mrb[234].mxu1  ;;  %11249 = vmatprep.mubr.msk.bf16.mxu1 %vm7095_vm9, %v6974_v62 }
 0x5da   : > { %v6810_v31 = vpack.c.bf16 %v6778_v49, %v6774_v28  ;;  %v6684_v37 = vadd.f32 %v6586_v43, %v6343_v47  ;;  %v6345_v8 = vpop.f32.mrb[235].mxu1  ;;  %7240 = vmatmul.mubr.bf16.gmra.mrb[20].mxu1 %v6973_v26  ;;  %v6776_v36 = vmax.f32 %v6680_v30, 0.0 }
 0x5db   : > { %v6811_v58 = vpack.c.bf16 %v6779_v23, %v6775_v48  ;;  %v6685_v35 = vadd.f32 %v6586_v43, %v6345_v8  ;;  %v6196_v22 = vpop.f32.mrb[236].mxu0  ;;  %v6777_v63 = vmax.f32 %v6681_v61, 0.0 }
 0x5dc   : > { %v6780_v44 = vmax.f32 %v6684_v37, 0.0  ;;  %v6686_v50 = vadd.f32 %v6591_v11, %v6196_v22  ;;  %v6198_v27 = vpop.f32.mrb[237].mxu0 }
 0x5dd   : > { %v6781_v42 = vmax.f32 %v6685_v35, 0.0  ;;  %v6687_v55 = vadd.f32 %v6591_v11, %v6198_v27  ;;  %v6200_v52 = vpop.f32.mrb[238].mxu0  ;;  %6926 = vmatprep.mubr.bf16.mxu0 %v6811_v58 }
 0x5de   : > { %v6975_v6 = vpack.c.bf16 %v6780_v44, %v6776_v36  ;;  %v6690_v19 = vadd.f32 %v6596_v17, %v6200_v52  ;;  %v6202_v34 = vpop.f32.mrb[239].mxu0  ;;  %6927 = vmatmul.mubr.bf16.gmra.mrb[24].mxu0 %v6810_v31  ;;  %v6782_v5 = vmax.f32 %v6686_v50, 0.0 }
 0x5df   : > { %v6976_v1 = vpack.c.bf16 %v6781_v42, %v6777_v63  ;;  %v6691_v46 = vadd.f32 %v6596_v17, %v6202_v34  ;;  %v6349_v41 = vpop.f32.mrb[236].mxu1  ;;  %v6783_v3 = vmax.f32 %v6687_v55, 0.0 }
 0x5e0   : > { %v6786_v13 = vmax.f32 %v6690_v19, 0.0  ;;  %v6688_v10 = vadd.f32 %v6591_v11, %v6349_v41  ;;  %v6351_v33 = vpop.f32.mrb[237].mxu1 }
 0x5e1   : > { %v6787_v15 = vmax.f32 %v6691_v46, 0.0  ;;  %v6689_v54 = vadd.f32 %v6591_v11, %v6351_v33  ;;  %v6353_v56 = vpop.f32.mrb[238].mxu1  ;;  %11250 = vmatprep.mubr.msk.bf16.mxu1 %vm7095_vm9, %v6976_v1 }
 0x5e2   : > { %v6812_v21 = vpack.c.bf16 %v6786_v13, %v6782_v5  ;;  %v6692_v20 = vadd.f32 %v6596_v17, %v6353_v56  ;;  %v6355_v32 = vpop.f32.mrb[239].mxu1  ;;  %7248 = vmatmul.mubr.bf16.gmra.mrb[24].mxu1 %v6975_v6  ;;  %v6784_v0 = vmax.f32 %v6688_v10, 0.0 }
 0x5e3   : > { %v6813_v45 = vpack.c.bf16 %v6787_v15, %v6783_v3  ;;  %v6693_v57 = vadd.f32 %v6596_v17, %v6355_v32  ;;  %v6785_v7 = vmax.f32 %v6689_v54, 0.0 }
 0x5e4   : > { %v6788_v25 = vmax.f32 %v6692_v20, 0.0 }
 0x5e5   : > { %v6789_v24 = vmax.f32 %v6693_v57, 0.0  ;;  %6934 = vmatprep.mubr.bf16.mxu0 %v6813_v45 }
 0x5e6   : > { %v6977_v12 = vpack.c.bf16 %v6788_v25, %v6784_v0  ;;  %6935 = vmatmul.mubr.bf16.gmra.mrb[28].mxu0 %v6812_v21 }
 0x5e7   : > { %v6978_v18 = vpack.c.bf16 %v6789_v24, %v6785_v7 }
 0x5e9   : > { %11251 = vmatprep.mubr.msk.bf16.mxu1 %vm7095_vm9, %v6978_v18 }
 0x5ea   : > { %7256 = vmatmul.mubr.bf16.gmra.mrb[28].mxu1 %v6977_v12 }
 0x661   : > { %v11927_v60 = vpop.f32.mrb[240].mxu0 }
 0x662   : > { %v11928_v29 = vpop.f32.mrb[241].mxu0 }
 0x663   : > { %v11929_v38 = vadd.f32 %v11928_v29, %v11927_v60  ;;  %v11930_v43 = vpop.f32.mrb[242].mxu0 }
 0x664   : > { %v11931_v2 = vpop.f32.mrb[243].mxu0 }
 0x665   : > { %v11932_v53 = vadd.f32 %v11931_v2, %v11930_v43  ;;  %v7169_v16 = vpop.f32.mrb[240].mxu1 }
 0x666   : > { %v7171_v51 = vpop.f32.mrb[241].mxu1 }
 0x667   : > { %v16074_v26 = vpack.c.bf16 %v11932_v53, %v11929_v38  ;;  %v7172_v59 = vpop.f32.mrb[242].mxu1 }
 0x668   : > { %v16076_v40 = vpack.c.bf16 %v7172_v59, %v7169_v16  ;;  %v7174_v62 = vpop.f32.mrb[243].mxu1 }
 0x669   : > { %8337 = vrot.lane.b32.xlu0 %v16074_v26, %s13203_s23  ;;  %v11933_v14 = vpop.f32.mrb[244].mxu0 }
 0x66a   : > { %8339 = vrot.lane.b32.xlu1 %v16076_v40, %s13203_s23  ;;  %v11934_v39 = vpop.f32.mrb[245].mxu0 }
 0x66b   : > { %v11935_v28 = vadd.f32 %v11934_v39, %v11933_v14  ;;  %v11936_v49 = vpop.f32.mrb[246].mxu0 }
 0x66c   : > { %v11937_v30 = vpop.f32.mrb[247].mxu0 }
 0x66d   : > { %v11938_v4 = vadd.f32 %v11937_v30, %v11936_v49  ;;  %v7177_v48 = vpop.f32.mrb[244].mxu1 }
 0x66e   : > { %v7179_v23 = vpop.f32.mrb[245].mxu1 }
 0x66f   : > { %v16082_v61 = vpack.c.bf16 %v11938_v4, %v11935_v28  ;;  %v7180_v47 = vpop.f32.mrb[246].mxu1 }
 0x670   : > { %v16084_v31 = vpack.c.bf16 %v7180_v47, %v7177_v48  ;;  %v7182_v37 = vpop.f32.mrb[247].mxu1 }
 0x671   : > { %8341 = vrot.lane.b32.xlu0 %v16082_v61, %s13203_s23  ;;  %v11939_v8 = vpop.f32.mrb[248].mxu0 }
 0x672   : > { %8343 = vrot.lane.b32.xlu1 %v16084_v31, %s13203_s23  ;;  %v11940_v11 = vpop.f32.mrb[249].mxu0 }
 0x673   : > { %v11941_v58 = vadd.f32 %v11940_v11, %v11939_v8  ;;  %v11942_v35 = vpop.f32.mrb[250].mxu0 }
 0x674   : > { %v11943_v22 = vpop.f32.mrb[251].mxu0 }
 0x675   : > { %v11944_v36 = vadd.f32 %v11943_v22, %v11942_v35  ;;  %v7185_v44 = vpop.f32.mrb[248].mxu1 }
 0x676   : > { %v7187_v50 = vpop.f32.mrb[249].mxu1 }
 0x677   : > { %v16090_v27 = vpack.c.bf16 %v11944_v36, %v11941_v58  ;;  %v7188_v17 = vpop.f32.mrb[250].mxu1 }
 0x678   : > { %v16092_v63 = vpack.c.bf16 %v7188_v17, %v7185_v44  ;;  %v7190_v42 = vpop.f32.mrb[251].mxu1 }
 0x679   : > { %8345 = vrot.lane.b32.xlu0 %v16090_v27, %s13203_s23  ;;  %v11945_v55 = vpop.f32.mrb[252].mxu0 }
 0x67a   : > { %8347 = vrot.lane.b32.xlu1 %v16092_v63, %s13203_s23  ;;  %v11946_v52 = vpop.f32.mrb[253].mxu0 }
 0x67b   : > { %v11947_v6 = vadd.f32 %v11946_v52, %v11945_v55  ;;  %v11948_v19 = vpop.f32.mrb[254].mxu0 }
 0x67c   : > { %v11949_v34 = vpop.f32.mrb[255].mxu0 }
 0x67d   : > { %v11950_v1 = vadd.f32 %v11949_v34, %v11948_v19  ;;  %v7193_v46 = vpop.f32.mrb[252].mxu1 }
 0x67e   : > { %v7195_v41 = vpop.f32.mrb[253].mxu1 }
 0x67f   : > { %v16098_v5 = vpack.c.bf16 %v11950_v1, %v11947_v6  ;;  %v7196_v13 = vpop.f32.mrb[254].mxu1 }
 0x680   : > { %v16100_v10 = vpack.c.bf16 %v7196_v13, %v7193_v46  ;;  %v7198_v33 = vpop.f32.mrb[255].mxu1 }
 0x681   : > { %8349 = vrot.lane.b32.xlu0 %v16098_v5, %s13203_s23  ;;  %v11951_v3 = vpop.f32.mrb[0].mxu0 }
 0x682   : > { %8351 = vrot.lane.b32.xlu1 %v16100_v10, %s13203_s23  ;;  %v11952_v15 = vpop.f32.mrb[1].mxu0 }
 0x683   : > { %v11953_v54 = vadd.f32 %v11952_v15, %v11951_v3  ;;  %v11954_v56 = vpop.f32.mrb[2].mxu0 }
 0x684   : > { %v11955_v21 = vpop.f32.mrb[3].mxu0 }
 0x685   : > { %v11956_v20 = vadd.f32 %v11955_v21, %v11954_v56  ;;  %v7201_v32 = vpop.f32.mrb[0].mxu1 }
 0x686   : > { %v7203_v45 = vpop.f32.mrb[1].mxu1 }
 0x687   : > { %v16106_v57 = vpack.c.bf16 %v11956_v20, %v11953_v54  ;;  %v7204_v0 = vpop.f32.mrb[2].mxu1 }
 0x688   : > { %v16108_v25 = vpack.c.bf16 %v7204_v0, %v7201_v32  ;;  %v7206_v7 = vpop.f32.mrb[3].mxu1 }
 0x689   : > { %8353 = vrot.lane.b32.xlu0 %v16106_v57, %s13203_s23  ;;  %v11957_v24 = vpop.f32.mrb[4].mxu0 }
 0x68a   : > { %8355 = vrot.lane.b32.xlu1 %v16108_v25, %s13203_s23  ;;  %v11958_v12 = vpop.f32.mrb[5].mxu0 }
 0x68b   : > { %v11959_v18 = vadd.f32 %v11958_v12, %v11957_v24  ;;  %v11960_v60 = vpop.f32.mrb[6].mxu0 }
 0x68c   : > { %v11961_v29 = vpop.f32.mrb[7].mxu0 }
 0x68d   : > { %v11962_v38 = vadd.f32 %v11961_v29, %v11960_v60  ;;  %v7209_v43 = vpop.f32.mrb[4].mxu1 }
 0x68e   : > { %v7211_v2 = vpop.f32.mrb[5].mxu1 }
 0x68f   : > { %v16114_v53 = vpack.c.bf16 %v11962_v38, %v11959_v18  ;;  %v7212_v16 = vpop.f32.mrb[6].mxu1 }
 0x690   : > { %v16116_v51 = vpack.c.bf16 %v7212_v16, %v7209_v43  ;;  %v7214_v59 = vpop.f32.mrb[7].mxu1 }
 0x691   : > { %8357 = vrot.lane.b32.xlu0 %v16114_v53, %s13203_s23  ;;  %v11963_v62 = vpop.f32.mrb[8].mxu0 }
 0x692   : > { %8359 = vrot.lane.b32.xlu1 %v16116_v51, %s13203_s23  ;;  %v11964_v14 = vpop.f32.mrb[9].mxu0 }
 0x693   : > { %v11965_v39 = vadd.f32 %v11964_v14, %v11963_v62  ;;  %v11966_v28 = vpop.f32.mrb[10].mxu0 }
 0x694   : > { %v11967_v49 = vpop.f32.mrb[11].mxu0 }
 0x695   : > { %v11968_v30 = vadd.f32 %v11967_v49, %v11966_v28  ;;  %v7217_v4 = vpop.f32.mrb[8].mxu1 }
 0x696   : > { %v7219_v48 = vpop.f32.mrb[9].mxu1 }
 0x697   : > { %v16122_v23 = vpack.c.bf16 %v11968_v30, %v11965_v39  ;;  %v7220_v47 = vpop.f32.mrb[10].mxu1  ;;  %v12911_v48 = vld [vmem:[%s17307_s5 + $0x1e4] ss:$8 sps:$4 sm:$0xff]  }
 0x698   : > { %v16124_v37 = vpack.c.bf16 %v7220_v47, %v7217_v4  ;;  %v7222_v8 = vpop.f32.mrb[11].mxu1  ;;  %11432 = vmatprep.mubr.msk.bf16.mxu0 %vm3405_vm4, %v12911_v48 }
 0x699   : > { %8361 = vrot.lane.b32.xlu0 %v16122_v23, %s13203_s23  ;;  %v11969_v11 = vpop.f32.mrb[12].mxu0 }
 0x69a   : > { %8363 = vrot.lane.b32.xlu1 %v16124_v37, %s13203_s23  ;;  %v11970_v58 = vpop.f32.mrb[13].mxu0 }
 0x69b   : > { %v11971_v35 = vadd.f32 %v11970_v58, %v11969_v11  ;;  %v11972_v22 = vpop.f32.mrb[14].mxu0 }
 0x69c   : > { %v11973_v36 = vpop.f32.mrb[15].mxu0 }
 0x69d   : > { %v11974_v44 = vadd.f32 %v11973_v36, %v11972_v22  ;;  %v7225_v50 = vpop.f32.mrb[12].mxu1 }
 0x69e   : > { %v7227_v17 = vpop.f32.mrb[13].mxu1 }
 0x69f   : > { %v16130_v42 = vpack.c.bf16 %v11974_v44, %v11971_v35  ;;  %v7228_v55 = vpop.f32.mrb[14].mxu1 }
 0x6a0   : > { %v16132_v52 = vpack.c.bf16 %v7228_v55, %v7225_v50  ;;  %v7230_v6 = vpop.f32.mrb[15].mxu1 }
 0x6a1   : > { %8365 = vrot.lane.b32.xlu0 %v16130_v42, %s13203_s23  ;;  %v11975_v19 = vpop.f32.mrb[16].mxu0 }
 0x6a2   : > { %8367 = vrot.lane.b32.xlu1 %v16132_v52, %s13203_s23  ;;  %v11976_v34 = vpop.f32.mrb[17].mxu0 }
 0x6a3   : > { %v11977_v1 = vadd.f32 %v11976_v34, %v11975_v19  ;;  %v11978_v46 = vpop.f32.mrb[18].mxu0 }
 0x6a4   : > { %v11979_v41 = vpop.f32.mrb[19].mxu0 }
 0x6a5   : > { %v11980_v13 = vadd.f32 %v11979_v41, %v11978_v46  ;;  %v7233_v33 = vpop.f32.mrb[16].mxu1 }
 0x6a6   : > { %v7235_v3 = vpop.f32.mrb[17].mxu1 }
 0x6a7   : > { %v16138_v15 = vpack.c.bf16 %v11980_v13, %v11977_v1  ;;  %v7236_v54 = vpop.f32.mrb[18].mxu1 }
 0x6a8   : > { %v16140_v56 = vpack.c.bf16 %v7236_v54, %v7233_v33  ;;  %v7238_v21 = vpop.f32.mrb[19].mxu1 }
 0x6a9   : > { %8369 = vrot.lane.b32.xlu0 %v16138_v15, %s13203_s23  ;;  %v11981_v20 = vpop.f32.mrb[20].mxu0 }
 0x6aa   : > { %8371 = vrot.lane.b32.xlu1 %v16140_v56, %s13203_s23  ;;  %v11982_v32 = vpop.f32.mrb[21].mxu0 }
 0x6ab   : > { %v11983_v45 = vadd.f32 %v11982_v32, %v11981_v20  ;;  %v11984_v0 = vpop.f32.mrb[22].mxu0 }
 0x6ac   : > { %v11985_v7 = vpop.f32.mrb[23].mxu0 }
 0x6ad   : > { %v11986_v24 = vadd.f32 %v11985_v7, %v11984_v0  ;;  %v7241_v12 = vpop.f32.mrb[20].mxu1 }
 0x6ae   : > { %v7243_v18 = vpop.f32.mrb[21].mxu1 }
 0x6af   : > { %v16146_v60 = vpack.c.bf16 %v11986_v24, %v11983_v45  ;;  %v7244_v29 = vpop.f32.mrb[22].mxu1 }
 0x6b0   : > { %v16148_v38 = vpack.c.bf16 %v7244_v29, %v7241_v12  ;;  %v7246_v43 = vpop.f32.mrb[23].mxu1 }
 0x6b1   : > { %8373 = vrot.lane.b32.xlu0 %v16146_v60, %s13203_s23  ;;  %v11987_v2 = vpop.f32.mrb[24].mxu0 }
 0x6b2   : > { %8375 = vrot.lane.b32.xlu1 %v16148_v38, %s13203_s23  ;;  %v11988_v16 = vpop.f32.mrb[25].mxu0 }
 0x6b3   : > { %v11989_v59 = vadd.f32 %v11988_v16, %v11987_v2  ;;  %v11990_v62 = vpop.f32.mrb[26].mxu0 }
 0x6b4   : > { %v11991_v14 = vpop.f32.mrb[27].mxu0 }
 0x6b5   : > { %v11992_v39 = vadd.f32 %v11991_v14, %v11990_v62  ;;  %v7249_v28 = vpop.f32.mrb[24].mxu1  ;;  %v12947_v14 = vld [vmem:[%s17307_s5 + $0xf4] ss:$8 sps:$4 sm:$0xff]  }
 0x6b6   : > { %v7251_v49 = vpop.f32.mrb[25].mxu1  ;;  %11312 = vmatprep.mubr.msk.bf16.mxu1 %vm3405_vm4, %v12947_v14  ;;  %v12918_v14 = vld [vmem:[%s17307_s5 + $0x210] ss:$8 sps:$4 sm:$0xff]  }
 0x6b7   : > { %v16154_v30 = vpack.c.bf16 %v11992_v39, %v11989_v59  ;;  %v7252_v4 = vpop.f32.mrb[26].mxu1 }
 0x6b8   : > { %v16159_v47 = vpack.c.bf16 %v7252_v4, %v7249_v28  ;;  %v7254_v8 = vpop.f32.mrb[27].mxu1 }
 0x6b9   : > { %8377 = vrot.lane.b32.xlu0 %v16154_v30, %s13203_s23  ;;  %v11993_v11 = vpop.f32.mrb[28].mxu0 }
 0x6ba   : > { %8379 = vrot.lane.b32.xlu1 %v16159_v47, %s13203_s23  ;;  %v11994_v58 = vpop.f32.mrb[29].mxu0 }
 0x6bb   : > { %v11995_v35 = vadd.f32 %v11994_v58, %v11993_v11  ;;  %v11996_v22 = vpop.f32.mrb[30].mxu0 }
 0x6bc   : > { %v11997_v36 = vpop.f32.mrb[31].mxu0 }
 0x6bd   : > { %v11998_v44 = vadd.f32 %v11997_v36, %v11996_v22  ;;  %v7257_v50 = vpop.f32.mrb[28].mxu1 }
 0x6be   : > { %v7259_v17 = vpop.f32.mrb[29].mxu1 }
 0x6bf   : > { %v16166_v55 = vpack.c.bf16 %v11998_v44, %v11995_v35  ;;  %v7260_v6 = vpop.f32.mrb[30].mxu1 }
 0x6c0   : > { %v16168_v19 = vpack.c.bf16 %v7260_v6, %v7257_v50  ;;  %v7262_v34 = vpop.f32.mrb[31].mxu1  ;;  %v12909_v6 = vld [vmem:[%s17307_s5 + $0x1e0] ss:$8 sps:$4 sm:$0xff]  }
 0x6c1   : > { %8381 = vrot.lane.b32.xlu0 %v16166_v55, %s13203_s23 }
 0x6c2   : > { %8383 = vrot.lane.b32.xlu1 %v16168_v19, %s13203_s23 }
 0x6c5   : > { %7496 = vrot.lane.b32.xlu0 %v16074_v26, %s13202_s22 }
 0x6c6   : > { %7498 = vrot.lane.b32.xlu1 %v16076_v40, %s13202_s22 }
 0x6c9   : > { %8875 = vrot.lane.b32.xlu0 %v16074_v26, %s13204_s27 }
 0x6ca   : > { %8877 = vrot.lane.b32.xlu1 %v16076_v40, %s13204_s27 }
 0x6cd   : > { %7500 = vrot.lane.b32.xlu0 %v16082_v61, %s13202_s22 }
 0x6ce   : > { %7502 = vrot.lane.b32.xlu1 %v16084_v31, %s13202_s22 }
 0x6d1   : > { %8879 = vrot.lane.b32.xlu0 %v16082_v61, %s13204_s27 }
 0x6d2   : > { %8881 = vrot.lane.b32.xlu1 %v16084_v31, %s13204_s27 }
 0x6d5   : > { %7504 = vrot.lane.b32.xlu0 %v16090_v27, %s13202_s22 }
 0x6d6   : > { %7506 = vrot.lane.b32.xlu1 %v16092_v63, %s13202_s22 }
 0x6d9   : > { %8883 = vrot.lane.b32.xlu0 %v16090_v27, %s13204_s27 }
 0x6da   : > { %8885 = vrot.lane.b32.xlu1 %v16092_v63, %s13204_s27 }
 0x6db   : > { %v8338_v1 = vpop.permute.xlu0 %8337 }
 0x6dc   : > { %v8340_v46 = vpop.permute.xlu1 %8339 }
 0x6dd   : > { %v8385_v41 = vsel %vm4427_vm6, %v8338_v1, %v8340_v46  ;;  %8466 = vmatprep.subr.bf16.mxu0 %v8340_v46  ;;  %7508 = vrot.lane.b32.xlu0 %v16098_v5, %s13202_s22  ;;  %v12914_v1 = vld [vmem:[%s17307_s5 + $0x1f4] ss:$8 sps:$4 sm:$0xff]  }
 0x6de   : > { %7510 = vrot.lane.b32.xlu1 %v16100_v10, %s13202_s22  ;;  %8467 = vmatpush1.bf16.msra.mxu0 %v8385_v41 }
 0x6e1   : > { %8887 = vrot.lane.b32.xlu0 %v16098_v5, %s13204_s27 }
 0x6e2   : > { %8889 = vrot.lane.b32.xlu1 %v16100_v10, %s13204_s27 }
 0x6e3   : > { %v8342_v13 = vpop.permute.xlu0 %8341 }
 0x6e4   : > { %v8344_v33 = vpop.permute.xlu1 %8343 }
 0x6e5   : > { %v8386_v3 = vsel %vm4427_vm6, %v8342_v13, %v8344_v33  ;;  %8468 = vmatprep.subr.bf16.mxu0 %v8344_v33  ;;  %7512 = vrot.lane.b32.xlu0 %v16106_v57, %s13202_s22 }
 0x6e6   : > { %7514 = vrot.lane.b32.xlu1 %v16108_v25, %s13202_s22  ;;  %8469 = vmatpush1.bf16.msra.mxu0 %v8386_v3 }
 0x6e9   : > { %8891 = vrot.lane.b32.xlu0 %v16106_v57, %s13204_s27 }
 0x6ea   : > { %8893 = vrot.lane.b32.xlu1 %v16108_v25, %s13204_s27 }
 0x6eb   : > { %v8346_v54 = vpop.permute.xlu0 %8345 }
 0x6ec   : > { %v8348_v21 = vpop.permute.xlu1 %8347 }
 0x6ed   : > { %v8387_v20 = vsel %vm4427_vm6, %v8346_v54, %v8348_v21  ;;  %8470 = vmatprep.subr.bf16.mxu0 %v8348_v21  ;;  %7516 = vrot.lane.b32.xlu0 %v16114_v53, %s13202_s22  ;;  %v12912_v54 = vld [vmem:[%s17307_s5 + $0x1f0] ss:$8 sps:$4 sm:$0xff]  }
 0x6ee   : > { %7518 = vrot.lane.b32.xlu1 %v16116_v51, %s13202_s22  ;;  %8471 = vmatpush1.bf16.msra.mxu0 %v8387_v20  ;;  %v12917_v20 = vld [vmem:[%s17307_s5 + $0x204] ss:$8 sps:$4 sm:$0xff]  }
 0x6f1   : > { %8895 = vrot.lane.b32.xlu0 %v16114_v53, %s13204_s27 }
 0x6f2   : > { %8897 = vrot.lane.b32.xlu1 %v16116_v51, %s13204_s27 }
 0x6f3   : > { %v8350_v32 = vpop.permute.xlu0 %8349 }
 0x6f4   : > { %v8352_v45 = vpop.permute.xlu1 %8351 }
 0x6f5   : > { %v8388_v0 = vsel %vm4427_vm6, %v8350_v32, %v8352_v45  ;;  %8472 = vmatprep.subr.bf16.mxu0 %v8352_v45  ;;  %7520 = vrot.lane.b32.xlu0 %v16122_v23, %s13202_s22 }
 0x6f6   : > { %7522 = vrot.lane.b32.xlu1 %v16124_v37, %s13202_s22  ;;  %8473 = vmatpush1.bf16.msra.mxu0 %v8388_v0 }
 0x6f9   : > { %8899 = vrot.lane.b32.xlu0 %v16122_v23, %s13204_s27 }
 0x6fa   : > { %8901 = vrot.lane.b32.xlu1 %v16124_v37, %s13204_s27 }
 0x6fb   : > { %v8354_v7 = vpop.permute.xlu0 %8353 }
 0x6fc   : > { %v8356_v24 = vpop.permute.xlu1 %8355 }
 0x6fd   : > { %v8389_v12 = vsel %vm4427_vm6, %v8354_v7, %v8356_v24  ;;  %8474 = vmatprep.subr.bf16.mxu0 %v8356_v24  ;;  %7524 = vrot.lane.b32.xlu0 %v16130_v42, %s13202_s22 }
 0x6fe   : > { %7526 = vrot.lane.b32.xlu1 %v16132_v52, %s13202_s22  ;;  %8475 = vmatpush1.bf16.msra.mxu0 %v8389_v12  ;;  %v12915_v12 = vld [vmem:[%s17307_s5 + $0x200] ss:$8 sps:$4 sm:$0xff]  }
 0x701   : > { %8903 = vrot.lane.b32.xlu0 %v16130_v42, %s13204_s27 }
 0x702   : > { %8905 = vrot.lane.b32.xlu1 %v16132_v52, %s13204_s27 }
 0x703   : > { %v8358_v18 = vpop.permute.xlu0 %8357 }
 0x704   : > { %v8360_v29 = vpop.permute.xlu1 %8359 }
 0x705   : > { %v8390_v43 = vsel %vm4427_vm6, %v8358_v18, %v8360_v29  ;;  %8476 = vmatprep.subr.bf16.mxu0 %v8360_v29  ;;  %7528 = vrot.lane.b32.xlu0 %v16138_v15, %s13202_s22  ;;  %v12920_v29 = vld [vmem:[%s17307_s5 + $0x214] ss:$8 sps:$4 sm:$0xff]  }
 0x706   : > { %7530 = vrot.lane.b32.xlu1 %v16140_v56, %s13202_s22  ;;  %8477 = vmatpush1.bf16.msra.mxu0 %v8390_v43 }
 0x709   : > { %8907 = vrot.lane.b32.xlu0 %v16138_v15, %s13204_s27 }
 0x70a   : > { %8909 = vrot.lane.b32.xlu1 %v16140_v56, %s13204_s27 }
 0x70b   : > { %v8362_v2 = vpop.permute.xlu0 %8361 }
 0x70c   : > { %v8364_v16 = vpop.permute.xlu1 %8363 }
 0x70d   : > { %v8391_v59 = vsel %vm4427_vm6, %v8362_v2, %v8364_v16  ;;  %8478 = vmatprep.subr.bf16.mxu0 %v8364_v16  ;;  %7532 = vrot.lane.b32.xlu0 %v16146_v60, %s13202_s22 }
 0x70e   : > { %7534 = vrot.lane.b32.xlu1 %v16148_v38, %s13202_s22  ;;  %8479 = vmatpush1.bf16.msra.mxu0 %v8391_v59 }
 0x711   : > { %8911 = vrot.lane.b32.xlu0 %v16146_v60, %s13204_s27 }
 0x712   : > { %8913 = vrot.lane.b32.xlu1 %v16148_v38, %s13204_s27 }
 0x713   : > { %v8366_v62 = vpop.permute.xlu0 %8365 }
 0x714   : > { %v8368_v39 = vpop.permute.xlu1 %8367 }
 0x715   : > { %v8392_v28 = vsel %vm4427_vm6, %v8366_v62, %v8368_v39  ;;  %8480 = vmatprep.subr.bf16.mxu0 %v8368_v39  ;;  %7536 = vrot.lane.b32.xlu0 %v16154_v30, %s13202_s22 }
 0x716   : > { %7538 = vrot.lane.b32.xlu1 %v16159_v47, %s13202_s22  ;;  %8481 = vmatpush1.bf16.msra.mxu0 %v8392_v28  ;;  %v12923_v28 = vld [vmem:[%s17307_s5 + $0x224] ss:$8 sps:$4 sm:$0xff]  }
 0x719   : > { %8915 = vrot.lane.b32.xlu0 %v16154_v30, %s13204_s27 }
 0x71a   : > { %8917 = vrot.lane.b32.xlu1 %v16159_v47, %s13204_s27 }
 0x71b   : > { %v8370_v49 = vpop.permute.xlu0 %8369 }
 0x71c   : > { %v8372_v4 = vpop.permute.xlu1 %8371 }
 0x71d   : > { %v8393_v48 = vsel %vm4427_vm6, %v8370_v49, %v8372_v4  ;;  %8482 = vmatprep.subr.bf16.mxu0 %v8372_v4  ;;  %7540 = vrot.lane.b32.xlu0 %v16166_v55, %s13202_s22 }
 0x71e   : > { %7542 = vrot.lane.b32.xlu1 %v16168_v19, %s13202_s22  ;;  %8483 = vmatpush1.bf16.msra.mxu0 %v8393_v48 }
 0x721   : > { %8919 = vrot.lane.b32.xlu0 %v16166_v55, %s13204_s27 }
 0x722   : > { %8921 = vrot.lane.b32.xlu1 %v16168_v19, %s13204_s27 }
 0x723   : > { %v8374_v8 = vpop.permute.xlu0 %8373 }
 0x724   : > { %v8376_v11 = vpop.permute.xlu1 %8375 }
 0x725   : > { %v8394_v58 = vsel %vm4427_vm6, %v8374_v8, %v8376_v11  ;;  %8484 = vmatprep.subr.bf16.mxu0 %v8376_v11  ;;  %9413 = vrot.lane.b32.xlu0 %v16074_v26, %s13205_s28  ;;  %v9786_v8 = vld [vmem:[%s17308_s6 + $0x8] sm:$0xff]  ;;  %v9785_v11 = vld [vmem:[%s17308_s6] sm:$0xff] }
 0x726   : > { %9415 = vrot.lane.b32.xlu1 %v16076_v40, %s13205_s28  ;;  %8485 = vmatpush1.bf16.msra.mxu0 %v8394_v58 }
 0x729   : > { %9417 = vrot.lane.b32.xlu0 %v16082_v61, %s13205_s28 }
 0x72a   : > { %9419 = vrot.lane.b32.xlu1 %v16084_v31, %s13205_s28 }
 0x72b   : > { %v8378_v35 = vpop.permute.xlu0 %8377 }
 0x72c   : > { %v8380_v22 = vpop.permute.xlu1 %8379 }
 0x72d   : > { %v8395_v36 = vsel %vm4427_vm6, %v8378_v35, %v8380_v22  ;;  %8486 = vmatprep.subr.bf16.mxu0 %v8380_v22  ;;  %9421 = vrot.lane.b32.xlu0 %v16090_v27, %s13205_s28  ;;  %v12921_v22 = vld [vmem:[%s17307_s5 + $0x220] ss:$8 sps:$4 sm:$0xff]  }
 0x72e   : > { %9423 = vrot.lane.b32.xlu1 %v16092_v63, %s13205_s28  ;;  %8487 = vmatpush1.bf16.msra.mxu0 %v8395_v36 }
 0x731   : > { %9425 = vrot.lane.b32.xlu0 %v16098_v5, %s13205_s28 }
 0x732   : > { %9427 = vrot.lane.b32.xlu1 %v16100_v10, %s13205_s28 }
 0x733   : > { %v8382_v44 = vpop.permute.xlu0 %8381 }
 0x734   : > { %v8384_v50 = vpop.permute.xlu1 %8383 }
 0x735   : > { %v8396_v17 = vsel %vm4427_vm6, %v8382_v44, %v8384_v50  ;;  %8488 = vmatprep.subr.bf16.mxu0 %v8384_v50  ;;  %9429 = vrot.lane.b32.xlu0 %v16106_v57, %s13205_s28  ;;  %v9788_v44 = vld [vmem:[%s17308_s6 + $0x18] sm:$0xff]  ;;  %v9787_v50 = vld [vmem:[%s17308_s6 + $0x10] sm:$0xff] }
 0x736   : > { %9431 = vrot.lane.b32.xlu1 %v16108_v25, %s13205_s28  ;;  %8489 = vmatpush1.bf16.msra.mxu0 %v8396_v17  ;;  %v12926_v17 = vld [vmem:[%s17307_s5 + $0x234] ss:$8 sps:$4 sm:$0xff]  }
 0x737   : > { %v7497_v34 = vpop.permute.xlu0 %7496 }
 0x738   : > { %v7499_v46 = vpop.permute.xlu1 %7498 }
 0x739   : > { %v7544_v41 = vsel %vm3320_vm5, %v7497_v34, %v7499_v46  ;;  %7625 = vmatprep.subr.bf16.mxu1 %v7499_v46  ;;  %8499 = vmatmul.mubr.bf16.vlgmr.msra.gmra.mrb[32].mxu0 %v12909_v6  ;;  %v9790_v46 = vld [vmem:[%s17308_s6 + $0x28] sm:$0xff] }
 0x73a   : > { %9435 = vrot.lane.b32.xlu1 %v16116_v51, %s13205_s28  ;;  %9433 = vrot.lane.b32.xlu0 %v16114_v53, %s13205_s28 }
 0x73b   : > { %7626 = vmatpush1.bf16.msra.mxu1 %v7544_v41  ;;  %v8876_v13 = vpop.permute.xlu0 %8875  ;;  %11433 = vmatprep.mubr.msk.bf16.mxu0 %vm3405_vm4, %v12914_v1  ;;  %v9789_v41 = vld [vmem:[%s17308_s6 + $0x20] sm:$0xff] }
 0x73c   : > { %v8878_v33 = vpop.permute.xlu1 %8877 }
 0x73d   : > { %v8923_v3 = vsel %vm5179_vm7, %v8876_v13, %v8878_v33  ;;  %9004 = vmatprep.subr.bf16.mxu0 %v8878_v33 }
 0x73e   : > { %9439 = vrot.lane.b32.xlu1 %v16124_v37, %s13205_s28  ;;  %9437 = vrot.lane.b32.xlu0 %v16122_v23, %s13205_s28 }
 0x73f   : > { %9005 = vmatpush1.bf16.msra.mxu0 %v8923_v3  ;;  %v7501_v21 = vpop.permute.xlu0 %7500  ;;  %v12924_v3 = vld [vmem:[%s17307_s5 + $0x230] ss:$8 sps:$4 sm:$0xff]  }
 0x740   : > { %v7503_v32 = vpop.permute.xlu1 %7502 }
 0x741   : > { %v7545_v45 = vsel %vm3320_vm5, %v7501_v21, %v7503_v32  ;;  %7627 = vmatprep.subr.bf16.mxu1 %v7503_v32  ;;  %8509 = vmatmul.mubr.bf16.gmra.mrb[36].mxu0 %v12912_v54  ;;  %v9792_v21 = vld [vmem:[%s17308_s6 + $0x38] sm:$0xff]  ;;  %v12929_v32 = vld [vmem:[%s17307_s5 + $0x244] ss:$8 sps:$4 sm:$0xff]  }
 0x742   : > { %9443 = vrot.lane.b32.xlu1 %v16132_v52, %s13205_s28  ;;  %9441 = vrot.lane.b32.xlu0 %v16130_v42, %s13205_s28 }
 0x743   : > { %7628 = vmatpush1.bf16.msra.mxu1 %v7545_v45  ;;  %v8880_v0 = vpop.permute.xlu0 %8879  ;;  %11434 = vmatprep.mubr.msk.bf16.mxu0 %vm3405_vm4, %v12917_v20  ;;  %v9791_v20 = vld [vmem:[%s17308_s6 + $0x30] sm:$0xff] }
 0x744   : > { %v8882_v7 = vpop.permute.xlu1 %8881 }
 0x745   : > { %v8924_v24 = vsel %vm5179_vm7, %v8880_v0, %v8882_v7  ;;  %9006 = vmatprep.subr.bf16.mxu0 %v8882_v7 }
 0x746   : > { %9447 = vrot.lane.b32.xlu1 %v16140_v56, %s13205_s28  ;;  %9445 = vrot.lane.b32.xlu0 %v16138_v15, %s13205_s28 }
 0x747   : > { %9007 = vmatpush1.bf16.msra.mxu0 %v8924_v24  ;;  %v7505_v18 = vpop.permute.xlu0 %7504  ;;  %v9794_v24 = vld [vmem:[%s17308_s6 + $0x48] sm:$0xff] }
 0x748   : > { %v7507_v43 = vpop.permute.xlu1 %7506 }
 0x749   : > { %v7546_v2 = vsel %vm3320_vm5, %v7505_v18, %v7507_v43  ;;  %7629 = vmatprep.subr.bf16.mxu1 %v7507_v43  ;;  %8519 = vmatmul.mubr.bf16.gmra.mrb[40].mxu0 %v12915_v12  ;;  %v9793_v12 = vld [vmem:[%s17308_s6 + $0x40] sm:$0xff] }
 0x74a   : > { %9451 = vrot.lane.b32.xlu1 %v16148_v38, %s13205_s28  ;;  %9449 = vrot.lane.b32.xlu0 %v16146_v60, %s13205_s28  ;;  %v12927_v43 = vld [vmem:[%s17307_s5 + $0x240] ss:$8 sps:$4 sm:$0xff]  }
 0x74b   : > { %7630 = vmatpush1.bf16.msra.mxu1 %v7546_v2  ;;  %v8884_v16 = vpop.permute.xlu0 %8883  ;;  %11435 = vmatprep.mubr.msk.bf16.mxu0 %vm3405_vm4, %v12920_v29 }
 0x74c   : > { %v8886_v59 = vpop.permute.xlu1 %8885 }
 0x74d   : > { %v8925_v62 = vsel %vm5179_vm7, %v8884_v16, %v8886_v59  ;;  %9008 = vmatprep.subr.bf16.mxu0 %v8886_v59  ;;  %v9796_v16 = vld [vmem:[%s17308_s6 + $0x58] sm:$0xff]  ;;  %v9795_v59 = vld [vmem:[%s17308_s6 + $0x50] sm:$0xff] }
 0x74e   : > { %9455 = vrot.lane.b32.xlu1 %v16159_v47, %s13205_s28  ;;  %9453 = vrot.lane.b32.xlu0 %v16154_v30, %s13205_s28 }
 0x74f   : > { %9009 = vmatpush1.bf16.msra.mxu0 %v8925_v62  ;;  %v7509_v39 = vpop.permute.xlu0 %7508  ;;  %v12932_v62 = vld [vmem:[%s17307_s5 + $0x254] ss:$8 sps:$4 sm:$0xff]  }
 0x750   : > { %v7511_v49 = vpop.permute.xlu1 %7510 }
 0x751   : > { %v7547_v4 = vsel %vm3320_vm5, %v7509_v39, %v7511_v49  ;;  %7631 = vmatprep.subr.bf16.mxu1 %v7511_v49  ;;  %8529 = vmatmul.mubr.bf16.gmra.mrb[44].mxu0 %v12918_v14  ;;  %v9798_v49 = vld [vmem:[%s17308_s6 + $0x68] sm:$0xff] }
 0x752   : > { %9459 = vrot.lane.b32.xlu1 %v16168_v19, %s13205_s28  ;;  %9457 = vrot.lane.b32.xlu0 %v16166_v55, %s13205_s28 }
 0x753   : > { %7632 = vmatpush1.bf16.msra.mxu1 %v7547_v4  ;;  %v8888_v48 = vpop.permute.xlu0 %8887  ;;  %11436 = vmatprep.mubr.msk.bf16.mxu0 %vm3405_vm4, %v12923_v28  ;;  %v9797_v4 = vld [vmem:[%s17308_s6 + $0x60] sm:$0xff] }
 0x754   : > { %v8890_v58 = vpop.permute.xlu1 %8889 }
 0x755   : > { %v8926_v35 = vsel %vm5179_vm7, %v8888_v48, %v8890_v58  ;;  %9010 = vmatprep.subr.bf16.mxu0 %v8890_v58 }
 0x756   : > { %9822 = vperm.xlu1 %12639, %v9786_v8   ;;  %9817 = vperm.xlu0 %12638, %v9785_v11   ;;  %v12930_v11 = vld [vmem:[%s17307_s5 + $0x250] ss:$8 sps:$4 sm:$0xff]  }
 0x757   : > { %9011 = vmatpush1.bf16.msra.mxu0 %v8926_v35  ;;  %v7513_v36 = vpop.permute.xlu0 %7512  ;;  %v9800_v35 = vld [vmem:[%s17308_s6 + $0x78] sm:$0xff] }
 0x758   : > { %v7515_v6 = vpop.permute.xlu1 %7514 }
 0x759   : > { %v7548_v34 = vsel %vm3320_vm5, %v7513_v36, %v7515_v6  ;;  %7633 = vmatprep.subr.bf16.mxu1 %v7515_v6  ;;  %8539 = vmatmul.mubr.bf16.gmra.mrb[48].mxu0 %v12921_v22  ;;  %v9799_v22 = vld [vmem:[%s17308_s6 + $0x70] sm:$0xff]  ;;  %v12935_v36 = vld [vmem:[%s17307_s5 + $0x264] ss:$8 sps:$4 sm:$0xff]  }
 0x75a   : > { %9832 = vperm.xlu1 %12639, %v9788_v44   ;;  %9827 = vperm.xlu0 %12638, %v9787_v50   ;;  %v9802_v6 = vld [vmem:[%s17308_s6 + $0x88] sm:$0xff] }
 0x75b   : > { %7634 = vmatpush1.bf16.msra.mxu1 %v7548_v34  ;;  %v8892_v1 = vpop.permute.xlu0 %8891  ;;  %11437 = vmatprep.mubr.msk.bf16.mxu0 %vm3405_vm4, %v12926_v17  ;;  %v9801_v34 = vld [vmem:[%s17308_s6 + $0x80] sm:$0xff] }
 0x75c   : > { %v8894_v13 = vpop.permute.xlu1 %8893 }
 0x75d   : > { %v8927_v33 = vsel %vm5179_vm7, %v8892_v1, %v8894_v13  ;;  %9012 = vmatprep.subr.bf16.mxu0 %v8894_v13 }
 0x75e   : > { %9842 = vperm.xlu1 %12639, %v9790_v46   ;;  %9837 = vperm.xlu0 %12638, %v9789_v41   ;;  %v12933_v41 = vld [vmem:[%s17307_s5 + $0x260] ss:$8 sps:$4 sm:$0xff]  }
 0x75f   : > { %9013 = vmatpush1.bf16.msra.mxu0 %v8927_v33  ;;  %v7517_v54 = vpop.permute.xlu0 %7516  ;;  %v9804_v33 = vld [vmem:[%s17308_s6 + $0x98] sm:$0xff] }
 0x760   : > { %v7519_v45 = vpop.permute.xlu1 %7518 }
 0x761   : > { %v7549_v0 = vsel %vm3320_vm5, %v7517_v54, %v7519_v45  ;;  %7635 = vmatprep.subr.bf16.mxu1 %v7519_v45  ;;  %8549 = vmatmul.mubr.bf16.gmra.mrb[52].mxu0 %v12924_v3  ;;  %v9803_v3 = vld [vmem:[%s17308_s6 + $0x90] sm:$0xff]  ;;  %v9806_v45 = vld [vmem:[%s17308_s6 + $0xa8] sm:$0xff] }
 0x762   : > { %9852 = vperm.xlu1 %12639, %v9792_v21   ;;  %9847 = vperm.xlu0 %12638, %v9791_v20   ;;  %v12938_v54 = vld [vmem:[%s17307_s5 + $0x274] ss:$8 sps:$4 sm:$0xff]  }
 0x763   : > { %7636 = vmatpush1.bf16.msra.mxu1 %v7549_v0  ;;  %v8896_v7 = vpop.permute.xlu0 %8895  ;;  %11438 = vmatprep.mubr.msk.bf16.mxu0 %vm3405_vm4, %v12929_v32  ;;  %v9805_v0 = vld [vmem:[%s17308_s6 + $0xa0] sm:$0xff] }
 0x764   : > { %v8898_v18 = vpop.permute.xlu1 %8897 }
 0x765   : > { %v8928_v29 = vsel %vm5179_vm7, %v8896_v7, %v8898_v18  ;;  %9014 = vmatprep.subr.bf16.mxu0 %v8898_v18 }
 0x766   : > { %9862 = vperm.xlu1 %12639, %v9794_v24   ;;  %9857 = vperm.xlu0 %12638, %v9793_v12   ;;  %v12936_v12 = vld [vmem:[%s17307_s5 + $0x270] ss:$8 sps:$4 sm:$0xff]  }
 0x767   : > { %9015 = vmatpush1.bf16.msra.mxu0 %v8928_v29  ;;  %v7521_v2 = vpop.permute.xlu0 %7520  ;;  %v9808_v29 = vld [vmem:[%s17308_s6 + $0xb8] sm:$0xff] }
 0x768   : > { %v7523_v14 = vpop.permute.xlu1 %7522 }
 0x769   : > { %v7550_v39 = vsel %vm3320_vm5, %v7521_v2, %v7523_v14  ;;  %7637 = vmatprep.subr.bf16.mxu1 %v7523_v14  ;;  %8559 = vmatmul.mubr.bf16.gmra.mrb[56].mxu0 %v12927_v43  ;;  %v9807_v43 = vld [vmem:[%s17308_s6 + $0xb0] sm:$0xff]  ;;  %v12941_v2 = vld [vmem:[%s17307_s5 + $0x284] ss:$8 sps:$4 sm:$0xff]  }
 0x76a   : > { %9872 = vperm.xlu1 %12639, %v9796_v16   ;;  %9867 = vperm.xlu0 %12638, %v9795_v59   ;;  %v9810_v14 = vld [vmem:[%s17308_s6 + $0xc8] sm:$0xff] }
 0x76b   : > { %7638 = vmatpush1.bf16.msra.mxu1 %v7550_v39  ;;  %v8900_v28 = vpop.permute.xlu0 %8899  ;;  %11439 = vmatprep.mubr.msk.bf16.mxu0 %vm3405_vm4, %v12932_v62  ;;  %v9809_v39 = vld [vmem:[%s17308_s6 + $0xc0] sm:$0xff] }
 0x76c   : > { %v8902_v48 = vpop.permute.xlu1 %8901 }
 0x76d   : > { %v8929_v8 = vsel %vm5179_vm7, %v8900_v28, %v8902_v48  ;;  %9016 = vmatprep.subr.bf16.mxu0 %v8902_v48 }
 0x76e   : > { %9882 = vperm.xlu1 %12639, %v9798_v49   ;;  %9877 = vperm.xlu0 %12638, %v9797_v4   ;;  %v12939_v4 = vld [vmem:[%s17307_s5 + $0x280] ss:$8 sps:$4 sm:$0xff]  }
 0x76f   : > { %9017 = vmatpush1.bf16.msra.mxu0 %v8929_v8  ;;  %v7525_v58 = vpop.permute.xlu0 %7524  ;;  %v9812_v8 = vld [vmem:[%s17308_s6 + $0xd8] sm:$0xff] }
 0x770   : > { %v7527_v44 = vpop.permute.xlu1 %7526 }
 0x771   : > { %v7551_v50 = vsel %vm3320_vm5, %v7525_v58, %v7527_v44  ;;  %7639 = vmatprep.subr.bf16.mxu1 %v7527_v44  ;;  %8569 = vmatmul.mubr.bf16.gmra.mrb[60].mxu0 %v12930_v11  ;;  %v9811_v11 = vld [vmem:[%s17308_s6 + $0xd0] sm:$0xff]  ;;  %v9814_v44 = vld [vmem:[%s17308_s6 + $0xe8] sm:$0xff] }
 0x772   : > { %9892 = vperm.xlu1 %12639, %v9800_v35   ;;  %9887 = vperm.xlu0 %12638, %v9799_v22   ;;  %v12944_v58 = vld [vmem:[%s17307_s5 + $0x294] ss:$8 sps:$4 sm:$0xff]  }
 0x773   : > { %7640 = vmatpush1.bf16.msra.mxu1 %v7551_v50  ;;  %v8904_v17 = vpop.permute.xlu0 %8903  ;;  %11440 = vmatprep.mubr.msk.bf16.mxu0 %vm3405_vm4, %v12935_v36  ;;  %v9813_v50 = vld [vmem:[%s17308_s6 + $0xe0] sm:$0xff] }
 0x774   : > { %v8906_v1 = vpop.permute.xlu1 %8905 }
 0x775   : > { %v8930_v46 = vsel %vm5179_vm7, %v8904_v17, %v8906_v1  ;;  %9018 = vmatprep.subr.bf16.mxu0 %v8906_v1  ;;  %v12950_v1 = vld [vmem:[%s17307_s5 + $0x2a4] ss:$8 sps:$4 sm:$0xff]  }
 0x776   : > { %9902 = vperm.xlu1 %12639, %v9802_v6   ;;  %9897 = vperm.xlu0 %12638, %v9801_v34   ;;  %v12942_v34 = vld [vmem:[%s17307_s5 + $0x290] ss:$8 sps:$4 sm:$0xff]  }
 0x777   : > { %9019 = vmatpush1.bf16.msra.mxu0 %v8930_v46  ;;  %v7529_v13 = vpop.permute.xlu0 %7528 }
 0x778   : > { %v7531_v21 = vpop.permute.xlu1 %7530 }
 0x779   : > { %v7552_v20 = vsel %vm3320_vm5, %v7529_v13, %v7531_v21  ;;  %7641 = vmatprep.subr.bf16.mxu1 %v7531_v21  ;;  %8579 = vmatmul.mubr.bf16.gmra.mrb[64].mxu0 %v12933_v41 }
 0x77a   : > { %9912 = vperm.xlu1 %12639, %v9804_v33   ;;  %9907 = vperm.xlu0 %12638, %v9803_v3   ;;  %v12945_v33 = vld [vmem:[%s17307_s5 + $0xf0] ss:$8 sps:$4 sm:$0xff]  }
 0x77b   : > { %7642 = vmatpush1.bf16.msra.mxu1 %v7552_v20  ;;  %v8908_v32 = vpop.permute.xlu0 %8907  ;;  %11441 = vmatprep.mubr.msk.bf16.mxu0 %vm3405_vm4, %v12938_v54  ;;  %v12953_v54 = vld [vmem:[%s17307_s5 + $0x104] ss:$8 sps:$4 sm:$0xff]  }
 0x77c   : > { %v8910_v7 = vpop.permute.xlu1 %8909 }
 0x77d   : > { %v8931_v24 = vsel %vm5179_vm7, %v8908_v32, %v8910_v7  ;;  %9020 = vmatprep.subr.bf16.mxu0 %v8910_v7  ;;  %v12948_v32 = vld [vmem:[%s17307_s5 + $0x2a0] ss:$8 sps:$4 sm:$0xff]  }
 0x77e   : > { %9922 = vperm.xlu1 %12639, %v9806_v45   ;;  %9917 = vperm.xlu0 %12638, %v9805_v0   ;;  %v12951_v7 = vld [vmem:[%s17307_s5 + $0x100] ss:$8 sps:$4 sm:$0xff]  }
 0x77f   : > { %9021 = vmatpush1.bf16.msra.mxu0 %v8931_v24  ;;  %v7533_v18 = vpop.permute.xlu0 %7532 }
 0x780   : > { %v7535_v16 = vpop.permute.xlu1 %7534 }
 0x781   : > { %v7553_v59 = vsel %vm3320_vm5, %v7533_v18, %v7535_v16  ;;  %7643 = vmatprep.subr.bf16.mxu1 %v7535_v16  ;;  %8589 = vmatmul.mubr.bf16.gmra.mrb[68].mxu0 %v12936_v12 }
 0x782   : > { %9932 = vperm.xlu1 %12639, %v9808_v29   ;;  %9927 = vperm.xlu0 %12638, %v9807_v43  }
 0x783   : > { %7644 = vmatpush1.bf16.msra.mxu1 %v7553_v59  ;;  %v8912_v62 = vpop.permute.xlu0 %8911  ;;  %11442 = vmatprep.mubr.msk.bf16.mxu0 %vm3405_vm4, %v12941_v2  ;;  %v12974_v59 = vld [vmem:[%s17307_s5 + $0x2e4] ss:$8 sps:$4 sm:$0xff]  }
 0x784   : > { %v8914_v28 = vpop.permute.xlu1 %8913 }
 0x785   : > { %v8932_v49 = vsel %vm5179_vm7, %v8912_v62, %v8914_v28  ;;  %9022 = vmatprep.subr.bf16.mxu0 %v8914_v28 }
 0x786   : > { %9942 = vperm.xlu1 %12639, %v9810_v14   ;;  %9937 = vperm.xlu0 %12638, %v9809_v39   ;;  %v12972_v14 = vld [vmem:[%s17307_s5 + $0x2e0] ss:$8 sps:$4 sm:$0xff]  }
 0x787   : > { %9023 = vmatpush1.bf16.msra.mxu0 %v8932_v49  ;;  %v7537_v48 = vpop.permute.xlu0 %7536  ;;  %v12975_v49 = vld [vmem:[%s17307_s5 + $0x140] ss:$8 sps:$4 sm:$0xff]  }
 0x788   : > { %v7539_v35 = vpop.permute.xlu1 %7538 }
 0x789   : > { %v7554_v22 = vsel %vm3320_vm5, %v7537_v48, %v7539_v35  ;;  %7645 = vmatprep.subr.bf16.mxu1 %v7539_v35  ;;  %8599 = vmatmul.mubr.bf16.gmra.mrb[72].mxu0 %v12939_v4  ;;  %v12983_v4 = vld [vmem:[%s17307_s5 + $0x154] ss:$8 sps:$4 sm:$0xff]  }
 0x78a   : > { %9952 = vperm.xlu1 %12639, %v9812_v8   ;;  %9947 = vperm.xlu0 %12638, %v9811_v11   ;;  %v12978_v8 = vld [vmem:[%s17307_s5 + $0x2f0] ss:$8 sps:$4 sm:$0xff]  }
 0x78b   : > { %7646 = vmatpush1.bf16.msra.mxu1 %v7554_v22  ;;  %v8916_v36 = vpop.permute.xlu0 %8915  ;;  %11443 = vmatprep.mubr.msk.bf16.mxu0 %vm3405_vm4, %v12944_v58  ;;  %v12981_v11 = vld [vmem:[%s17307_s5 + $0x150] ss:$8 sps:$4 sm:$0xff]   ;;  %v12984_v22 = vld [vmem:[%s17307_s5 + $0x300] ss:$8 sps:$4 sm:$0xff]  }
 0x78c   : > { %v8918_v17 = vpop.permute.xlu1 %8917 }
 0x78d   : > { %v8933_v6 = vsel %vm5179_vm7, %v8916_v36, %v8918_v17  ;;  %9024 = vmatprep.subr.bf16.mxu0 %v8918_v17  ;;  %v12987_v17 = vld [vmem:[%s17307_s5 + $0x160] ss:$8 sps:$4 sm:$0xff]  }
 0x78e   : > { %9962 = vperm.xlu1 %12639, %v9814_v44   ;;  %9957 = vperm.xlu0 %12638, %v9813_v50  }
 0x78f   : > { %9025 = vmatpush1.bf16.msra.mxu0 %v8933_v6  ;;  %v7541_v46 = vpop.permute.xlu0 %7540  ;;  %v12995_v6 = vld [vmem:[%s17307_s5 + $0x174] ss:$8 sps:$4 sm:$0xff]  }
 0x790   : > { %v7543_v41 = vpop.permute.xlu1 %7542 }
 0x791   : > { %v7555_v13 = vsel %vm3320_vm5, %v7541_v46, %v7543_v41  ;;  %7647 = vmatprep.subr.bf16.mxu1 %v7543_v41  ;;  %8609 = vmatmul.mubr.bf16.gmra.mrb[76].mxu0 %v12942_v34 }
 0x792   : > { %7648 = vmatpush1.bf16.msra.mxu1 %v7555_v13  ;;  %11444 = vmatprep.mubr.msk.bf16.mxu0 %vm3405_vm4, %v12950_v1  ;;  %v12990_v1 = vld [vmem:[%s17307_s5 + $0x310] ss:$8 sps:$4 sm:$0xff]   ;;  %v12998_v13 = vld [vmem:[%s17307_s5 + $0x324] ss:$8 sps:$4 sm:$0xff]  }
 0x793   : > { %7988 = vmatprep.subr.bf16.mxu1 %v16076_v40  ;;  %v8920_v3 = vpop.permute.xlu0 %8919  ;;  %v12956_v40 = vld [vmem:[%s17307_s5 + $0x2b4] ss:$8 sps:$4 sm:$0xff]  }
 0x794   : > { %v8922_v21 = vpop.permute.xlu1 %8921 }
 0x795   : > { %v8934_v20 = vsel %vm5179_vm7, %v8920_v3, %v8922_v21  ;;  %7658 = vmatmul.mubr.bf16.vlgmr.msra.gmra.mrb[32].mxu1 %v12945_v33  ;;  %9026 = vmatprep.subr.bf16.mxu0 %v8922_v21  ;;  %v12993_v3 = vld [vmem:[%s17307_s5 + $0x170] ss:$8 sps:$4 sm:$0xff]  }
 0x796   : > { %7989 = vmatpush1.bf16.msra.mxu1 %v16074_v26  ;;  %9027 = vmatpush1.bf16.msra.mxu0 %v8934_v20  ;;  %v12959_v26 = vld [vmem:[%s17307_s5 + $0x114] ss:$8 sps:$4 sm:$0xff]  }
 0x797   : > { %7990 = vmatprep.subr.bf16.mxu1 %v16084_v31  ;;  %11313 = vmatprep.mubr.msk.bf16.mxu1 %vm3405_vm4, %v12953_v54  ;;  %v9414_v0 = vpop.permute.xlu0 %9413  ;;  %v12954_v31 = vld [vmem:[%s17307_s5 + $0x2b0] ss:$8 sps:$4 sm:$0xff]   ;;  %v13001_v54 = vld [vmem:[%s17307_s5 + $0x184] ss:$8 sps:$4 sm:$0xff]  }
 0x798   : > { %v9416_v45 = vpop.permute.xlu1 %9415 }
 0x799   : > { %8619 = vmatmul.mubr.bf16.gmra.mrb[80].mxu0 %v12948_v32  ;;  %9542 = vmatprep.subr.bf16.mxu0 %v9416_v45  ;;  %v9461_v62 = vsel %vm5931_vm8, %v9414_v0, %v9416_v45  ;;  %v13004_v45 = vld [vmem:[%s17307_s5 + $0x334] ss:$8 sps:$4 sm:$0xff]  }
 0x79a   : > { %7991 = vmatpush1.bf16.msra.mxu1 %v16082_v61  ;;  %11445 = vmatprep.mubr.msk.bf16.mxu0 %vm3405_vm4, %v12956_v40  ;;  %v12962_v61 = vld [vmem:[%s17307_s5 + $0x2c4] ss:$8 sps:$4 sm:$0xff]   ;;  %v12996_v40 = vld [vmem:[%s17307_s5 + $0x320] ss:$8 sps:$4 sm:$0xff]  }
 0x79b   : > { %7992 = vmatprep.subr.bf16.mxu1 %v16092_v63  ;;  %v9418_v12 = vpop.permute.xlu0 %9417  ;;  %v12957_v63 = vld [vmem:[%s17307_s5 + $0x110] ss:$8 sps:$4 sm:$0xff]  }
 0x79c   : > { %v9420_v24 = vpop.permute.xlu1 %9419 }
 0x79d   : > { %7668 = vmatmul.mubr.bf16.gmra.mrb[36].mxu1 %v12951_v7  ;;  %v12999_v7 = vld [vmem:[%s17307_s5 + $0x180] ss:$8 sps:$4 sm:$0xff]  }
 0x79e   : > { %7993 = vmatpush1.bf16.msra.mxu1 %v16090_v27  ;;  %11314 = vmatprep.mubr.msk.bf16.mxu1 %vm3405_vm4, %v12959_v26  ;;  %v12965_v27 = vld [vmem:[%s17307_s5 + $0x124] ss:$8 sps:$4 sm:$0xff]  }
 0x79f   : > { %7994 = vmatprep.subr.bf16.mxu1 %v16100_v10  ;;  %v9422_v29 = vpop.permute.xlu0 %9421  ;;  %v12960_v10 = vld [vmem:[%s17307_s5 + $0x2c0] ss:$8 sps:$4 sm:$0xff]  }
 0x7a0   : > { %v9424_v18 = vpop.permute.xlu1 %9423 }
 0x7a1   : > { %8629 = vmatmul.mubr.bf16.gmra.mrb[84].mxu0 %v12954_v31 }
 0x7a2   : > { %7995 = vmatpush1.bf16.msra.mxu1 %v16098_v5  ;;  %11446 = vmatprep.mubr.msk.bf16.mxu0 %vm3405_vm4, %v12962_v61  ;;  %v12968_v5 = vld [vmem:[%s17307_s5 + $0x2d4] ss:$8 sps:$4 sm:$0xff]   ;;  %v13002_v61 = vld [vmem:[%s17307_s5 + $0x330] ss:$8 sps:$4 sm:$0xff]  }
 0x7a3   : > { %7996 = vmatprep.subr.bf16.mxu1 %v16108_v25  ;;  %v12963_v25 = vld [vmem:[%s17307_s5 + $0x120] ss:$8 sps:$4 sm:$0xff]   ;;  %v9426_v2 = vpop.permute.xlu0 %9425 }
 0x7a4   : > { %v9428_v43 = vpop.permute.xlu1 %9427 }
 0x7a5   : > { %7678 = vmatmul.mubr.bf16.gmra.mrb[40].mxu1 %v12957_v63  ;;  %v9464_v48 = vsel %vm5931_vm8, %v9426_v2, %v9428_v43  ;;  %v13010_v63 = vld [vmem:[%s17307_s5 + $0x344] ss:$8 sps:$4 sm:$0xff]  }
 0x7a6   : > { %7997 = vmatpush1.bf16.msra.mxu1 %v16106_v57  ;;  %11315 = vmatprep.mubr.msk.bf16.mxu1 %vm3405_vm4, %v12965_v27  ;;  %v12971_v57 = vld [vmem:[%s17307_s5 + $0x134] ss:$8 sps:$4 sm:$0xff]   ;;  %v13005_v27 = vld [vmem:[%s17307_s5 + $0x190] ss:$8 sps:$4 sm:$0xff]   ;;  %v13022_v2 = vld [vmem:[%s17307_s5 + $0x364] ss:$8 sps:$4 sm:$0xff]  }
 0x7a7   : > { %7998 = vmatprep.subr.bf16.mxu1 %v16116_v51  ;;  %v12966_v51 = vld [vmem:[%s17307_s5 + $0x2d0] ss:$8 sps:$4 sm:$0xff]   ;;  %v9430_v16 = vpop.permute.xlu0 %9429 }
 0x7a9   : > { %8639 = vmatmul.mubr.bf16.gmra.mrb[88].mxu0 %v12960_v10  ;;  %v13016_v10 = vld [vmem:[%s17307_s5 + $0x354] ss:$8 sps:$4 sm:$0xff]  }
 0x7aa   : > { %7999 = vmatpush1.bf16.msra.mxu1 %v16114_v53  ;;  %11507 = vmatprep.mubr.msk.bf16.mxu0 %vm3405_vm4, %v12968_v5  ;;  %v9432_v53 = vpop.permute.xlu1 %9431  ;;  %v13011_v5 = vld [vmem:[%s17307_s5 + $0x1a0] ss:$8 sps:$4 sm:$0xff]  }
 0x7ab   : > { %8000 = vmatprep.subr.bf16.mxu1 %v16124_v37  ;;  %v12969_v37 = vld [vmem:[%s17307_s5 + $0x130] ss:$8 sps:$4 sm:$0xff]  }
 0x7ac   : > { %v9434_v28 = vpop.permute.xlu0 %9433 }
 0x7ad   : > { %7688 = vmatmul.mubr.bf16.gmra.mrb[44].mxu1 %v12963_v25  ;;  %v13019_v25 = vld [vmem:[%s17307_s5 + $0x1b4] ss:$8 sps:$4 sm:$0xff]  }
 0x7ae   : > { %8001 = vmatpush1.bf16.msra.mxu1 %v16122_v23  ;;  %11316 = vmatprep.mubr.msk.bf16.mxu1 %vm3405_vm4, %v12971_v57  ;;  %v12977_v23 = vld [vmem:[%s17307_s5 + $0x144] ss:$8 sps:$4 sm:$0xff]   ;;  %v9436_v39 = vpop.permute.xlu1 %9435  ;;  %v13017_v57 = vld [vmem:[%s17307_s5 + $0x1b0] ss:$8 sps:$4 sm:$0xff]  }
 0x7af   : > { %8002 = vmatprep.subr.bf16.mxu1 %v16132_v52  ;;  %v9462_v52 = vsel %vm5931_vm8, %v9418_v12, %v9420_v24 }
 0x7b1   : > { %9037 = vmatmul.mubr.bf16.vlgmr.msra.gmra.mrb[32].mxu0 %v12966_v51  ;;  %v13025_v51 = vld [vmem:[%s17307_s5 + $0x1c4] ss:$8 sps:$4 sm:$0xff]  }
 0x7b2   : > { %9543 = vmatpush1.bf16.msra.mxu0 %v9461_v62  ;;  %8003 = vmatpush1.bf16.msra.mxu1 %v16130_v42  ;;  %v12980_v42 = vld [vmem:[%s17307_s5 + $0x2f4] ss:$8 sps:$4 sm:$0xff]  }
 0x7b3   : > { %9544 = vmatprep.subr.bf16.mxu0 %v9420_v24  ;;  %8004 = vmatprep.subr.bf16.mxu1 %v16140_v56  ;;  %v9463_v56 = vsel %vm5931_vm8, %v9422_v29, %v9424_v18  ;;  %v13007_v24 = vld [vmem:[%s17307_s5 + $0x194] ss:$8 sps:$4 sm:$0xff]   ;;  %v13008_v29 = vld [vmem:[%s17307_s5 + $0x340] ss:$8 sps:$4 sm:$0xff]  }
 0x7b4   : > { %11508 = vmatprep.mubr.msk.bf16.mxu0 %vm3405_vm4, %v12974_v59  ;;  %v13023_v59 = vld [vmem:[%s17307_s5 + $0x1c0] ss:$8 sps:$4 sm:$0xff]   ;;  %v13031_v62 = vld [vmem:[%s17307_s5 + $0x1d4] ss:$8 sps:$4 sm:$0xff]  }
 0x7b5   : > { %7698 = vmatmul.mubr.bf16.gmra.mrb[48].mxu1 %v12969_v37  ;;  %v13026_v37 = vld [vmem:[%s17307_s5 + $0x370] ss:$8 sps:$4 sm:$0xff]  }
 0x7b6   : > { %9545 = vmatpush1.bf16.msra.mxu0 %v9462_v52  ;;  %8005 = vmatpush1.bf16.msra.mxu1 %v16138_v15  ;;  %v9440_v15 = vpop.permute.xlu1 %9439  ;;  %v13029_v52 = vld [vmem:[%s17307_s5 + $0x1d0] ss:$8 sps:$4 sm:$0xff]  }
 0x7b7   : > { %9546 = vmatprep.subr.bf16.mxu0 %v9424_v18  ;;  %8006 = vmatprep.subr.bf16.mxu1 %v16148_v38  ;;  %v9438_v38 = vpop.permute.xlu0 %9437  ;;  %v13013_v18 = vld [vmem:[%s17307_s5 + $0x1a4] ss:$8 sps:$4 sm:$0xff]  }
 0x7b8   : > { %11317 = vmatprep.mubr.msk.bf16.mxu1 %vm3405_vm4, %v12977_v23  ;;  %v9467_v50 = vsel %vm5931_vm8, %v9438_v38, %v9440_v15  ;;  %v13034_v23 = vld [vmem:[%s17307_s5 + $0x384] ss:$8 sps:$4 sm:$0xff]   ;;  %v13041_v38 = vld [vmem:[%s17307_s5 + $0x10] ss:$8 sps:$4 sm:$0xff]  }
 0x7b9   : > { %9047 = vmatmul.mubr.bf16.gmra.mrb[36].mxu0 %v12972_v14  ;;  %v13037_v14 = vld [vmem:[%s17307_s5 + $0x4] ss:$8 sps:$4 sm:$0xff]  }
 0x7ba   : > { %9547 = vmatpush1.bf16.msra.mxu0 %v9463_v56  ;;  %8007 = vmatpush1.bf16.msra.mxu1 %v16146_v60  ;;  %v12986_v60 = vld [vmem:[%s17307_s5 + $0x304] ss:$8 sps:$4 sm:$0xff]   ;;  %v9444_v58 = vpop.permute.xlu1 %9443  ;;  %v13043_v56 = vld [vmem:[%s17307_s5 + $0x14] ss:$8 sps:$4 sm:$0xff]  }
 0x7bb   : > { %9548 = vmatprep.subr.bf16.mxu0 %v9428_v43  ;;  %8008 = vmatprep.subr.bf16.mxu1 %v16159_v47  ;;  %v9465_v47 = vsel %vm5931_vm8, %v9430_v16, %v9432_v53  ;;  %v9442_v35 = vpop.permute.xlu0 %9441  ;;  %v13014_v43 = vld [vmem:[%s17307_s5 + $0x350] ss:$8 sps:$4 sm:$0xff]   ;;  %v13028_v16 = vld [vmem:[%s17307_s5 + $0x374] ss:$8 sps:$4 sm:$0xff]  }
 0x7bc   : > { %11509 = vmatprep.mubr.msk.bf16.mxu0 %vm3405_vm4, %v12980_v42  ;;  %v9468_v34 = vsel %vm5931_vm8, %v9442_v35, %v9444_v58  ;;  %v13035_v42 = vld [vmem:[%s17307_s5] ss:$8 sps:$4 sm:$0xff]   ;;  %v13053_v35 = vld [vmem:[%s17307_s5 + $0x30] ss:$8 sps:$4 sm:$0xff]  }
 0x7bd   : > { %7708 = vmatmul.mubr.bf16.gmra.mrb[52].mxu1 %v12975_v49  ;;  %v13038_v49 = vld [vmem:[%s17307_s5 + $0x390] ss:$8 sps:$4 sm:$0xff]  }
 0x7be   : > { %9549 = vmatpush1.bf16.msra.mxu0 %v9464_v48  ;;  %8009 = vmatpush1.bf16.msra.mxu1 %v16154_v30  ;;  %v12989_v30 = vld [vmem:[%s17307_s5 + $0x164] ss:$8 sps:$4 sm:$0xff]   ;;  %v9448_v36 = vpop.permute.xlu1 %9447  ;;  %v13044_v48 = vld [vmem:[%s17307_s5 + $0x3a0] ss:$8 sps:$4 sm:$0xff]  }
 0x7bf   : > { %9550 = vmatprep.subr.bf16.mxu0 %v9432_v53  ;;  %8010 = vmatprep.subr.bf16.mxu1 %v16168_v19  ;;  %v9466_v19 = vsel %vm5931_vm8, %v9434_v28, %v9436_v39  ;;  %v9446_v44 = vpop.permute.xlu0 %9445  ;;  %v13020_v53 = vld [vmem:[%s17307_s5 + $0x360] ss:$8 sps:$4 sm:$0xff]   ;;  %v13040_v28 = vld [vmem:[%s17307_s5 + $0x394] ss:$8 sps:$4 sm:$0xff]  }
 0x7c0   : > { %11318 = vmatprep.mubr.msk.bf16.mxu1 %vm3405_vm4, %v12983_v4  ;;  %v9469_v33 = vsel %vm5931_vm8, %v9446_v44, %v9448_v36  ;;  %v13049_v4 = vld [vmem:[%s17307_s5 + $0x24] ss:$8 sps:$4 sm:$0xff]   ;;  %v13062_v44 = vld [vmem:[%s17307_s5 + $0x3d0] ss:$8 sps:$4 sm:$0xff]  }
 0x7c1   : > { %9057 = vmatmul.mubr.bf16.gmra.mrb[40].mxu0 %v12978_v8  ;;  %v13052_v8 = vld [vmem:[%s17307_s5 + $0x3b4] ss:$8 sps:$4 sm:$0xff]  }
 0x7c2   : > { %9551 = vmatpush1.bf16.msra.mxu0 %v9465_v47  ;;  %8011 = vmatpush1.bf16.msra.mxu1 %v16166_v55  ;;  %v12992_v55 = vld [vmem:[%s17307_s5 + $0x314] ss:$8 sps:$4 sm:$0xff]   ;;  %v9452_v46 = vpop.permute.xlu1 %9451 }
 0x7c3   : > { %9552 = vmatprep.subr.bf16.mxu0 %v9436_v39  ;;  %11510 = vmatprep.mubr.msk.bf16.mxu0 %vm3405_vm4, %v12986_v60  ;;  %v9450_v41 = vpop.permute.xlu0 %9449  ;;  %v13032_v39 = vld [vmem:[%s17307_s5 + $0x380] ss:$8 sps:$4 sm:$0xff]   ;;  %v13055_v47 = vld [vmem:[%s17307_s5 + $0x34] ss:$8 sps:$4 sm:$0xff]  }
 0x7c4   : > { %v9470_v32 = vsel %vm5931_vm8, %v9450_v41, %v9452_v46  ;;  %v13047_v60 = vld [vmem:[%s17307_s5 + $0x20] ss:$8 sps:$4 sm:$0xff]   ;;  %v13079_v41 = vld [vmem:[%s17307_s5 + $0x74] ss:$8 sps:$4 sm:$0xff]  }
 0x7c5   : > { %7718 = vmatmul.mubr.bf16.gmra.mrb[56].mxu1 %v12981_v11  ;;  %v13050_v11 = vld [vmem:[%s17307_s5 + $0x3b0] ss:$8 sps:$4 sm:$0xff]  }
 0x7c6   : > { %9553 = vmatpush1.bf16.msra.mxu0 %v9466_v19  ;;  %11319 = vmatprep.mubr.msk.bf16.mxu1 %vm3405_vm4, %v12989_v30  ;;  %v9456_v21 = vpop.permute.xlu1 %9455  ;;  %v13061_v30 = vld [vmem:[%s17307_s5 + $0x44] ss:$8 sps:$4 sm:$0xff]   ;;  %v13056_v19 = vld [vmem:[%s17307_s5 + $0x3c0] ss:$8 sps:$4 sm:$0xff]  }
 0x7c7   : > { %9554 = vmatprep.subr.bf16.mxu0 %v9440_v15  ;;  %v9454_v20 = vpop.permute.xlu0 %9453  ;;  %v13046_v15 = vld [vmem:[%s17307_s5 + $0x3a4] ss:$8 sps:$4 sm:$0xff]  }
 0x7c8   : > { %v9471_v0 = vsel %vm5931_vm8, %v9454_v20, %v9456_v21  ;;  %v13088_v20 = vld [vmem:[%s17307_s5 + $0x414] ss:$8 sps:$4 sm:$0xff]  }
 0x7c9   : > { %9067 = vmatmul.mubr.bf16.gmra.mrb[44].mxu0 %v12984_v22  ;;  %v13064_v22 = vld [vmem:[%s17307_s5 + $0x3d4] ss:$8 sps:$4 sm:$0xff]  }
 0x7ca   : > { %9555 = vmatpush1.bf16.msra.mxu0 %v9467_v50  ;;  %11511 = vmatprep.mubr.msk.bf16.mxu0 %vm3405_vm4, %v12992_v55  ;;  %v9460_v26 = vpop.permute.xlu1 %9459  ;;  %v13059_v55 = vld [vmem:[%s17307_s5 + $0x40] ss:$8 sps:$4 sm:$0xff]   ;;  %v13070_v50 = vld [vmem:[%s17307_s5 + $0x3e4] ss:$8 sps:$4 sm:$0xff]  }
 0x7cb   : > { %9556 = vmatprep.subr.bf16.mxu0 %v9444_v58  ;;  %v9458_v31 = vpop.permute.xlu0 %9457  ;;  %v13058_v58 = vld [vmem:[%s17307_s5 + $0x3c4] ss:$8 sps:$4 sm:$0xff]  }
 0x7cc   : > { %v9472_v12 = vsel %vm5931_vm8, %v9458_v31, %v9460_v26  ;;  %v13092_v31 = vld [vmem:[%s17307_s5 + $0x420] ss:$8 sps:$4 sm:$0xff]  }
 0x7cd   : > { %7728 = vmatmul.mubr.bf16.gmra.mrb[60].mxu1 %v12987_v17  ;;  %v13065_v17 = vld [vmem:[%s17307_s5 + $0x50] ss:$8 sps:$4 sm:$0xff]  }
 0x7ce   : > { %9557 = vmatpush1.bf16.msra.mxu0 %v9468_v34  ;;  %11320 = vmatprep.mubr.msk.bf16.mxu1 %vm3405_vm4, %v12995_v6  ;;  %v13073_v6 = vld [vmem:[%s17307_s5 + $0x64] ss:$8 sps:$4 sm:$0xff]   ;;  %v13068_v34 = vld [vmem:[%s17307_s5 + $0x3e0] ss:$8 sps:$4 sm:$0xff]  }
 0x7cf   : > { %9558 = vmatprep.subr.bf16.mxu0 %v9448_v36  ;;  %v13067_v36 = vld [vmem:[%s17307_s5 + $0x54] ss:$8 sps:$4 sm:$0xff]  }
 0x7d1   : > { %9077 = vmatmul.mubr.bf16.gmra.mrb[48].mxu0 %v12990_v1  ;;  %v13076_v1 = vld [vmem:[%s17307_s5 + $0x3f4] ss:$8 sps:$4 sm:$0xff]  }
 0x7d2   : > { %9559 = vmatpush1.bf16.msra.mxu0 %v9469_v33  ;;  %11512 = vmatprep.mubr.msk.bf16.mxu0 %vm3405_vm4, %v12998_v13  ;;  %v13074_v13 = vld [vmem:[%s17307_s5 + $0x3f0] ss:$8 sps:$4 sm:$0xff]   ;;  %v13082_v33 = vld [vmem:[%s17307_s5 + $0x404] ss:$8 sps:$4 sm:$0xff]  }
 0x7d3   : > { %9560 = vmatprep.subr.bf16.mxu0 %v9452_v46  ;;  %v13071_v46 = vld [vmem:[%s17307_s5 + $0x60] ss:$8 sps:$4 sm:$0xff]  }
 0x7d5   : > { %7738 = vmatmul.mubr.bf16.gmra.mrb[64].mxu1 %v12993_v3  ;;  %v13077_v3 = vld [vmem:[%s17307_s5 + $0x70] ss:$8 sps:$4 sm:$0xff]  }
 0x7d6   : > { %9561 = vmatpush1.bf16.msra.mxu0 %v9470_v32  ;;  %11321 = vmatprep.mubr.msk.bf16.mxu1 %vm3405_vm4, %v13001_v54  ;;  %v13085_v54 = vld [vmem:[%s17307_s5 + $0x84] ss:$8 sps:$4 sm:$0xff]   ;;  %v13083_v32 = vld [vmem:[%s17307_s5 + $0x80] ss:$8 sps:$4 sm:$0xff]  }
 0x7d7   : > { %9562 = vmatprep.subr.bf16.mxu0 %v9456_v21  ;;  %v13080_v21 = vld [vmem:[%s17307_s5 + $0x400] ss:$8 sps:$4 sm:$0xff]  }
 0x7d9   : > { %9087 = vmatmul.mubr.bf16.gmra.mrb[52].mxu0 %v12996_v40  ;;  %v13091_v40 = vld [vmem:[%s17307_s5 + $0x94] ss:$8 sps:$4 sm:$0xff]  }
 0x7da   : > { %9563 = vmatpush1.bf16.msra.mxu0 %v9471_v0  ;;  %11513 = vmatprep.mubr.msk.bf16.mxu0 %vm3405_vm4, %v13004_v45  ;;  %v13086_v45 = vld [vmem:[%s17307_s5 + $0x410] ss:$8 sps:$4 sm:$0xff]   ;;  %v13094_v0 = vld [vmem:[%s17307_s5 + $0x424] ss:$8 sps:$4 sm:$0xff]  }
 0x7db   : > { %9564 = vmatprep.subr.bf16.mxu0 %v9460_v26  ;;  %v13097_v26 = vld [vmem:[%s17307_s5 + $0xa4] ss:$8 sps:$4 sm:$0xff]  }
 0x7dd   : > { %7748 = vmatmul.mubr.bf16.gmra.mrb[68].mxu1 %v12999_v7  ;;  %v13089_v7 = vld [vmem:[%s17307_s5 + $0x90] ss:$8 sps:$4 sm:$0xff]  }
 0x7de   : > { %9565 = vmatpush1.bf16.msra.mxu0 %v9472_v12  ;;  %11322 = vmatprep.mubr.msk.bf16.mxu1 %vm3405_vm4, %v13007_v24  ;;  %v13100_v24 = vld [vmem:[%s17307_s5 + $0x434] ss:$8 sps:$4 sm:$0xff]   ;;  %v13095_v12 = vld [vmem:[%s17307_s5 + $0xa0] ss:$8 sps:$4 sm:$0xff]  }
 0x7e1   : > { %9097 = vmatmul.mubr.bf16.gmra.mrb[56].mxu0 %v13002_v61  ;;  %v13103_v61 = vld [vmem:[%s17307_s5 + $0xb4] ss:$8 sps:$4 sm:$0xff]  }
 0x7e2   : > { %11514 = vmatprep.mubr.msk.bf16.mxu0 %vm3405_vm4, %v13010_v63  ;;  %v13098_v63 = vld [vmem:[%s17307_s5 + $0x430] ss:$8 sps:$4 sm:$0xff]  }
 0x7e5   : > { %7758 = vmatmul.mubr.bf16.gmra.mrb[72].mxu1 %v13005_v27  ;;  %v13106_v27 = vld [vmem:[%s17307_s5 + $0x444] ss:$8 sps:$4 sm:$0xff]  }
 0x7e6   : > { %11323 = vmatprep.mubr.msk.bf16.mxu1 %vm3405_vm4, %v13013_v18  ;;  %v13101_v18 = vld [vmem:[%s17307_s5 + $0xb0] ss:$8 sps:$4 sm:$0xff]  }
 0x7e9   : > { %9107 = vmatmul.mubr.bf16.gmra.mrb[60].mxu0 %v13008_v29  ;;  %v13109_v29 = vld [vmem:[%s17307_s5 + $0xc4] ss:$8 sps:$4 sm:$0xff]  }
 0x7ea   : > { %11515 = vmatprep.mubr.msk.bf16.mxu0 %vm3405_vm4, %v13016_v10  ;;  %v13104_v10 = vld [vmem:[%s17307_s5 + $0x440] ss:$8 sps:$4 sm:$0xff]  }
 0x7ed   : > { %7768 = vmatmul.mubr.bf16.gmra.mrb[76].mxu1 %v13011_v5  ;;  %v13112_v5 = vld [vmem:[%s17307_s5 + $0x454] ss:$8 sps:$4 sm:$0xff]  }
 0x7ee   : > { %11324 = vmatprep.mubr.msk.bf16.mxu1 %vm3405_vm4, %v13019_v25  ;;  %v13107_v25 = vld [vmem:[%s17307_s5 + $0xc0] ss:$8 sps:$4 sm:$0xff]  }
 0x7f1   : > { %9117 = vmatmul.mubr.bf16.gmra.mrb[64].mxu0 %v13014_v43  ;;  %v13115_v43 = vld [vmem:[%s17307_s5 + $0xd4] ss:$8 sps:$4 sm:$0xff]  }
 0x7f2   : > { %11516 = vmatprep.mubr.msk.bf16.mxu0 %vm3405_vm4, %v13022_v2  ;;  %v13110_v2 = vld [vmem:[%s17307_s5 + $0x450] ss:$8 sps:$4 sm:$0xff]  }
 0x7f5   : > { %7778 = vmatmul.mubr.bf16.gmra.mrb[80].mxu1 %v13017_v57  ;;  %v13118_v57 = vld [vmem:[%s17307_s5 + $0x464] ss:$8 sps:$4 sm:$0xff]  }
 0x7f6   : > { %11325 = vmatprep.mubr.msk.bf16.mxu1 %vm3405_vm4, %v13025_v51  ;;  %v13113_v51 = vld [vmem:[%s17307_s5 + $0xd0] ss:$8 sps:$4 sm:$0xff]  }
 0x7f9   : > { %9127 = vmatmul.mubr.bf16.gmra.mrb[68].mxu0 %v13020_v53  ;;  %v13121_v53 = vld [vmem:[%s17307_s5 + $0xe4] ss:$8 sps:$4 sm:$0xff]  }
 0x7fa   : > { %11517 = vmatprep.mubr.msk.bf16.mxu0 %vm3405_vm4, %v13028_v16  ;;  %v13116_v16 = vld [vmem:[%s17307_s5 + $0x460] ss:$8 sps:$4 sm:$0xff]  }
 0x7fd   : > { %7788 = vmatmul.mubr.bf16.gmra.mrb[84].mxu1 %v13023_v59  ;;  %v13124_v59 = vld [vmem:[%s17307_s5 + $0x474] ss:$8 sps:$4 sm:$0xff]  }
 0x7fe   : > { %11326 = vmatprep.mubr.msk.bf16.mxu1 %vm3405_vm4, %v13031_v62  ;;  %v13119_v62 = vld [vmem:[%s17307_s5 + $0xe0] ss:$8 sps:$4 sm:$0xff]  }
 0x801   : > { %9137 = vmatmul.mubr.bf16.gmra.mrb[72].mxu0 %v13026_v37  ;;  %v13122_v37 = vld [vmem:[%s17307_s5 + $0x470] ss:$8 sps:$4 sm:$0xff]  }
 0x802   : > { %11518 = vmatprep.mubr.msk.bf16.mxu0 %vm3405_vm4, %v13034_v23  ;;  %v13127_v23 = vld [vmem:[%s17307_s5 + $0x484] ss:$8 sps:$4 sm:$0xff]  }
 0x805   : > { %7798 = vmatmul.mubr.bf16.gmra.mrb[88].mxu1 %v13029_v52  ;;  %v13125_v52 = vld [vmem:[%s17307_s5 + $0x480] ss:$8 sps:$4 sm:$0xff]  }
 0x806   : > { %11357 = vmatprep.mubr.msk.bf16.mxu1 %vm3405_vm4, %v13037_v14  ;;  %v13130_v14 = vld [vmem:[%s17307_s5 + $0x494] ss:$8 sps:$4 sm:$0xff]  }
 0x809   : > { %9147 = vmatmul.mubr.bf16.gmra.mrb[76].mxu0 %v13032_v39  ;;  %v13128_v39 = vld [vmem:[%s17307_s5 + $0x490] ss:$8 sps:$4 sm:$0xff]  }
 0x80a   : > { %11519 = vmatprep.mubr.msk.bf16.mxu0 %vm3405_vm4, %v13040_v28  ;;  %v13133_v28 = vld [vmem:[%s17307_s5 + $0x4a4] ss:$8 sps:$4 sm:$0xff]  }
 0x80d   : > { %8021 = vmatmul.mubr.bf16.vlgmr.msra.gmra.mrb[32].mxu1 %v13035_v42  ;;  %v13131_v42 = vld [vmem:[%s17307_s5 + $0x4a0] ss:$8 sps:$4 sm:$0xff]  }
 0x80e   : > { %11358 = vmatprep.mubr.msk.bf16.mxu1 %vm3405_vm4, %v13043_v56 }
 0x811   : > { %9157 = vmatmul.mubr.bf16.gmra.mrb[80].mxu0 %v13038_v49 }
 0x812   : > { %11520 = vmatprep.mubr.msk.bf16.mxu0 %vm3405_vm4, %v13046_v15 }
 0x815   : > { %8031 = vmatmul.mubr.bf16.gmra.mrb[36].mxu1 %v13041_v38 }
 0x816   : > { %11359 = vmatprep.mubr.msk.bf16.mxu1 %vm3405_vm4, %v13049_v4 }
 0x819   : > { %9167 = vmatmul.mubr.bf16.gmra.mrb[84].mxu0 %v13044_v48 }
 0x81a   : > { %11521 = vmatprep.mubr.msk.bf16.mxu0 %vm3405_vm4, %v13052_v8 }
 0x81d   : > { %8041 = vmatmul.mubr.bf16.gmra.mrb[40].mxu1 %v13047_v60 }
 0x81e   : > { %11360 = vmatprep.mubr.msk.bf16.mxu1 %vm3405_vm4, %v13055_v47 }
 0x821   : > { %9177 = vmatmul.mubr.bf16.gmra.mrb[88].mxu0 %v13050_v11 }
 0x822   : > { %11582 = vmatprep.mubr.msk.bf16.mxu0 %vm3405_vm4, %v13058_v58 }
 0x825   : > { %8051 = vmatmul.mubr.bf16.gmra.mrb[44].mxu1 %v13053_v35 }
 0x826   : > { %11361 = vmatprep.mubr.msk.bf16.mxu1 %vm3405_vm4, %v13061_v30 }
 0x829   : > { %9575 = vmatmul.mubr.bf16.vlgmr.msra.gmra.mrb[32].mxu0 %v13056_v19 }
 0x82a   : > { %11583 = vmatprep.mubr.msk.bf16.mxu0 %vm3405_vm4, %v13064_v22  ;;  %v13136_v22 = vld [vmem:[%s17310_s8 + $0x4] ss:$8 sps:$4 sm:$0xff]  }
 0x82d   : > { %8061 = vmatmul.mubr.bf16.gmra.mrb[48].mxu1 %v13059_v55 }
 0x82e   : > { %11362 = vmatprep.mubr.msk.bf16.mxu1 %vm3405_vm4, %v13067_v36 }
 0x831   : > { %9585 = vmatmul.mubr.bf16.gmra.mrb[36].mxu0 %v13062_v44 }
 0x832   : > { %11584 = vmatprep.mubr.msk.bf16.mxu0 %vm3405_vm4, %v13070_v50 }
 0x835   : > { %8071 = vmatmul.mubr.bf16.gmra.mrb[52].mxu1 %v13065_v17 }
 0x836   : > { %11363 = vmatprep.mubr.msk.bf16.mxu1 %vm3405_vm4, %v13073_v6  ;;  %v9818_v6 = vpop.permute.xlu0 %9817 }
 0x839   : > { %9595 = vmatmul.mubr.bf16.gmra.mrb[40].mxu0 %v13068_v34 }
 0x83a   : > { %11585 = vmatprep.mubr.msk.bf16.mxu0 %vm3405_vm4, %v13076_v1 }
 0x83d   : > { %8081 = vmatmul.mubr.bf16.gmra.mrb[56].mxu1 %v13071_v46 }
 0x83e   : > { %11364 = vmatprep.mubr.msk.bf16.mxu1 %vm3405_vm4, %v13079_v41 }
 0x841   : > { %9605 = vmatmul.mubr.bf16.gmra.mrb[44].mxu0 %v13074_v13 }
 0x842   : > { %11586 = vmatprep.mubr.msk.bf16.mxu0 %vm3405_vm4, %v13082_v33  ;;  %v9823_v33 = vpop.permute.xlu1 %9822 }
 0x845   : > { %8091 = vmatmul.mubr.bf16.gmra.mrb[60].mxu1 %v13077_v3 }
 0x846   : > { %11365 = vmatprep.mubr.msk.bf16.mxu1 %vm3405_vm4, %v13085_v54 }
 0x849   : > { %9615 = vmatmul.mubr.bf16.gmra.mrb[48].mxu0 %v13080_v21 }
 0x84a   : > { %11587 = vmatprep.mubr.msk.bf16.mxu0 %vm3405_vm4, %v13088_v20 }
 0x84d   : > { %8101 = vmatmul.mubr.bf16.gmra.mrb[64].mxu1 %v13083_v32 }
 0x84e   : > { %11366 = vmatprep.mubr.msk.bf16.mxu1 %vm3405_vm4, %v13091_v40 }
 0x851   : > { %9625 = vmatmul.mubr.bf16.gmra.mrb[52].mxu0 %v13086_v45 }
 0x852   : > { %11588 = vmatprep.mubr.msk.bf16.mxu0 %vm3405_vm4, %v13094_v0 }
 0x855   : > { %8111 = vmatmul.mubr.bf16.gmra.mrb[68].mxu1 %v13089_v7 }
 0x856   : > { %11367 = vmatprep.mubr.msk.bf16.mxu1 %vm3405_vm4, %v13097_v26 }
 0x859   : > { %9635 = vmatmul.mubr.bf16.gmra.mrb[56].mxu0 %v13092_v31 }
 0x85a   : > { %11589 = vmatprep.mubr.msk.bf16.mxu0 %vm3405_vm4, %v13100_v24 }
 0x85d   : > { %8121 = vmatmul.mubr.bf16.gmra.mrb[72].mxu1 %v13095_v12 }
 0x85e   : > { %11368 = vmatprep.mubr.msk.bf16.mxu1 %vm3405_vm4, %v13103_v61 }
 0x861   : > { %9645 = vmatmul.mubr.bf16.gmra.mrb[60].mxu0 %v13098_v63 }
 0x862   : > { %11590 = vmatprep.mubr.msk.bf16.mxu0 %vm3405_vm4, %v13106_v27 }
 0x865   : > { %8131 = vmatmul.mubr.bf16.gmra.mrb[76].mxu1 %v13101_v18  ;;  %v9828_v18 = vpop.permute.xlu0 %9827 }
 0x866   : > { %11369 = vmatprep.mubr.msk.bf16.mxu1 %vm3405_vm4, %v13109_v29 }
 0x869   : > { %9655 = vmatmul.mubr.bf16.gmra.mrb[64].mxu0 %v13104_v10 }
 0x86a   : > { %11591 = vmatprep.mubr.msk.bf16.mxu0 %vm3405_vm4, %v13112_v5 }
 0x86d   : > { %8141 = vmatmul.mubr.bf16.gmra.mrb[80].mxu1 %v13107_v25 }
 0x86e   : > { %11370 = vmatprep.mubr.msk.bf16.mxu1 %vm3405_vm4, %v13115_v43 }
 0x871   : > { %9665 = vmatmul.mubr.bf16.gmra.mrb[68].mxu0 %v13110_v2 }
 0x872   : > { %11592 = vmatprep.mubr.msk.bf16.mxu0 %vm3405_vm4, %v13118_v57  ;;  %v9833_v57 = vpop.permute.xlu1 %9832 }
 0x875   : > { %8151 = vmatmul.mubr.bf16.gmra.mrb[84].mxu1 %v13113_v51 }
 0x876   : > { %11371 = vmatprep.mubr.msk.bf16.mxu1 %vm3405_vm4, %v13121_v53 }
 0x879   : > { %9675 = vmatmul.mubr.bf16.gmra.mrb[72].mxu0 %v13116_v16 }
 0x87a   : > { %11593 = vmatprep.mubr.msk.bf16.mxu0 %vm3405_vm4, %v13124_v59 }
 0x87d   : > { %8161 = vmatmul.mubr.bf16.gmra.mrb[88].mxu1 %v13119_v62 }
 0x87e   : > { %11613 = vmatprep.mubr.msk.bf16.mxu1 %vm10199_vm10, %v13136_v22 }
 0x881   : > { %9685 = vmatmul.mubr.bf16.gmra.mrb[76].mxu0 %v13122_v37 }
 0x882   : > { %11594 = vmatprep.mubr.msk.bf16.mxu0 %vm3405_vm4, %v13127_v23 }
 0x889   : > { %9695 = vmatmul.mubr.bf16.gmra.mrb[80].mxu0 %v13125_v52 }
 0x88a   : > { %11595 = vmatprep.mubr.msk.bf16.mxu0 %vm3405_vm4, %v13130_v14 }
 0x891   : > { %9705 = vmatmul.mubr.bf16.gmra.mrb[84].mxu0 %v13128_v39 }
 0x892   : > { %11596 = vmatprep.mubr.msk.bf16.mxu0 %vm3405_vm4, %v13133_v28 }
 0x899   : > { %9715 = vmatmul.mubr.bf16.gmra.mrb[88].mxu0 %v13131_v42 }
 0x8e0   : > { %v8022_v56 = vpop.f32.mrb[32].mxu1 }
 0x8e1   : > { %v8024_v49 = vpop.f32.mrb[33].mxu1 }
 0x8e2   : > { %v8026_v15 = vpop.f32.mrb[34].mxu1 }
 0x8e3   : > { %v8028_v38 = vpop.f32.mrb[35].mxu1 }
 0x8e8   : > { %v8032_v4 = vpop.f32.mrb[36].mxu1 }
 0x8e9   : > { %v8034_v48 = vpop.f32.mrb[37].mxu1 }
 0x8ea   : > { %v8036_v8 = vpop.f32.mrb[38].mxu1 }
 0x8eb   : > { %v8038_v60 = vpop.f32.mrb[39].mxu1 }
 0x8f0   : > { %v8042_v47 = vpop.f32.mrb[40].mxu1 }
 0x8f1   : > { %v17001_v11 = vpop.f32.mrb[41].mxu1 }
 0x8f2   : > { %v17003_v58 = vpop.f32.mrb[42].mxu1 }
 0x8f3   : > { %v17005_v35 = vpop.f32.mrb[43].mxu1 }
 0x8f8   : > { %v17007_v30 = vpop.f32.mrb[44].mxu1 }
 0x8f9   : > { %v17009_v19 = vpop.f32.mrb[45].mxu1 }
 0x8fa   : > { %v17014_v55 = vpop.f32.mrb[46].mxu1 }
 0x8fb   : > { %v17016_v36 = vpop.f32.mrb[47].mxu1 }
 0x8fc   : > { %v9576_v44 = vpop.f32.mrb[32].mxu0 }
 0x8fd   : > { %v11999_v50 = vadd.f32 %v9576_v44, %v8022_v56  ;;  %v9578_v17 = vpop.f32.mrb[33].mxu0 }
 0x8fe   : > { %v12000_v34 = vadd.f32 %v9578_v17, %v8024_v49  ;;  %v9580_v1 = vpop.f32.mrb[34].mxu0  ;;  %v9843_v17 = vpop.permute.xlu1 %9842 }
 0x8ff   : > { %v9965_v46 = vadd.f32 %v11999_v50, %v9818_v6  ;;  %v12001_v41 = vadd.f32 %v9580_v1, %v8026_v15  ;;  %v9582_v13 = vpop.f32.mrb[35].mxu0 }
 0x900   : > { %v9966_v3 = vadd.f32 %v12000_v34, %v9818_v6  ;;  %v12002_v54 = vadd.f32 %v9582_v13, %v8028_v38  ;;  %v17019_v21 = vpop.f32.mrb[48].mxu1 }
 0x901   : > { %v9967_v20 = vadd.f32 %v12001_v41, %v9823_v33  ;;  %v17021_v32 = vpop.f32.mrb[49].mxu1  ;;  %v10025_v0 = vmax.f32 %v9965_v46, 0.0 }
 0x902   : > { %v9968_v40 = vadd.f32 %v12002_v54, %v9823_v33  ;;  %v17023_v45 = vpop.f32.mrb[50].mxu1  ;;  %v10026_v31 = vmax.f32 %v9966_v3, 0.0 }
 0x903   : > { %v10027_v7 = vmax.f32 %v9967_v20, 0.0  ;;  %v17025_v26 = vpop.f32.mrb[51].mxu1 }
 0x904   : > { %v10028_v24 = vmax.f32 %v9968_v40, 0.0  ;;  %v9586_v12 = vpop.f32.mrb[36].mxu0 }
 0x905   : > { %v10100_v61 = vpack.c.bf16 %v10027_v7, %v10025_v0  ;;  %v12003_v63 = vadd.f32 %v9586_v12, %v8032_v4  ;;  %v9588_v27 = vpop.f32.mrb[37].mxu0  ;;  %v9838_v4 = vpop.permute.xlu0 %9837 }
 0x906   : > { %v12004_v29 = vadd.f32 %v9588_v27, %v8034_v48  ;;  %v9590_v10 = vpop.f32.mrb[38].mxu0  ;;  %v10101_v5 = vpack.c.bf16 %v10028_v24, %v10026_v31 }
 0x907   : > { %v9969_v25 = vadd.f32 %v12003_v63, %v9828_v18  ;;  %v12005_v43 = vadd.f32 %v9590_v10, %v8036_v8  ;;  %v9592_v2 = vpop.f32.mrb[39].mxu0 }
 0x908   : > { %v9970_v51 = vadd.f32 %v12004_v29, %v9828_v18  ;;  %v12006_v53 = vadd.f32 %v9592_v2, %v8038_v60  ;;  %v17027_v16 = vpop.f32.mrb[52].mxu1  ;;  %10224 = vmatprep.subr.bf16.mxu1 %v10101_v5  ;;  %v9853_v18 = vpop.permute.xlu1 %9852 }
 0x909   : > { %v9971_v59 = vadd.f32 %v12005_v43, %v9833_v57  ;;  %v17029_v62 = vpop.f32.mrb[53].mxu1  ;;  %10225 = vmatpush1.bf16.msra.mxu1 %v10100_v61  ;;  %v10029_v52 = vmax.f32 %v9969_v25, 0.0  ;;  %v9848_v7 = vpop.permute.xlu0 %9847 }
 0x90a   : > { %v9972_v37 = vadd.f32 %v12006_v53, %v9833_v57  ;;  %v17031_v23 = vpop.f32.mrb[54].mxu1  ;;  %v10030_v28 = vmax.f32 %v9970_v51, 0.0 }
 0x90b   : > { %v10031_v14 = vmax.f32 %v9971_v59, 0.0  ;;  %v17033_v39 = vpop.f32.mrb[55].mxu1 }
 0x90c   : > { %v10032_v42 = vmax.f32 %v9972_v37, 0.0  ;;  %v9596_v56 = vpop.f32.mrb[40].mxu0 }
 0x90d   : > { %v10102_v49 = vpack.c.bf16 %v10031_v14, %v10029_v52  ;;  %v12007_v15 = vadd.f32 %v9596_v56, %v8042_v47  ;;  %v9598_v38 = vpop.f32.mrb[41].mxu0  ;;  %v9858_v14 = vpop.permute.xlu0 %9857 }
 0x90e   : > { %v12008_v48 = vadd.f32 %v9598_v38, %v17001_v11  ;;  %v9600_v8 = vpop.f32.mrb[42].mxu0  ;;  %v10103_v60 = vpack.c.bf16 %v10032_v42, %v10030_v28 }
 0x90f   : > { %v9973_v22 = vadd.f32 %v12007_v15, %v9838_v4  ;;  %v12009_v44 = vadd.f32 %v9600_v8, %v17003_v58  ;;  %v9602_v50 = vpop.f32.mrb[43].mxu0 }
 0x910   : > { %v9974_v6 = vadd.f32 %v12008_v48, %v9838_v4  ;;  %v12010_v34 = vadd.f32 %v9602_v50, %v17005_v35  ;;  %v17038_v1 = vpop.f32.mrb[56].mxu1  ;;  %10226 = vmatprep.subr.bf16.mxu1 %v10103_v60  ;;  %v9863_v4 = vpop.permute.xlu1 %9862 }
 0x911   : > { %v9975_v46 = vadd.f32 %v12009_v44, %v9843_v17  ;;  %v17040_v41 = vpop.f32.mrb[57].mxu1  ;;  %10227 = vmatpush1.bf16.msra.mxu1 %v10102_v49  ;;  %v10033_v11 = vmax.f32 %v9973_v22, 0.0 }
 0x912   : > { %v9976_v47 = vadd.f32 %v12010_v34, %v9843_v17  ;;  %v17042_v13 = vpop.f32.mrb[58].mxu1  ;;  %v10034_v58 = vmax.f32 %v9974_v6, 0.0 }
 0x913   : > { %v10035_v33 = vmax.f32 %v9975_v46, 0.0  ;;  %v17044_v3 = vpop.f32.mrb[59].mxu1 }
 0x914   : > { %v10036_v54 = vmax.f32 %v9976_v47, 0.0  ;;  %v9606_v20 = vpop.f32.mrb[44].mxu0 }
 0x915   : > { %v10104_v40 = vpack.c.bf16 %v10035_v33, %v10033_v11  ;;  %v12011_v35 = vadd.f32 %v9606_v20, %v17007_v30  ;;  %v9608_v0 = vpop.f32.mrb[45].mxu0  ;;  %v9868_v33 = vpop.permute.xlu0 %9867 }
 0x916   : > { %v12012_v31 = vadd.f32 %v9608_v0, %v17009_v19  ;;  %v9610_v24 = vpop.f32.mrb[46].mxu0  ;;  %v10105_v12 = vpack.c.bf16 %v10036_v54, %v10034_v58 }
 0x917   : > { %v9977_v61 = vadd.f32 %v12011_v35, %v9848_v7  ;;  %v12013_v63 = vadd.f32 %v9610_v24, %v17014_v55  ;;  %v9612_v27 = vpop.f32.mrb[47].mxu0 }
 0x918   : > { %v9978_v29 = vadd.f32 %v12012_v31, %v9848_v7  ;;  %v12014_v10 = vadd.f32 %v9612_v27, %v17016_v36  ;;  %v17050_v5 = vpop.f32.mrb[60].mxu1  ;;  %10228 = vmatprep.subr.bf16.mxu1 %v10105_v12  ;;  %v9873_v7 = vpop.permute.xlu1 %9872 }
 0x919   : > { %v9979_v25 = vadd.f32 %v12013_v63, %v9853_v18  ;;  %v17052_v43 = vpop.f32.mrb[61].mxu1  ;;  %10229 = vmatpush1.bf16.msra.mxu1 %v10104_v40  ;;  %v10037_v19 = vmax.f32 %v9977_v61, 0.0 }
 0x91a   : > { %v9980_v30 = vadd.f32 %v12014_v10, %v9853_v18  ;;  %v17054_v2 = vpop.f32.mrb[62].mxu1  ;;  %v10038_v55 = vmax.f32 %v9978_v29, 0.0 }
 0x91b   : > { %v10039_v57 = vmax.f32 %v9979_v25, 0.0  ;;  %v17056_v51 = vpop.f32.mrb[63].mxu1 }
 0x91c   : > { %v10040_v53 = vmax.f32 %v9980_v30, 0.0  ;;  %v9616_v59 = vpop.f32.mrb[48].mxu0 }
 0x91d   : > { %v10106_v37 = vpack.c.bf16 %v10039_v57, %v10037_v19  ;;  %v12015_v36 = vadd.f32 %v9616_v59, %v17019_v21  ;;  %v9618_v52 = vpop.f32.mrb[49].mxu0  ;;  %v9878_v57 = vpop.permute.xlu0 %9877 }
 0x91e   : > { %v12016_v28 = vadd.f32 %v9618_v52, %v17021_v32  ;;  %v9620_v42 = vpop.f32.mrb[50].mxu0  ;;  %v10107_v56 = vpack.c.bf16 %v10040_v53, %v10038_v55 }
 0x91f   : > { %v9981_v49 = vadd.f32 %v12015_v36, %v9858_v14  ;;  %v12017_v15 = vadd.f32 %v9620_v42, %v17023_v45  ;;  %v9622_v38 = vpop.f32.mrb[51].mxu0 }
 0x920   : > { %v9982_v48 = vadd.f32 %v12016_v28, %v9858_v14  ;;  %v12018_v8 = vadd.f32 %v9622_v38, %v17025_v26  ;;  %v17062_v60 = vpop.f32.mrb[64].mxu1  ;;  %10230 = vmatprep.subr.bf16.mxu1 %v10107_v56  ;;  %v9883_v14 = vpop.permute.xlu1 %9882 }
 0x921   : > { %v9983_v22 = vadd.f32 %v12017_v15, %v9863_v4  ;;  %v17064_v44 = vpop.f32.mrb[65].mxu1  ;;  %10231 = vmatpush1.bf16.msra.mxu1 %v10106_v37  ;;  %v10041_v32 = vmax.f32 %v9981_v49, 0.0 }
 0x922   : > { %v9984_v21 = vadd.f32 %v12018_v8, %v9863_v4  ;;  %v17066_v50 = vpop.f32.mrb[66].mxu1  ;;  %v10042_v45 = vmax.f32 %v9982_v48, 0.0 }
 0x923   : > { %v10043_v17 = vmax.f32 %v9983_v22, 0.0  ;;  %v17068_v6 = vpop.f32.mrb[67].mxu1 }
 0x924   : > { %v10044_v34 = vmax.f32 %v9984_v21, 0.0  ;;  %v9626_v46 = vpop.f32.mrb[52].mxu0 }
 0x925   : > { %v10108_v47 = vpack.c.bf16 %v10043_v17, %v10041_v32  ;;  %v12019_v26 = vadd.f32 %v9626_v46, %v17027_v16  ;;  %v9628_v11 = vpop.f32.mrb[53].mxu0  ;;  %v9888_v17 = vpop.permute.xlu0 %9887 }
 0x926   : > { %v12020_v58 = vadd.f32 %v9628_v11, %v17029_v62  ;;  %v9630_v54 = vpop.f32.mrb[54].mxu0  ;;  %v10109_v20 = vpack.c.bf16 %v10044_v34, %v10042_v45 }
 0x927   : > { %v9985_v40 = vadd.f32 %v12019_v26, %v9868_v33  ;;  %v12021_v35 = vadd.f32 %v9630_v54, %v17031_v23  ;;  %v9632_v0 = vpop.f32.mrb[55].mxu0 }
 0x928   : > { %v9986_v31 = vadd.f32 %v12020_v58, %v9868_v33  ;;  %v12022_v24 = vadd.f32 %v9632_v0, %v17033_v39  ;;  %v17074_v12 = vpop.f32.mrb[68].mxu1  ;;  %10232 = vmatprep.subr.bf16.mxu1 %v10109_v20  ;;  %v9893_v33 = vpop.permute.xlu1 %9892 }
 0x929   : > { %v9987_v61 = vadd.f32 %v12021_v35, %v9873_v7  ;;  %v17076_v63 = vpop.f32.mrb[69].mxu1  ;;  %10233 = vmatpush1.bf16.msra.mxu1 %v10108_v47  ;;  %v10045_v62 = vmax.f32 %v9985_v40, 0.0 }
 0x92a   : > { %v9988_v16 = vadd.f32 %v12022_v24, %v9873_v7  ;;  %v17078_v27 = vpop.f32.mrb[70].mxu1  ;;  %v10046_v23 = vmax.f32 %v9986_v31, 0.0 }
 0x92b   : > { %v10047_v18 = vmax.f32 %v9987_v61, 0.0  ;;  %v17080_v29 = vpop.f32.mrb[71].mxu1 }
 0x92c   : > { %v10048_v10 = vmax.f32 %v9988_v16, 0.0  ;;  %v9636_v25 = vpop.f32.mrb[56].mxu0 }
 0x92d   : > { %v10110_v30 = vpack.c.bf16 %v10047_v18, %v10045_v62  ;;  %v12023_v39 = vadd.f32 %v9636_v25, %v17038_v1  ;;  %v9638_v19 = vpop.f32.mrb[57].mxu0  ;;  %v9898_v18 = vpop.permute.xlu0 %9897 }
 0x92e   : > { %v12024_v55 = vadd.f32 %v9638_v19, %v17040_v41  ;;  %v9640_v53 = vpop.f32.mrb[58].mxu0  ;;  %v10111_v59 = vpack.c.bf16 %v10048_v10, %v10046_v23 }
 0x92f   : > { %v9989_v37 = vadd.f32 %v12023_v39, %v9878_v57  ;;  %v12025_v36 = vadd.f32 %v9640_v53, %v17042_v13  ;;  %v9642_v52 = vpop.f32.mrb[59].mxu0 }
 0x930   : > { %v9990_v28 = vadd.f32 %v12024_v55, %v9878_v57  ;;  %v12026_v42 = vadd.f32 %v9642_v52, %v17044_v3  ;;  %v17086_v56 = vpop.f32.mrb[72].mxu1  ;;  %10234 = vmatprep.subr.bf16.mxu1 %v10111_v59  ;;  %v9903_v57 = vpop.permute.xlu1 %9902 }
 0x931   : > { %v9991_v49 = vadd.f32 %v12025_v36, %v9883_v14  ;;  %v17088_v15 = vpop.f32.mrb[73].mxu1  ;;  %10235 = vmatpush1.bf16.msra.mxu1 %v10110_v30  ;;  %v10049_v41 = vmax.f32 %v9989_v37, 0.0 }
 0x932   : > { %v9992_v1 = vadd.f32 %v12026_v42, %v9883_v14  ;;  %v17090_v38 = vpop.f32.mrb[74].mxu1  ;;  %v10050_v13 = vmax.f32 %v9990_v28, 0.0 }
 0x933   : > { %v10051_v4 = vmax.f32 %v9991_v49, 0.0  ;;  %v17092_v48 = vpop.f32.mrb[75].mxu1 }
 0x934   : > { %v10052_v8 = vmax.f32 %v9992_v1, 0.0  ;;  %v9646_v22 = vpop.f32.mrb[60].mxu0 }
 0x935   : > { %v10112_v21 = vpack.c.bf16 %v10051_v4, %v10049_v41  ;;  %v12027_v3 = vadd.f32 %v9646_v22, %v17050_v5  ;;  %v9648_v32 = vpop.f32.mrb[61].mxu0  ;;  %v9908_v4 = vpop.permute.xlu0 %9907 }
 0x936   : > { %v12028_v45 = vadd.f32 %v9648_v32, %v17052_v43  ;;  %v9650_v34 = vpop.f32.mrb[62].mxu0  ;;  %v10113_v46 = vpack.c.bf16 %v10052_v8, %v10050_v13 }
 0x937   : > { %v9993_v47 = vadd.f32 %v12027_v3, %v9888_v17  ;;  %v12029_v26 = vadd.f32 %v9650_v34, %v17054_v2  ;;  %v9652_v11 = vpop.f32.mrb[63].mxu0 }
 0x938   : > { %v9994_v58 = vadd.f32 %v12028_v45, %v9888_v17  ;;  %v12030_v54 = vadd.f32 %v9652_v11, %v17056_v51  ;;  %v17098_v20 = vpop.f32.mrb[76].mxu1  ;;  %10236 = vmatprep.subr.bf16.mxu1 %v10113_v46  ;;  %v9913_v17 = vpop.permute.xlu1 %9912 }
 0x939   : > { %v9995_v40 = vadd.f32 %v12029_v26, %v9893_v33  ;;  %v17100_v35 = vpop.f32.mrb[77].mxu1  ;;  %10237 = vmatpush1.bf16.msra.mxu1 %v10112_v21  ;;  %v10053_v43 = vmax.f32 %v9993_v47, 0.0 }
 0x93a   : > { %v9996_v5 = vadd.f32 %v12030_v54, %v9893_v33  ;;  %v17102_v0 = vpop.f32.mrb[78].mxu1  ;;  %v10054_v2 = vmax.f32 %v9994_v58, 0.0 }
 0x93b   : > { %v10055_v7 = vmax.f32 %v9995_v40, 0.0  ;;  %v17104_v31 = vpop.f32.mrb[79].mxu1 }
 0x93c   : > { %v10056_v24 = vmax.f32 %v9996_v5, 0.0  ;;  %v9656_v61 = vpop.f32.mrb[64].mxu0 }
 0x93d   : > { %v10114_v16 = vpack.c.bf16 %v10055_v7, %v10053_v43  ;;  %v12031_v51 = vadd.f32 %v9656_v61, %v17062_v60  ;;  %v9658_v62 = vpop.f32.mrb[65].mxu0  ;;  %v9918_v7 = vpop.permute.xlu0 %9917 }
 0x93e   : > { %v12032_v23 = vadd.f32 %v9658_v62, %v17064_v44  ;;  %v9660_v10 = vpop.f32.mrb[66].mxu0  ;;  %v10115_v25 = vpack.c.bf16 %v10056_v24, %v10054_v2 }
 0x93f   : > { %v9997_v30 = vadd.f32 %v12031_v51, %v9898_v18  ;;  %v12033_v39 = vadd.f32 %v9660_v10, %v17066_v50  ;;  %v9662_v19 = vpop.f32.mrb[67].mxu0 }
 0x940   : > { %v9998_v55 = vadd.f32 %v12032_v23, %v9898_v18  ;;  %v12034_v53 = vadd.f32 %v9662_v19, %v17068_v6  ;;  %v17110_v59 = vpop.f32.mrb[80].mxu1  ;;  %10238 = vmatprep.subr.bf16.mxu1 %v10115_v25  ;;  %v9923_v18 = vpop.permute.xlu1 %9922 }
 0x941   : > { %v9999_v37 = vadd.f32 %v12033_v39, %v9903_v57  ;;  %v17112_v36 = vpop.f32.mrb[81].mxu1  ;;  %10239 = vmatpush1.bf16.msra.mxu1 %v10114_v16  ;;  %v10057_v44 = vmax.f32 %v9997_v30, 0.0 }
 0x942   : > { %v10000_v60 = vadd.f32 %v12034_v53, %v9903_v57  ;;  %v17114_v52 = vpop.f32.mrb[82].mxu1  ;;  %v10058_v50 = vmax.f32 %v9998_v55, 0.0 }
 0x943   : > { %v10059_v14 = vmax.f32 %v9999_v37, 0.0  ;;  %v17116_v28 = vpop.f32.mrb[83].mxu1 }
 0x944   : > { %v10060_v42 = vmax.f32 %v10000_v60, 0.0  ;;  %v9666_v49 = vpop.f32.mrb[68].mxu0 }
 0x945   : > { %v10116_v1 = vpack.c.bf16 %v10059_v14, %v10057_v44  ;;  %v12035_v6 = vadd.f32 %v9666_v49, %v17074_v12  ;;  %v9668_v41 = vpop.f32.mrb[69].mxu0  ;;  %v9928_v14 = vpop.permute.xlu0 %9927 }
 0x946   : > { %v12036_v13 = vadd.f32 %v9668_v41, %v17076_v63  ;;  %v9670_v8 = vpop.f32.mrb[70].mxu0  ;;  %v10117_v22 = vpack.c.bf16 %v10060_v42, %v10058_v50 }
 0x947   : > { %v10001_v21 = vadd.f32 %v12035_v6, %v9908_v4  ;;  %v12037_v3 = vadd.f32 %v9670_v8, %v17078_v27  ;;  %v9672_v32 = vpop.f32.mrb[71].mxu0 }
 0x948   : > { %v10002_v45 = vadd.f32 %v12036_v13, %v9908_v4  ;;  %v12038_v34 = vadd.f32 %v9672_v32, %v17080_v29  ;;  %v17122_v46 = vpop.f32.mrb[84].mxu1  ;;  %10240 = vmatprep.subr.bf16.mxu1 %v10117_v22  ;;  %v9933_v4 = vpop.permute.xlu1 %9932 }
 0x949   : > { %v10003_v47 = vadd.f32 %v12037_v3, %v9913_v17  ;;  %v17124_v26 = vpop.f32.mrb[85].mxu1  ;;  %10241 = vmatpush1.bf16.msra.mxu1 %v10116_v1  ;;  %v10061_v63 = vmax.f32 %v10001_v21, 0.0 }
 0x94a   : > { %v10004_v12 = vadd.f32 %v12038_v34, %v9913_v17  ;;  %v17126_v11 = vpop.f32.mrb[86].mxu1  ;;  %v10062_v27 = vmax.f32 %v10002_v45, 0.0 }
 0x94b   : > { %v10063_v33 = vmax.f32 %v10003_v47, 0.0  ;;  %v17128_v58 = vpop.f32.mrb[87].mxu1 }
 0x94c   : > { %v10064_v54 = vmax.f32 %v10004_v12, 0.0  ;;  %v9676_v40 = vpop.f32.mrb[72].mxu0  ;;  %v9938_v12 = vpop.permute.xlu0 %9937 }
 0x94d   : > { %v10118_v5 = vpack.c.bf16 %v10063_v33, %v10061_v63  ;;  %v12039_v29 = vadd.f32 %v9676_v40, %v17086_v56  ;;  %v9678_v43 = vpop.f32.mrb[73].mxu0  ;;  %v9943_v40 = vpop.permute.xlu1 %9942 }
 0x94e   : > { %v12040_v2 = vadd.f32 %v9678_v43, %v17088_v15  ;;  %v9680_v24 = vpop.f32.mrb[74].mxu0  ;;  %v10119_v61 = vpack.c.bf16 %v10064_v54, %v10062_v27 }
 0x94f   : > { %v10005_v16 = vadd.f32 %v12039_v29, %v9918_v7  ;;  %v12041_v51 = vadd.f32 %v9680_v24, %v17090_v38  ;;  %v9682_v62 = vpop.f32.mrb[75].mxu0 }
 0x950   : > { %v10006_v23 = vadd.f32 %v12040_v2, %v9918_v7  ;;  %v12042_v10 = vadd.f32 %v9682_v62, %v17092_v48  ;;  %v17134_v25 = vpop.f32.mrb[88].mxu1  ;;  %10242 = vmatprep.subr.bf16.mxu1 %v10119_v61 }
 0x951   : > { %v10007_v30 = vadd.f32 %v12041_v51, %v9923_v18  ;;  %v17136_v39 = vpop.f32.mrb[89].mxu1  ;;  %10243 = vmatpush1.bf16.msra.mxu1 %v10118_v5  ;;  %v10065_v15 = vmax.f32 %v10005_v16, 0.0 }
 0x952   : > { %v10008_v56 = vadd.f32 %v12042_v10, %v9923_v18  ;;  %v17138_v19 = vpop.f32.mrb[90].mxu1  ;;  %v10066_v38 = vmax.f32 %v10006_v23, 0.0  ;;  %v9948_v18 = vpop.permute.xlu0 %9947 }
 0x953   : > { %v10067_v57 = vmax.f32 %v10007_v30, 0.0  ;;  %v17140_v55 = vpop.f32.mrb[91].mxu1 }
 0x954   : > { %v10068_v53 = vmax.f32 %v10008_v56, 0.0  ;;  %v9686_v37 = vpop.f32.mrb[76].mxu0 }
 0x955   : > { %v10120_v60 = vpack.c.bf16 %v10067_v57, %v10065_v15  ;;  %v12043_v48 = vadd.f32 %v9686_v37, %v17098_v20  ;;  %v9688_v44 = vpop.f32.mrb[77].mxu0  ;;  %v9953_v15 = vpop.permute.xlu1 %9952 }
 0x956   : > { %v12044_v50 = vadd.f32 %v9688_v44, %v17100_v35  ;;  %v9690_v42 = vpop.f32.mrb[78].mxu0  ;;  %v10121_v49 = vpack.c.bf16 %v10068_v53, %v10066_v38 }
 0x957   : > { %v10009_v1 = vadd.f32 %v12043_v48, %v9928_v14  ;;  %v12045_v6 = vadd.f32 %v9690_v42, %v17102_v0  ;;  %v9692_v41 = vpop.f32.mrb[79].mxu0 }
 0x958   : > { %v10010_v13 = vadd.f32 %v12044_v50, %v9928_v14  ;;  %v12046_v8 = vadd.f32 %v9692_v41, %v17104_v31  ;;  %10244 = vmatprep.subr.bf16.mxu1 %v10121_v49  ;;  %v9958_v49 = vpop.permute.xlu0 %9957 }
 0x959   : > { %v10011_v22 = vadd.f32 %v12045_v6, %v9933_v4  ;;  %10245 = vmatpush1.bf16.msra.mxu1 %v10120_v60  ;;  %v10069_v3 = vmax.f32 %v10009_v1, 0.0 }
 0x95a   : > { %v10012_v21 = vadd.f32 %v12046_v8, %v9933_v4  ;;  %v10070_v32 = vmax.f32 %v10010_v13, 0.0  ;;  %v9963_v13 = vpop.permute.xlu1 %9962 }
 0x95b   : > { %v10071_v20 = vmax.f32 %v10011_v22, 0.0 }
 0x95c   : > { %v10072_v17 = vmax.f32 %v10012_v21, 0.0  ;;  %v9696_v45 = vpop.f32.mrb[80].mxu0 }
 0x95d   : > { %v10122_v35 = vpack.c.bf16 %v10071_v20, %v10069_v3  ;;  %v12047_v34 = vadd.f32 %v9696_v45, %v17110_v59  ;;  %v9698_v47 = vpop.f32.mrb[81].mxu0 }
 0x95e   : > { %v12048_v0 = vadd.f32 %v9698_v47, %v17112_v36  ;;  %v9700_v63 = vpop.f32.mrb[82].mxu0  ;;  %v10123_v33 = vpack.c.bf16 %v10072_v17, %v10070_v32  ;;  %v13137_v47 = vld [vmem:[%s17310_s8 + $0x10] ss:$8 sps:$4 sm:$0xff]  }
 0x95f   : > { %v10013_v27 = vadd.f32 %v12047_v34, %v9938_v12  ;;  %v12049_v31 = vadd.f32 %v9700_v63, %v17114_v52  ;;  %v9702_v54 = vpop.f32.mrb[83].mxu0  ;;  %v13158_v34 = vld [vmem:[%s17311_s9 + $0x8] sm:$0xff]   ;;  %v13160_v63 = vld [vmem:[%s17311_s9 + $0x18] sm:$0xff]  }
 0x960   : > { %v10014_v5 = vadd.f32 %v12048_v0, %v9938_v12  ;;  %v12050_v29 = vadd.f32 %v9702_v54, %v17116_v28  ;;  %10246 = vmatprep.subr.bf16.mxu1 %v10123_v33  ;;  %v13142_v12 = vld [vmem:[%s17310_s8 + $0x24] ss:$8 sps:$4 sm:$0xff]   ;;  %v13159_v0 = vld [vmem:[%s17311_s9 + $0x10] sm:$0xff]   ;;  %v13140_v33 = vld [vmem:[%s17310_s8 + $0x20] ss:$8 sps:$4 sm:$0xff]  }
 0x961   : > { %v10015_v43 = vadd.f32 %v12049_v31, %v9943_v40  ;;  %10247 = vmatpush1.bf16.msra.mxu1 %v10122_v35  ;;  %v10073_v2 = vmax.f32 %v10013_v27, 0.0  ;;  %v13157_v35 = vld [vmem:[%s17311_s9] sm:$0xff]   ;;  %v13145_v27 = vld [vmem:[%s17310_s8 + $0x34] ss:$8 sps:$4 sm:$0xff]   ;;  %v13162_v54 = vld [vmem:[%s17311_s9 + $0x28] sm:$0xff]  }
 0x962   : > { %v10016_v7 = vadd.f32 %v12050_v29, %v9943_v40  ;;  %v10074_v24 = vmax.f32 %v10014_v5, 0.0  ;;  %v13161_v31 = vld [vmem:[%s17311_s9 + $0x20] sm:$0xff]   ;;  %v13143_v40 = vld [vmem:[%s17310_s8 + $0x30] ss:$8 sps:$4 sm:$0xff]  }
 0x963   : > { %v10075_v59 = vmax.f32 %v10015_v43, 0.0  ;;  %v13148_v5 = vld [vmem:[%s17310_s8 + $0x44] ss:$8 sps:$4 sm:$0xff]   ;;  %v13163_v29 = vld [vmem:[%s17311_s9 + $0x30] sm:$0xff]   ;;  %v13164_v43 = vld [vmem:[%s17311_s9 + $0x38] sm:$0xff]  }
 0x964   : > { %v10076_v61 = vmax.f32 %v10016_v7, 0.0  ;;  %v9706_v16 = vpop.f32.mrb[84].mxu0  ;;  %v13146_v7 = vld [vmem:[%s17310_s8 + $0x40] ss:$8 sps:$4 sm:$0xff]  }
 0x965   : > { %v10124_v36 = vpack.c.bf16 %v10075_v59, %v10073_v2  ;;  %v12051_v51 = vadd.f32 %v9706_v16, %v17122_v46  ;;  %v9708_v62 = vpop.f32.mrb[85].mxu0  ;;  %v13151_v2 = vld [vmem:[%s17310_s8 + $0x54] ss:$8 sps:$4 sm:$0xff]   ;;  %v13165_v59 = vld [vmem:[%s17311_s9 + $0x40] sm:$0xff]  }
 0x966   : > { %v12052_v52 = vadd.f32 %v9708_v62, %v17124_v26  ;;  %v9710_v23 = vpop.f32.mrb[86].mxu0  ;;  %v10125_v10 = vpack.c.bf16 %v10076_v61, %v10074_v24  ;;  %v13166_v24 = vld [vmem:[%s17311_s9 + $0x48] sm:$0xff]   ;;  %v13149_v61 = vld [vmem:[%s17310_s8 + $0x50] ss:$8 sps:$4 sm:$0xff]  }
 0x967   : > { %v10017_v30 = vadd.f32 %v12051_v51, %v9948_v18  ;;  %v12053_v28 = vadd.f32 %v9710_v23, %v17126_v11  ;;  %v9712_v56 = vpop.f32.mrb[87].mxu0  ;;  %v13154_v16 = vld [vmem:[%s17310_s8 + $0x64] ss:$8 sps:$4 sm:$0xff]   ;;  %v13168_v51 = vld [vmem:[%s17311_s9 + $0x58] sm:$0xff]   ;;  %v10099_v62 = vld [vmem:[%s17310_s8 + $0x70] sm:$0xff] }
 0x968   : > { %v10018_v57 = vadd.f32 %v12052_v52, %v9948_v18  ;;  %v12054_v38 = vadd.f32 %v9712_v56, %v17128_v58  ;;  %10248 = vmatprep.subr.bf16.mxu1 %v10125_v10  ;;  %v13152_v18 = vld [vmem:[%s17310_s8 + $0x60] ss:$8 sps:$4 sm:$0xff]   ;;  %v11612_v52 = vcombine.high %v10099_v62, %v10099_v62  ;;  %v11611_v10 = vcombine.low %v10099_v62, %v10099_v62 }
 0x969   : > { %v10019_v53 = vadd.f32 %v12053_v28, %v9953_v15  ;;  %10249 = vmatpush1.bf16.msra.mxu1 %v10124_v36  ;;  %v10077_v60 = vmax.f32 %v10017_v30, 0.0  ;;  %v13167_v36 = vld [vmem:[%s17311_s9 + $0x50] sm:$0xff]   ;;  %v13169_v23 = vld [vmem:[%s17311_s9 + $0x60] sm:$0xff]   ;;  %v13170_v30 = vld [vmem:[%s17311_s9 + $0x68] sm:$0xff]  }
 0x96a   : > { %v10020_v37 = vadd.f32 %v12054_v38, %v9953_v15  ;;  %v10078_v48 = vmax.f32 %v10018_v57, 0.0  ;;  %v13171_v28 = vld [vmem:[%s17311_s9 + $0x70] sm:$0xff]  }
 0x96b   : > { %v10079_v46 = vmax.f32 %v10019_v53, 0.0 }
 0x96c   : > { %v10080_v44 = vmax.f32 %v10020_v37, 0.0  ;;  %v9716_v14 = vpop.f32.mrb[88].mxu0 }
 0x96d   : > { %v10126_v26 = vpack.c.bf16 %v10079_v46, %v10077_v60  ;;  %v12055_v50 = vadd.f32 %v9716_v14, %v17134_v25  ;;  %v9718_v42 = vpop.f32.mrb[89].mxu0 }
 0x96e   : > { %v12056_v11 = vadd.f32 %v9718_v42, %v17136_v39  ;;  %v9720_v1 = vpop.f32.mrb[90].mxu0  ;;  %v10127_v6 = vpack.c.bf16 %v10080_v44, %v10078_v48 }
 0x96f   : > { %v10021_v41 = vadd.f32 %v12055_v50, %v9958_v49  ;;  %v12057_v58 = vadd.f32 %v9720_v1, %v17138_v19  ;;  %v9722_v4 = vpop.f32.mrb[91].mxu0  ;;  %v13134_v19 = vld [vmem:[%s17310_s8] ss:$8 sps:$4 sm:$0xff]  }
 0x970   : > { %v10022_v8 = vadd.f32 %v12056_v11, %v9958_v49  ;;  %v12058_v22 = vadd.f32 %v9722_v4, %v17140_v55  ;;  %10250 = vmatprep.subr.bf16.mxu1 %v10127_v6  ;;  %v13139_v55 = vld [vmem:[%s17310_s8 + $0x14] ss:$8 sps:$4 sm:$0xff]  }
 0x971   : > { %v10023_v21 = vadd.f32 %v12057_v58, %v9963_v13  ;;  %10251 = vmatpush1.bf16.msra.mxu1 %v10126_v26  ;;  %v10081_v20 = vmax.f32 %v10021_v41, 0.0 }
 0x972   : > { %v10024_v3 = vadd.f32 %v12058_v22, %v9963_v13  ;;  %v10082_v32 = vmax.f32 %v10022_v8, 0.0 }
 0x973   : > { %v10083_v25 = vmax.f32 %v10023_v21, 0.0 }
 0x974   : > { %v10084_v17 = vmax.f32 %v10024_v3, 0.0 }
 0x975   : > { %v10128_v45 = vpack.c.bf16 %v10083_v25, %v10081_v20 }
 0x976   : > { %v10129_v39 = vpack.c.bf16 %v10084_v17, %v10082_v32 }
 0x978   : > { %10252 = vmatprep.subr.bf16.mxu1 %v10129_v39 }
 0x979   : > { %10253 = vmatpush1.bf16.msra.mxu1 %v10128_v45 }
 0x97a   : > { %10502 = vmatprep.subr.bf16.mxu1 %v17427_v9 }
 0x97c   : > { %10257 = vmatmul.mubr.bf16.vlgmr.msra.gmra.mrb[92].mxu1 %v13134_v19 }
 0x97d   : > { %11614 = vmatprep.mubr.msk.bf16.mxu1 %vm10199_vm10, %v13139_v55  ;;  %10503 = vmatpush1.bf16.msra.mxu1 %v13157_v35 }
 0x97e   : > { %10504 = vmatprep.subr.bf16.mxu1 %v17427_v9 }
 0x981   : > { %10505 = vmatpush1.bf16.msra.mxu1 %v13158_v34 }
 0x982   : > { %10506 = vmatprep.subr.bf16.mxu1 %v17427_v9 }
 0x984   : > { %10267 = vmatmul.mubr.bf16.gmra.mrb[96].mxu1 %v13137_v47 }
 0x985   : > { %11615 = vmatprep.mubr.msk.bf16.mxu1 %vm10199_vm10, %v13142_v12  ;;  %10507 = vmatpush1.bf16.msra.mxu1 %v13159_v0 }
 0x986   : > { %10508 = vmatprep.subr.bf16.mxu1 %v17427_v9 }
 0x989   : > { %10509 = vmatpush1.bf16.msra.mxu1 %v13160_v63 }
 0x98a   : > { %10510 = vmatprep.subr.bf16.mxu1 %v17427_v9 }
 0x98c   : > { %10277 = vmatmul.mubr.bf16.gmra.mrb[100].mxu1 %v13140_v33 }
 0x98d   : > { %11616 = vmatprep.mubr.msk.bf16.mxu1 %vm10199_vm10, %v13145_v27  ;;  %10511 = vmatpush1.bf16.msra.mxu1 %v13161_v31 }
 0x98e   : > { %10512 = vmatprep.subr.bf16.mxu1 %v17427_v9 }
 0x991   : > { %10513 = vmatpush1.bf16.msra.mxu1 %v13162_v54 }
 0x992   : > { %10514 = vmatprep.subr.bf16.mxu1 %v17427_v9 }
 0x994   : > { %10287 = vmatmul.mubr.bf16.gmra.mrb[104].mxu1 %v13143_v40 }
 0x995   : > { %11617 = vmatprep.mubr.msk.bf16.mxu1 %vm10199_vm10, %v13148_v5  ;;  %10515 = vmatpush1.bf16.msra.mxu1 %v13163_v29 }
 0x996   : > { %10516 = vmatprep.subr.bf16.mxu1 %v17427_v9 }
 0x999   : > { %10517 = vmatpush1.bf16.msra.mxu1 %v13164_v43  ;;  %v11621_v43 = vld [vmem:[%s17312_s10] ss:$0 sm:$0xff] }
 0x99a   : > { %10518 = vmatprep.subr.bf16.mxu1 %v17427_v9 }
 0x99c   : > { %10297 = vmatmul.mubr.bf16.gmra.mrb[108].mxu1 %v13146_v7 }
 0x99d   : > { %11618 = vmatprep.mubr.msk.bf16.mxu1 %vm10199_vm10, %v13151_v2  ;;  %10519 = vmatpush1.bf16.msra.mxu1 %v13165_v59 }
 0x99e   : > { %10520 = vmatprep.subr.bf16.mxu1 %v17427_v9 }
 0x9a1   : > { %10521 = vmatpush1.bf16.msra.mxu1 %v13166_v24 }
 0x9a2   : > { %10522 = vmatprep.subr.bf16.mxu1 %v17427_v9 }
 0x9a4   : > { %10307 = vmatmul.mubr.bf16.gmra.mrb[112].mxu1 %v13149_v61 }
 0x9a5   : > { %11619 = vmatprep.mubr.msk.bf16.mxu1 %vm10199_vm10, %v13154_v16  ;;  %10523 = vmatpush1.bf16.msra.mxu1 %v13167_v36 }
 0x9a6   : > { %10524 = vmatprep.subr.bf16.mxu1 %v17427_v9 }
 0x9a9   : > { %10525 = vmatpush1.bf16.msra.mxu1 %v13168_v51 }
 0x9aa   : > { %10526 = vmatprep.subr.bf16.mxu1 %v17427_v9 }
 0x9ac   : > { %10317 = vmatmul.mubr.bf16.gmra.mrb[116].mxu1 %v13152_v18 }
 0x9ad   : > { %11620 = vmatprep.mubr.msk.bf16.mxu1 %vm10199_vm10, %v11612_v52  ;;  %10527 = vmatpush1.bf16.msra.mxu1 %v13169_v23 }
 0x9ae   : > { %10528 = vmatprep.subr.bf16.mxu1 %v17427_v9 }
 0x9b1   : > { %10529 = vmatpush1.bf16.msra.mxu1 %v13170_v30 }
 0x9b2   : > { %10530 = vmatprep.subr.bf16.mxu1 %v17427_v9 }
 0x9b4   : > { %10327 = vmatmul.mubr.bf16.gmra.mrb[120].mxu1 %v11611_v10 }
 0x9b5   : > { %10531 = vmatpush1.bf16.msra.mxu1 %v13171_v28 }
 0xa4f   : > { %v10258_v56 = vpop.f32.mrb[92].mxu1 }
 0xa50   : > { %v10260_v15 = vpop.f32.mrb[93].mxu1 }
 0xa51   : > { %v10262_v57 = vpop.f32.mrb[94].mxu1 }
 0xa52   : > { %v10335_v38 = vpack.c.bf16 %v10262_v57, %v10258_v56  ;;  %v10264_v53 = vpop.f32.mrb[95].mxu1 }
 0xa53   : > { %v10336_v37 = vpack.c.bf16 %v10264_v53, %v10260_v15 }
 0xa55   : > { %11637 = vmatprep.mubr.msk.bf16.mxu1 %vm10199_vm10, %v10336_v37 }
 0xa56   : > { %10535 = vmatmul.mubr.bf16.vlgmr.msra.gmra.mrb[124].mxu1 %v10335_v38 }
 0xa57   : > { %v10268_v60 = vpop.f32.mrb[96].mxu1 }
 0xa58   : > { %v10270_v46 = vpop.f32.mrb[97].mxu1 }
 0xa59   : > { %v10272_v48 = vpop.f32.mrb[98].mxu1 }
 0xa5a   : > { %v10337_v44 = vpack.c.bf16 %v10272_v48, %v10268_v60  ;;  %v10274_v14 = vpop.f32.mrb[99].mxu1 }
 0xa5b   : > { %v10338_v9 = vpack.c.bf16 %v10274_v14, %v10270_v46 }
 0xa5d   : > { %11638 = vmatprep.mubr.msk.bf16.mxu1 %vm10199_vm10, %v10338_v9 }
 0xa5e   : > { %10543 = vmatmul.mubr.bf16.gmra.mrb[128].mxu1 %v10337_v44 }
 0xa5f   : > { %v10278_v26 = vpop.f32.mrb[100].mxu1 }
 0xa60   : > { %v10280_v50 = vpop.f32.mrb[101].mxu1 }
 0xa61   : > { %v10282_v42 = vpop.f32.mrb[102].mxu1 }
 0xa62   : > { %v10339_v49 = vpack.c.bf16 %v10282_v42, %v10278_v26  ;;  %v10284_v11 = vpop.f32.mrb[103].mxu1 }
 0xa63   : > { %v10340_v1 = vpack.c.bf16 %v10284_v11, %v10280_v50 }
 0xa65   : > { %11639 = vmatprep.mubr.msk.bf16.mxu1 %vm10199_vm10, %v10340_v1 }
 0xa66   : > { %10551 = vmatmul.mubr.bf16.gmra.mrb[132].mxu1 %v10339_v49 }
 0xa67   : > { %v10288_v6 = vpop.f32.mrb[104].mxu1 }
 0xa68   : > { %v10290_v41 = vpop.f32.mrb[105].mxu1 }
 0xa69   : > { %v10292_v58 = vpop.f32.mrb[106].mxu1 }
 0xa6a   : > { %v10341_v4 = vpack.c.bf16 %v10292_v58, %v10288_v6  ;;  %v10294_v13 = vpop.f32.mrb[107].mxu1 }
 0xa6b   : > { %v10342_v8 = vpack.c.bf16 %v10294_v13, %v10290_v41 }
 0xa6d   : > { %11640 = vmatprep.mubr.msk.bf16.mxu1 %vm10199_vm10, %v10342_v8 }
 0xa6e   : > { %10559 = vmatmul.mubr.bf16.gmra.mrb[136].mxu1 %v10341_v4 }
 0xa6f   : > { %v10298_v22 = vpop.f32.mrb[108].mxu1 }
 0xa70   : > { %v10300_v21 = vpop.f32.mrb[109].mxu1 }
 0xa71   : > { %v10302_v3 = vpop.f32.mrb[110].mxu1 }
 0xa72   : > { %v10343_v20 = vpack.c.bf16 %v10302_v3, %v10298_v22  ;;  %v10304_v25 = vpop.f32.mrb[111].mxu1 }
 0xa73   : > { %v10344_v32 = vpack.c.bf16 %v10304_v25, %v10300_v21 }
 0xa75   : > { %11641 = vmatprep.mubr.msk.bf16.mxu1 %vm10199_vm10, %v10344_v32 }
 0xa76   : > { %10567 = vmatmul.mubr.bf16.gmra.mrb[140].mxu1 %v10343_v20 }
 0xa77   : > { %v10308_v17 = vpop.f32.mrb[112].mxu1 }
 0xa78   : > { %v10310_v45 = vpop.f32.mrb[113].mxu1 }
 0xa79   : > { %v10312_v39 = vpop.f32.mrb[114].mxu1 }
 0xa7a   : > { %v10345_v19 = vpack.c.bf16 %v10312_v39, %v10308_v17  ;;  %v10314_v55 = vpop.f32.mrb[115].mxu1 }
 0xa7b   : > { %v10346_v35 = vpack.c.bf16 %v10314_v55, %v10310_v45 }
 0xa7d   : > { %11642 = vmatprep.mubr.msk.bf16.mxu1 %vm10199_vm10, %v10346_v35 }
 0xa7e   : > { %10575 = vmatmul.mubr.bf16.gmra.mrb[144].mxu1 %v10345_v19 }
 0xa7f   : > { %v10318_v34 = vpop.f32.mrb[116].mxu1 }
 0xa80   : > { %v10320_v47 = vpop.f32.mrb[117].mxu1 }
 0xa81   : > { %v10322_v12 = vpop.f32.mrb[118].mxu1 }
 0xa82   : > { %v10347_v0 = vpack.c.bf16 %v10322_v12, %v10318_v34  ;;  %v10324_v63 = vpop.f32.mrb[119].mxu1 }
 0xa83   : > { %v10348_v33 = vpack.c.bf16 %v10324_v63, %v10320_v47 }
 0xa85   : > { %11643 = vmatprep.mubr.msk.bf16.mxu1 %vm10199_vm10, %v10348_v33 }
 0xa86   : > { %10583 = vmatmul.mubr.bf16.gmra.mrb[148].mxu1 %v10347_v0 }
 0xa87   : > { %v10328_v27 = vpop.f32.mrb[120].mxu1 }
 0xa88   : > { %v10330_v31 = vpop.f32.mrb[121].mxu1  ;;  %v10349_v29 = vpack.c.bf16 %v10328_v27, %v10328_v27 }
 0xa89   : > { %v10350_v54 = vpack.c.bf16 %v10330_v31, %v10330_v31  ;;  %v10332_v40 = vpop.f32.mrb[122].mxu1 }
 0xa8a   : > { %v10333_v5 = vpop.f32.mrb[123].mxu1 }
 0xa8b   : > { %11644 = vmatprep.mubr.msk.bf16.mxu1 %vm10199_vm10, %v10350_v54 }
 0xa8e   : > { %10591 = vmatmul.mubr.bf16.gmra.mrb[152].mxu1 %v10349_v29 }
 0xb29   : > { %v10536_v7 = vpop.f32.mrb[124].mxu1 }
 0xb2a   : > { %v10537_v2 = vadd.f32 %v11621_v43, %v10536_v7  ;;  %v10538_v59 = vpop.f32.mrb[125].mxu1 }
 0xb2b   : > { %v10539_v24 = vpop.f32.mrb[126].mxu1 }
 0xb2c   : > { %10598 = vst [vmem:[%s17282_s25] sm:$0xff] %v10537_v2  ;;  %v10540_v61 = vadd.f32 %v11621_v43, %v10539_v24  ;;  %v10541_v16 = vpop.f32.mrb[127].mxu1 }
 0xb2e   : > { %10599 = vst [vmem:[%s17282_s25 + $0x8] sm:$0xff] %v10540_v61 }
 0xb31   : > { %v10544_v36 = vpop.f32.mrb[128].mxu1 }
 0xb32   : > { %v10545_v51 = vadd.f32 %v11621_v43, %v10544_v36  ;;  %v10546_v62 = vpop.f32.mrb[129].mxu1 }
 0xb33   : > { %v10547_v18 = vpop.f32.mrb[130].mxu1 }
 0xb34   : > { %10600 = vst [vmem:[%s17282_s25 + $0x10] sm:$0xff] %v10545_v51  ;;  %v10548_v52 = vadd.f32 %v11621_v43, %v10547_v18  ;;  %v10549_v23 = vpop.f32.mrb[131].mxu1 }
 0xb36   : > { %10601 = vst [vmem:[%s17282_s25 + $0x18] sm:$0xff] %v10548_v52 }
 0xb39   : > { %v10552_v10 = vpop.f32.mrb[132].mxu1 }
 0xb3a   : > { %v10553_v30 = vadd.f32 %v11621_v43, %v10552_v10  ;;  %v10554_v28 = vpop.f32.mrb[133].mxu1 }
 0xb3b   : > { %v10555_v56 = vpop.f32.mrb[134].mxu1 }
 0xb3c   : > { %10602 = vst [vmem:[%s17282_s25 + $0x20] sm:$0xff] %v10553_v30  ;;  %v10556_v15 = vadd.f32 %v11621_v43, %v10555_v56  ;;  %v10557_v57 = vpop.f32.mrb[135].mxu1 }
 0xb3e   : > { %10603 = vst [vmem:[%s17282_s25 + $0x28] sm:$0xff] %v10556_v15 }
 0xb41   : > { %v10560_v38 = vpop.f32.mrb[136].mxu1 }
 0xb42   : > { %v10561_v53 = vadd.f32 %v11621_v43, %v10560_v38  ;;  %v10562_v37 = vpop.f32.mrb[137].mxu1 }
 0xb43   : > { %v10563_v60 = vpop.f32.mrb[138].mxu1 }
 0xb44   : > { %10604 = vst [vmem:[%s17282_s25 + $0x30] sm:$0xff] %v10561_v53  ;;  %v10564_v46 = vadd.f32 %v11621_v43, %v10563_v60  ;;  %v10565_v48 = vpop.f32.mrb[139].mxu1 }
 0xb46   : > { %10605 = vst [vmem:[%s17282_s25 + $0x38] sm:$0xff] %v10564_v46 }
 0xb49   : > { %v10568_v44 = vpop.f32.mrb[140].mxu1 }
 0xb4a   : > { %v10569_v14 = vadd.f32 %v11621_v43, %v10568_v44  ;;  %v10570_v9 = vpop.f32.mrb[141].mxu1 }
 0xb4b   : > { %v10571_v26 = vpop.f32.mrb[142].mxu1 }
 0xb4c   : > { %10606 = vst [vmem:[%s17282_s25 + $0x40] sm:$0xff] %v10569_v14  ;;  %v10572_v50 = vadd.f32 %v11621_v43, %v10571_v26  ;;  %v10573_v42 = vpop.f32.mrb[143].mxu1 }
 0xb4e   : > { %10607 = vst [vmem:[%s17282_s25 + $0x48] sm:$0xff] %v10572_v50 }
 0xb51   : > { %v10576_v49 = vpop.f32.mrb[144].mxu1 }
 0xb52   : > { %v10577_v11 = vadd.f32 %v11621_v43, %v10576_v49  ;;  %v10578_v1 = vpop.f32.mrb[145].mxu1 }
 0xb53   : > { %v10579_v6 = vpop.f32.mrb[146].mxu1 }
 0xb54   : > { %10608 = vst [vmem:[%s17282_s25 + $0x50] sm:$0xff] %v10577_v11  ;;  %v10580_v41 = vadd.f32 %v11621_v43, %v10579_v6  ;;  %v10581_v58 = vpop.f32.mrb[147].mxu1 }
 0xb56   : > { %10609 = vst [vmem:[%s17282_s25 + $0x58] sm:$0xff] %v10580_v41 }
 0xb59   : > { %v10584_v4 = vpop.f32.mrb[148].mxu1 }
 0xb5a   : > { %v10585_v13 = vadd.f32 %v11621_v43, %v10584_v4  ;;  %v10586_v8 = vpop.f32.mrb[149].mxu1 }
 0xb5b   : > { %v10587_v22 = vpop.f32.mrb[150].mxu1 }
 0xb5c   : > { %10610 = vst [vmem:[%s17282_s25 + $0x60] sm:$0xff] %v10585_v13  ;;  %v10588_v21 = vadd.f32 %v11621_v43, %v10587_v22  ;;  %v10589_v3 = vpop.f32.mrb[151].mxu1 }
 0xb5e   : > { %10611 = vst [vmem:[%s17282_s25 + $0x68] sm:$0xff] %v10588_v21 }
 0xb61   : > { %v10592_v20 = vpop.f32.mrb[152].mxu1 }
 0xb62   : > { %v10593_v25 = vadd.f32 %v11621_v43, %v10592_v20  ;;  %v10594_v32 = vpop.f32.mrb[153].mxu1 }
 0xb63   : > { %v10595_v17 = vpop.f32.mrb[154].mxu1 }
 0xb64   : > { %10612 = vst [vmem:[%s17282_s25 + $0x70] sm:$0xff] %v10593_v25  ;;  %v10596_v45 = vpop.f32.mrb[155].mxu1 }
 0xb65 PF: > { %s21_s17 = sadd.s32 1, %s13199_s17  }
 0xb66   : > { %p18_p4 = scmp.ge.s32.totalorder %s21_s17, 4  }
 0xb68   :  { %20 = sbr.rel (!%p18_p4) target bundleno = 1 (0x1), region = 102 }

</bundles_post_ra>
